<compile_context>
chip_gen: v7x
topology: tpu7x:2x2x1
jax: 0.10.0
libtpu: 0.0.40
codegen_flags: <defaults>
</compile_context>

<pallas_src>
import functools

import jax
import jax.numpy as jnp
from jax import lax
from jax.experimental import pallas as pl
from jax.experimental.pallas import tpu as pltpu


def _round_up(x, m):
    return (x + m - 1) // m * m


# ---------------------------------------------------------------------------
# ConvTranspose2d(k=2, s=2) core: (M, K) @ (K, 4*Cout) + bias, K collapsed.
# ---------------------------------------------------------------------------
def _matmul_bias_kernel(a_ref, b_ref, bias_ref, o_ref):
    acc = jnp.dot(a_ref[...], b_ref[...], preferred_element_type=jnp.float32)
    o_ref[...] = (acc + bias_ref[...]).astype(o_ref.dtype)


def pallas_matmul_bias(a, b, bias, *, out_dtype=jnp.bfloat16):
    M, K = a.shape
    K2, Nc = b.shape
    assert K == K2 and bias.shape == (Nc,)
    Mp = _round_up(M, 128)
    Kp = _round_up(K, 128)
    Np = _round_up(Nc, 128)
    # TODO(synk): add a K grid axis + f32 accumulator scratch if Kp ever
    # exceeds ~2048; for this module K == in_channel and always fits one step.
    tn = 256 if Np % 256 == 0 else 128
    if Mp >= 512 and Mp % 256 == 0:
        tm = 256
    elif Mp >= 256:
        tm = 128
    else:
        tm = 64                     # guarantees >= 2 parallel M tiles (v7x 2 TCs)

    a_p = a.astype(jnp.bfloat16)
    if (Mp, Kp) != (M, K):
        a_p = jnp.pad(a_p, ((0, Mp - M), (0, Kp - K)))
    b_p = b.astype(jnp.bfloat16)
    if (Kp, Np) != (K, Nc):
        b_p = jnp.pad(b_p, ((0, Kp - K), (0, Np - Nc)))
    bias_p = bias.astype(jnp.float32)
    if Np != Nc:
        bias_p = jnp.pad(bias_p, (0, Np - Nc))
    bias_p = bias_p.reshape(1, Np)

    out = pl.pallas_call(
        _matmul_bias_kernel,
        out_shape=jax.ShapeDtypeStruct((Mp, Np), out_dtype),
        grid=(Mp // tm, Np // tn),
        in_specs=[
            pl.BlockSpec((tm, Kp), lambda m, n: (m, 0)),
            pl.BlockSpec((Kp, tn), lambda m, n: (0, n)),
            pl.BlockSpec((1, tn), lambda m, n: (0, n)),
        ],
        out_specs=pl.BlockSpec((tm, tn), lambda m, n: (m, n)),
        compiler_params=pltpu.CompilerParams(
            dimension_semantics=("parallel", "parallel")),
    )(a_p, b_p, bias_p)
    return out[:M, :Nc]


# ---------------------------------------------------------------------------
# Shared helpers for the implicit-im2col 3x3 conv kernels.
# The padded image for one batch element lives as a flat (rows, Cin) slab where
# row = Y*(W+2) + X.  Output "rows" o = y*(W+2) + x include 2 garbage columns
# per image row (x >= W); they are masked out of the BN stats and zeroed before
# being re-used as the next conv's padded input.
# ---------------------------------------------------------------------------
def _tap_matmul(read, w_ref, *, Wp, HWp_r, Cin, Coutp):
    acc = jnp.zeros((HWp_r, Coutp), jnp.float32)
    for ky in range(3):
        for kx in range(3):
            t = ky * 3 + kx
            a = read(ky * Wp + kx)                       # (HWp_r, Cin) bf16
            w = w_ref[t * Cin:(t + 1) * Cin, :]          # (Cin, Coutp) bf16
            acc = acc + jnp.dot(a, w, preferred_element_type=jnp.float32)
    return acc


def _valid_mask(shape, *, W, Wp, HWp):
    rows = lax.broadcasted_iota(jnp.int32, shape, 0)
    return jnp.logical_and(rows % Wp < W, rows < HWp)


def _write_stats(st_ref, acc, mask_f32):
    am = acc * mask_f32
    s = jnp.sum(am, axis=0, keepdims=True)               # (1, Coutp)
    ss = jnp.sum(am * acc, axis=0, keepdims=True)        # (1, Coutp)
    row = jnp.concatenate([s, ss], axis=-1)              # (1, 2*Coutp)
    st_ref[...] = jnp.broadcast_to(row[None], st_ref.shape)


# ---------------------------------------------------------------------------
# Conv kernel #1: padded slab comes straight from HBM (already halo-padded).
# ---------------------------------------------------------------------------
def _conv1_kernel(x_ref, w_ref, y_ref, st_ref, *, W, Wp, HWp, HWp_r, Cin, Coutp):
    read = lambda s: x_ref[0, s:s + HWp_r, :]
    acc = _tap_matmul(read, w_ref, Wp=Wp, HWp_r=HWp_r, Cin=Cin, Coutp=Coutp)
    mask = _valid_mask((HWp_r, Coutp), W=W, Wp=Wp, HWp=HWp).astype(jnp.float32)
    _write_stats(st_ref, acc, mask)
    y_ref[...] = acc[None].astype(y_ref.dtype)


def conv3x3_stats(xflat, w_flat, *, H, W, Coutp):
    N, R1, Cin = xflat.shape
    Wp = W + 2
    HWp = H * Wp
    HWp_r = _round_up(HWp, 8)
    assert R1 >= HWp_r + 2 * Wp + 2
    assert w_flat.shape == (9 * Cin, Coutp)
    kernel = functools.partial(_conv1_kernel, W=W, Wp=Wp, HWp=HWp,
                               HWp_r=HWp_r, Cin=Cin, Coutp=Coutp)
    return pl.pallas_call(
        kernel,
        out_shape=(jax.ShapeDtypeStruct((N, HWp_r, Coutp), jnp.bfloat16),
                   jax.ShapeDtypeStruct((N, 8, 2 * Coutp), jnp.float32)),
        grid=(N,),
        in_specs=[pl.BlockSpec((1, R1, Cin), lambda n: (n, 0, 0)),
                  pl.BlockSpec((9 * Cin, Coutp), lambda n: (0, 0))],
        out_specs=(pl.BlockSpec((1, HWp_r, Coutp), lambda n: (n, 0, 0)),
                   pl.BlockSpec((1, 8, 2 * Coutp), lambda n: (n, 0, 0))),
        compiler_params=pltpu.CompilerParams(dimension_semantics=("parallel",)),
    )(xflat, w_flat)


# ---------------------------------------------------------------------------
# Conv kernel #2: previous conv's raw output is loaded, BN affine + ReLU + mask
# are fused into the load, the halo-padded slab is rebuilt in a VMEM scratch
# with a single contiguous write, then the 9-tap matmul runs from the scratch.
# ---------------------------------------------------------------------------
def _conv2_kernel(y1_ref, sc_ref, sh_ref, w_ref, y_ref, st_ref, xpad_ref, *,
                  W, Wp, HWp, HWp_r, Cin, Coutp):
    t = y1_ref[0].astype(jnp.float32) * sc_ref[...] + sh_ref[...]
    t = jnp.maximum(t, 0.0)
    mask_in = _valid_mask((HWp_r, Cin), W=W, Wp=Wp, HWp=HWp)
    t = jnp.where(mask_in, t, 0.0)
    xpad_ref[...] = jnp.zeros_like(xpad_ref)
    xpad_ref[Wp + 1:Wp + 1 + HWp_r, :] = t.astype(xpad_ref.dtype)

    read = lambda s: xpad_ref[s:s + HWp_r, :]
    acc = _tap_matmul(read, w_ref, Wp=Wp, HWp_r=HWp_r, Cin=Cin, Coutp=Coutp)
    mask_o = _valid_mask((HWp_r, Coutp), W=W, Wp=Wp, HWp=HWp).astype(jnp.float32)
    _write_stats(st_ref, acc, mask_o)
    y_ref[...] = acc[None].astype(y_ref.dtype)


def conv3x3_fused_stats(y_prev, scale, shift, w_flat, *, H, W, Coutp):
    N, HWp_r, Cin = y_prev.shape
    Wp = W + 2
    HWp = H * Wp
    R = _round_up(HWp_r + 2 * Wp + 2, 8)
    assert w_flat.shape == (9 * Cin, Coutp)
    kernel = functools.partial(_conv2_kernel, W=W, Wp=Wp, HWp=HWp,
                               HWp_r=HWp_r, Cin=Cin, Coutp=Coutp)
    return pl.pallas_call(
        kernel,
        out_shape=(jax.ShapeDtypeStruct((N, HWp_r, Coutp), jnp.float32),
                   jax.ShapeDtypeStruct((N, 8, 2 * Coutp), jnp.float32)),
        grid=(N,),
        in_specs=[pl.BlockSpec((1, HWp_r, Cin), lambda n: (n, 0, 0)),
                  pl.BlockSpec((1, Cin), lambda n: (0, 0)),
                  pl.BlockSpec((1, Cin), lambda n: (0, 0)),
                  pl.BlockSpec((9 * Cin, Coutp), lambda n: (0, 0))],
        out_specs=(pl.BlockSpec((1, HWp_r, Coutp), lambda n: (n, 0, 0)),
                   pl.BlockSpec((1, 8, 2 * Coutp), lambda n: (n, 0, 0))),
        scratch_shapes=[pltpu.VMEM((R, Cin), jnp.bfloat16)],
        compiler_params=pltpu.CompilerParams(dimension_semantics=("parallel",)),
    )(y_prev, scale, shift, w_flat)


# ---------------------------------------------------------------------------
# BN scale/shift from kernel-emitted partials (tiny per-channel vector math).
# ---------------------------------------------------------------------------
def bn_scale_shift(stats, gamma_p, beta_p, count, eps=1e-5):
    C = gamma_p.shape[0]
    r = jnp.sum(stats[:, 0, :], axis=0)                  # (2C,)
    s, ss = r[:C], r[C:]
    mean = s / count
    # NOTE: one-pass E[x^2]-E[x]^2 in f32; can drift vs torch for huge means.
    var = jnp.maximum(ss / count - mean * mean, 0.0)
    inv = lax.rsqrt(var + eps)
    scale = gamma_p * inv
    shift = beta_p - mean * scale
    return scale.reshape(1, C), shift.reshape(1, C)


# ---------------------------------------------------------------------------
# Final BN affine + ReLU fused with the NHWC -> NCHW output transform.
# ---------------------------------------------------------------------------
def _bn_relu_nchw_kernel(y_ref, sc_ref, sh_ref, o_ref, *, H, W, Wp, Cout):
    t = jnp.maximum(y_ref[0] * sc_ref[...] + sh_ref[...], 0.0)   # (HWp_r, Coutp)
    rows = [t[y * Wp:y * Wp + W, :] for y in range(H)]           # drop halo cols
    tv = jnp.concatenate(rows, axis=0)                           # (H*W, Coutp)
    o_ref[...] = tv.T[None, :Cout, :]                            # (1, Cout, H*W)


def bn_relu_to_nchw(y, scale, shift, *, H, W, Cout):
    N, HWp_r, Coutp = y.shape
    Wp = W + 2
    kernel = functools.partial(_bn_relu_nchw_kernel, H=H, W=W, Wp=Wp, Cout=Cout)
    return pl.pallas_call(
        kernel,
        out_shape=jax.ShapeDtypeStruct((N, Cout, H * W), jnp.float32),
        grid=(N,),
        in_specs=[pl.BlockSpec((1, HWp_r, Coutp), lambda n: (n, 0, 0)),
                  pl.BlockSpec((1, Coutp), lambda n: (0, 0)),
                  pl.BlockSpec((1, Coutp), lambda n: (0, 0))],
        out_specs=pl.BlockSpec((1, Cout, H * W), lambda n: (n, 0, 0)),
        compiler_params=pltpu.CompilerParams(dimension_semantics=("parallel",)),
    )(y, scale, shift)


# ---------------------------------------------------------------------------
# One-time parameter preparation (reshape / pad / cast hoisted out of forward).
# ---------------------------------------------------------------------------
def prepare_params(raw, in_channel, out_channel):
    half = in_channel // 2
    Cin_p = _round_up(in_channel, 128)
    Coutp = _round_up(out_channel, 128)
    Nt = 4 * half
    Ntp = _round_up(Nt, 128)

    wt2 = raw['wt'].reshape(in_channel, Nt)
    wt2 = jnp.pad(wt2, ((0, 0), (0, Ntp - Nt))).astype(jnp.bfloat16)
    bt4 = jnp.pad(jnp.tile(raw['bt'], 4), (0, Ntp - Nt)).astype(jnp.float32)

    w1 = jnp.pad(raw['w1'], ((0, 0), (0, 0), (0, Cin_p - in_channel),
                             (0, Coutp - out_channel)))
    w1f = w1.reshape(9 * Cin_p, Coutp).astype(jnp.bfloat16)
    w2 = jnp.pad(raw['w2'], ((0, 0), (0, 0), (0, Coutp - out_channel),
                             (0, Coutp - out_channel)))
    w2f = w2.reshape(9 * Coutp, Coutp).astype(jnp.bfloat16)

    pad_c = (0, Coutp - out_channel)
    return dict(
        wt2=wt2, bt4=bt4, w1f=w1f, w2f=w2f,
        g1p=jnp.pad(raw['g1'], pad_c).astype(jnp.float32),
        b1p=jnp.pad(raw['b1'], pad_c).astype(jnp.float32),
        g2p=jnp.pad(raw['g2'], pad_c).astype(jnp.float32),
        b2p=jnp.pad(raw['b2'], pad_c).astype(jnp.float32),
    )


# ---------------------------------------------------------------------------
# Up.forward: upsample -> pad -> cat([x2, x1]) -> Conv+BN+ReLU x2 (batch stats).
# ---------------------------------------------------------------------------
def up_forward(prep, x1_nchw, x2_nchw, *, out_channel):
    N, C1, H1, W1 = x1_nchw.shape
    _, half, H2, W2 = x2_nchw.shape
    assert C1 == 2 * half
    Cin = C1
    Cin_p = prep['w1f'].shape[0] // 9
    Coutp = prep['w1f'].shape[1]

    # --- ConvTranspose2d(k=2, s=2): fused matmul+bias, then pixel shuffle ----
    a = jnp.transpose(x1_nchw, (0, 2, 3, 1)).reshape(N * H1 * W1, Cin)
    up = pallas_matmul_bias(a, prep['wt2'], prep['bt4'], out_dtype=jnp.bfloat16)
    up = up[:, :4 * half]
    up = up.reshape(N, H1, W1, 2, 2, half).transpose(0, 1, 3, 2, 4, 5)
    up = up.reshape(N, 2 * H1, 2 * W1, half)
    # TODO(synk): fold this pixel shuffle + the pads/concat below into conv1's
    # in-kernel slab construction to remove the last few small XLA layout ops.

    # --- diff-pad + concat + conv halo pad, flattened for implicit im2col ----
    Hp, Wp = H2 + 2, W2 + 2
    dY, dX = H2 - 2 * H1, W2 - 2 * W1
    x2 = jnp.transpose(x2_nchw, (0, 2, 3, 1)).astype(jnp.bfloat16)
    x2p = jnp.pad(x2, ((0, 0), (1, 1), (1, 1), (0, 0)))
    upp = jnp.pad(up, ((0, 0), (1 + dY // 2, 1 + dY - dY // 2),
                       (1 + dX // 2, 1 + dX - dX // 2), (0, 0)))
    parts = [x2p, upp]
    if Cin_p > Cin:
        parts.append(jnp.zeros((N, Hp, Wp, Cin_p - Cin), jnp.bfloat16))
    slab = jnp.concatenate(parts, axis=-1).reshape(N, Hp * Wp, Cin_p)
    HWp_r = _round_up(H2 * Wp, 8)
    R = _round_up(HWp_r + 2 * Wp + 2, 8)
    slab = jnp.pad(slab, ((0, 0), (0, R - Hp * Wp), (0, 0)))
    count = N * H2 * W2

    # --- conv1 (implicit im2col) + BN1 batch-stat partials --------------------
    y1, st1 = conv3x3_stats(slab, prep['w1f'], H=H2, W=W2, Coutp=Coutp)
    sc1, sh1 = bn_scale_shift(st1, prep['g1p'], prep['b1p'], count)

    # --- conv2 with BN1 affine + ReLU fused into its input load --------------
    y2, st2 = conv3x3_fused_stats(y1, sc1, sh1, prep['w2f'],
                                  H=H2, W=W2, Coutp=Coutp)
    sc2, sh2 = bn_scale_shift(st2, prep['g2p'], prep['b2p'], count)

    # --- BN2 affine + ReLU fused with the NHWC->NCHW output transform --------
    out = bn_relu_to_nchw(y2, sc2, sh2, H=H2, W=W2, Cout=out_channel)
    return out.reshape(N, out_channel, H2, W2)


# ---------------------------------------------------------------------------
# Deterministic synthetic parameters (BN gamma=1, beta=0 like PyTorch defaults).
# ---------------------------------------------------------------------------
def init_up_params(key, in_channel, out_channel):
    k0, k1, k2, k3 = jax.random.split(key, 4)
    half = in_channel // 2
    return dict(
        wt=(jax.random.normal(k0, (in_channel, 2, 2, half), jnp.float32)
            * (1.0 / (in_channel * 4)) ** 0.5),
        bt=jax.random.normal(k3, (half,), jnp.float32) * 0.01,
        w1=(jax.random.normal(k1, (3, 3, in_channel, out_channel), jnp.float32)
            * (2.0 / (9 * in_channel)) ** 0.5),
        g1=jnp.ones((out_channel,), jnp.float32),
        b1=jnp.zeros((out_channel,), jnp.float32),
        w2=(jax.random.normal(k2, (3, 3, out_channel, out_channel), jnp.float32)
            * (2.0 / (9 * out_channel)) ** 0.5),
        g2=jnp.ones((out_channel,), jnp.float32),
        b2=jnp.zeros((out_channel,), jnp.float32),
    )


if __name__ == "__main__":
    key = jax.random.PRNGKey(0)
    kp, kx1, kx2 = jax.random.split(key, 3)
    in_channel, out_channel = 128, 64
    raw = init_up_params(kp, in_channel, out_channel)
    prep = prepare_params(raw, in_channel, out_channel)      # hoisted, once
    # Up(in=128, out=64): x1 has 128 channels at 8x8, x2 has 64 channels at 16x16.
    x1 = jax.random.normal(kx1, (2, in_channel, 8, 8), jnp.float32)
    x2 = jax.random.normal(kx2, (2, in_channel // 2, 16, 16), jnp.float32)

    fwd = jax.jit(functools.partial(up_forward, out_channel=out_channel))
    out = jax.block_until_ready(fwd(prep, x1, x2))
    assert out.shape == (2, out_channel, 16, 16), out.shape
    assert bool(jnp.all(jnp.isfinite(out)))
    print("KERNEL_OK")
</pallas_src>

<mosaic_0001>
module attributes {stable_mosaic.version = 11 : i64} {
  func.func @_matmul_bias_kernel(%arg0: i32, %arg1: i32, %arg2: memref<64x128xbf16, #tpu.memory_space<vmem>>, %arg3: memref<128x256xbf16, #tpu.memory_space<vmem>>, %arg4: memref<1x256xf32, #tpu.memory_space<vmem>>, %arg5: memref<64x256xbf16, #tpu.memory_space<vmem>>) attributes {dimension_semantics = [#tpu.dimension_semantics<parallel>, #tpu.dimension_semantics<parallel>], iteration_bounds = array<i64: 2, 1>, scalar_prefetch = 0 : i64, scratch_operands = 0 : i64, tpu.core_type = #tpu.core_type<tc>, window_params = [{transform_indices = @transform_0, window_bounds = array<i64: 64, 128>}, {transform_indices = @transform_1, window_bounds = array<i64: 128, 256>}, {transform_indices = @transform_2, window_bounds = array<i64: 1, 256>}, {transform_indices = @transform_3, window_bounds = array<i64: 64, 256>}]} {
    %c0 = arith.constant 0 : index
    %c0_0 = arith.constant 0 : index
    %0 = vector.load %arg2[%c0, %c0_0] : memref<64x128xbf16, #tpu.memory_space<vmem>>, vector<64x128xbf16>
    %c0_1 = arith.constant 0 : index
    %c0_2 = arith.constant 0 : index
    %1 = vector.load %arg3[%c0_1, %c0_2] : memref<128x256xbf16, #tpu.memory_space<vmem>>, vector<128x256xbf16>
    %cst = arith.constant dense<0.000000e+00> : vector<64x256xf32>
    %2 = tpu.matmul %0, %1, %cst {dimension_numbers = #tpu.dot_dimension_numbers<[1], [0], [0], [1], [0, 0, 1, 1], [], []>} : vector<64x128xbf16>, vector<128x256xbf16>, vector<64x256xf32> -> vector<64x256xf32>
    %c0_3 = arith.constant 0 : index
    %c0_4 = arith.constant 0 : index
    %3 = vector.load %arg4[%c0_3, %c0_4] : memref<1x256xf32, #tpu.memory_space<vmem>>, vector<1x256xf32>
    %4 = vector.broadcast %3 : vector<1x256xf32> to vector<64x256xf32>
    %5 = arith.addf %2, %4 : vector<64x256xf32>
    %6 = arith.truncf %5 : vector<64x256xf32> to vector<64x256xbf16>
    %c0_5 = arith.constant 0 : index
    %c0_6 = arith.constant 0 : index
    %7 = vector.load %arg5[%c0_5, %c0_6] : memref<64x256xbf16, #tpu.memory_space<vmem>>, vector<64x256xbf16>
    tpu.vector_store %arg5[%c0_5, %c0_6], %6 {strides = array<i32>} : memref<64x256xbf16, #tpu.memory_space<vmem>>, vector<64x256xbf16>,
    return
  }
  func.func @transform_0(%arg0: i32, %arg1: i32) -> (i32, i32) {
    %c0_i32 = arith.constant 0 : i32
    %c0_i32_0 = arith.constant 0 : i32
    return %arg0, %c0_i32 : i32, i32
  }
  func.func @transform_1(%arg0: i32, %arg1: i32) -> (i32, i32) {
    %c0_i32 = arith.constant 0 : i32
    %c0_i32_0 = arith.constant 0 : i32
    return %c0_i32, %arg1 : i32, i32
  }
  func.func @transform_2(%arg0: i32, %arg1: i32) -> (i32, i32) {
    %c0_i32 = arith.constant 0 : i32
    %c0_i32_0 = arith.constant 0 : i32
    return %c0_i32, %arg1 : i32, i32
  }
  func.func @transform_3(%arg0: i32, %arg1: i32) -> (i32, i32) {
    %c0_i32 = arith.constant 0 : i32
    return %arg0, %arg1 : i32, i32
  }
}

module attributes {stable_mosaic.version = 11 : i64} {
  func.func @_conv1_kernel(%arg0: i32, %arg1: memref<1x328x128xbf16, #tpu.memory_space<vmem>>, %arg2: memref<1152x128xbf16, #tpu.memory_space<vmem>>, %arg3: memref<1x288x128xbf16, #tpu.memory_space<vmem>>, %arg4: memref<1x8x256xf32, #tpu.memory_space<vmem>>) attributes {dimension_semantics = [#tpu.dimension_semantics<parallel>], iteration_bounds = array<i64: 2>, scalar_prefetch = 0 : i64, scratch_operands = 0 : i64, tpu.core_type = #tpu.core_type<tc>, window_params = [{transform_indices = @transform_0, window_bounds = array<i64: 1, 328, 128>}, {pipeline_mode = #tpu.pipeline_mode<synchronous>, transform_indices = @transform_1, window_bounds = array<i64: 1152, 128>}, {transform_indices = @transform_2, window_bounds = array<i64: 1, 288, 128>}, {transform_indices = @transform_3, window_bounds = array<i64: 1, 8, 256>}]} {
    %cst = arith.constant 0.000000e+00 : f32
    %0 = vector.broadcast %cst : f32 to vector<288x128xf32>
    %c0 = arith.constant 0 : index
    %c0_0 = arith.constant 0 : index
    %c0_1 = arith.constant 0 : index
    %1 = vector.load %arg1[%c0, %c0_0, %c0_1] : memref<1x328x128xbf16, #tpu.memory_space<vmem>>, vector<1x288x128xbf16>
    %2 = vector.shape_cast %1 : vector<1x288x128xbf16> to vector<288x128xbf16>
    %c0_2 = arith.constant 0 : index
    %c0_3 = arith.constant 0 : index
    %3 = vector.load %arg2[%c0_2, %c0_3] : memref<1152x128xbf16, #tpu.memory_space<vmem>>, vector<128x128xbf16>
    %cst_4 = arith.constant dense<0.000000e+00> : vector<288x128xf32>
    %4 = tpu.matmul %2, %3, %cst_4 {dimension_numbers = #tpu.dot_dimension_numbers<[1], [0], [0], [1], [0, 0, 1, 1], [], []>} : vector<288x128xbf16>, vector<128x128xbf16>, vector<288x128xf32> -> vector<288x128xf32>
    %5 = arith.addf %0, %4 : vector<288x128xf32>
    %c0_5 = arith.constant 0 : index
    %c1 = arith.constant 1 : index
    %c0_6 = arith.constant 0 : index
    %6 = vector.load %arg1[%c0_5, %c1, %c0_6] : memref<1x328x128xbf16, #tpu.memory_space<vmem>>, vector<1x288x128xbf16>
    %7 = vector.shape_cast %6 : vector<1x288x128xbf16> to vector<288x128xbf16>
    %c128 = arith.constant 128 : index
    %c0_7 = arith.constant 0 : index
    %8 = vector.load %arg2[%c128, %c0_7] : memref<1152x128xbf16, #tpu.memory_space<vmem>>, vector<128x128xbf16>
    %cst_8 = arith.constant dense<0.000000e+00> : vector<288x128xf32>
    %9 = tpu.matmul %7, %8, %cst_8 {dimension_numbers = #tpu.dot_dimension_numbers<[1], [0], [0], [1], [0, 0, 1, 1], [], []>} : vector<288x128xbf16>, vector<128x128xbf16>, vector<288x128xf32> -> vector<288x128xf32>
    %10 = arith.addf %5, %9 : vector<288x128xf32>
    %c0_9 = arith.constant 0 : index
    %c2 = arith.constant 2 : index
    %c0_10 = arith.constant 0 : index
    %11 = vector.load %arg1[%c0_9, %c2, %c0_10] : memref<1x328x128xbf16, #tpu.memory_space<vmem>>, vector<1x288x128xbf16>
    %12 = vector.shape_cast %11 : vector<1x288x128xbf16> to vector<288x128xbf16>
    %c256 = arith.constant 256 : index
    %c0_11 = arith.constant 0 : index
    %13 = vector.load %arg2[%c256, %c0_11] : memref<1152x128xbf16, #tpu.memory_space<vmem>>, vector<128x128xbf16>
    %cst_12 = arith.constant dense<0.000000e+00> : vector<288x128xf32>
    %14 = tpu.matmul %12, %13, %cst_12 {dimension_numbers = #tpu.dot_dimension_numbers<[1], [0], [0], [1], [0, 0, 1, 1], [], []>} : vector<288x128xbf16>, vector<128x128xbf16>, vector<288x128xf32> -> vector<288x128xf32>
    %15 = arith.addf %10, %14 : vector<288x128xf32>
    %c0_13 = arith.constant 0 : index
    %c18 = arith.constant 18 : index
    %c0_14 = arith.constant 0 : index
    %16 = vector.load %arg1[%c0_13, %c18, %c0_14] : memref<1x328x128xbf16, #tpu.memory_space<vmem>>, vector<1x288x128xbf16>
    %17 = vector.shape_cast %16 : vector<1x288x128xbf16> to vector<288x128xbf16>
    %c384 = arith.constant 384 : index
    %c0_15 = arith.constant 0 : index
    %18 = vector.load %arg2[%c384, %c0_15] : memref<1152x128xbf16, #tpu.memory_space<vmem>>, vector<128x128xbf16>
    %cst_16 = arith.constant dense<0.000000e+00> : vector<288x128xf32>
    %19 = tpu.matmul %17, %18, %cst_16 {dimension_numbers = #tpu.dot_dimension_numbers<[1], [0], [0], [1], [0, 0, 1, 1], [], []>} : vector<288x128xbf16>, vector<128x128xbf16>, vector<288x128xf32> -> vector<288x128xf32>
    %20 = arith.addf %15, %19 : vector<288x128xf32>
    %c0_17 = arith.constant 0 : index
    %c19 = arith.constant 19 : index
    %c0_18 = arith.constant 0 : index
    %21 = vector.load %arg1[%c0_17, %c19, %c0_18] : memref<1x328x128xbf16, #tpu.memory_space<vmem>>, vector<1x288x128xbf16>
    %22 = vector.shape_cast %21 : vector<1x288x128xbf16> to vector<288x128xbf16>
    %c512 = arith.constant 512 : index
    %c0_19 = arith.constant 0 : index
    %23 = vector.load %arg2[%c512, %c0_19] : memref<1152x128xbf16, #tpu.memory_space<vmem>>, vector<128x128xbf16>
    %cst_20 = arith.constant dense<0.000000e+00> : vector<288x128xf32>
    %24 = tpu.matmul %22, %23, %cst_20 {dimension_numbers = #tpu.dot_dimension_numbers<[1], [0], [0], [1], [0, 0, 1, 1], [], []>} : vector<288x128xbf16>, vector<128x128xbf16>, vector<288x128xf32> -> vector<288x128xf32>
    %25 = arith.addf %20, %24 : vector<288x128xf32>
    %c0_21 = arith.constant 0 : index
    %c20 = arith.constant 20 : index
    %c0_22 = arith.constant 0 : index
    %26 = vector.load %arg1[%c0_21, %c20, %c0_22] : memref<1x328x128xbf16, #tpu.memory_space<vmem>>, vector<1x288x128xbf16>
    %27 = vector.shape_cast %26 : vector<1x288x128xbf16> to vector<288x128xbf16>
    %c640 = arith.constant 640 : index
    %c0_23 = arith.constant 0 : index
    %28 = vector.load %arg2[%c640, %c0_23] : memref<1152x128xbf16, #tpu.memory_space<vmem>>, vector<128x128xbf16>
    %cst_24 = arith.constant dense<0.000000e+00> : vector<288x128xf32>
    %29 = tpu.matmul %27, %28, %cst_24 {dimension_numbers = #tpu.dot_dimension_numbers<[1], [0], [0], [1], [0, 0, 1, 1], [], []>} : vector<288x128xbf16>, vector<128x128xbf16>, vector<288x128xf32> -> vector<288x128xf32>
    %30 = arith.addf %25, %29 : vector<288x128xf32>
    %c0_25 = arith.constant 0 : index
    %c36 = arith.constant 36 : index
    %c0_26 = arith.constant 0 : index
    %31 = vector.load %arg1[%c0_25, %c36, %c0_26] : memref<1x328x128xbf16, #tpu.memory_space<vmem>>, vector<1x288x128xbf16>
    %32 = vector.shape_cast %31 : vector<1x288x128xbf16> to vector<288x128xbf16>
    %c768 = arith.constant 768 : index
    %c0_27 = arith.constant 0 : index
    %33 = vector.load %arg2[%c768, %c0_27] : memref<1152x128xbf16, #tpu.memory_space<vmem>>, vector<128x128xbf16>
    %cst_28 = arith.constant dense<0.000000e+00> : vector<288x128xf32>
    %34 = tpu.matmul %32, %33, %cst_28 {dimension_numbers = #tpu.dot_dimension_numbers<[1], [0], [0], [1], [0, 0, 1, 1], [], []>} : vector<288x128xbf16>, vector<128x128xbf16>, vector<288x128xf32> -> vector<288x128xf32>
    %35 = arith.addf %30, %34 : vector<288x128xf32>
    %c0_29 = arith.constant 0 : index
    %c37 = arith.constant 37 : index
    %c0_30 = arith.constant 0 : index
    %36 = vector.load %arg1[%c0_29, %c37, %c0_30] : memref<1x328x128xbf16, #tpu.memory_space<vmem>>, vector<1x288x128xbf16>
    %37 = vector.shape_cast %36 : vector<1x288x128xbf16> to vector<288x128xbf16>
    %c896 = arith.constant 896 : index
    %c0_31 = arith.constant 0 : index
    %38 = vector.load %arg2[%c896, %c0_31] : memref<1152x128xbf16, #tpu.memory_space<vmem>>, vector<128x128xbf16>
    %cst_32 = arith.constant dense<0.000000e+00> : vector<288x128xf32>
    %39 = tpu.matmul %37, %38, %cst_32 {dimension_numbers = #tpu.dot_dimension_numbers<[1], [0], [0], [1], [0, 0, 1, 1], [], []>} : vector<288x128xbf16>, vector<128x128xbf16>, vector<288x128xf32> -> vector<288x128xf32>
    %40 = arith.addf %35, %39 : vector<288x128xf32>
    %c0_33 = arith.constant 0 : index
    %c38 = arith.constant 38 : index
    %c0_34 = arith.constant 0 : index
    %41 = vector.load %arg1[%c0_33, %c38, %c0_34] : memref<1x328x128xbf16, #tpu.memory_space<vmem>>, vector<1x288x128xbf16>
    %42 = vector.shape_cast %41 : vector<1x288x128xbf16> to vector<288x128xbf16>
    %c1024 = arith.constant 1024 : index
    %c0_35 = arith.constant 0 : index
    %43 = vector.load %arg2[%c1024, %c0_35] : memref<1152x128xbf16, #tpu.memory_space<vmem>>, vector<128x128xbf16>
    %cst_36 = arith.constant dense<0.000000e+00> : vector<288x128xf32>
    %44 = tpu.matmul %42, %43, %cst_36 {dimension_numbers = #tpu.dot_dimension_numbers<[1], [0], [0], [1], [0, 0, 1, 1], [], []>} : vector<288x128xbf16>, vector<128x128xbf16>, vector<288x128xf32> -> vector<288x128xf32>
    %45 = arith.addf %40, %44 : vector<288x128xf32>
    %46 = tpu.iota {dimensions = array<i32: 0>} : vector<288x128xi32>
    %c18_i32 = arith.constant 18 : i32
    %c0_i32 = arith.constant 0 : i32
    %47 = arith.cmpi eq, %c18_i32, %c0_i32 : i32
    %c1_i32 = arith.constant 1 : i32
    %48 = arith.select %47, %c1_i32, %c18_i32 : i32
    %49 = vector.broadcast %48 : i32 to vector<288x128xi32>
    %50 = arith.remsi %46, %49 : vector<288x128xi32>
    %c0_i32_37 = arith.constant 0 : i32
    %51 = vector.broadcast %c0_i32_37 : i32 to vector<288x128xi32>
    %52 = arith.cmpi ne, %50, %51 : vector<288x128xi32>
    %c0_i32_38 = arith.constant 0 : i32
    %53 = vector.broadcast %c0_i32_38 : i32 to vector<288x128xi32>
    %54 = arith.cmpi slt, %50, %53 : vector<288x128xi32>
    %c0_i32_39 = arith.constant 0 : i32
    %55 = arith.cmpi slt, %48, %c0_i32_39 : i32
    %56 = vector.broadcast %55 : i1 to vector<288x128xi1>
    %57 = vector.broadcast %56 : vector<288x128xi1> to vector<288x128xi1>
    %58 = arith.xori %54, %57 : vector<288x128xi1>
    %59 = arith.andi %58, %52 : vector<288x128xi1>
    %60 = vector.broadcast %48 : i32 to vector<288x128xi32>
    %61 = arith.addi %50, %60 : vector<288x128xi32>
    %62 = arith.select %59, %61, %50 : vector<288x128xi1>, vector<288x128xi32>
    %c16_i32 = arith.constant 16 : i32
    %63 = vector.broadcast %c16_i32 : i32 to vector<288x128xi32>
    %64 = arith.cmpi slt, %62, %63 : vector<288x128xi32>
    %c288_i32 = arith.constant 288 : i32
    %65 = vector.broadcast %c288_i32 : i32 to vector<288x128xi32>
    %66 = arith.cmpi slt, %46, %65 : vector<288x128xi32>
    %67 = arith.andi %64, %66 : vector<288x128xi1>
    %68 = arith.extui %67 : vector<288x128xi1> to vector<288x128xi32>
    %69 = arith.sitofp %68 : vector<288x128xi32> to vector<288x128xf32>
    %70 = arith.mulf %45, %69 : vector<288x128xf32>
    %cst_40 = arith.constant dense<0.000000e+00> : vector<128xf32>
    %71 = vector.multi_reduction <add>, %70, %cst_40 [0] : vector<288x128xf32> to vector<128xf32>
    %72 = vector.shape_cast %71 : vector<128xf32> to vector<1x128xf32>
    %73 = arith.mulf %70, %45 : vector<288x128xf32>
    %cst_41 = arith.constant dense<0.000000e+00> : vector<128xf32>
    %74 = vector.multi_reduction <add>, %73, %cst_41 [0] : vector<288x128xf32> to vector<128xf32>
    %75 = vector.shape_cast %74 : vector<128xf32> to vector<1x128xf32>
    %76 = tpu.concatenate %72, %75 in 1 : vector<1x128xf32>, vector<1x128xf32> -> vector<1x256xf32>
    %77 = vector.shape_cast %76 : vector<1x256xf32> to vector<1x1x256xf32>
    %78 = vector.shape_cast %77 : vector<1x1x256xf32> to vector<1x1x256xf32>
    %79 = vector.broadcast %78 : vector<1x1x256xf32> to vector<1x8x256xf32>
    %c0_42 = arith.constant 0 : index
    %c0_43 = arith.constant 0 : index
    %c0_44 = arith.constant 0 : index
    %80 = vector.load %arg4[%c0_42, %c0_43, %c0_44] : memref<1x8x256xf32, #tpu.memory_space<vmem>>, vector<1x8x256xf32>
    tpu.vector_store %arg4[%c0_42, %c0_43, %c0_44], %79 {strides = array<i32>} : memref<1x8x256xf32, #tpu.memory_space<vmem>>, vector<1x8x256xf32>,
    %81 = vector.shape_cast %45 : vector<288x128xf32> to vector<1x288x128xf32>
    %82 = arith.truncf %81 : vector<1x288x128xf32> to vector<1x288x128xbf16>
    %c0_45 = arith.constant 0 : index
    %c0_46 = arith.constant 0 : index
    %c0_47 = arith.constant 0 : index
    %83 = vector.load %arg3[%c0_45, %c0_46, %c0_47] : memref<1x288x128xbf16, #tpu.memory_space<vmem>>, vector<1x288x128xbf16>
    tpu.vector_store %arg3[%c0_45, %c0_46, %c0_47], %82 {strides = array<i32>} : memref<1x288x128xbf16, #tpu.memory_space<vmem>>, vector<1x288x128xbf16>,
    return
  }
  func.func @transform_0(%arg0: i32) -> (i32, i32, i32) {
    %c0_i32 = arith.constant 0 : i32
    %c0_i32_0 = arith.constant 0 : i32
    %c0_i32_1 = arith.constant 0 : i32
    return %arg0, %c0_i32, %c0_i32_0 : i32, i32, i32
  }
  func.func @transform_1(%arg0: i32) -> (i32, i32) {
    %c0_i32 = arith.constant 0 : i32
    %c0_i32_0 = arith.constant 0 : i32
    %c0_i32_1 = arith.constant 0 : i32
    return %c0_i32, %c0_i32_0 : i32, i32
  }
  func.func @transform_2(%arg0: i32) -> (i32, i32, i32) {
    %c0_i32 = arith.constant 0 : i32
    %c0_i32_0 = arith.constant 0 : i32
    %c0_i32_1 = arith.constant 0 : i32
    return %arg0, %c0_i32, %c0_i32_0 : i32, i32, i32
  }
  func.func @transform_3(%arg0: i32) -> (i32, i32, i32) {
    %c0_i32 = arith.constant 0 : i32
    %c0_i32_0 = arith.constant 0 : i32
    %c0_i32_1 = arith.constant 0 : i32
    return %arg0, %c0_i32, %c0_i32_0 : i32, i32, i32
  }
}

module attributes {stable_mosaic.version = 11 : i64} {
  func.func @_conv2_kernel(%arg0: i32, %arg1: memref<1x288x128xbf16, #tpu.memory_space<vmem>>, %arg2: memref<1x128xf32, #tpu.memory_space<vmem>>, %arg3: memref<1x128xf32, #tpu.memory_space<vmem>>, %arg4: memref<1152x128xbf16, #tpu.memory_space<vmem>>, %arg5: memref<1x288x128xf32, #tpu.memory_space<vmem>>, %arg6: memref<1x8x256xf32, #tpu.memory_space<vmem>>, %arg7: memref<328x128xbf16, #tpu.memory_space<vmem>>) attributes {dimension_semantics = [#tpu.dimension_semantics<parallel>], iteration_bounds = array<i64: 2>, scalar_prefetch = 0 : i64, scratch_operands = 1 : i64, tpu.core_type = #tpu.core_type<tc>, window_params = [{transform_indices = @transform_0, window_bounds = array<i64: 1, 288, 128>}, {pipeline_mode = #tpu.pipeline_mode<synchronous>, transform_indices = @transform_1, window_bounds = array<i64: 1, 128>}, {pipeline_mode = #tpu.pipeline_mode<synchronous>, transform_indices = @transform_2, window_bounds = array<i64: 1, 128>}, {pipeline_mode = #tpu.pipeline_mode<synchronous>, transform_indices = @transform_3, window_bounds = array<i64: 1152, 128>}, {transform_indices = @transform_4, window_bounds = array<i64: 1, 288, 128>}, {transform_indices = @transform_5, window_bounds = array<i64: 1, 8, 256>}]} {
    %c0 = arith.constant 0 : index
    %c0_0 = arith.constant 0 : index
    %c0_1 = arith.constant 0 : index
    %0 = vector.load %arg1[%c0, %c0_0, %c0_1] : memref<1x288x128xbf16, #tpu.memory_space<vmem>>, vector<1x288x128xbf16>
    %1 = vector.shape_cast %0 : vector<1x288x128xbf16> to vector<288x128xbf16>
    %2 = arith.extf %1 : vector<288x128xbf16> to vector<288x128xf32>
    %c0_2 = arith.constant 0 : index
    %c0_3 = arith.constant 0 : index
    %3 = vector.load %arg2[%c0_2, %c0_3] : memref<1x128xf32, #tpu.memory_space<vmem>>, vector<1x128xf32>
    %4 = vector.broadcast %3 : vector<1x128xf32> to vector<288x128xf32>
    %5 = arith.mulf %2, %4 : vector<288x128xf32>
    %c0_4 = arith.constant 0 : index
    %c0_5 = arith.constant 0 : index
    %6 = vector.load %arg3[%c0_4, %c0_5] : memref<1x128xf32, #tpu.memory_space<vmem>>, vector<1x128xf32>
    %7 = vector.broadcast %6 : vector<1x128xf32> to vector<288x128xf32>
    %8 = arith.addf %5, %7 : vector<288x128xf32>
    %cst = arith.constant 0.000000e+00 : f32
    %9 = vector.broadcast %cst : f32 to vector<288x128xf32>
    %10 = arith.maximumf %8, %9 : vector<288x128xf32>
    %11 = tpu.iota {dimensions = array<i32: 0>} : vector<288x128xi32>
    %c18_i32 = arith.constant 18 : i32
    %c0_i32 = arith.constant 0 : i32
    %12 = arith.cmpi eq, %c18_i32, %c0_i32 : i32
    %c1_i32 = arith.constant 1 : i32
    %13 = arith.select %12, %c1_i32, %c18_i32 : i32
    %14 = vector.broadcast %13 : i32 to vector<288x128xi32>
    %15 = arith.remsi %11, %14 : vector<288x128xi32>
    %c0_i32_6 = arith.constant 0 : i32
    %16 = vector.broadcast %c0_i32_6 : i32 to vector<288x128xi32>
    %17 = arith.cmpi ne, %15, %16 : vector<288x128xi32>
    %c0_i32_7 = arith.constant 0 : i32
    %18 = vector.broadcast %c0_i32_7 : i32 to vector<288x128xi32>
    %19 = arith.cmpi slt, %15, %18 : vector<288x128xi32>
    %c0_i32_8 = arith.constant 0 : i32
    %20 = arith.cmpi slt, %13, %c0_i32_8 : i32
    %21 = vector.broadcast %20 : i1 to vector<288x128xi1>
    %22 = vector.broadcast %21 : vector<288x128xi1> to vector<288x128xi1>
    %23 = arith.xori %19, %22 : vector<288x128xi1>
    %24 = arith.andi %23, %17 : vector<288x128xi1>
    %25 = vector.broadcast %13 : i32 to vector<288x128xi32>
    %26 = arith.addi %15, %25 : vector<288x128xi32>
    %27 = arith.select %24, %26, %15 : vector<288x128xi1>, vector<288x128xi32>
    %c16_i32 = arith.constant 16 : i32
    %28 = vector.broadcast %c16_i32 : i32 to vector<288x128xi32>
    %29 = arith.cmpi slt, %27, %28 : vector<288x128xi32>
    %c288_i32 = arith.constant 288 : i32
    %30 = vector.broadcast %c288_i32 : i32 to vector<288x128xi32>
    %31 = arith.cmpi slt, %11, %30 : vector<288x128xi32>
    %32 = arith.andi %29, %31 : vector<288x128xi1>
    %cst_9 = arith.constant 0.000000e+00 : f32
    %33 = vector.broadcast %cst_9 : f32 to vector<288x128xf32>
    %34 = arith.select %32, %10, %33 : vector<288x128xi1>, vector<288x128xf32>
    %cst_10 = arith.constant 0.000000e+00 : bf16
    %35 = vector.broadcast %cst_10 : bf16 to vector<328x128xbf16>
    %c0_11 = arith.constant 0 : index
    %c0_12 = arith.constant 0 : index
    %36 = vector.load %arg7[%c0_11, %c0_12] : memref<328x128xbf16, #tpu.memory_space<vmem>>, vector<328x128xbf16>
    tpu.vector_store %arg7[%c0_11, %c0_12], %35 {strides = array<i32>} : memref<328x128xbf16, #tpu.memory_space<vmem>>, vector<328x128xbf16>,
    %37 = arith.truncf %34 : vector<288x128xf32> to vector<288x128xbf16>
    %c19 = arith.constant 19 : index
    %c0_13 = arith.constant 0 : index
    %38 = vector.load %arg7[%c19, %c0_13] : memref<328x128xbf16, #tpu.memory_space<vmem>>, vector<288x128xbf16>
    tpu.vector_store %arg7[%c19, %c0_13], %37 {strides = array<i32>} : memref<328x128xbf16, #tpu.memory_space<vmem>>, vector<288x128xbf16>,
    %cst_14 = arith.constant 0.000000e+00 : f32
    %39 = vector.broadcast %cst_14 : f32 to vector<288x128xf32>
    %c0_15 = arith.constant 0 : index
    %c0_16 = arith.constant 0 : index
    %40 = vector.load %arg7[%c0_15, %c0_16] : memref<328x128xbf16, #tpu.memory_space<vmem>>, vector<288x128xbf16>
    %c0_17 = arith.constant 0 : index
    %c0_18 = arith.constant 0 : index
    %41 = vector.load %arg4[%c0_17, %c0_18] : memref<1152x128xbf16, #tpu.memory_space<vmem>>, vector<128x128xbf16>
    %cst_19 = arith.constant dense<0.000000e+00> : vector<288x128xf32>
    %42 = tpu.matmul %40, %41, %cst_19 {dimension_numbers = #tpu.dot_dimension_numbers<[1], [0], [0], [1], [0, 0, 1, 1], [], []>} : vector<288x128xbf16>, vector<128x128xbf16>, vector<288x128xf32> -> vector<288x128xf32>
    %43 = arith.addf %39, %42 : vector<288x128xf32>
    %c1 = arith.constant 1 : index
    %c0_20 = arith.constant 0 : index
    %44 = vector.load %arg7[%c1, %c0_20] : memref<328x128xbf16, #tpu.memory_space<vmem>>, vector<288x128xbf16>
    %c128 = arith.constant 128 : index
    %c0_21 = arith.constant 0 : index
    %45 = vector.load %arg4[%c128, %c0_21] : memref<1152x128xbf16, #tpu.memory_space<vmem>>, vector<128x128xbf16>
    %cst_22 = arith.constant dense<0.000000e+00> : vector<288x128xf32>
    %46 = tpu.matmul %44, %45, %cst_22 {dimension_numbers = #tpu.dot_dimension_numbers<[1], [0], [0], [1], [0, 0, 1, 1], [], []>} : vector<288x128xbf16>, vector<128x128xbf16>, vector<288x128xf32> -> vector<288x128xf32>
    %47 = arith.addf %43, %46 : vector<288x128xf32>
    %c2 = arith.constant 2 : index
    %c0_23 = arith.constant 0 : index
    %48 = vector.load %arg7[%c2, %c0_23] : memref<328x128xbf16, #tpu.memory_space<vmem>>, vector<288x128xbf16>
    %c256 = arith.constant 256 : index
    %c0_24 = arith.constant 0 : index
    %49 = vector.load %arg4[%c256, %c0_24] : memref<1152x128xbf16, #tpu.memory_space<vmem>>, vector<128x128xbf16>
    %cst_25 = arith.constant dense<0.000000e+00> : vector<288x128xf32>
    %50 = tpu.matmul %48, %49, %cst_25 {dimension_numbers = #tpu.dot_dimension_numbers<[1], [0], [0], [1], [0, 0, 1, 1], [], []>} : vector<288x128xbf16>, vector<128x128xbf16>, vector<288x128xf32> -> vector<288x128xf32>
    %51 = arith.addf %47, %50 : vector<288x128xf32>
    %c18 = arith.constant 18 : index
    %c0_26 = arith.constant 0 : index
    %52 = vector.load %arg7[%c18, %c0_26] : memref<328x128xbf16, #tpu.memory_space<vmem>>, vector<288x128xbf16>
    %c384 = arith.constant 384 : index
    %c0_27 = arith.constant 0 : index
    %53 = vector.load %arg4[%c384, %c0_27] : memref<1152x128xbf16, #tpu.memory_space<vmem>>, vector<128x128xbf16>
    %cst_28 = arith.constant dense<0.000000e+00> : vector<288x128xf32>
    %54 = tpu.matmul %52, %53, %cst_28 {dimension_numbers = #tpu.dot_dimension_numbers<[1], [0], [0], [1], [0, 0, 1, 1], [], []>} : vector<288x128xbf16>, vector<128x128xbf16>, vector<288x128xf32> -> vector<288x128xf32>
    %55 = arith.addf %51, %54 : vector<288x128xf32>
    %c19_29 = arith.constant 19 : index
    %c0_30 = arith.constant 0 : index
    %56 = vector.load %arg7[%c19_29, %c0_30] : memref<328x128xbf16, #tpu.memory_space<vmem>>, vector<288x128xbf16>
    %c512 = arith.constant 512 : index
    %c0_31 = arith.constant 0 : index
    %57 = vector.load %arg4[%c512, %c0_31] : memref<1152x128xbf16, #tpu.memory_space<vmem>>, vector<128x128xbf16>
    %cst_32 = arith.constant dense<0.000000e+00> : vector<288x128xf32>
    %58 = tpu.matmul %56, %57, %cst_32 {dimension_numbers = #tpu.dot_dimension_numbers<[1], [0], [0], [1], [0, 0, 1, 1], [], []>} : vector<288x128xbf16>, vector<128x128xbf16>, vector<288x128xf32> -> vector<288x128xf32>
    %59 = arith.addf %55, %58 : vector<288x128xf32>
    %c20 = arith.constant 20 : index
    %c0_33 = arith.constant 0 : index
    %60 = vector.load %arg7[%c20, %c0_33] : memref<328x128xbf16, #tpu.memory_space<vmem>>, vector<288x128xbf16>
    %c640 = arith.constant 640 : index
    %c0_34 = arith.constant 0 : index
    %61 = vector.load %arg4[%c640, %c0_34] : memref<1152x128xbf16, #tpu.memory_space<vmem>>, vector<128x128xbf16>
    %cst_35 = arith.constant dense<0.000000e+00> : vector<288x128xf32>
    %62 = tpu.matmul %60, %61, %cst_35 {dimension_numbers = #tpu.dot_dimension_numbers<[1], [0], [0], [1], [0, 0, 1, 1], [], []>} : vector<288x128xbf16>, vector<128x128xbf16>, vector<288x128xf32> -> vector<288x128xf32>
    %63 = arith.addf %59, %62 : vector<288x128xf32>
    %c36 = arith.constant 36 : index
    %c0_36 = arith.constant 0 : index
    %64 = vector.load %arg7[%c36, %c0_36] : memref<328x128xbf16, #tpu.memory_space<vmem>>, vector<288x128xbf16>
    %c768 = arith.constant 768 : index
    %c0_37 = arith.constant 0 : index
    %65 = vector.load %arg4[%c768, %c0_37] : memref<1152x128xbf16, #tpu.memory_space<vmem>>, vector<128x128xbf16>
    %cst_38 = arith.constant dense<0.000000e+00> : vector<288x128xf32>
    %66 = tpu.matmul %64, %65, %cst_38 {dimension_numbers = #tpu.dot_dimension_numbers<[1], [0], [0], [1], [0, 0, 1, 1], [], []>} : vector<288x128xbf16>, vector<128x128xbf16>, vector<288x128xf32> -> vector<288x128xf32>
    %67 = arith.addf %63, %66 : vector<288x128xf32>
    %c37 = arith.constant 37 : index
    %c0_39 = arith.constant 0 : index
    %68 = vector.load %arg7[%c37, %c0_39] : memref<328x128xbf16, #tpu.memory_space<vmem>>, vector<288x128xbf16>
    %c896 = arith.constant 896 : index
    %c0_40 = arith.constant 0 : index
    %69 = vector.load %arg4[%c896, %c0_40] : memref<1152x128xbf16, #tpu.memory_space<vmem>>, vector<128x128xbf16>
    %cst_41 = arith.constant dense<0.000000e+00> : vector<288x128xf32>
    %70 = tpu.matmul %68, %69, %cst_41 {dimension_numbers = #tpu.dot_dimension_numbers<[1], [0], [0], [1], [0, 0, 1, 1], [], []>} : vector<288x128xbf16>, vector<128x128xbf16>, vector<288x128xf32> -> vector<288x128xf32>
    %71 = arith.addf %67, %70 : vector<288x128xf32>
    %c38 = arith.constant 38 : index
    %c0_42 = arith.constant 0 : index
    %72 = vector.load %arg7[%c38, %c0_42] : memref<328x128xbf16, #tpu.memory_space<vmem>>, vector<288x128xbf16>
    %c1024 = arith.constant 1024 : index
    %c0_43 = arith.constant 0 : index
    %73 = vector.load %arg4[%c1024, %c0_43] : memref<1152x128xbf16, #tpu.memory_space<vmem>>, vector<128x128xbf16>
    %cst_44 = arith.constant dense<0.000000e+00> : vector<288x128xf32>
    %74 = tpu.matmul %72, %73, %cst_44 {dimension_numbers = #tpu.dot_dimension_numbers<[1], [0], [0], [1], [0, 0, 1, 1], [], []>} : vector<288x128xbf16>, vector<128x128xbf16>, vector<288x128xf32> -> vector<288x128xf32>
    %75 = arith.addf %71, %74 : vector<288x128xf32>
    %76 = tpu.iota {dimensions = array<i32: 0>} : vector<288x128xi32>
    %c18_i32_45 = arith.constant 18 : i32
    %c0_i32_46 = arith.constant 0 : i32
    %77 = arith.cmpi eq, %c18_i32_45, %c0_i32_46 : i32
    %c1_i32_47 = arith.constant 1 : i32
    %78 = arith.select %77, %c1_i32_47, %c18_i32_45 : i32
    %79 = vector.broadcast %78 : i32 to vector<288x128xi32>
    %80 = arith.remsi %76, %79 : vector<288x128xi32>
    %c0_i32_48 = arith.constant 0 : i32
    %81 = vector.broadcast %c0_i32_48 : i32 to vector<288x128xi32>
    %82 = arith.cmpi ne, %80, %81 : vector<288x128xi32>
    %c0_i32_49 = arith.constant 0 : i32
    %83 = vector.broadcast %c0_i32_49 : i32 to vector<288x128xi32>
    %84 = arith.cmpi slt, %80, %83 : vector<288x128xi32>
    %c0_i32_50 = arith.constant 0 : i32
    %85 = arith.cmpi slt, %78, %c0_i32_50 : i32
    %86 = vector.broadcast %85 : i1 to vector<288x128xi1>
    %87 = vector.broadcast %86 : vector<288x128xi1> to vector<288x128xi1>
    %88 = arith.xori %84, %87 : vector<288x128xi1>
    %89 = arith.andi %88, %82 : vector<288x128xi1>
    %90 = vector.broadcast %78 : i32 to vector<288x128xi32>
    %91 = arith.addi %80, %90 : vector<288x128xi32>
    %92 = arith.select %89, %91, %80 : vector<288x128xi1>, vector<288x128xi32>
    %c16_i32_51 = arith.constant 16 : i32
    %93 = vector.broadcast %c16_i32_51 : i32 to vector<288x128xi32>
    %94 = arith.cmpi slt, %92, %93 : vector<288x128xi32>
    %c288_i32_52 = arith.constant 288 : i32
    %95 = vector.broadcast %c288_i32_52 : i32 to vector<288x128xi32>
    %96 = arith.cmpi slt, %76, %95 : vector<288x128xi32>
    %97 = arith.andi %94, %96 : vector<288x128xi1>
    %98 = arith.extui %97 : vector<288x128xi1> to vector<288x128xi32>
    %99 = arith.sitofp %98 : vector<288x128xi32> to vector<288x128xf32>
    %100 = arith.mulf %75, %99 : vector<288x128xf32>
    %cst_53 = arith.constant dense<0.000000e+00> : vector<128xf32>
    %101 = vector.multi_reduction <add>, %100, %cst_53 [0] : vector<288x128xf32> to vector<128xf32>
    %102 = vector.shape_cast %101 : vector<128xf32> to vector<1x128xf32>
    %103 = arith.mulf %100, %75 : vector<288x128xf32>
    %cst_54 = arith.constant dense<0.000000e+00> : vector<128xf32>
    %104 = vector.multi_reduction <add>, %103, %cst_54 [0] : vector<288x128xf32> to vector<128xf32>
    %105 = vector.shape_cast %104 : vector<128xf32> to vector<1x128xf32>
    %106 = tpu.concatenate %102, %105 in 1 : vector<1x128xf32>, vector<1x128xf32> -> vector<1x256xf32>
    %107 = vector.shape_cast %106 : vector<1x256xf32> to vector<1x1x256xf32>
    %108 = vector.shape_cast %107 : vector<1x1x256xf32> to vector<1x1x256xf32>
    %109 = vector.broadcast %108 : vector<1x1x256xf32> to vector<1x8x256xf32>
    %c0_55 = arith.constant 0 : index
    %c0_56 = arith.constant 0 : index
    %c0_57 = arith.constant 0 : index
    %110 = vector.load %arg6[%c0_55, %c0_56, %c0_57] : memref<1x8x256xf32, #tpu.memory_space<vmem>>, vector<1x8x256xf32>
    tpu.vector_store %arg6[%c0_55, %c0_56, %c0_57], %109 {strides = array<i32>} : memref<1x8x256xf32, #tpu.memory_space<vmem>>, vector<1x8x256xf32>,
    %111 = vector.shape_cast %75 : vector<288x128xf32> to vector<1x288x128xf32>
    %c0_58 = arith.constant 0 : index
    %c0_59 = arith.constant 0 : index
    %c0_60 = arith.constant 0 : index
    %112 = vector.load %arg5[%c0_58, %c0_59, %c0_60] : memref<1x288x128xf32, #tpu.memory_space<vmem>>, vector<1x288x128xf32>
    tpu.vector_store %arg5[%c0_58, %c0_59, %c0_60], %111 {strides = array<i32>} : memref<1x288x128xf32, #tpu.memory_space<vmem>>, vector<1x288x128xf32>,
    return
  }
  func.func @transform_0(%arg0: i32) -> (i32, i32, i32) {
    %c0_i32 = arith.constant 0 : i32
    %c0_i32_0 = arith.constant 0 : i32
    %c0_i32_1 = arith.constant 0 : i32
    return %arg0, %c0_i32, %c0_i32_0 : i32, i32, i32
  }
  func.func @transform_1(%arg0: i32) -> (i32, i32) {
    %c0_i32 = arith.constant 0 : i32
    %c0_i32_0 = arith.constant 0 : i32
    %c0_i32_1 = arith.constant 0 : i32
    return %c0_i32, %c0_i32_0 : i32, i32
  }
  func.func @transform_2(%arg0: i32) -> (i32, i32) {
    %c0_i32 = arith.constant 0 : i32
    %c0_i32_0 = arith.constant 0 : i32
    %c0_i32_1 = arith.constant 0 : i32
    return %c0_i32, %c0_i32_0 : i32, i32
  }
  func.func @transform_3(%arg0: i32) -> (i32, i32) {
    %c0_i32 = arith.constant 0 : i32
    %c0_i32_0 = arith.constant 0 : i32
    %c0_i32_1 = arith.constant 0 : i32
    return %c0_i32, %c0_i32_0 : i32, i32
  }
  func.func @transform_4(%arg0: i32) -> (i32, i32, i32) {
    %c0_i32 = arith.constant 0 : i32
    %c0_i32_0 = arith.constant 0 : i32
    %c0_i32_1 = arith.constant 0 : i32
    return %arg0, %c0_i32, %c0_i32_0 : i32, i32, i32
  }
  func.func @transform_5(%arg0: i32) -> (i32, i32, i32) {
    %c0_i32 = arith.constant 0 : i32
    %c0_i32_0 = arith.constant 0 : i32
    %c0_i32_1 = arith.constant 0 : i32
    return %arg0, %c0_i32, %c0_i32_0 : i32, i32, i32
  }
}

module attributes {stable_mosaic.version = 11 : i64} {
  func.func @_bn_relu_nchw_kernel(%arg0: i32, %arg1: memref<1x288x128xf32, #tpu.memory_space<vmem>>, %arg2: memref<1x128xf32, #tpu.memory_space<vmem>>, %arg3: memref<1x128xf32, #tpu.memory_space<vmem>>, %arg4: memref<1x64x256xf32, #tpu.memory_space<vmem>>) attributes {dimension_semantics = [#tpu.dimension_semantics<parallel>], iteration_bounds = array<i64: 2>, scalar_prefetch = 0 : i64, scratch_operands = 0 : i64, tpu.core_type = #tpu.core_type<tc>, window_params = [{transform_indices = @transform_0, window_bounds = array<i64: 1, 288, 128>}, {pipeline_mode = #tpu.pipeline_mode<synchronous>, transform_indices = @transform_1, window_bounds = array<i64: 1, 128>}, {pipeline_mode = #tpu.pipeline_mode<synchronous>, transform_indices = @transform_2, window_bounds = array<i64: 1, 128>}, {transform_indices = @transform_3, window_bounds = array<i64: 1, 64, 256>}]} {
    %c0 = arith.constant 0 : index
    %c0_0 = arith.constant 0 : index
    %c0_1 = arith.constant 0 : index
    %0 = vector.load %arg1[%c0, %c0_0, %c0_1] : memref<1x288x128xf32, #tpu.memory_space<vmem>>, vector<1x288x128xf32>
    %1 = vector.shape_cast %0 : vector<1x288x128xf32> to vector<288x128xf32>
    %c0_2 = arith.constant 0 : index
    %c0_3 = arith.constant 0 : index
    %2 = vector.load %arg2[%c0_2, %c0_3] : memref<1x128xf32, #tpu.memory_space<vmem>>, vector<1x128xf32>
    %3 = vector.broadcast %2 : vector<1x128xf32> to vector<288x128xf32>
    %4 = arith.mulf %1, %3 : vector<288x128xf32>
    %c0_4 = arith.constant 0 : index
    %c0_5 = arith.constant 0 : index
    %5 = vector.load %arg3[%c0_4, %c0_5] : memref<1x128xf32, #tpu.memory_space<vmem>>, vector<1x128xf32>
    %6 = vector.broadcast %5 : vector<1x128xf32> to vector<288x128xf32>
    %7 = arith.addf %4, %6 : vector<288x128xf32>
    %cst = arith.constant 0.000000e+00 : f32
    %8 = vector.broadcast %cst : f32 to vector<288x128xf32>
    %9 = arith.maximumf %7, %8 : vector<288x128xf32>
    %10 = vector.extract_strided_slice %9 {offsets = [0, 0], sizes = [16, 128], strides = [1, 1]} : vector<288x128xf32> to vector<16x128xf32>
    %11 = vector.extract_strided_slice %9 {offsets = [18, 0], sizes = [16, 128], strides = [1, 1]} : vector<288x128xf32> to vector<16x128xf32>
    %12 = vector.extract_strided_slice %9 {offsets = [36, 0], sizes = [16, 128], strides = [1, 1]} : vector<288x128xf32> to vector<16x128xf32>
    %13 = vector.extract_strided_slice %9 {offsets = [54, 0], sizes = [16, 128], strides = [1, 1]} : vector<288x128xf32> to vector<16x128xf32>
    %14 = vector.extract_strided_slice %9 {offsets = [72, 0], sizes = [16, 128], strides = [1, 1]} : vector<288x128xf32> to vector<16x128xf32>
    %15 = vector.extract_strided_slice %9 {offsets = [90, 0], sizes = [16, 128], strides = [1, 1]} : vector<288x128xf32> to vector<16x128xf32>
    %16 = vector.extract_strided_slice %9 {offsets = [108, 0], sizes = [16, 128], strides = [1, 1]} : vector<288x128xf32> to vector<16x128xf32>
    %17 = vector.extract_strided_slice %9 {offsets = [126, 0], sizes = [16, 128], strides = [1, 1]} : vector<288x128xf32> to vector<16x128xf32>
    %18 = vector.extract_strided_slice %9 {offsets = [144, 0], sizes = [16, 128], strides = [1, 1]} : vector<288x128xf32> to vector<16x128xf32>
    %19 = vector.extract_strided_slice %9 {offsets = [162, 0], sizes = [16, 128], strides = [1, 1]} : vector<288x128xf32> to vector<16x128xf32>
    %20 = vector.extract_strided_slice %9 {offsets = [180, 0], sizes = [16, 128], strides = [1, 1]} : vector<288x128xf32> to vector<16x128xf32>
    %21 = vector.extract_strided_slice %9 {offsets = [198, 0], sizes = [16, 128], strides = [1, 1]} : vector<288x128xf32> to vector<16x128xf32>
    %22 = vector.extract_strided_slice %9 {offsets = [216, 0], sizes = [16, 128], strides = [1, 1]} : vector<288x128xf32> to vector<16x128xf32>
    %23 = vector.extract_strided_slice %9 {offsets = [234, 0], sizes = [16, 128], strides = [1, 1]} : vector<288x128xf32> to vector<16x128xf32>
    %24 = vector.extract_strided_slice %9 {offsets = [252, 0], sizes = [16, 128], strides = [1, 1]} : vector<288x128xf32> to vector<16x128xf32>
    %25 = vector.extract_strided_slice %9 {offsets = [270, 0], sizes = [16, 128], strides = [1, 1]} : vector<288x128xf32> to vector<16x128xf32>
    %26 = tpu.concatenate %10, %11, %12, %13, %14, %15, %16, %17, %18, %19, %20, %21, %22, %23, %24, %25 in 0 : vector<16x128xf32>, vector<16x128xf32>, vector<16x128xf32>, vector<16x128xf32>, vector<16x128xf32>, vector<16x128xf32>, vector<16x128xf32>, vector<16x128xf32>, vector<16x128xf32>, vector<16x128xf32>, vector<16x128xf32>, vector<16x128xf32>, vector<16x128xf32>, vector<16x128xf32>, vector<16x128xf32>, vector<16x128xf32> -> vector<256x128xf32>
    %27 = tpu.transpose %26, [1, 0] : vector<256x128xf32> -> vector<128x256xf32>
    %28 = vector.extract_strided_slice %27 {offsets = [0, 0], sizes = [64, 256], strides = [1, 1]} : vector<128x256xf32> to vector<64x256xf32>
    %29 = vector.shape_cast %28 : vector<64x256xf32> to vector<1x64x256xf32>
    %c0_6 = arith.constant 0 : index
    %c0_7 = arith.constant 0 : index
    %c0_8 = arith.constant 0 : index
    %30 = vector.load %arg4[%c0_6, %c0_7, %c0_8] : memref<1x64x256xf32, #tpu.memory_space<vmem>>, vector<1x64x256xf32>
    tpu.vector_store %arg4[%c0_6, %c0_7, %c0_8], %29 {strides = array<i32>} : memref<1x64x256xf32, #tpu.memory_space<vmem>>, vector<1x64x256xf32>,
    return
  }
  func.func @transform_0(%arg0: i32) -> (i32, i32, i32) {
    %c0_i32 = arith.constant 0 : i32
    %c0_i32_0 = arith.constant 0 : i32
    %c0_i32_1 = arith.constant 0 : i32
    return %arg0, %c0_i32, %c0_i32_0 : i32, i32, i32
  }
  func.func @transform_1(%arg0: i32) -> (i32, i32) {
    %c0_i32 = arith.constant 0 : i32
    %c0_i32_0 = arith.constant 0 : i32
    %c0_i32_1 = arith.constant 0 : i32
    return %c0_i32, %c0_i32_0 : i32, i32
  }
  func.func @transform_2(%arg0: i32) -> (i32, i32) {
    %c0_i32 = arith.constant 0 : i32
    %c0_i32_0 = arith.constant 0 : i32
    %c0_i32_1 = arith.constant 0 : i32
    return %c0_i32, %c0_i32_0 : i32, i32
  }
  func.func @transform_3(%arg0: i32) -> (i32, i32, i32) {
    %c0_i32 = arith.constant 0 : i32
    %c0_i32_0 = arith.constant 0 : i32
    %c0_i32_1 = arith.constant 0 : i32
    return %arg0, %c0_i32, %c0_i32_0 : i32, i32, i32
  }
}

</mosaic_0001>

<bundles_post_ra>
// kernel: up_forward.4
= control target key start
LH: loop header
LB: loop body
LE: loop exit
PB: predicated region body
PF: predicated region fallthrough
CT: control target
= control target key end

     0   :  { %s786_s12 = smov 0   ;;  %s788_s13 = smov 0   ;;  %s890_s0 = inlined_call_operand.vmem [shape: bf16[128,128], index: 0, kind: input, shape index: {}]   ;;  %s891_s1 = inlined_call_operand.vmem [shape: bf16[128,256], index: 1, kind: input, shape index: {}]   ;;  %s892_s2 = inlined_call_operand.vmem [shape: f32[1,256], index: 2, kind: input, shape index: {}]   ;;  %s893_s3 = inlined_call_operand.vmem [shape: bf16[128,256], index: 3, kind: output, shape index: {}]  }
   0x1   :  { %s790_s14 = smov 0  }
   0x2 LB: > { %s25_s15 = sadd.s32 1, %s759_s13  ;;  %p627_p0 = scmp.ge.s32.totalorder %s763_s14, 1  ;;  %s763_s14 = sphi %s790_s14, %s13_s14   ;;  %s759_s13 = sphi %s788_s13, %s895_s13   ;;  %s755_s12 = sphi %s786_s12, %s894_s12  }
   0x3   : > { %p27_p1 = scmp.ge.s32.totalorder %s25_s15, 2  ;;  %p173_p2 = scmp.lt.s32.totalorder %s763_s14, 3 }
   0x5   : > { %s897_s15 = smov (%p27_p1, %s25_s15), 0  ;;  %p174_p3 = pnand %p627_p0, %p173_p2 }
   0x6   : > { %v713_v0 = vld [vmem:[%s891_s1 + $0x4] ss:$8 sps:$4 sm:$0xff] (!%p174_p3)   ;;  %s628_s18 = sshll.u32 (!%p174_p3), %s755_s12, 3  ;;  %v715_v1 = vld [vmem:[%s891_s1] ss:$8 sps:$4 sm:$0xff] (!%p174_p3)   ;;  %v765_v2 = vmov (!%p174_p3), 0   ;;  %v267_v21 = vlaneseq (!%p174_p3) }
   0x7   : > { %177 = sbr.rel (%p174_p3) target bundleno = 268 (0x10c), region = 32  ;;  %413 = vmatprep.mubr.bf16.mxu0 (!%p174_p3), %v765_v2  ;;  %433 = vmatprep.mubr.bf16.mxu1 (!%p174_p3), %v765_v2  ;;  %p212_p4 = scmp.lt.s32.totalorder (!%p174_p3), %s628_s18, 15  ;;  %v716_v3 = vld [vmem:[%s891_s1 + $0x14] ss:$8 sps:$4 sm:$0xff] (!%p174_p3)   ;;  %v718_v4 = vld [vmem:[%s891_s1 + $0x10] ss:$8 sps:$4 sm:$0xff] (!%p174_p3)  }
   0x8   : > { %381 = vmatprep.subr.bf16.mxu0 (!%p174_p3), %v713_v0  ;;  %672 = vmatprep.subr.bf16.mxu1 (!%p174_p3), %v713_v0  ;;  %v719_v5 = vld [vmem:[%s891_s1 + $0x24] ss:$8 sps:$4 sm:$0xff] (!%p174_p3)   ;;  %v721_v6 = vld [vmem:[%s891_s1 + $0x20] ss:$8 sps:$4 sm:$0xff] (!%p174_p3)   ;;  %v722_v7 = vld [vmem:[%s891_s1 + $0x34] ss:$8 sps:$4 sm:$0xff] (!%p174_p3)  }
   0x9   : > { %382 = vmatpush1.bf16.msra.mxu0 (!%p174_p3), %v715_v1  ;;  %680 = vmatpush1.bf16.msra.mxu1 (!%p174_p3), %v715_v1  ;;  %v724_v8 = vld [vmem:[%s891_s1 + $0x30] ss:$8 sps:$4 sm:$0xff] (!%p174_p3)   ;;  %v725_v9 = vld [vmem:[%s891_s1 + $0x44] ss:$8 sps:$4 sm:$0xff] (!%p174_p3)   ;;  %v727_v10 = vld [vmem:[%s891_s1 + $0x40] ss:$8 sps:$4 sm:$0xff] (!%p174_p3)  }
   0xa   : > { %383 = vmatprep.subr.bf16.mxu0 (!%p174_p3), %v716_v3  ;;  %673 = vmatprep.subr.bf16.mxu1 (!%p174_p3), %v716_v3  ;;  %v728_v11 = vld [vmem:[%s891_s1 + $0x54] ss:$8 sps:$4 sm:$0xff] (!%p174_p3)   ;;  %v730_v12 = vld [vmem:[%s891_s1 + $0x50] ss:$8 sps:$4 sm:$0xff] (!%p174_p3)   ;;  %v731_v13 = vld [vmem:[%s891_s1 + $0x64] ss:$8 sps:$4 sm:$0xff] (!%p174_p3)  }
   0xb   : > { %v733_v14 = vld [vmem:[%s891_s1 + $0x60] ss:$8 sps:$4 sm:$0xff] (!%p174_p3)   ;;  %v734_v15 = vld [vmem:[%s891_s1 + $0x74] ss:$8 sps:$4 sm:$0xff] (!%p174_p3)   ;;  %v736_v16 = vld [vmem:[%s891_s1 + $0x70] ss:$8 sps:$4 sm:$0xff] (!%p174_p3)  }
   0xc   : > { %v268_v22 = vshrl.u32 (!%p174_p3), %v267_v21, 7  ;;  %v265_v24 = vld [vmem:[%s892_s2] sm:$0x3] (!%p174_p3) }
   0xd   : > { %384 = vmatpush1.bf16.msra.mxu0 (!%p174_p3), %v718_v4  ;;  %681 = vmatpush1.bf16.msra.mxu1 (!%p174_p3), %v718_v4 }
   0xe   : > { %s899_s18 = smov (!%p212_p4, %s628_s18), 15  ;;  %385 = vmatprep.subr.bf16.mxu0 %v719_v5  ;;  %674 = vmatprep.subr.bf16.mxu1 %v719_v5  ;;  %v269_v23 = vsub.s32 0, %v268_v22  ;;  %v273_v25 = vsub.s32 1, %v268_v22 }
   0xf   : > { %s629_s27 = sshll.u32 %s899_s18, 2  ;;  %s663_s5 = sshll.u32 %s899_s18, 3 }
  0x10   : > { %s831_s7 = scalar_lea.vmem %s890_s0, %s629_s27  ;;  %v270_v26 = vrot.slane %v265_v24, %v269_v23  ;;  %v274_v27 = vrot.slane %v265_v24, %v273_v25  ;;  %s871_s8 = scalar_lea.vmem %s893_s3, %s663_s5 }
  0x11   : > { %386 = vmatpush1.bf16.msra.mxu0 %v721_v6  ;;  %682 = vmatpush1.bf16.msra.mxu1 %v721_v6  ;;  %v737_v17 = vld [vmem:[%s831_s7] sm:$0xff]   ;;  %v738_v18 = vld [vmem:[%s831_s7 + $0x10] sm:$0xff]   ;;  %v739_v19 = vld [vmem:[%s831_s7 + $0x8] sm:$0xff]  }
  0x12   : > { %387 = vmatprep.subr.bf16.mxu0 %v722_v7  ;;  %675 = vmatprep.subr.bf16.mxu1 %v722_v7  ;;  %v740_v20 = vld [vmem:[%s831_s7 + $0x18] sm:$0xff]  }
  0x15   : > { %388 = vmatpush1.bf16.msra.mxu0 %v724_v8  ;;  %683 = vmatpush1.bf16.msra.mxu1 %v724_v8 }
  0x16   : > { %389 = vmatprep.subr.bf16.mxu0 %v725_v9  ;;  %676 = vmatprep.subr.bf16.mxu1 %v725_v9 }
  0x19   : > { %390 = vmatpush1.bf16.msra.mxu0 %v727_v10  ;;  %684 = vmatpush1.bf16.msra.mxu1 %v727_v10 }
  0x1a   : > { %391 = vmatprep.subr.bf16.mxu0 %v728_v11  ;;  %677 = vmatprep.subr.bf16.mxu1 %v728_v11 }
  0x1d   : > { %392 = vmatpush1.bf16.msra.mxu0 %v730_v12  ;;  %685 = vmatpush1.bf16.msra.mxu1 %v730_v12 }
  0x1e   : > { %393 = vmatprep.subr.bf16.mxu0 %v731_v13  ;;  %678 = vmatprep.subr.bf16.mxu1 %v731_v13 }
  0x21   : > { %394 = vmatpush1.bf16.msra.mxu0 %v733_v14  ;;  %686 = vmatpush1.bf16.msra.mxu1 %v733_v14 }
  0x22   : > { %395 = vmatprep.subr.bf16.mxu0 %v734_v15  ;;  %679 = vmatprep.subr.bf16.mxu1 %v734_v15 }
  0x25   : > { %396 = vmatpush1.bf16.msra.mxu0 %v736_v16  ;;  %687 = vmatpush1.bf16.msra.mxu1 %v736_v16 }
  0x28   : > { %414 = vmatmul.mubr.bf16.vlgmr.msra.gmra.mrb[0].mxu0 %v737_v17  ;;  %434 = vmatmul.mubr.bf16.vlgmr.msra.gmra.mrb[0].mxu1 %v738_v18 }
  0x29   : > { %423 = vmatprep.mubr.bf16.mxu0 %v765_v2  ;;  %443 = vmatprep.mubr.bf16.mxu1 %v765_v2 }
  0x30   : > { %424 = vmatmul.mubr.bf16.gmra.mrb[4].mxu0 %v739_v19  ;;  %444 = vmatmul.mubr.bf16.gmra.mrb[4].mxu1 %v740_v20 }
  0xfb   : > { %v415_v28 = vpop.f32.mrb[0].mxu0  ;;  %v435_v29 = vpop.f32.mrb[0].mxu1 }
  0xfc   : > { %v416_v30 = vadd.f32 %v415_v28, %v270_v26  ;;  %v436_v31 = vadd.f32 %v435_v29, %v270_v26  ;;  %v417_v32 = vpop.f32.mrb[1].mxu0  ;;  %v437_v33 = vpop.f32.mrb[1].mxu1 }
  0xfd   : > { %v418_v34 = vadd.f32 %v417_v32, %v274_v27  ;;  %v438_v35 = vadd.f32 %v437_v33, %v274_v27  ;;  %v419_v36 = vpop.f32.mrb[2].mxu0  ;;  %v439_v37 = vpop.f32.mrb[2].mxu1 }
  0xfe   : > { %v420_v38 = vadd.f32 %v419_v36, %v270_v26  ;;  %v440_v39 = vadd.f32 %v439_v37, %v270_v26  ;;  %v421_v40 = vpop.f32.mrb[3].mxu0  ;;  %v441_v41 = vpop.f32.mrb[3].mxu1 }
  0xff   : > { %v664_v42 = vpack.c.bf16 %v418_v34, %v416_v30  ;;  %v668_v43 = vpack.c.bf16 %v438_v35, %v436_v31  ;;  %v422_v44 = vadd.f32 %v421_v40, %v274_v27  ;;  %v442_v45 = vadd.f32 %v441_v41, %v274_v27 }
 0x101   : > { %502 = vst [vmem:[%s871_s8] sm:$0xff] %v664_v42  ;;  %506 = vst [vmem:[%s871_s8 + $0x20] sm:$0xff] %v668_v43  ;;  %v665_v46 = vpack.c.bf16 %v422_v44, %v420_v38  ;;  %v669_v47 = vpack.c.bf16 %v442_v45, %v440_v39 }
 0x103   : > { %503 = vst [vmem:[%s871_s8 + $0x8] sm:$0xff] %v665_v46  ;;  %507 = vst [vmem:[%s871_s8 + $0x28] sm:$0xff] %v669_v47  ;;  %v425_v48 = vpop.f32.mrb[4].mxu0  ;;  %v445_v49 = vpop.f32.mrb[4].mxu1 }
 0x104   : > { %v426_v50 = vadd.f32 %v425_v48, %v270_v26  ;;  %v446_v51 = vadd.f32 %v445_v49, %v270_v26  ;;  %v427_v52 = vpop.f32.mrb[5].mxu0  ;;  %v447_v53 = vpop.f32.mrb[5].mxu1 }
 0x105   : > { %v428_v54 = vadd.f32 %v427_v52, %v274_v27  ;;  %v448_v55 = vadd.f32 %v447_v53, %v274_v27  ;;  %v429_v56 = vpop.f32.mrb[6].mxu0  ;;  %v449_v57 = vpop.f32.mrb[6].mxu1 }
 0x106   : > { %v430_v58 = vadd.f32 %v429_v56, %v270_v26  ;;  %v450_v59 = vadd.f32 %v449_v57, %v270_v26  ;;  %v431_v60 = vpop.f32.mrb[7].mxu0  ;;  %v451_v61 = vpop.f32.mrb[7].mxu1 }
 0x107   : > { %v666_v62 = vpack.c.bf16 %v428_v54, %v426_v50  ;;  %v670_v63 = vpack.c.bf16 %v448_v55, %v446_v51  ;;  %v432_v0 = vadd.f32 %v431_v60, %v274_v27  ;;  %v452_v1 = vadd.f32 %v451_v61, %v274_v27 }
 0x109   : > { %504 = vst [vmem:[%s871_s8 + $0x10] sm:$0xff] %v666_v62  ;;  %508 = vst [vmem:[%s871_s8 + $0x30] sm:$0xff] %v670_v63  ;;  %v667_v2 = vpack.c.bf16 %v432_v0, %v430_v58  ;;  %v671_v3 = vpack.c.bf16 %v452_v1, %v450_v59 }
 0x10b   : > { %505 = vst [vmem:[%s871_s8 + $0x18] sm:$0xff] %v667_v2  ;;  %509 = vst [vmem:[%s871_s8 + $0x38] sm:$0xff] %v671_v3 }
 0x10c PF: > { %s13_s14 = sadd.s32 1, %s763_s14   ;;  %s894_s12 = smov %s759_s13 }
 0x10d   : > { %p10_p5 = scmp.ge.s32.totalorder %s13_s14, 4   ;;  %s895_s13 = smov %s897_s15 }
 0x10f   :  { %12 = sbr.rel (!%p10_p5) target bundleno = 2 (0x2), region = 68 }

// kernel: up_forward.7
= control target key start
LH: loop header
LB: loop body
LE: loop exit
PB: predicated region body
PF: predicated region fallthrough
CT: control target
= control target key end

     0   :  { %s629_s12 = smov 0   ;;  %s812_s0 = inlined_call_operand.vmem [shape: f32[2,288,128], index: 0, kind: input, shape index: {}]   ;;  %s813_s1 = inlined_call_operand.vmem [shape: f32[1,128], index: 1, kind: input, shape index: {}]   ;;  %s814_s2 = inlined_call_operand.vmem [shape: f32[1,128], index: 2, kind: input, shape index: {}]   ;;  %s815_s3 = inlined_call_operand.vmem [shape: f32[2,64,256], index: 3, kind: output, shape index: {}]  }
   0x1 LB: > { %s579_s13 = sadd.s32 4294967295, %s607_s12   ;;  %p583_p0 = scmp.ge.s32.totalorder %s607_s12, 1  ;;  %s607_s12 = sphi %s629_s12, %s13_s12  }
   0x2   : > { %p137_p1 = scmp.lt.s32.totalorder %s607_s12, 3 }
   0x4   : > { %p138_p2 = pnand %p583_p0, %p137_p1 }
   0x5   : > { %p161_p3 = scmp.lt.s32.totalorder (!%p138_p2), %s579_s13, 1  ;;  %v643_v0 = vld [vmem:[%s813_s1] ss:$0 sm:$0xff] (!%p138_p2)  ;;  %vm332_vm0 = vcmask (!%p138_p2), 1045504   ;;  %vm342_vm1 = vcmask (!%p138_p2), 1043456   ;;  %vm352_vm2 = vcmask (!%p138_p2), 1041408  }
   0x6   : > { %141 = sbr.rel (%p138_p2) target bundleno = 182 (0xb6), region = 32  ;;  %v653_v1 = vld [vmem:[%s814_s2] ss:$0 sm:$0xff] (!%p138_p2) }
   0xd   : > { %s817_s13 = smov (!%p161_p3, %s579_s13), 1 }
   0xe   : > { %s592_s14 = smul.u32 288, %s817_s13  ;;  %s591_s22 = sshll.u32 %s817_s13, 7 }
   0xf   : > { %s791_s25 = scalar_lea.vmem %s815_s3, %s591_s22 }
  0x10   : > { %s648_s19 = scalar_lea.vmem %s812_s0, %s592_s14 }
  0x11   : > { %v189_v2 = vld [vmem:[%s648_s19 + $0x90] sm:$0xff]  ;;  %v171_v3 = vld [vmem:[%s648_s19] sm:$0xff]  ;;  %v190_v4 = vld [vmem:[%s648_s19 + $0x98] sm:$0xff] }
  0x12   : > { %v232_v5 = vmul.f32 %v643_v0, %v189_v2  ;;  %v214_v6 = vmul.f32 %v643_v0, %v171_v3  ;;  %v233_v7 = vmul.f32 %v643_v0, %v190_v4  ;;  %v172_v8 = vld [vmem:[%s648_s19 + $0x8] sm:$0xff]  ;;  %v191_v9 = vld [vmem:[%s648_s19 + $0xa0] sm:$0xff]  ;;  %v173_v14 = vld [vmem:[%s648_s19 + $0x10] sm:$0xff] }
  0x13   : > { %v192_v10 = vld [vmem:[%s648_s19 + $0xa8] sm:$0xff]  ;;  %v215_v11 = vmul.f32 %v643_v0, %v172_v8  ;;  %v234_v12 = vmul.f32 %v643_v0, %v191_v9  ;;  %v174_v15 = vld [vmem:[%s648_s19 + $0x18] sm:$0xff]  ;;  %v216_v19 = vmul.f32 %v643_v0, %v173_v14  ;;  %v193_v24 = vld [vmem:[%s648_s19 + $0xb0] sm:$0xff] }
  0x14   : > { %v235_v13 = vmul.f32 %v643_v0, %v192_v10  ;;  %v275_v16 = vadd.f32 %v653_v1, %v232_v5  ;;  %v257_v17 = vadd.f32 %v653_v1, %v214_v6  ;;  %v276_v18 = vadd.f32 %v653_v1, %v233_v7  ;;  %v175_v25 = vld [vmem:[%s648_s19 + $0x20] sm:$0xff]  ;;  %v194_v26 = vld [vmem:[%s648_s19 + $0xb8] sm:$0xff]  ;;  %v176_v31 = vld [vmem:[%s648_s19 + $0x28] sm:$0xff] }
  0x15   : > { %v258_v20 = vadd.f32 %v653_v1, %v215_v11  ;;  %v277_v21 = vadd.f32 %v653_v1, %v234_v12  ;;  %v217_v23 = vmul.f32 %v643_v0, %v174_v15  ;;  %v259_v30 = vadd.f32 %v653_v1, %v216_v19  ;;  %v195_v40 = vld [vmem:[%s648_s19 + $0xc0] sm:$0xff]  ;;  %v177_v45 = vld [vmem:[%s648_s19 + $0x30] sm:$0xff]  ;;  %v196_v50 = vld [vmem:[%s648_s19 + $0xc8] sm:$0xff] }
  0x16   : > { %v278_v22 = vadd.f32 %v653_v1, %v235_v13  ;;  %v311_v27 = vmax.f32 %v275_v16, 0.0  ;;  %v293_v28 = vmax.f32 %v257_v17, 0.0  ;;  %v312_v29 = vmax.f32 %v276_v18, 0.0  ;;  %v178_v5 = vld [vmem:[%s648_s19 + $0x38] sm:$0xff]  ;;  %v197_v6 = vld [vmem:[%s648_s19 + $0xd0] sm:$0xff]  ;;  %v179_v7 = vld [vmem:[%s648_s19 + $0x40] sm:$0xff] }
  0x17   : > { %v294_v32 = vmax.f32 %v258_v20, 0.0  ;;  %v313_v33 = vmax.f32 %v277_v21, 0.0  ;;  %v260_v35 = vadd.f32 %v653_v1, %v217_v23  ;;  %v295_v36 = vmax.f32 %v259_v30, 0.0 }
  0x18   : > { %v314_v34 = vmax.f32 %v278_v22, 0.0  ;;  %476 = vxpose.xlu1.b32.start [1/16] (narrow) %v311_v27, 64  ;;  %444 = vxpose.xlu0.b32.start [1/16] (narrow) %v293_v28, 64  ;;  %v236_v37 = vmul.f32 %v643_v0, %v193_v24  ;;  %v218_v38 = vmul.f32 %v643_v0, %v175_v25  ;;  %v237_v39 = vmul.f32 %v643_v0, %v194_v26  ;;  %v198_v28 = vld [vmem:[%s648_s19 + $0xd8] sm:$0xff] }
  0x19   : > { %v391_v41 = vrot.slane %v313_v33, 2  ;;  %v296_v43 = vmax.f32 %v260_v35, 0.0  ;;  %v219_v44 = vmul.f32 %v643_v0, %v176_v31  ;;  %v333_v46 = vrot.slane %v295_v36, 2  ;;  %v200_v33 = vld [vmem:[%s648_s19 + $0xe8] sm:$0xff] }
  0x1a   : > { %v392_v42 = vrot.slane %v314_v34, 2  ;;  %v279_v47 = vadd.f32 %v653_v1, %v236_v37  ;;  %v261_v48 = vadd.f32 %v653_v1, %v218_v38  ;;  %v280_v49 = vadd.f32 %v653_v1, %v237_v39  ;;  %v180_v38 = vld [vmem:[%s648_s19 + $0x48] sm:$0xff]  ;;  %v201_v39 = vld [vmem:[%s648_s19 + $0xf0] sm:$0xff] }
  0x1b   : > { %v334_v52 = vrot.slane %v296_v43, 2  ;;  %v262_v53 = vadd.f32 %v653_v1, %v219_v44  ;;  %v238_v54 = vmul.f32 %v643_v0, %v195_v40  ;;  %v220_v58 = vmul.f32 %v643_v0, %v177_v45  ;;  %v199_v43 = vld [vmem:[%s648_s19 + $0xe0] sm:$0xff] }
  0x1c   : > { %v393_v51 = vsel %vm332_vm0, %v391_v41, %v392_v42  ;;  %477 = vxpose.xlu1.b32.cont [2/16] (narrow) %v312_v29, 64  ;;  %445 = vxpose.xlu0.b32.cont [2/16] (narrow) %v294_v32, 64  ;;  %v315_v55 = vmax.f32 %v279_v47, 0.0  ;;  %v297_v56 = vmax.f32 %v261_v48, 0.0  ;;  %v316_v57 = vmax.f32 %v280_v49, 0.0  ;;  %v182_v41 = vld [vmem:[%s648_s19 + $0x58] sm:$0xff] }
  0x1d   : > { %v335_v59 = vsel %vm332_vm0, %v333_v46, %v334_v52  ;;  %v298_v60 = vmax.f32 %v262_v53, 0.0  ;;  %v281_v61 = vadd.f32 %v653_v1, %v238_v54  ;;  %v239_v62 = vmul.f32 %v643_v0, %v196_v50  ;;  %v181_v48 = vld [vmem:[%s648_s19 + $0x50] sm:$0xff]  ;;  %v202_v50 = vld [vmem:[%s648_s19 + $0xf8] sm:$0xff] }
  0x1e   : > { %v394_v63 = vrot.slane %v315_v55, 2  ;;  %v336_v2 = vrot.slane %v297_v56, 2  ;;  %v400_v3 = vrot.slane %v315_v55, 4  ;;  %v263_v4 = vadd.f32 %v653_v1, %v220_v58  ;;  %v184_v55 = vld [vmem:[%s648_s19 + $0x68] sm:$0xff] }
  0x1f   : > { %v401_v8 = vrot.slane %v316_v57, 4  ;;  %v343_v9 = vrot.slane %v297_v56, 4  ;;  %v344_v10 = vrot.slane %v298_v60, 4  ;;  %v317_v11 = vmax.f32 %v281_v61, 0.0 }
  0x20   : > { %478 = vxpose.xlu1.b32.cont [3/16] (narrow) %v393_v51, 64  ;;  %446 = vxpose.xlu0.b32.cont [3/16] (narrow) %v335_v59, 64  ;;  %v395_v12 = vsel %vm332_vm0, %v392_v42, %v394_v63  ;;  %v337_v13 = vsel %vm332_vm0, %v334_v52, %v336_v2  ;;  %v299_v14 = vmax.f32 %v263_v4, 0.0  ;;  %v282_v15 = vadd.f32 %v653_v1, %v239_v62  ;;  %v183_v42 = vld [vmem:[%s648_s19 + $0x60] sm:$0xff] }
  0x21   : > { %v221_v16 = vmul.f32 %v643_v0, %v178_v5  ;;  %v240_v17 = vmul.f32 %v643_v0, %v197_v6  ;;  %v222_v18 = vmul.f32 %v643_v0, %v179_v7  ;;  %v403_v19 = vrot.slane %v317_v11, 4  ;;  %v203_v2 = vld [vmem:[%s648_s19 + $0x100] sm:$0xff]  ;;  %v185_v7 = vld [vmem:[%s648_s19 + $0x70] sm:$0xff] }
  0x22   : > { %v318_v20 = vmax.f32 %v282_v15, 0.0  ;;  %v402_v23 = vsel %vm342_vm1, %v400_v3, %v401_v8  ;;  %v345_v24 = vsel %vm342_vm1, %v343_v9, %v344_v10  ;;  %v346_v25 = vrot.slane %v299_v14, 4 }
  0x23   : > { %v264_v21 = vadd.f32 %v653_v1, %v221_v16  ;;  %v283_v22 = vadd.f32 %v653_v1, %v240_v17  ;;  %v265_v26 = vadd.f32 %v653_v1, %v222_v18  ;;  %v404_v29 = vsel %vm342_vm1, %v401_v8, %v403_v19 }
  0x24   : > { %479 = vxpose.xlu1.b32.cont [4/16] (narrow) %v395_v12, 64  ;;  %447 = vxpose.xlu0.b32.cont [4/16] (narrow) %v337_v13, 64  ;;  %v409_v30 = vrot.slane %v317_v11, 6  ;;  %v410_v31 = vrot.slane %v318_v20, 6  ;;  %v347_v34 = vsel %vm342_vm1, %v344_v10, %v346_v25  ;;  %v353_v35 = vrot.slane %v299_v14, 6  ;;  %v204_v20 = vld [vmem:[%s648_s19 + $0x108] sm:$0xff] }
  0x25   : > { %v300_v27 = vmax.f32 %v264_v21, 0.0  ;;  %v319_v32 = vmax.f32 %v283_v22, 0.0  ;;  %v301_v37 = vmax.f32 %v265_v26, 0.0  ;;  %v241_v40 = vmul.f32 %v643_v0, %v198_v28  ;;  %v186_v22 = vld [vmem:[%s648_s19 + $0x78] sm:$0xff] }
  0x26   : > { %v243_v44 = vmul.f32 %v643_v0, %v200_v33  ;;  %v411_v45 = vsel %vm352_vm2, %v409_v30, %v410_v31  ;;  %v223_v47 = vmul.f32 %v643_v0, %v180_v38  ;;  %v244_v49 = vmul.f32 %v643_v0, %v201_v39 }
  0x27   : > { %v354_v36 = vrot.slane %v300_v27, 6  ;;  %v412_v46 = vrot.slane %v319_v32, 6  ;;  %v356_v52 = vrot.slane %v301_v37, 6  ;;  %v225_v53 = vmul.f32 %v643_v0, %v182_v41 }
  0x28   : > { %480 = vxpose.xlu1.b32.cont [5/16] (narrow) %v402_v23, 64  ;;  %448 = vxpose.xlu0.b32.cont [5/16] (narrow) %v345_v24, 64  ;;  %v226_v54 = vmul.f32 %v643_v0, %v183_v42  ;;  %v284_v56 = vadd.f32 %v653_v1, %v241_v40  ;;  %v242_v57 = vmul.f32 %v643_v0, %v199_v43 }
  0x29   : > { %v355_v51 = vsel %vm352_vm2, %v353_v35, %v354_v36  ;;  %v224_v58 = vmul.f32 %v643_v0, %v181_v48  ;;  %v286_v59 = vadd.f32 %v653_v1, %v243_v44  ;;  %v245_v60 = vmul.f32 %v643_v0, %v202_v50  ;;  %v187_v35 = vld [vmem:[%s648_s19 + $0x80] sm:$0xff] }
  0x2a   : > { %v266_v61 = vadd.f32 %v653_v1, %v223_v47  ;;  %v287_v62 = vadd.f32 %v653_v1, %v244_v49  ;;  %v227_v63 = vmul.f32 %v643_v0, %v184_v55  ;;  %v413_v3 = vsel %vm352_vm2, %v410_v31, %v412_v46  ;;  %v206_v46 = vld [vmem:[%s648_s19 + $0x118] sm:$0xff]  ;;  %v188_v47 = vld [vmem:[%s648_s19 + $0x88] sm:$0xff] }
  0x2b   : > { %v357_v4 = vsel %vm352_vm2, %v354_v36, %v356_v52  ;;  %v268_v5 = vadd.f32 %v653_v1, %v225_v53  ;;  %v269_v6 = vadd.f32 %v653_v1, %v226_v54  ;;  %v320_v8 = vmax.f32 %v284_v56, 0.0 }
  0x2c   : > { %481 = vxpose.xlu1.b32.cont [6/16] (narrow) %v404_v29, 64  ;;  %449 = vxpose.xlu0.b32.cont [6/16] (narrow) %v347_v34, 64  ;;  %v285_v9 = vadd.f32 %v653_v1, %v242_v57  ;;  %v267_v10 = vadd.f32 %v653_v1, %v224_v58  ;;  %v322_v11 = vmax.f32 %v286_v59, 0.0  ;;  %v288_v12 = vadd.f32 %v653_v1, %v245_v60  ;;  %v205_v34 = vld [vmem:[%s648_s19 + $0x110] sm:$0xff] }
  0x2d   : > { %v246_v13 = vmul.f32 %v643_v0, %v203_v2  ;;  %v302_v14 = vmax.f32 %v266_v61, 0.0  ;;  %v323_v15 = vmax.f32 %v287_v62, 0.0  ;;  %v270_v16 = vadd.f32 %v653_v1, %v227_v63 }
  0x2e   : > { %v228_v17 = vmul.f32 %v643_v0, %v185_v7  ;;  %v304_v18 = vmax.f32 %v268_v5, 0.0  ;;  %v305_v19 = vmax.f32 %v269_v6, 0.0  ;;  %v321_v21 = vmax.f32 %v285_v9, 0.0 }
  0x2f   : > { %v303_v23 = vmax.f32 %v267_v10, 0.0  ;;  %v419_v24 = vrot.slane %v322_v11, 2  ;;  %v324_v25 = vmax.f32 %v288_v12, 0.0  ;;  %v289_v26 = vadd.f32 %v653_v1, %v246_v13 }
  0x30   : > { %482 = vxpose.xlu1.b32.cont [7/16] (narrow) %v411_v45, 64  ;;  %450 = vxpose.xlu0.b32.cont [7/16] (narrow) %v355_v51, 64  ;;  %v420_v27 = vrot.slane %v323_v15, 2  ;;  %v306_v28 = vmax.f32 %v270_v16, 0.0  ;;  %v271_v29 = vadd.f32 %v653_v1, %v228_v17  ;;  %v247_v30 = vmul.f32 %v643_v0, %v204_v20 }
  0x31   : > { %v363_v31 = vrot.slane %v304_v18, 2  ;;  %v364_v32 = vrot.slane %v305_v19, 2  ;;  %v229_v33 = vmul.f32 %v643_v0, %v186_v22  ;;  %v422_v36 = vrot.slane %v324_v25, 2 }
  0x32   : > { %v325_v37 = vmax.f32 %v289_v26, 0.0  ;;  %v421_v38 = vsel %vm332_vm0, %v419_v24, %v420_v27  ;;  %v366_v39 = vrot.slane %v306_v28, 2  ;;  %v307_v40 = vmax.f32 %v271_v29, 0.0 }
  0x33   : > { %v290_v41 = vadd.f32 %v653_v1, %v247_v30  ;;  %v365_v42 = vsel %vm332_vm0, %v363_v31, %v364_v32  ;;  %v272_v43 = vadd.f32 %v653_v1, %v229_v33  ;;  %v248_v44 = vmul.f32 %v643_v0, %v205_v34 }
  0x34   : > { %483 = vxpose.xlu1.b32.cont [8/16] (narrow) %v413_v3, 64  ;;  %451 = vxpose.xlu0.b32.cont [8/16] (narrow) %v357_v4, 64  ;;  %v230_v45 = vmul.f32 %v643_v0, %v187_v35  ;;  %v423_v48 = vsel %vm332_vm0, %v420_v27, %v422_v36  ;;  %v428_v49 = vrot.slane %v324_v25, 4  ;;  %v429_v50 = vrot.slane %v325_v37, 4 }
  0x35   : > { %v372_v51 = vrot.slane %v306_v28, 4  ;;  %v367_v52 = vsel %vm332_vm0, %v364_v32, %v366_v39  ;;  %v373_v53 = vrot.slane %v307_v40, 4  ;;  %v326_v54 = vmax.f32 %v290_v41, 0.0 }
  0x36   : > { %v249_v55 = vmul.f32 %v643_v0, %v206_v46  ;;  %v308_v56 = vmax.f32 %v272_v43, 0.0  ;;  %v291_v57 = vadd.f32 %v653_v1, %v248_v44  ;;  %v273_v58 = vadd.f32 %v653_v1, %v230_v45 }
  0x37   : > { %v231_v59 = vmul.f32 %v643_v0, %v188_v47  ;;  %v430_v60 = vsel %vm342_vm1, %v428_v49, %v429_v50  ;;  %v374_v61 = vsel %vm342_vm1, %v372_v51, %v373_v53  ;;  %v431_v62 = vrot.slane %v326_v54, 4 }
  0x38   : > { %484 = vxpose.xlu1.b32.cont [9/16] (narrow) %v320_v8, 64  ;;  %452 = vxpose.xlu0.b32.cont [9/16] (narrow) %v302_v14, 64  ;;  %v292_v63 = vadd.f32 %v653_v1, %v249_v55  ;;  %v375_v2 = vrot.slane %v308_v56, 4  ;;  %v327_v3 = vmax.f32 %v291_v57, 0.0  ;;  %v309_v4 = vmax.f32 %v273_v58, 0.0 }
  0x39   : > { %v274_v5 = vadd.f32 %v653_v1, %v231_v59  ;;  %v432_v6 = vsel %vm342_vm1, %v429_v50, %v431_v62  ;;  %v437_v7 = vrot.slane %v326_v54, 6  ;;  %v381_v0 = vrot.slane %v308_v56, 6 }
  0x3a   : > { %v328_v8 = vmax.f32 %v292_v63, 0.0  ;;  %v376_v9 = vsel %vm342_vm1, %v373_v53, %v375_v2  ;;  %v438_v10 = vrot.slane %v327_v3, 6  ;;  %v382_v11 = vrot.slane %v309_v4, 6 }
  0x3b   : > { %v310_v12 = vmax.f32 %v274_v5, 0.0 }
  0x3c   : > { %485 = vxpose.xlu1.b32.cont [10/16] (narrow) %v321_v21, 64  ;;  %453 = vxpose.xlu0.b32.cont [10/16] (narrow) %v303_v23, 64  ;;  %v439_v13 = vsel %vm352_vm2, %v437_v7, %v438_v10  ;;  %v383_v14 = vsel %vm352_vm2, %v381_v0, %v382_v11  ;;  %v440_v1 = vrot.slane %v328_v8, 6 }
  0x3d   : > { %v384_v15 = vrot.slane %v310_v12, 6 }
  0x3e   : > { %v441_v16 = vsel %vm352_vm2, %v438_v10, %v440_v1 }
  0x3f   : > { %v385_v17 = vsel %vm352_vm2, %v382_v11, %v384_v15 }
  0x40   : > { %486 = vxpose.xlu1.b32.cont [11/16] (narrow) %v421_v38, 64  ;;  %454 = vxpose.xlu0.b32.cont [11/16] (narrow) %v365_v42, 64 }
  0x44   : > { %487 = vxpose.xlu1.b32.cont [12/16] (narrow) %v423_v48, 64  ;;  %455 = vxpose.xlu0.b32.cont [12/16] (narrow) %v367_v52, 64 }
  0x48   : > { %488 = vxpose.xlu1.b32.cont [13/16] (narrow) %v430_v60, 64  ;;  %456 = vxpose.xlu0.b32.cont [13/16] (narrow) %v374_v61, 64 }
  0x4c   : > { %489 = vxpose.xlu1.b32.cont [14/16] (narrow) %v432_v6, 64  ;;  %457 = vxpose.xlu0.b32.cont [14/16] (narrow) %v376_v9, 64 }
  0x50   : > { %490 = vxpose.xlu1.b32.cont [15/16] (narrow) %v439_v13, 64  ;;  %458 = vxpose.xlu0.b32.cont [15/16] (narrow) %v383_v14, 64 }
  0x54   : > { %491 = vxpose.xlu1.b32.end [16/16] (narrow) %v441_v16, 64  ;;  %459 = vxpose.xlu0.b32.end [16/16] (narrow) %v385_v17, 64 }
  0x98   : > { %v492_v18 = vpop.trf.xlu1  ;;  %v460_v19 = vpop.trf.xlu0 }
  0x99   : > { %509 = vst [vmem:[%s791_s25 + $0x8] sm:$0xff] %v492_v18  ;;  %508 = vst [vmem:[%s791_s25] sm:$0xff] %v460_v19 }
  0x9c   : > { %v493_v20 = vpop.trf.xlu1  ;;  %v461_v21 = vpop.trf.xlu0 }
  0x9d   : > { %511 = vst [vmem:[%s791_s25 + $0x18] sm:$0xff] %v493_v20  ;;  %510 = vst [vmem:[%s791_s25 + $0x10] sm:$0xff] %v461_v21 }
  0xa0   : > { %v494_v22 = vpop.trf.xlu1  ;;  %v462_v23 = vpop.trf.xlu0 }
  0xa1   : > { %513 = vst [vmem:[%s791_s25 + $0x28] sm:$0xff] %v494_v22  ;;  %512 = vst [vmem:[%s791_s25 + $0x20] sm:$0xff] %v462_v23 }
  0xa4   : > { %v495_v24 = vpop.trf.xlu1  ;;  %v463_v25 = vpop.trf.xlu0 }
  0xa5   : > { %515 = vst [vmem:[%s791_s25 + $0x38] sm:$0xff] %v495_v24  ;;  %514 = vst [vmem:[%s791_s25 + $0x30] sm:$0xff] %v463_v25 }
  0xa8   : > { %v496_v26 = vpop.trf.xlu1  ;;  %v464_v27 = vpop.trf.xlu0 }
  0xa9   : > { %517 = vst [vmem:[%s791_s25 + $0x48] sm:$0xff] %v496_v26  ;;  %516 = vst [vmem:[%s791_s25 + $0x40] sm:$0xff] %v464_v27 }
  0xac   : > { %v497_v28 = vpop.trf.xlu1  ;;  %v465_v29 = vpop.trf.xlu0 }
  0xad   : > { %519 = vst [vmem:[%s791_s25 + $0x58] sm:$0xff] %v497_v28  ;;  %518 = vst [vmem:[%s791_s25 + $0x50] sm:$0xff] %v465_v29 }
  0xb0   : > { %v498_v30 = vpop.trf.xlu1  ;;  %v466_v31 = vpop.trf.xlu0 }
  0xb1   : > { %521 = vst [vmem:[%s791_s25 + $0x68] sm:$0xff] %v498_v30  ;;  %520 = vst [vmem:[%s791_s25 + $0x60] sm:$0xff] %v466_v31 }
  0xb4   : > { %v499_v32 = vpop.trf.xlu1  ;;  %v467_v33 = vpop.trf.xlu0 }
  0xb5   : > { %523 = vst [vmem:[%s791_s25 + $0x78] sm:$0xff] %v499_v32  ;;  %522 = vst [vmem:[%s791_s25 + $0x70] sm:$0xff] %v467_v33 }
  0xb6 PF: > { %s13_s12 = sadd.s32 1, %s607_s12  }
  0xb7   : > { %p10_p4 = scmp.ge.s32.totalorder %s13_s12, 4  }
  0xb9   :  { %12 = sbr.rel (!%p10_p4) target bundleno = 1 (0x1), region = 62 }

// kernel: up_forward.5
= control target key start
LH: loop header
LB: loop body
LE: loop exit
PB: predicated region body
PF: predicated region fallthrough
CT: control target
= control target key end

     0   :  { %s6738_s12 = smov 0   ;;  %s8782_s0 = inlined_call_operand.vmem [shape: bf16[2,328,128], index: 0, kind: input, shape index: {}]   ;;  %s8783_s1 = inlined_call_operand.vmem [shape: bf16[1152,128], index: 1, kind: input, shape index: {}]   ;;  %s8784_s2 = inlined_call_operand.vmem [shape: bf16[2,288,128], index: 2, kind: output, shape index: {0}]   ;;  %s8785_s3 = inlined_call_operand.vmem [shape: f32[2,8,256], index: 3, kind: output, shape index: {1}]  }
   0x1 LB: > { %s5082_s13 = sadd.s32 4294967295, %s6715_s12   ;;  %p5086_p0 = scmp.ge.s32.totalorder %s6715_s12, 1  ;;  %s6715_s12 = sphi %s6738_s12, %s14_s12  }
   0x2   : > { %p140_p1 = scmp.lt.s32.totalorder %s6715_s12, 3 }
   0x4   : > { %p141_p2 = pnand %p5086_p0, %p140_p1 }
   0x6   : > { %144 = sbr.rel (%p141_p2) target bundleno = 608 (0x260), region = 28 }
   0xd   : > { %v6532_v0 = vld [vmem:[%s8783_s1 + $0x40] sm:$0xff]   ;;  %p169_p3 = scmp.lt.s32.totalorder %s5082_s13, 1  ;;  %v6534_v2 = vld [vmem:[%s8783_s1 + $0x48] sm:$0xff]   ;;  %v6536_v4 = vld [vmem:[%s8783_s1 + $0x50] sm:$0xff]   ;;  %vm347_vm0 = vsmask.f32 7424 }
   0xe   : > { %v6533_v1 = vld [vmem:[%s8783_s1 + $0x100] sm:$0xff]   ;;  %5677 = vmatprep.subr.bf16.mxu1 %v6532_v0  ;;  %v6535_v3 = vld [vmem:[%s8783_s1 + $0x108] sm:$0xff]   ;;  %v6537_v5 = vld [vmem:[%s8783_s1 + $0x110] sm:$0xff]   ;;  %vm1801_vm1 = vsmask.f32 6400  ;;  %vm2271_vm2 = vcmask 1045504  }
   0xf   : > { %5885 = vmatprep.subr.bf16.mxu0 %v6533_v1  ;;  %5678 = vmatpush3.bf16.msra.mxu1 %v6532_v0  ;;  %s8927_s13 = smov (!%p169_p3, %s5082_s13), 1  ;;  %v6538_v6 = vld [vmem:[%s8783_s1 + $0x58] sm:$0xff]   ;;  %v6540_v8 = vld [vmem:[%s8783_s1 + $0x60] sm:$0xff]   ;;  %v6542_v10 = vld [vmem:[%s8783_s1 + $0x68] sm:$0xff]   ;;  %vm1002_vm3 = vcmask 1046528   ;;  %vm3540_vm5 = vcmask 1044480  }
  0x10   : > { %5886 = vmatpush3.bf16.msra.mxu0 %v6533_v1  ;;  %5679 = vmatprep.subr.bf16.mxu1 %v6534_v2  ;;  %v6539_v7 = vld [vmem:[%s8783_s1 + $0x118] sm:$0xff]   ;;  %s6449_s30 = smul.u32 164, %s8927_s13  ;;  %v6541_v9 = vld [vmem:[%s8783_s1 + $0x120] sm:$0xff]   ;;  %v6543_v11 = vld [vmem:[%s8783_s1 + $0x128] sm:$0xff]   ;;  %vm3070_vm4 = vsmask.f32 5376 }
  0x11   : > { %5887 = vmatprep.subr.bf16.mxu0 %v6535_v3  ;;  %v6544_v17 = vld [vmem:[%s8783_s1 + $0x70] sm:$0xff]   ;;  %v6546_v32 = vld [vmem:[%s8783_s1 + $0x78] sm:$0xff]   ;;  %v6553_v48 = vld [vmem:[%s8783_s1] sm:$0xff]   ;;  %s5299_s9 = sshll.u32 %s8927_s13, 4 }
  0x12   : > { %s6782_s10 = scalar_lea.vmem %s8782_s0, %s6449_s30  ;;  %v6545_v20 = vld [vmem:[%s8783_s1 + $0x130] sm:$0xff]   ;;  %v6547_v36 = vld [vmem:[%s8783_s1 + $0x138] sm:$0xff]   ;;  %v6555_v54 = vld [vmem:[%s8783_s1 + $0x140] sm:$0xff]   ;;  %s183_s15 = scalar_lea.vmem %s8785_s3, %s5299_s9 }
  0x13   : > { %5680 = vmatpush3.bf16.msra.mxu1 %v6534_v2  ;;  %v185_v12 = vld [vmem:[%s6782_s10] sm:$0xf]  ;;  %v186_v13 = vld [vmem:[%s6782_s10 + $0x4] sm:$0xf]  ;;  %v6795_v15 = vld [vmem:[%s6782_s10 + $0x8] sm:$0xff]  }
  0x14   : > { %5888 = vmatpush3.bf16.msra.mxu0 %v6535_v3  ;;  %5681 = vmatprep.subr.bf16.mxu1 %v6536_v4  ;;  %v6792_v14 = vcombine.low %v185_v12, %v186_v13  ;;  %v6798_v16 = vld [vmem:[%s6782_s10 + $0x10] sm:$0xff]   ;;  %v1319_v18 = vld [vmem:[%s6782_s10 + $0x8] sm:$0xe]  ;;  %v6805_v19 = vld [vmem:[%s6782_s10 + $0xc] sm:$0xf]  ;;  %v356_v23 = vshll.u32 %v6795_v15, 16 }
  0x15   : > { %5889 = vmatprep.subr.bf16.mxu0 %v6537_v5  ;;  %v6814_v24 = vcombine.low %v1319_v18, %v6805_v19  ;;  %v6817_v25 = vld [vmem:[%s6782_s10 + $0x10] sm:$0xff]   ;;  %v1811_v26 = vshrl.u32 %v6798_v16, 16  ;;  %v1814_v27 = vshll.u32 %v6798_v16, 16  ;;  %v360_v40 = vshrl.u32 %v6795_v15, 16  ;;  %v6832_v41 = vld [vmem:[%s6782_s10 + $0x18] sm:$0xff]   ;;  %v6849_v57 = vld [vmem:[%s6782_s10 + $0x20] sm:$0xff]  }
  0x16   : > { %v349_v21 = vshrl.u32 %v6792_v14, 16  ;;  %v351_v22 = vshll.u32 %v6792_v14, 16  ;;  %v358_v29 = vrot.slane %v356_v23, 1  ;;  %v364_v35 = vshll.u32 %v6817_v25, 16  ;;  %v6846_v55 = vld [vmem:[%s6782_s10 + $0x18] sm:$0xff]   ;;  %v6853_v60 = vld [vmem:[%s6782_s10 + $0x20] sm:$0xff]  }
  0x17   : > { %5682 = vmatpush3.bf16.msra.mxu1 %v6536_v4  ;;  %v1803_v30 = vshrl.u32 %v6814_v24, 16  ;;  %v1806_v31 = vshll.u32 %v6814_v24, 16  ;;  %v1813_v33 = vrot.slane %v1811_v26, 1  ;;  %v1816_v34 = vrot.slane %v1814_v27, 2  ;;  %v6857_v62 = vld [vmem:[%s6782_s10 + $0x28] sm:$0xff]  }
  0x18   : > { %5890 = vmatpush3.bf16.msra.mxu0 %v6537_v5  ;;  %5683 = vmatprep.subr.bf16.mxu1 %v6538_v6  ;;  %v353_v28 = vrot.slane %v351_v22, 1  ;;  %v1820_v45 = vshrl.u32 %v6832_v41, 16  ;;  %v1823_v46 = vshll.u32 %v6832_v41, 16  ;;  %v366_v47 = vrot.slane %v364_v35, 1  ;;  %v6877_v22 = vld [vmem:[%s6782_s10 + $0x28] sm:$0xff]  }
  0x19   : > { %5891 = vmatprep.subr.bf16.mxu0 %v6539_v7  ;;  %v1805_v38 = vrot.slane %v1803_v30, 1  ;;  %v1808_v39 = vrot.slane %v1806_v31, 2  ;;  %v1817_v42 = vor.u32 %v1816_v34, %v1813_v33  ;;  %v368_v49 = vshrl.u32 %v6817_v25, 16  ;;  %v6886_v31 = vld [vmem:[%s6782_s10 + $0x30] sm:$0xff]   ;;  %v6890_v33 = vld [vmem:[%s6782_s10 + $0x38] sm:$0xff]  }
  0x1a   : > { %v354_v37 = vor.u32 %v353_v28, %v349_v21  ;;  %v362_v51 = vor.u32 %v360_v40, %v358_v29  ;;  %v1822_v52 = vrot.slane %v1820_v45, 1  ;;  %v1825_v53 = vrot.slane %v1823_v46, 2  ;;  %v6561_v21 = vld [vmem:[%s8783_s1 + $0x150] sm:$0xff]  }
  0x1b   : > { %5684 = vmatpush3.bf16.msra.mxu1 %v6538_v6  ;;  %v1809_v44 = vor.u32 %v1808_v39, %v1805_v38  ;;  %v370_v58 = vor.u32 %v368_v49, %v366_v47  ;;  %v372_v59 = vshll.u32 %v6846_v55, 16  ;;  %v376_v61 = vshrl.u32 %v6846_v55, 16  ;;  %v6882_v28 = vld [vmem:[%s6782_s10 + $0x30] sm:$0xff]  }
  0x1c   : > { %5892 = vmatpush3.bf16.msra.mxu0 %v6539_v7  ;;  %5685 = vmatprep.subr.bf16.mxu1 %v6540_v8  ;;  %v359_v43 = vsel %vm347_vm0, %v354_v37, %v358_v29  ;;  %v1826_v56 = vor.u32 %v1825_v53, %v1822_v52  ;;  %v367_v63 = vsel %vm347_vm0, %v362_v51, %v366_v47  ;;  %v1829_v1 = vshrl.u32 %v6849_v57, 16  ;;  %v6556_v7 = vld [vmem:[%s8783_s1 + $0x148] sm:$0xff]   ;;  %v6569_v46 = vld [vmem:[%s8783_s1 + $0x10] sm:$0xff]   ;;  %v6568_v53 = vld [vmem:[%s8783_s1 + $0x160] sm:$0xff]  }
  0x1d   : > { %5893 = vmatprep.subr.bf16.mxu0 %v6541_v9  ;;  %5693 = vmatprep.mubr.bf16.mxu1 %v359_v43  ;;  %v1818_v50 = vsel %vm1801_vm1, %v1809_v44, %v1817_v42  ;;  %v1832_v2 = vshll.u32 %v6849_v57, 16  ;;  %v374_v3 = vrot.slane %v372_v59, 1  ;;  %v380_v4 = vshll.u32 %v6853_v60, 16  ;;  %v6563_v43 = vld [vmem:[%s8783_s1 + $0x158] sm:$0xff]  }
  0x1e   : > { %5901 = vmatprep.mubr.bf16.mxu0 %v1818_v50  ;;  %v1827_v0 = vsel %vm1801_vm1, %v1817_v42, %v1826_v56  ;;  %v1838_v5 = vshrl.u32 %v6857_v62, 16  ;;  %v1841_v6 = vshll.u32 %v6857_v62, 16  ;;  %v384_v23 = vshrl.u32 %v6853_v60, 16 }
  0x1f   : > { %5686 = vmatpush3.bf16.msra.mxu1 %v6540_v8  ;;  %v1831_v8 = vrot.slane %v1829_v1, 1  ;;  %v382_v18 = vrot.slane %v380_v4, 1  ;;  %v388_v30 = vshll.u32 %v6877_v22, 16  ;;  %v1850_v37 = vshll.u32 %v6882_v28, 16  ;;  %v6919_v1 = vld [vmem:[%s6782_s10 + $0x40] sm:$0xff]  }
  0x20   : > { %5894 = vmatpush3.bf16.msra.mxu0 %v6541_v9  ;;  %5687 = vmatprep.subr.bf16.mxu1 %v6542_v10  ;;  %v1834_v9 = vrot.slane %v1832_v2, 2  ;;  %v1840_v12 = vrot.slane %v1838_v5, 1  ;;  %v396_v39 = vshll.u32 %v6886_v31, 16  ;;  %v1856_v40 = vshrl.u32 %v6890_v33, 16 }
  0x21   : > { %5895 = vmatprep.subr.bf16.mxu0 %v6543_v11  ;;  %v386_v29 = vor.u32 %v384_v23, %v382_v18  ;;  %v390_v38 = vrot.slane %v388_v30, 1  ;;  %v1859_v42 = vshll.u32 %v6890_v33, 16  ;;  %v1852_v45 = vrot.slane %v1850_v37, 2  ;;  %v6576_v30 = vld [vmem:[%s8783_s1 + $0x18] sm:$0xff]   ;;  %v2251_v37 = vld [vmem:[%s6782_s10 + $0x8] sm:$0xc] }
  0x22   : > { %v1835_v13 = vor.u32 %v1834_v9, %v1831_v8  ;;  %v398_v51 = vrot.slane %v396_v39, 1  ;;  %v2273_v39 = vrot.slane %v6798_v16, 2 }
  0x23   : > { %5688 = vmatpush3.bf16.msra.mxu1 %v6542_v10  ;;  %v6562_v10 = vld [vmem:[%s8783_s1 + $0x8] sm:$0xff]   ;;  %v391_v47 = vsel %vm347_vm0, %v386_v29, %v390_v38  ;;  %v1861_v52 = vrot.slane %v1859_v42, 2  ;;  %v6575_v29 = vld [vmem:[%s8783_s1 + $0x170] sm:$0xff]  }
  0x24   : > { %5896 = vmatpush3.bf16.msra.mxu0 %v6543_v11  ;;  %5689 = vmatprep.subr.bf16.mxu1 %v6544_v17  ;;  %v375_v11 = vsel %vm347_vm0, %v370_v58, %v374_v3  ;;  %v1836_v26 = vsel %vm1801_vm1, %v1826_v56, %v1835_v13  ;;  %v400_v56 = vshrl.u32 %v6886_v31, 16 }
  0x25   : > { %5897 = vmatprep.subr.bf16.mxu0 %v6545_v20 }
  0x27   : > { %5690 = vmatpush3.bf16.msra.mxu1 %v6544_v17  ;;  %v378_v17 = vor.u32 %v376_v61, %v374_v3  ;;  %v6915_v61 = vld [vmem:[%s6782_s10 + $0x40] sm:$0xff]   ;;  %v6570_v3 = vld [vmem:[%s8783_s1 + $0x168] sm:$0xff]  }
  0x28   : > { %5898 = vmatpush3.bf16.msra.mxu0 %v6545_v20  ;;  %5691 = vmatprep.subr.bf16.mxu1 %v6546_v32  ;;  %v1843_v20 = vrot.slane %v1841_v6, 2  ;;  %v1865_v4 = vshrl.u32 %v6915_v61, 16  ;;  %v1868_v5 = vshll.u32 %v6915_v61, 16 }
  0x29   : > { %5899 = vmatprep.subr.bf16.mxu0 %v6547_v36  ;;  %v383_v34 = vsel %vm347_vm0, %v378_v17, %v382_v18 }
  0x2a   : > { %v1844_v27 = vor.u32 %v1843_v20, %v1840_v12  ;;  %v1870_v12 = vrot.slane %v1868_v5, 2  ;;  %v2277_v5 = vrot.slane %v6849_v57, 2 }
  0x2b   : > { %5692 = vmatpush3.bf16.msra.mxu1 %v6546_v32  ;;  %v392_v32 = vshrl.u32 %v6877_v22, 16 }
  0x2c   : > { %5900 = vmatpush3.bf16.msra.mxu0 %v6547_v36  ;;  %5729 = vmatprep.subr.bf16.mxu1 %v6553_v48  ;;  %v1845_v35 = vsel %vm1801_vm1, %v1835_v13, %v1844_v27  ;;  %v1847_v36 = vshrl.u32 %v6882_v28, 16 }
  0x2d   : > { %5937 = vmatprep.subr.bf16.mxu0 %v6555_v54  ;;  %v394_v50 = vor.u32 %v392_v32, %v390_v38  ;;  %v5171_v38 = vcombine.low %v2251_v37, %v6805_v19  ;;  %v6592_v37 = vld [vmem:[%s8783_s1 + $0x190] sm:$0xff]  }
  0x2e   : > { %5694 = vmatmul.mubr.bf16.vlgmr.msra.gmra.mrb[0].mxu1 %v367_v63  ;;  %v1849_v44 = vrot.slane %v1847_v36, 1  ;;  %v402_v63 = vor.u32 %v400_v56, %v398_v51  ;;  %v416_v36 = vshrl.u32 %v6919_v1, 16 }
  0x2f   : > { %5902 = vmatmul.mubr.bf16.vlgmr.msra.gmra.mrb[0].mxu0 %v1827_v0  ;;  %5730 = vmatpush3.bf16.msra.mxu1 %v6553_v48  ;;  %v1858_v48 = vrot.slane %v1856_v40, 1  ;;  %v399_v2 = vsel %vm347_vm0, %v394_v50, %v398_v51  ;;  %v6953_v40 = vld [vmem:[%s6782_s10 + $0x50] sm:$0xff]   ;;  %v2272_v19 = vrot.slane %v5171_v38, 2 }
  0x30   : > { %5938 = vmatpush3.bf16.msra.mxu0 %v6555_v54  ;;  %5697 = vmatprep.mubr.bf16.mxu1 %v375_v11  ;;  %v1853_v49 = vor.u32 %v1852_v45, %v1849_v44  ;;  %v6910_v54 = vld [vmem:[%s6782_s10 + $0x38] sm:$0xff]   ;;  %v1867_v11 = vrot.slane %v1865_v4, 1  ;;  %v432_v51 = vshrl.u32 %v6953_v40, 16 }
  0x31   : > { %5939 = vmatprep.subr.bf16.mxu0 %v6556_v7  ;;  %5731 = vmatprep.subr.bf16.mxu1 %v6562_v10  ;;  %v1862_v59 = vor.u32 %v1861_v52, %v1858_v48  ;;  %v404_v0 = vshll.u32 %v6910_v54, 16  ;;  %v408_v6 = vshrl.u32 %v6910_v54, 16  ;;  %v428_v48 = vshll.u32 %v6953_v40, 16 }
  0x32   : > { %5905 = vmatprep.mubr.bf16.mxu0 %v1836_v26  ;;  %v1854_v58 = vsel %vm1801_vm1, %v1844_v27, %v1853_v49 }
  0x33   : > { %5732 = vmatpush3.bf16.msra.mxu1 %v6562_v10  ;;  %v1863_v8 = vsel %vm1801_vm1, %v1853_v49, %v1862_v59  ;;  %v406_v9 = vrot.slane %v404_v0, 1  ;;  %v412_v10 = vshll.u32 %v6919_v1, 16  ;;  %v6577_v49 = vld [vmem:[%s8783_s1 + $0x178] sm:$0xff]   ;;  %v430_v56 = vrot.slane %v428_v48, 1 }
  0x34   : > { %5940 = vmatpush3.bf16.msra.mxu0 %v6556_v7  ;;  %5733 = vmatprep.subr.bf16.mxu1 %v6569_v46  ;;  %v6929_v7 = vld [vmem:[%s6782_s10 + $0x48] sm:$0xff]   ;;  %v2275_v0 = vrot.slane %v6832_v41, 2  ;;  %v6598_v48 = vld [vmem:[%s8783_s1 + $0x198] sm:$0xff]  }
  0x35   : > { %5941 = vmatprep.subr.bf16.mxu0 %v6561_v21  ;;  %v1874_v13 = vshrl.u32 %v6929_v7, 16  ;;  %v1877_v17 = vshll.u32 %v6929_v7, 16  ;;  %v407_v18 = vsel %vm347_vm0, %v402_v63, %v406_v9  ;;  %v414_v20 = vrot.slane %v412_v10, 1 }
  0x36   : > { %5698 = vmatmul.mubr.bf16.gmra.mrb[4].mxu1 %v383_v34  ;;  %v410_v23 = vor.u32 %v408_v6, %v406_v9  ;;  %v434_v4 = vor.u32 %v432_v51, %v430_v56  ;;  %v6584_v6 = vld [vmem:[%s8783_s1 + $0x180] sm:$0xff]   ;;  %v2276_v57 = vsel %vm2271_vm2, %v2273_v39, %v2275_v0 }
  0x37   : > { %5906 = vmatmul.mubr.bf16.gmra.mrb[4].mxu0 %v1845_v35  ;;  %5701 = vmatprep.mubr.bf16.mxu1 %v391_v47  ;;  %v1876_v26 = vrot.slane %v1874_v13, 1  ;;  %v1879_v27 = vrot.slane %v1877_v17, 2  ;;  %v6946_v35 = vld [vmem:[%s6782_s10 + $0x48] sm:$0xff]   ;;  %v6962_v47 = vld [vmem:[%s6782_s10 + $0x58] sm:$0xff]   ;;  %v6589_v17 = vld [vmem:[%s8783_s1 + $0x30] sm:$0xff]  }
  0x38   : > { %5942 = vmatpush3.bf16.msra.mxu0 %v6561_v21  ;;  %5734 = vmatpush3.bf16.msra.mxu1 %v6569_v46  ;;  %v1871_v21 = vor.u32 %v1870_v12, %v1867_v11  ;;  %v415_v42 = vsel %vm347_vm0, %v410_v23, %v414_v20  ;;  %v420_v44 = vshll.u32 %v6946_v35, 16  ;;  %v424_v45 = vshrl.u32 %v6946_v35, 16  ;;  %v6581_v46 = vld [vmem:[%s8783_s1 + $0x20] sm:$0xff]   ;;  %v7003_v23 = vld [vmem:[%s6782_s10 + $0x70] sm:$0xff]  }
  0x39   : > { %5943 = vmatprep.subr.bf16.mxu0 %v6563_v43  ;;  %5909 = vmatprep.mubr.bf16.mxu0 %v1854_v58  ;;  %v6943_v34 = vor.u32 %v1879_v27, %v1876_v26  ;;  %v436_v52 = vshll.u32 %v6962_v47, 16  ;;  %v6974_v58 = vld [vmem:[%s6782_s10 + $0x60] sm:$0xff]   ;;  %v440_v10 = vshrl.u32 %v6962_v47, 16  ;;  %v2279_v27 = vrot.slane %v6857_v62, 2 }
  0x3a   : > { %v1872_v32 = vsel %vm1801_vm1, %v1862_v59, %v1871_v21  ;;  %5735 = vmatprep.subr.bf16.mxu1 %v6576_v30  ;;  %v422_v50 = vrot.slane %v420_v44, 1  ;;  %v444_v41 = vshll.u32 %v6974_v58, 16  ;;  %v448_v11 = vshrl.u32 %v6974_v58, 16 }
  0x3b   : > { %v1881_v16 = vsel %vm1801_vm1, %v1871_v21, %v6943_v34  ;;  %v460_v38 = vshll.u32 %v7003_v23, 16  ;;  %v464_v44 = vshrl.u32 %v7003_v23, 16 }
  0x3c   : > { %5944 = vmatpush3.bf16.msra.mxu0 %v6563_v43  ;;  %5736 = vmatpush3.bf16.msra.mxu1 %v6576_v30  ;;  %v418_v43 = vor.u32 %v416_v36, %v414_v20  ;;  %v426_v63 = vor.u32 %v424_v45, %v422_v50  ;;  %v6588_v20 = vld [vmem:[%s8783_s1 + $0x188] sm:$0xff]   ;;  %v446_v21 = vrot.slane %v444_v41, 1  ;;  %v2281_v36 = vrot.slane %v6882_v28, 2  ;;  %v6595_v41 = vld [vmem:[%s6782_s10 + $0x50] sm:$0xff]  }
  0x3d   : > { %5945 = vmatprep.subr.bf16.mxu0 %v6568_v53  ;;  %5737 = vmatprep.subr.bf16.mxu1 %v6581_v46 }
  0x3e   : > { %5702 = vmatmul.mubr.bf16.gmra.mrb[8].mxu1 %v399_v2  ;;  %v423_v59 = vsel %vm347_vm0, %v418_v43, %v422_v50  ;;  %v438_v2 = vrot.slane %v436_v52, 1  ;;  %v431_v9 = vsel %vm347_vm0, %v426_v63, %v430_v56  ;;  %v2280_v43 = vsel %vm2271_vm2, %v2277_v5, %v2279_v27 }
  0x3f   : > { %5910 = vmatmul.mubr.bf16.gmra.mrb[8].mxu0 %v1863_v8  ;;  %5705 = vmatprep.mubr.bf16.mxu1 %v407_v18  ;;  %v6986_v8 = vld [vmem:[%s6782_s10 + $0x68] sm:$0xff]   ;;  %v2278_v18 = vsel %vm2271_vm2, %v2275_v0, %v2277_v5  ;;  %v2283_v50 = vrot.slane %v6890_v33, 2  ;;  %v2285_v56 = vrot.slane %v6915_v61, 2  ;;  %v6602_v61 = vld [vmem:[%s8783_s1 + $0x1a0] sm:$0xff]  }
  0x40   : > { %5946 = vmatpush3.bf16.msra.mxu0 %v6568_v53  ;;  %5913 = vmatprep.mubr.bf16.mxu0 %v1872_v32  ;;  %v2274_v53 = vsel %vm2271_vm2, %v2272_v19, %v2273_v39  ;;  %v439_v12 = vsel %vm347_vm0, %v434_v4, %v438_v2  ;;  %v452_v13 = vshll.u32 %v6986_v8, 16  ;;  %v442_v26 = vor.u32 %v440_v10, %v438_v2  ;;  %v7007_v32 = vld [vmem:[%s6782_s10 + $0x78] sm:$0xff]  }
  0x41   : > { %5947 = vmatprep.subr.bf16.mxu0 %v6570_v3  ;;  %5738 = vmatpush3.bf16.msra.mxu1 %v6581_v46  ;;  %v456_v62 = vshrl.u32 %v6986_v8, 16  ;;  %v468_v45 = vshll.u32 %v7007_v32, 16  ;;  %v2282_v46 = vsel %vm2271_vm2, %v2279_v27, %v2281_v36  ;;  %v462_v19 = vrot.slane %v460_v38, 1  ;;  %v6610_v27 = vld [vmem:[%s8783_s1 + $0x1b0] sm:$0xff]  }
  0x42   : > { %v454_v30 = vrot.slane %v452_v13, 1  ;;  %v447_v39 = vsel %vm347_vm0, %v442_v26, %v446_v21  ;;  %v472_v0 = vshrl.u32 %v7007_v32, 16  ;;  %v2284_v2 = vsel %vm2271_vm2, %v2281_v36, %v2283_v50 }
  0x43   : > { %v466_v51 = vor.u32 %v464_v44, %v462_v19  ;;  %v470_v52 = vrot.slane %v468_v45, 1  ;;  %v6601_v45 = vld [vmem:[%s6782_s10 + $0x68] sm:$0xff]  }
  0x44   : > { %5948 = vmatpush3.bf16.msra.mxu0 %v6570_v3  ;;  %v6585_v3 = vld [vmem:[%s8783_s1 + $0x28] sm:$0xff]  }
  0x45   : > { %5949 = vmatprep.subr.bf16.mxu0 %v6575_v29  ;;  %5739 = vmatprep.subr.bf16.mxu1 %v6585_v3 }
  0x46   : > { %5706 = vmatmul.mubr.bf16.gmra.mrb[12].mxu1 %v415_v42  ;;  %v6594_v42 = vld [vmem:[%s8783_s1 + $0x38] sm:$0xff]  }
  0x47   : > { %5914 = vmatmul.mubr.bf16.gmra.mrb[12].mxu0 %v1881_v16  ;;  %5709 = vmatprep.mubr.bf16.mxu1 %v423_v59  ;;  %v7025_v16 = vld [vmem:[%s6782_s10 + $0x80] sm:$0xff]  }
  0x48   : > { %5950 = vmatpush3.bf16.msra.mxu0 %v6575_v29  ;;  %5953 = vmatprep.mubr.bf16.mxu0 %v2274_v53  ;;  %v450_v29 = vor.u32 %v448_v11, %v446_v21  ;;  %v7032_v53 = vld [vmem:[%s6782_s10 + $0x88] sm:$0xff]   ;;  %v7038_v59 = vld [vmem:[%s8783_s1 + $0x80] sm:$0xff]   ;;  %v476_v63 = vshll.u32 %v7025_v16, 16  ;;  %v480_v4 = vshrl.u32 %v7025_v16, 16  ;;  %v474_v11 = vor.u32 %v472_v0, %v470_v52  ;;  %v6609_v0 = vld [vmem:[%s8783_s1 + $0x90] sm:$0xff]  }
  0x49   : > { %5951 = vmatprep.subr.bf16.mxu0 %v6577_v49  ;;  %5740 = vmatpush3.bf16.msra.mxu1 %v6585_v3  ;;  %v471_v3 = vsel %vm347_vm0, %v466_v51, %v470_v52  ;;  %v484_v5 = vshll.u32 %v7032_v53, 16  ;;  %v6604_v51 = vld [vmem:[%s6782_s10 + $0x78] sm:$0xff]  }
  0x4a   : > { %5741 = vmatprep.subr.bf16.mxu1 %v6589_v17  ;;  %v455_v28 = vsel %vm347_vm0, %v450_v29, %v454_v30  ;;  %v478_v10 = vrot.slane %v476_v63, 1 }
  0x4c   : > { %5952 = vmatpush3.bf16.msra.mxu0 %v6577_v49  ;;  %v458_v49 = vor.u32 %v456_v62, %v454_v30  ;;  %v482_v13 = vor.u32 %v480_v4, %v478_v10  ;;  %v479_v21 = vsel %vm347_vm0, %v474_v11, %v478_v10  ;;  %v6614_v62 = vld [vmem:[%s8783_s1 + $0x1b8] sm:$0xff]   ;;  %v6618_v10 = vld [vmem:[%s8783_s1 + $0xa0] sm:$0xff]  }
  0x4d   : > { %5989 = vmatprep.subr.bf16.mxu0 %v6584_v6  ;;  %5742 = vmatpush3.bf16.msra.mxu1 %v6589_v17  ;;  %v486_v17 = vrot.slane %v484_v5, 1  ;;  %v6613_v4 = vld [vmem:[%s8783_s1 + $0x98] sm:$0xff]   ;;  %v2588_v5 = vld [vmem:[%s6782_s10 + $0x10] sm:$0xc] }
  0x4e   : > { %5710 = vmatmul.mubr.bf16.gmra.mrb[16].mxu1 %v431_v9  ;;  %5743 = vmatprep.subr.bf16.mxu1 %v6594_v42  ;;  %v463_v33 = vsel %vm347_vm0, %v458_v49, %v462_v19  ;;  %v7054_v9 = vld [vmem:[%s6782_s10 + $0x90] ss:$0 sps:$4 sm:$0x11]   ;;  %v2295_v49 = vrot.slane %v6601_v45, 2  ;;  %v6633_v45 = vld [vmem:[%s8783_s1 + $0x1d8] sm:$0xff]  }
  0x4f   : > { %5954 = vmatmul.mubr.bf16.vlgmr.msra.gmra.mrb[0].mxu0 %v2276_v57  ;;  %5713 = vmatprep.mubr.bf16.mxu1 %v439_v12  ;;  %v6606_v57 = vld [vmem:[%s8783_s1 + $0x1a8] sm:$0xff]   ;;  %v2287_v12 = vrot.slane %v6929_v7, 2  ;;  %v492_v26 = vshll.u32 %v7054_v9, 16  ;;  %v487_v30 = vsel %vm347_vm0, %v482_v13, %v486_v17  ;;  %v6597_v7 = vld [vmem:[%s6782_s10 + $0x58] sm:$0xff]   ;;  %v6603_v19 = vld [vmem:[%s6782_s10 + $0x70] sm:$0xff]  }
  0x50   : > { %5957 = vmatprep.mubr.bf16.mxu0 %v2278_v18  ;;  %5990 = vmatpush3.bf16.msra.mxu0 %v6584_v6  ;;  %v2286_v6 = vsel %vm2271_vm2, %v2283_v50, %v2285_v56  ;;  %v2289_v18 = vrot.slane %v6595_v41, 2  ;;  %v2297_v50 = vrot.slane %v6603_v19, 2  ;;  %v6612_v11 = vld [vmem:[%s6782_s10 + $0x98] ss:$0 sps:$4 sm:$0x33]   ;;  %v6622_v13 = vld [vmem:[%s8783_s1 + $0xa8] sm:$0xff]  }
  0x51   : > { %5991 = vmatprep.subr.bf16.mxu0 %v6588_v20  ;;  %5744 = vmatpush3.bf16.msra.mxu1 %v6594_v42  ;;  %v2288_v29 = vsel %vm2271_vm2, %v2285_v56, %v2287_v12  ;;  %v2291_v42 = vrot.slane %v6597_v7, 2  ;;  %v6605_v56 = vld [vmem:[%s8783_s1 + $0x88] sm:$0xff]  }
  0x52   : > { %5781 = vmatprep.subr.bf16.mxu1 %v7038_v59  ;;  %v2290_v36 = vsel %vm2271_vm2, %v2287_v12, %v2289_v18  ;;  %v2298_v63 = vsel %vm2271_vm2, %v2295_v49, %v2297_v50 }
  0x53   : > { %v2292_v44 = vsel %vm2271_vm2, %v2289_v18, %v2291_v42 }
  0x54   : > { %5992 = vmatpush3.bf16.msra.mxu0 %v6588_v20  ;;  %v488_v20 = vshrl.u32 %v7032_v53, 16 }
  0x55   : > { %5993 = vmatprep.subr.bf16.mxu0 %v6592_v37 }
  0x56   : > { %5714 = vmatmul.mubr.bf16.gmra.mrb[20].mxu1 %v447_v39  ;;  %v490_v38 = vor.u32 %v488_v20, %v486_v17  ;;  %v494_v39 = vrot.slane %v492_v26, 1  ;;  %v2307_v17 = vrot.slane %v6612_v11, 2 }
  0x57   : > { %5958 = vmatmul.mubr.bf16.gmra.mrb[4].mxu0 %v2280_v43  ;;  %5717 = vmatprep.mubr.bf16.mxu1 %v455_v28 }
  0x58   : > { %5961 = vmatprep.mubr.bf16.mxu0 %v2282_v46  ;;  %5994 = vmatpush3.bf16.msra.mxu0 %v6592_v37  ;;  %v6599_v37 = vld [vmem:[%s6782_s10 + $0x60] sm:$0xff]   ;;  %v495_v28 = vsel %vm347_vm0, %v490_v38, %v494_v39  ;;  %v7156_v38 = vld [vmem:[%s6782_s10 + $0x30] sm:$0xff]   ;;  %v6625_v39 = vld [vmem:[%s8783_s1 + $0x1c8] sm:$0xff]  }
  0x59   : > { %5995 = vmatprep.subr.bf16.mxu0 %v6598_v48  ;;  %v2293_v43 = vrot.slane %v6599_v37, 2 }
  0x5b   : > { %v2294_v46 = vsel %vm2271_vm2, %v2291_v42, %v2293_v43  ;;  %v2296_v52 = vsel %vm2271_vm2, %v2293_v43, %v2295_v49  ;;  %v6629_v43 = vld [vmem:[%s8783_s1 + $0x1d0] sm:$0xff]  }
  0x5c   : > { %5996 = vmatpush3.bf16.msra.mxu0 %v6598_v48  ;;  %v7082_v48 = vld [vmem:[%s8783_s1 + $0x1c0] sm:$0xff]  }
  0x5d   : > { %5997 = vmatprep.subr.bf16.mxu0 %v6602_v61 }
  0x5e   : > { %5718 = vmatmul.mubr.bf16.gmra.mrb[24].mxu1 %v463_v33  ;;  %v6607_v33 = vld [vmem:[%s6782_s10 + $0x80] sm:$0xff]  }
  0x5f   : > { %5962 = vmatmul.mubr.bf16.gmra.mrb[8].mxu0 %v2284_v2  ;;  %5721 = vmatprep.mubr.bf16.mxu1 %v471_v3  ;;  %v6608_v2 = vld [vmem:[%s6782_s10 + $0x88] sm:$0xff]  }
  0x60   : > { %5965 = vmatprep.mubr.bf16.mxu0 %v2286_v6  ;;  %5998 = vmatpush3.bf16.msra.mxu0 %v6602_v61  ;;  %v2301_v61 = vrot.slane %v6607_v33, 2  ;;  %v7110_v6 = vld [vmem:[%s6782_s10 + $0x14] sm:$0xf] }
  0x61   : > { %5999 = vmatprep.subr.bf16.mxu0 %v6606_v57  ;;  %v6646_v33 = vld [vmem:[%s8783_s1 + $0x1f0] sm:$0xff]  }
  0x64   : > { %6000 = vmatpush3.bf16.msra.mxu0 %v6606_v57 }
  0x65   : > { %6001 = vmatprep.subr.bf16.mxu0 %v6610_v27 }
  0x66   : > { %5722 = vmatmul.mubr.bf16.gmra.mrb[28].mxu1 %v479_v21  ;;  %v6626_v21 = vld [vmem:[%s8783_s1 + $0xb0] sm:$0xff]  }
  0x67   : > { %5966 = vmatmul.mubr.bf16.gmra.mrb[12].mxu0 %v2288_v29  ;;  %5725 = vmatprep.mubr.bf16.mxu1 %v487_v30  ;;  %v6630_v29 = vld [vmem:[%s8783_s1 + $0xb8] sm:$0xff]  }
  0x68   : > { %5969 = vmatprep.mubr.bf16.mxu0 %v2290_v36  ;;  %6002 = vmatpush3.bf16.msra.mxu0 %v6610_v27  ;;  %v7136_v27 = vld [vmem:[%s6782_s10 + $0x20] sm:$0xff]  }
  0x69   : > { %6003 = vmatprep.subr.bf16.mxu0 %v6614_v62  ;;  %v2737_v30 = vrot.slane %v7136_v27, 2  ;;  %v7152_v36 = vld [vmem:[%s8783_s1 + $0xc0] sm:$0xff]  }
  0x6c   : > { %6004 = vmatpush3.bf16.msra.mxu0 %v6614_v62  ;;  %v2741_v62 = vrot.slane %v7156_v38, 2 }
  0x6d   : > { %6041 = vmatprep.subr.bf16.mxu0 %v7082_v48 }
  0x6e   : > { %5726 = vmatmul.mubr.bf16.gmra.mrb[32].mxu1 %v495_v28 }
  0x6f   : > { %5970 = vmatmul.mubr.bf16.gmra.mrb[16].mxu0 %v2292_v44  ;;  %5745 = vmatprep.mubr.bf16.mxu1 %v6792_v14  ;;  %v2299_v14 = vrot.slane %v6604_v51, 2  ;;  %v7176_v44 = vld [vmem:[%s6782_s10 + $0x40] sm:$0xff]   ;;  %v6642_v51 = vld [vmem:[%s8783_s1 + $0x1e8] sm:$0xff]  }
  0x70   : > { %5973 = vmatprep.mubr.bf16.mxu0 %v2294_v46  ;;  %v2745_v46 = vrot.slane %v7176_v44, 2 }
  0x71   : > { %v2300_v3 = vsel %vm2271_vm2, %v2297_v50, %v2299_v14  ;;  %v7194_v50 = vld [vmem:[%s6782_s10 + $0x50] sm:$0xff]  }
  0x76   : > { %5746 = vmatmul.mubr.bf16.vlgmr.msra.gmra.mrb[0].mxu1 %v6795_v15  ;;  %v2302_v15 = vsel %vm2271_vm2, %v2299_v14, %v2301_v61 }
  0x77   : > { %5974 = vmatmul.mubr.bf16.gmra.mrb[20].mxu0 %v2296_v52  ;;  %5782 = vmatpush3.bf16.msra.mxu1 %v7038_v59  ;;  %v2303_v59 = vrot.slane %v6608_v2, 2  ;;  %v2749_v52 = vrot.slane %v7194_v50, 2  ;;  %v7218_v2 = vld [vmem:[%s6782_s10 + $0x68] sm:$0xff]  }
  0x78   : > { %5749 = vmatprep.mubr.bf16.mxu1 %v6817_v25  ;;  %5977 = vmatprep.mubr.bf16.mxu0 %v2298_v63  ;;  %v6611_v25 = vld [vmem:[%s6782_s10 + $0x90] sm:$0xff]   ;;  %v982_v63 = vld [vmem:[%s6782_s10] sm:$0xe] }
  0x79   : > { %5783 = vmatprep.subr.bf16.mxu1 %v6605_v56  ;;  %v2305_v41 = vrot.slane %v6611_v25, 2  ;;  %v2304_v57 = vsel %vm2271_vm2, %v2301_v61, %v2303_v59  ;;  %v6667_v25 = vld [vmem:[%s6782_s10 + $0x8] sm:$0xff]  }
  0x7b   : > { %5784 = vmatpush3.bf16.msra.mxu1 %v6605_v56  ;;  %v2306_v12 = vsel %vm2271_vm2, %v2303_v59, %v2305_v41  ;;  %v2308_v26 = vsel %vm2271_vm2, %v2305_v41, %v2307_v17 }
  0x7c   : > { %5785 = vmatprep.subr.bf16.mxu1 %v6609_v0 }
  0x7e   : > { %5750 = vmatmul.mubr.bf16.gmra.mrb[4].mxu1 %v6846_v55  ;;  %v7118_v55 = vcombine.low %v2588_v5, %v7110_v6  ;;  %v2755_v5 = vrot.slane %v7218_v2, 2 }
  0x7f   : > { %5978 = vmatmul.mubr.bf16.gmra.mrb[24].mxu0 %v2300_v3  ;;  %5753 = vmatprep.mubr.bf16.mxu1 %v6853_v60  ;;  %v7121_v60 = vld [vmem:[%s6782_s10 + $0x18] sm:$0xff]  }
  0x80   : > { %5981 = vmatprep.mubr.bf16.mxu0 %v2302_v15  ;;  %5786 = vmatpush3.bf16.msra.mxu1 %v6609_v0  ;;  %v2734_v18 = vrot.slane %v7118_v55, 2  ;;  %v2735_v20 = vrot.slane %v7121_v60, 2  ;;  %v6666_v0 = vld [vmem:[%s6782_s10 + $0x4] sm:$0xf]  ;;  %v6650_v3 = vld [vmem:[%s8783_s1 + $0x1f8] sm:$0xff]  }
  0x81   : > { %5787 = vmatprep.subr.bf16.mxu1 %v6613_v4  ;;  %v5126_v61 = vcombine.low %v982_v63, %v6666_v0  ;;  %v3072_v0 = vshrl.u32 %v7118_v55, 16 }
  0x82   : > { %v2738_v37 = vsel %vm2271_vm2, %v2735_v20, %v2737_v30 }
  0x83   : > { %v1003_v59 = vrot.slane %v5126_v61, 1 }
  0x84   : > { %5788 = vmatpush3.bf16.msra.mxu1 %v6613_v4  ;;  %v1004_v4 = vrot.slane %v6667_v25, 1 }
  0x85   : > { %5789 = vmatprep.subr.bf16.mxu1 %v6618_v10 }
  0x86   : > { %5754 = vmatmul.mubr.bf16.gmra.mrb[8].mxu1 %v6877_v22  ;;  %v2736_v22 = vsel %vm2271_vm2, %v2734_v18, %v2735_v20  ;;  %v1005_v41 = vsel %vm1002_vm3, %v1003_v59, %v1004_v4  ;;  %v6669_v18 = vld [vmem:[%s6782_s10 + $0x18] sm:$0xff]   ;;  %v6651_v59 = vld [vmem:[%s8783_s1 + $0xe0] sm:$0xff]  }
  0x87   : > { %5982 = vmatmul.mubr.bf16.gmra.mrb[28].mxu0 %v2304_v57  ;;  %5757 = vmatprep.mubr.bf16.mxu1 %v6886_v31  ;;  %v7140_v31 = vld [vmem:[%s6782_s10 + $0x28] sm:$0xff]   ;;  %v7240_v57 = vld [vmem:[%s6782_s10 + $0x78] sm:$0xff]   ;;  %v1008_v20 = vrot.slane %v6669_v18, 1  ;;  %v6674_v18 = vld [vmem:[%s6782_s10 + $0x40] sm:$0xff]  }
  0x88   : > { %5985 = vmatprep.mubr.bf16.mxu0 %v2306_v12  ;;  %5790 = vmatpush3.bf16.msra.mxu1 %v6618_v10  ;;  %v2739_v7 = vrot.slane %v7140_v31, 2  ;;  %v7236_v10 = vld [vmem:[%s6782_s10 + $0x70] sm:$0xff]  }
  0x89   : > { %5791 = vmatprep.subr.bf16.mxu1 %v6622_v13  ;;  %v6668_v12 = vld [vmem:[%s6782_s10 + $0x10] sm:$0xff]   ;;  %v2757_v17 = vrot.slane %v7236_v10, 2 }
  0x8a   : > { %v2742_v28 = vsel %vm2271_vm2, %v2739_v7, %v2741_v62 }
  0x8c   : > { %5792 = vmatpush3.bf16.msra.mxu1 %v6622_v13  ;;  %v1006_v13 = vrot.slane %v6668_v12, 1 }
  0x8d   : > { %5793 = vmatprep.subr.bf16.mxu1 %v6626_v21 }
  0x8e   : > { %5758 = vmatmul.mubr.bf16.gmra.mrb[12].mxu1 %v6910_v54  ;;  %v2740_v54 = vsel %vm2271_vm2, %v2737_v30, %v2739_v7  ;;  %v1009_v30 = vsel %vm1002_vm3, %v1006_v13, %v1008_v20 }
  0x8f   : > { %5986 = vmatmul.mubr.bf16.gmra.mrb[32].mxu0 %v2308_v26  ;;  %5761 = vmatprep.mubr.bf16.mxu1 %v6919_v1  ;;  %v7160_v1 = vld [vmem:[%s6782_s10 + $0x38] sm:$0xff]   ;;  %v1007_v26 = vsel %vm1002_vm3, %v1004_v4, %v1006_v13 }
  0x90   : > { %6005 = vmatprep.mubr.bf16.mxu0 %v2736_v22  ;;  %5794 = vmatpush3.bf16.msra.mxu1 %v6626_v21  ;;  %v2743_v42 = vrot.slane %v7160_v1, 2  ;;  %v2759_v21 = vrot.slane %v7240_v57, 2  ;;  %v2758_v22 = vsel %vm2271_vm2, %v2755_v5, %v2757_v17 }
  0x91   : > { %5795 = vmatprep.subr.bf16.mxu1 %v6630_v29 }
  0x92   : > { %v2746_v49 = vsel %vm2271_vm2, %v2743_v42, %v2745_v46  ;;  %v2760_v7 = vsel %vm2271_vm2, %v2757_v17, %v2759_v21  ;;  %v6653_v17 = vld [vmem:[%s8783_s1 + $0xe8] sm:$0xff]  }
  0x94   : > { %5796 = vmatpush3.bf16.msra.mxu1 %v6630_v29  ;;  %v7251_v29 = vld [vmem:[%s6782_s10 + $0x80] sm:$0xff]  }
  0x95   : > { %5833 = vmatprep.subr.bf16.mxu1 %v7152_v36 }
  0x96   : > { %5762 = vmatmul.mubr.bf16.gmra.mrb[16].mxu1 %v6946_v35  ;;  %v7179_v35 = vld [vmem:[%s6782_s10 + $0x48] sm:$0xff]  }
  0x97   : > { %6006 = vmatmul.mubr.bf16.vlgmr.msra.gmra.mrb[0].mxu0 %v2738_v37  ;;  %5765 = vmatprep.mubr.bf16.mxu1 %v6953_v40  ;;  %v2744_v40 = vsel %vm2271_vm2, %v2741_v62, %v2743_v42  ;;  %v2747_v19 = vrot.slane %v7179_v35, 2  ;;  %v6641_v37 = vld [vmem:[%s8783_s1 + $0xc8] sm:$0xff]   ;;  %v2761_v42 = vrot.slane %v7251_v29, 2 }
  0x98   : > { %6009 = vmatprep.mubr.bf16.mxu0 %v2740_v54  ;;  %6042 = vmatpush3.bf16.msra.mxu0 %v7082_v48  ;;  %v6638_v48 = vld [vmem:[%s8783_s1 + $0x1e0] sm:$0xff]   ;;  %v7259_v54 = vld [vmem:[%s6782_s10 + $0x88] sm:$0xff]  }
  0x99   : > { %6043 = vmatprep.subr.bf16.mxu0 %v6625_v39  ;;  %v2750_v14 = vsel %vm2271_vm2, %v2747_v19, %v2749_v52 }
  0x9c   : > { %6044 = vmatpush3.bf16.msra.mxu0 %v6625_v39  ;;  %v6670_v39 = vld [vmem:[%s6782_s10 + $0x20] sm:$0xff]  }
  0x9d   : > { %6045 = vmatprep.subr.bf16.mxu0 %v6629_v43  ;;  %v1010_v62 = vrot.slane %v6670_v39, 1 }
  0x9e   : > { %5766 = vmatmul.mubr.bf16.gmra.mrb[20].mxu1 %v6962_v47  ;;  %v2748_v47 = vsel %vm2271_vm2, %v2745_v46, %v2747_v19 }
  0x9f   : > { %6010 = vmatmul.mubr.bf16.gmra.mrb[4].mxu0 %v2742_v28  ;;  %5769 = vmatprep.mubr.bf16.mxu1 %v6974_v58  ;;  %v7198_v58 = vld [vmem:[%s6782_s10 + $0x58] sm:$0xff]   ;;  %v1011_v46 = vsel %vm1002_vm3, %v1008_v20, %v1010_v62  ;;  %v1018_v20 = vrot.slane %v6674_v18, 1  ;;  %v6679_v18 = vld [vmem:[%s6782_s10 + $0x60] sm:$0xff]  }
  0xa0   : > { %6013 = vmatprep.mubr.bf16.mxu0 %v2744_v40  ;;  %6046 = vmatpush3.bf16.msra.mxu0 %v6629_v43  ;;  %v2751_v56 = vrot.slane %v7198_v58, 2  ;;  %v6671_v43 = vld [vmem:[%s6782_s10 + $0x28] sm:$0xff]   ;;  %v6645_v40 = vld [vmem:[%s8783_s1 + $0xd0] sm:$0xff]  }
  0xa1   : > { %6047 = vmatprep.subr.bf16.mxu0 %v6633_v45  ;;  %v1012_v28 = vrot.slane %v6671_v43, 1  ;;  %v6655_v43 = vld [vmem:[%s8783_s1 + $0xf0] sm:$0xff]  }
  0xa3   : > { %v1013_v19 = vsel %vm1002_vm3, %v1010_v62, %v1012_v28  ;;  %v3098_v62 = vshrl.u32 %v7140_v31, 16 }
  0xa4   : > { %6048 = vmatpush3.bf16.msra.mxu0 %v6633_v45  ;;  %v2763_v45 = vrot.slane %v7259_v54, 2 }
  0xa5   : > { %6049 = vmatprep.subr.bf16.mxu0 %v6638_v48 }
  0xa6   : > { %5770 = vmatmul.mubr.bf16.gmra.mrb[24].mxu1 %v6986_v8  ;;  %v7213_v8 = vld [vmem:[%s6782_s10 + $0x60] sm:$0xff]  }
  0xa7   : > { %6014 = vmatmul.mubr.bf16.gmra.mrb[8].mxu0 %v2746_v49  ;;  %5773 = vmatprep.mubr.bf16.mxu1 %v7003_v23  ;;  %v2752_v23 = vsel %vm2271_vm2, %v2749_v52, %v2751_v56  ;;  %v2753_v15 = vrot.slane %v7213_v8, 2  ;;  %v2764_v49 = vsel %vm2271_vm2, %v2761_v42, %v2763_v45  ;;  %v6672_v52 = vld [vmem:[%s6782_s10 + $0x30] sm:$0xff]  }
  0xa8   : > { %6017 = vmatprep.mubr.bf16.mxu0 %v2748_v47  ;;  %6050 = vmatpush3.bf16.msra.mxu0 %v6638_v48  ;;  %v7273_v48 = vld [vmem:[%s6782_s10 + $0x90] sm:$0xff]   ;;  %v7277_v47 = vld [vmem:[%s6782_s10 + $0x98] sm:$0xff]  }
  0xa9   : > { %6051 = vmatprep.subr.bf16.mxu0 %v6642_v51  ;;  %v2756_v11 = vsel %vm2271_vm2, %v2753_v15, %v2755_v5  ;;  %v2765_v63 = vrot.slane %v7273_v48, 2  ;;  %v2767_v61 = vrot.slane %v7277_v47, 2 }
  0xab   : > { %v2766_v4 = vsel %vm2271_vm2, %v2763_v45, %v2765_v63 }
  0xac   : > { %6052 = vmatpush3.bf16.msra.mxu0 %v6642_v51  ;;  %v6649_v51 = vld [vmem:[%s8783_s1 + $0xd8] sm:$0xff]  }
  0xad   : > { %6053 = vmatprep.subr.bf16.mxu0 %v6646_v33 }
  0xae   : > { %5774 = vmatmul.mubr.bf16.gmra.mrb[28].mxu1 %v7007_v32  ;;  %v7231_v32 = vld [vmem:[%s8783_s1 + $0x200] sm:$0xff]  }
  0xaf   : > { %6018 = vmatmul.mubr.bf16.gmra.mrb[12].mxu0 %v2750_v14  ;;  %5777 = vmatprep.mubr.bf16.mxu1 %v7025_v16  ;;  %v2754_v16 = vsel %vm2271_vm2, %v2751_v56, %v2753_v15  ;;  %v1014_v56 = vrot.slane %v6672_v52, 1  ;;  %v3083_v15 = vshll.u32 %v7121_v60, 16  ;;  %v6657_v52 = vld [vmem:[%s8783_s1 + $0xf8] sm:$0xff]  }
  0xb0   : > { %6021 = vmatprep.mubr.bf16.mxu0 %v2752_v23  ;;  %6054 = vmatpush3.bf16.msra.mxu0 %v6646_v33  ;;  %v6673_v33 = vld [vmem:[%s6782_s10 + $0x38] sm:$0xff]   ;;  %v3075_v23 = vshll.u32 %v7118_v55, 16  ;;  %v2768_v55 = vsel %vm2271_vm2, %v2765_v63, %v2767_v61 }
  0xb1   : > { %6055 = vmatprep.subr.bf16.mxu0 %v6650_v3  ;;  %v1016_v14 = vrot.slane %v6673_v33, 1  ;;  %v1015_v25 = vsel %vm1002_vm3, %v1012_v28, %v1014_v56  ;;  %v3085_v13 = vrot.slane %v3083_v15, 3  ;;  %v3116_v15 = vshrl.u32 %v7160_v1, 16 }
  0xb3   : > { %v1017_v5 = vsel %vm1002_vm3, %v1014_v56, %v1016_v14  ;;  %v1019_v28 = vsel %vm1002_vm3, %v1016_v14, %v1018_v20  ;;  %v6676_v56 = vld [vmem:[%s6782_s10 + $0x50] sm:$0xff]   ;;  %v6677_v14 = vld [vmem:[%s6782_s10 + $0x58] sm:$0xff]  }
  0xb4   : > { %6056 = vmatpush3.bf16.msra.mxu0 %v6650_v3  ;;  %v3080_v3 = vshrl.u32 %v7121_v60, 16  ;;  %v1022_v63 = vrot.slane %v6676_v56, 1  ;;  %v6658_v56 = vld [vmem:[%s8783_s1 + $0x218] sm:$0xff]  }
  0xb5   : > { %6093 = vmatprep.subr.bf16.mxu0 %v7231_v32 }
  0xb6   : > { %5778 = vmatmul.mubr.bf16.gmra.mrb[32].mxu1 %v7032_v53  ;;  %v3082_v12 = vrot.slane %v3080_v3, 2 }
  0xb7   : > { %6022 = vmatmul.mubr.bf16.gmra.mrb[16].mxu0 %v2754_v16  ;;  %5797 = vmatprep.mubr.bf16.mxu1 %v1005_v41  ;;  %v6648_v16 = vld [vmem:[%s6782_s10 + $0xa0] ss:$0 sps:$4 sm:$0x33]   ;;  %v3074_v41 = vrot.slane %v3072_v0, 2  ;;  %v1024_v0 = vrot.slane %v6677_v14, 1 }
  0xb8   : > { %6025 = vmatprep.mubr.bf16.mxu0 %v2756_v11  ;;  %v3077_v11 = vrot.slane %v3075_v23, 3  ;;  %v3086_v39 = vor.u32 %v3085_v13, %v3082_v12  ;;  %v3110_v23 = vshll.u32 %v7156_v38, 16  ;;  %v6654_v13 = vld [vmem:[%s8783_s1 + $0x208] sm:$0xff]  }
  0xbe   : > { %5798 = vmatmul.mubr.bf16.vlgmr.msra.gmra.mrb[0].mxu1 %v1007_v26  ;;  %v6675_v26 = vld [vmem:[%s6782_s10 + $0x48] sm:$0xff]  }
  0xbf   : > { %6026 = vmatmul.mubr.bf16.gmra.mrb[20].mxu0 %v2758_v22  ;;  %5834 = vmatpush3.bf16.msra.mxu1 %v7152_v36  ;;  %v2762_v36 = vsel %vm2271_vm2, %v2759_v21, %v2761_v42  ;;  %v2769_v21 = vrot.slane %v6648_v16, 2  ;;  %v1020_v22 = vrot.slane %v6675_v26, 1  ;;  %v3101_v42 = vshll.u32 %v7140_v31, 16 }
  0xc0   : > { %5801 = vmatprep.mubr.bf16.mxu1 %v1009_v30  ;;  %6029 = vmatprep.mubr.bf16.mxu0 %v2760_v7  ;;  %v3089_v30 = vshrl.u32 %v7136_v27, 16  ;;  %v3092_v7 = vshll.u32 %v7136_v27, 16 }
  0xc1   : > { %5835 = vmatprep.subr.bf16.mxu1 %v6641_v37  ;;  %v1021_v45 = vsel %vm1002_vm3, %v1018_v20, %v1020_v22  ;;  %v1026_v20 = vrot.slane %v6679_v18, 1 }
  0xc3   : > { %5836 = vmatpush3.bf16.msra.mxu1 %v6641_v37  ;;  %v3078_v37 = vor.u32 %v3077_v11, %v3074_v41  ;;  %v3112_v41 = vrot.slane %v3110_v23, 3  ;;  %v3118_v11 = vrot.slane %v3116_v15, 2  ;;  %v3146_v15 = vshll.u32 %v7194_v50, 16 }
  0xc4   : > { %5837 = vmatprep.subr.bf16.mxu1 %v6645_v40 }
  0xc6   : > { %5802 = vmatmul.mubr.bf16.gmra.mrb[4].mxu1 %v1011_v46  ;;  %v3091_v46 = vrot.slane %v3089_v30, 2  ;;  %v3125_v30 = vshrl.u32 %v7176_v44, 16 }
  0xc7   : > { %6030 = vmatmul.mubr.bf16.gmra.mrb[24].mxu0 %v2762_v36  ;;  %5805 = vmatprep.mubr.bf16.mxu1 %v1013_v19  ;;  %v3094_v36 = vrot.slane %v3092_v7, 3  ;;  %v3087_v19 = vsel %vm3070_vm4, %v3078_v37, %v3086_v39  ;;  %v3128_v7 = vshll.u32 %v7176_v44, 16 }
  0xc8   : > { %6033 = vmatprep.mubr.bf16.mxu0 %v2764_v49  ;;  %5838 = vmatpush3.bf16.msra.mxu1 %v6645_v40  ;;  %v2770_v40 = vsel %vm2271_vm2, %v2767_v61, %v2769_v21  ;;  %v3100_v49 = vrot.slane %v3098_v62, 2  ;;  %v3107_v61 = vshrl.u32 %v7156_v38, 16  ;;  %v6680_v21 = vld [vmem:[%s6782_s10 + $0x68] sm:$0xff]   ;;  %v3137_v62 = vshll.u32 %v7179_v35, 16 }
  0xc9   : > { %5839 = vmatprep.subr.bf16.mxu1 %v6649_v51  ;;  %v3095_v33 = vor.u32 %v3094_v36, %v3091_v46  ;;  %v1028_v26 = vrot.slane %v6680_v21, 1  ;;  %v3127_v46 = vrot.slane %v3125_v30, 2  ;;  %v3130_v36 = vrot.slane %v3128_v7, 3  ;;  %v6660_v21 = vld [vmem:[%s8783_s1 + $0x228] sm:$0xff]  }
  0xca   : > { %v3109_v16 = vrot.slane %v3107_v61, 2  ;;  %v6682_v61 = vld [vmem:[%s6782_s10 + $0x78] sm:$0xff]   ;;  %v1036_v7 = vrot.slane %v7032_v53, 1 }
  0xcb   : > { %v1032_v23 = vrot.slane %v6682_v61, 1  ;;  %v6684_v61 = vld [vmem:[%s6782_s10 + $0x10] sm:$0xff]  }
  0xcc   : > { %5840 = vmatpush3.bf16.msra.mxu1 %v6649_v51  ;;  %v3103_v51 = vrot.slane %v3101_v42, 3  ;;  %v6656_v42 = vld [vmem:[%s8783_s1 + $0x210] sm:$0xff]  }
  0xcd   : > { %5841 = vmatprep.subr.bf16.mxu1 %v6651_v59 }
  0xce   : > { %5806 = vmatmul.mubr.bf16.gmra.mrb[8].mxu1 %v1015_v25  ;;  %v3104_v3 = vor.u32 %v3103_v51, %v3100_v49  ;;  %v1023_v25 = vsel %vm1002_vm3, %v1020_v22, %v1022_v63  ;;  %v3113_v22 = vor.u32 %v3112_v41, %v3109_v16 }
  0xcf   : > { %6034 = vmatmul.mubr.bf16.gmra.mrb[28].mxu0 %v2766_v4  ;;  %5809 = vmatprep.mubr.bf16.mxu1 %v1017_v5  ;;  %v3096_v4 = vsel %vm3070_vm4, %v3086_v39, %v3095_v33  ;;  %v1025_v5 = vsel %vm1002_vm3, %v1022_v63, %v1024_v0  ;;  %v3134_v39 = vshrl.u32 %v7179_v35, 16 }
  0xd0   : > { %6037 = vmatprep.mubr.bf16.mxu0 %v2768_v55  ;;  %5842 = vmatpush3.bf16.msra.mxu1 %v6651_v59  ;;  %v3119_v59 = vshll.u32 %v7160_v1, 16  ;;  %v3105_v55 = vsel %vm3070_vm4, %v3095_v33, %v3104_v3  ;;  %v6681_v33 = vld [vmem:[%s6782_s10 + $0x70] sm:$0xff]  }
  0xd1   : > { %5843 = vmatprep.subr.bf16.mxu1 %v6653_v17  ;;  %v3136_v51 = vrot.slane %v3134_v39, 2  ;;  %v1030_v14 = vrot.slane %v6681_v33, 1  ;;  %v3164_v39 = vshll.u32 %v7213_v8, 16  ;;  %v1038_v33 = vrot.slane %v7054_v9, 1 }
  0xd2   : > { %v3121_v12 = vrot.slane %v3119_v59, 3 }
  0xd3   : > { %v1031_v16 = vsel %vm1002_vm3, %v1028_v26, %v1030_v14  ;;  %v1039_v9 = vsel %vm1002_vm3, %v1036_v7, %v1038_v33  ;;  %v3215_v33 = vshrl.u32 %v7273_v48, 16 }
  0xd4   : > { %5844 = vmatpush3.bf16.msra.mxu1 %v6653_v17  ;;  %v7333_v17 = vld [vmem:[%s8783_s1 + $0x100] sm:$0xff]   ;;  %v3122_v37 = vor.u32 %v3121_v12, %v3118_v11  ;;  %v3148_v12 = vrot.slane %v3146_v15, 3  ;;  %v3182_v15 = vshll.u32 %v7236_v10, 16 }
  0xd5   : > { %5845 = vmatprep.subr.bf16.mxu1 %v6655_v43 }
  0xd6   : > { %5810 = vmatmul.mubr.bf16.gmra.mrb[12].mxu1 %v1019_v28  ;;  %v3574_v28 = vrot.slane %v7277_v47, 3  ;;  %v3123_v49 = vsel %vm3070_vm4, %v3113_v22, %v3122_v37 }
  0xd7   : > { %6038 = vmatmul.mubr.bf16.gmra.mrb[32].mxu0 %v2770_v40  ;;  %5813 = vmatprep.mubr.bf16.mxu1 %v1021_v45  ;;  %v1029_v40 = vsel %vm1002_vm3, %v1026_v20, %v1028_v26  ;;  %v3114_v45 = vsel %vm3070_vm4, %v3104_v3, %v3113_v22  ;;  %v3143_v3 = vshrl.u32 %v7194_v50, 16  ;;  %v6683_v26 = vld [vmem:[%s6782_s10 + $0x80] sm:$0xff]  }
  0xd8   : > { %6057 = vmatprep.mubr.bf16.mxu0 %v3087_v19  ;;  %5846 = vmatpush3.bf16.msra.mxu1 %v6655_v43  ;;  %v7347_v43 = vld [vmem:[%s6782_s10 + $0xa0] ss:$0 sps:$4 sm:$0x77]   ;;  %v1034_v22 = vrot.slane %v6683_v26, 1  ;;  %v3200_v26 = vshll.u32 %v7251_v29, 16 }
  0xd9   : > { %5847 = vmatprep.subr.bf16.mxu1 %v6657_v52  ;;  %v3576_v19 = vrot.slane %v7347_v43, 3  ;;  %v3145_v11 = vrot.slane %v3143_v3, 2  ;;  %v3179_v3 = vshrl.u32 %v7236_v10, 16 }
  0xda   : > { %v1037_v53 = vsel %vm1002_vm3, %v1034_v22, %v1036_v7 }
  0xdb   : > { %v7361_v63 = vsel %vm3540_vm5, %v3574_v28, %v3576_v19  ;;  %v3149_v30 = vor.u32 %v3148_v12, %v3145_v11  ;;  %v3166_v19 = vrot.slane %v3164_v39, 3  ;;  %v3209_v39 = vshll.u32 %v7259_v54, 16 }
  0xdc   : > { %5848 = vmatpush3.bf16.msra.mxu1 %v6657_v52  ;;  %v3139_v52 = vrot.slane %v3137_v62, 3 }
  0xdd   : > { %6145 = vmatprep.subr.bf16.mxu1 %v7333_v17 }
  0xde   : > { %5814 = vmatmul.mubr.bf16.gmra.mrb[16].mxu1 %v1023_v25  ;;  %v3140_v59 = vor.u32 %v3139_v52, %v3136_v51  ;;  %v3152_v25 = vshrl.u32 %v7198_v58, 16 }
  0xdf   : > { %6058 = vmatmul.mubr.bf16.vlgmr.msra.gmra.mrb[0].mxu0 %v3096_v4  ;;  %5817 = vmatprep.mubr.bf16.mxu1 %v1025_v5  ;;  %v3155_v4 = vshll.u32 %v7198_v58, 16  ;;  %v6659_v5 = vld [vmem:[%s8783_s1 + $0x220] sm:$0xff]  }
  0xe0   : > { %6061 = vmatprep.mubr.bf16.mxu0 %v3105_v55  ;;  %6094 = vmatpush3.bf16.msra.mxu0 %v7231_v32  ;;  %v1027_v32 = vsel %vm1002_vm3, %v1024_v0, %v1026_v20  ;;  %v3131_v0 = vor.u32 %v3130_v36, %v3127_v46  ;;  %v1033_v55 = vsel %vm1002_vm3, %v1030_v14, %v1032_v23  ;;  %v3154_v18 = vrot.slane %v3152_v25, 2 }
  0xe1   : > { %6095 = vmatprep.subr.bf16.mxu0 %v6654_v13  ;;  %v3157_v20 = vrot.slane %v3155_v4, 3  ;;  %v3150_v46 = vsel %vm3070_vm4, %v3140_v59, %v3149_v30  ;;  %v1465_v14 = vrot.slane %v6814_v24, 1  ;;  %v3188_v25 = vshrl.u32 %v7240_v57, 16 }
  0xe2   : > { %v3132_v41 = vsel %vm3070_vm4, %v3122_v37, %v3131_v0  ;;  %v3161_v37 = vshrl.u32 %v7213_v8, 16  ;;  %v3191_v4 = vshll.u32 %v7240_v57, 16 }
  0xe3   : > { %v3158_v62 = vor.u32 %v3157_v20, %v3154_v18  ;;  %v3190_v11 = vrot.slane %v3188_v25, 2  ;;  %v3217_v25 = vrot.slane %v3215_v33, 2 }
  0xe4   : > { %6096 = vmatpush3.bf16.msra.mxu0 %v6654_v13  ;;  %v3141_v13 = vsel %vm3070_vm4, %v3131_v0, %v3140_v59  ;;  %v3163_v36 = vrot.slane %v3161_v37, 2  ;;  %v3193_v12 = vrot.slane %v3191_v4, 3  ;;  %v3206_v37 = vshrl.u32 %v7259_v54, 16 }
  0xe5   : > { %6097 = vmatprep.subr.bf16.mxu0 %v6656_v42 }
  0xe6   : > { %5818 = vmatmul.mubr.bf16.gmra.mrb[20].mxu1 %v1027_v32  ;;  %v3173_v32 = vshll.u32 %v7218_v2, 16  ;;  %v3167_v0 = vor.u32 %v3166_v19, %v3163_v36  ;;  %v3194_v7 = vor.u32 %v3193_v12, %v3190_v11  ;;  %v3211_v36 = vrot.slane %v3209_v39, 3  ;;  %v6687_v19 = vld [vmem:[%s6782_s10 + $0x28] sm:$0xff]   ;;  %v6692_v12 = vld [vmem:[%s6782_s10 + $0x40] sm:$0xff]  }
  0xe7   : > { %6062 = vmatmul.mubr.bf16.gmra.mrb[4].mxu0 %v3114_v45  ;;  %5821 = vmatprep.mubr.bf16.mxu1 %v1029_v40  ;;  %v6661_v40 = vld [vmem:[%s8783_s1 + $0x230] sm:$0xff]   ;;  %v1035_v45 = vsel %vm1002_vm3, %v1032_v23, %v1034_v22  ;;  %v1466_v23 = vrot.slane %v6684_v61, 1  ;;  %v6686_v22 = vld [vmem:[%s6782_s10 + $0x20] sm:$0xff]  }
  0xe8   : > { %6065 = vmatprep.mubr.bf16.mxu0 %v3123_v49  ;;  %6098 = vmatpush3.bf16.msra.mxu0 %v6656_v42  ;;  %v3170_v42 = vshrl.u32 %v7218_v2, 16  ;;  %v3159_v49 = vsel %vm3070_vm4, %v3149_v30, %v3158_v62  ;;  %v3175_v52 = vrot.slane %v3173_v32, 3  ;;  %v3168_v24 = vsel %vm3070_vm4, %v3158_v62, %v3167_v0 }
  0xe9   : > { %6099 = vmatprep.subr.bf16.mxu0 %v6658_v56  ;;  %v1470_v30 = vrot.slane %v6686_v22, 1  ;;  %v3520_v22 = vld [vmem:[%s6782_s10 + $0x10] sm:$0x8] }
  0xea   : > { %v3172_v51 = vrot.slane %v3170_v42, 2 }
  0xec   : > { %6100 = vmatpush3.bf16.msra.mxu0 %v6658_v56  ;;  %v6663_v56 = vld [vmem:[%s8783_s1 + $0x238] sm:$0xff]   ;;  %v3176_v59 = vor.u32 %v3175_v52, %v3172_v51  ;;  %v6688_v52 = vld [vmem:[%s6782_s10 + $0x30] sm:$0xff]  }
  0xed   : > { %6101 = vmatprep.subr.bf16.mxu0 %v6659_v5 }
  0xee   : > { %5822 = vmatmul.mubr.bf16.gmra.mrb[24].mxu1 %v1031_v16  ;;  %v3181_v16 = vrot.slane %v3179_v3, 2 }
  0xef   : > { %6066 = vmatmul.mubr.bf16.gmra.mrb[8].mxu0 %v3132_v41  ;;  %5825 = vmatprep.mubr.bf16.mxu1 %v1033_v55  ;;  %v3184_v41 = vrot.slane %v3182_v15, 3  ;;  %v3177_v55 = vsel %vm3070_vm4, %v3167_v0, %v3176_v59  ;;  %v6689_v0 = vld [vmem:[%s8783_s1 + $0x108] sm:$0xff]  }
  0xf0   : > { %6069 = vmatprep.mubr.bf16.mxu0 %v3141_v13  ;;  %6102 = vmatpush3.bf16.msra.mxu0 %v6659_v5  ;;  %v1467_v5 = vsel %vm1002_vm3, %v1465_v14, %v1466_v23  ;;  %v6685_v13 = vld [vmem:[%s6782_s10 + $0x18] sm:$0xff]   ;;  %v3218_v14 = vshll.u32 %v7273_v48, 16 }
  0xf1   : > { %6103 = vmatprep.subr.bf16.mxu0 %v6660_v21  ;;  %v1468_v18 = vrot.slane %v6685_v13, 1  ;;  %v3185_v20 = vor.u32 %v3184_v41, %v3181_v16  ;;  %v6691_v41 = vld [vmem:[%s6782_s10 + $0x38] sm:$0xff]   ;;  %v1478_v13 = vrot.slane %v6692_v12, 1 }
  0xf2   : > { %v3220_v4 = vrot.slane %v3218_v14, 3  ;;  %v6698_v14 = vld [vmem:[%s8783_s1 + $0x130] sm:$0xff]  }
  0xf3   : > { %v1469_v62 = vsel %vm1002_vm3, %v1466_v23, %v1468_v18  ;;  %v3186_v42 = vsel %vm3070_vm4, %v3176_v59, %v3185_v20  ;;  %v3224_v23 = vshrl.u32 %v7277_v47, 16 }
  0xf4   : > { %6104 = vmatpush3.bf16.msra.mxu0 %v6660_v21  ;;  %v3197_v21 = vshrl.u32 %v7251_v29, 16  ;;  %v3221_v11 = vor.u32 %v3220_v4, %v3217_v25 }
  0xf5   : > { %6105 = vmatprep.subr.bf16.mxu0 %v6661_v40 }
  0xf6   : > { %5826 = vmatmul.mubr.bf16.gmra.mrb[28].mxu1 %v1035_v45  ;;  %v3199_v32 = vrot.slane %v3197_v21, 2  ;;  %v1471_v45 = vsel %vm1002_vm3, %v1468_v18, %v1470_v30  ;;  %v3233_v18 = vshrl.u32 %v7347_v43, 16 }
  0xf7   : > { %6070 = vmatmul.mubr.bf16.gmra.mrb[12].mxu0 %v3150_v46  ;;  %5829 = vmatprep.mubr.bf16.mxu1 %v1037_v53  ;;  %v3195_v46 = vsel %vm3070_vm4, %v3185_v20, %v3194_v7  ;;  %v3208_v53 = vrot.slane %v3206_v37, 2  ;;  %v3236_v20 = vshll.u32 %v7347_v43, 16 }
  0xf8   : > { %6073 = vmatprep.mubr.bf16.mxu0 %v3159_v49  ;;  %6106 = vmatpush3.bf16.msra.mxu0 %v6661_v40  ;;  %v3202_v40 = vrot.slane %v3200_v26, 3  ;;  %v1472_v49 = vrot.slane %v6687_v19, 1  ;;  %v6693_v26 = vld [vmem:[%s8783_s1 + $0x118] sm:$0xff]   ;;  %v3235_v39 = vrot.slane %v3233_v18, 2 }
  0xf9   : > { %6107 = vmatprep.subr.bf16.mxu0 %v6663_v56  ;;  %v3212_v61 = vor.u32 %v3211_v36, %v3208_v53  ;;  %v7451_v53 = vld [vmem:[%s6782_s10 + $0x50] sm:$0xff]   ;;  %v7497_v18 = vld [vmem:[%s6782_s10 + $0x78] sm:$0xff]  }
  0xfa   : > { %v3203_v51 = vor.u32 %v3202_v40, %v3199_v32  ;;  %v1473_v3 = vsel %vm1002_vm3, %v1470_v30, %v1472_v49  ;;  %v6694_v32 = vld [vmem:[%s8783_s1 + $0x120] sm:$0xff]   ;;  %v6695_v40 = vld [vmem:[%s6782_s10 + $0x48] sm:$0xff]   ;;  %v1482_v36 = vrot.slane %v7451_v53, 1 }
  0xfc   : > { %6108 = vmatpush3.bf16.msra.mxu0 %v6663_v56  ;;  %v1474_v56 = vrot.slane %v6688_v52, 1  ;;  %v3204_v15 = vsel %vm3070_vm4, %v3194_v7, %v3203_v51  ;;  %v3222_v7 = vsel %vm3070_vm4, %v3212_v61, %v3221_v11 }
  0xfe   : > { %5830 = vmatmul.mubr.bf16.gmra.mrb[32].mxu1 %v1039_v9  ;;  %v1475_v59 = vsel %vm1002_vm3, %v1472_v49, %v1474_v56  ;;  %v6690_v9 = vld [vmem:[%s8783_s1 + $0x110] sm:$0xff]   ;;  %v6697_v49 = vld [vmem:[%s8783_s1 + $0x128] sm:$0xff]  }
  0xff   : > { %6074 = vmatmul.mubr.bf16.gmra.mrb[16].mxu0 %v3168_v24  ;;  %5849 = vmatprep.mubr.bf16.mxu1 %v1467_v5  ;;  %v3213_v24 = vsel %vm3070_vm4, %v3203_v51, %v3212_v61  ;;  %v3226_v5 = vrot.slane %v3224_v23, 2  ;;  %v3544_v61 = vrot.slane %v7136_v27, 3  ;;  %v7471_v23 = vld [vmem:[%s6782_s10 + $0x60] sm:$0xff]  }
 0x100   : > { %6077 = vmatprep.mubr.bf16.mxu0 %v3177_v55  ;;  %v1476_v55 = vrot.slane %v6691_v41, 1  ;;  %v3550_v41 = vrot.slane %v7160_v1, 3  ;;  %v3552_v1 = vrot.slane %v7176_v44, 3 }
 0x102   : > { %v1477_v30 = vsel %vm1002_vm3, %v1474_v56, %v1476_v55  ;;  %v1479_v37 = vsel %vm1002_vm3, %v1476_v55, %v1478_v13 }
 0x106   : > { %5850 = vmatmul.mubr.bf16.vlgmr.msra.gmra.mrb[0].mxu1 %v1469_v62  ;;  %v3238_v62 = vrot.slane %v3236_v20, 3  ;;  %v7502_v20 = vld [vmem:[%s6782_s10 + $0x80] sm:$0xff]  }
 0x107   : > { %6078 = vmatmul.mubr.bf16.gmra.mrb[20].mxu0 %v3186_v42  ;;  %6153 = vmatpush3.bf16.msra.mxu1 %v7333_v17  ;;  %v3227_v17 = vshll.u32 %v7277_v47, 16  ;;  %v5216_v42 = vcombine.low %v3520_v22, %v7110_v6  ;;  %v3542_v6 = vrot.slane %v7121_v60, 3  ;;  %v7466_v60 = vld [vmem:[%s6782_s10 + $0x58] sm:$0xff]  }
 0x108   : > { %5853 = vmatprep.mubr.bf16.mxu1 %v1471_v45  ;;  %6081 = vmatprep.mubr.bf16.mxu0 %v3195_v46  ;;  %v1480_v45 = vrot.slane %v6695_v40, 1  ;;  %v3239_v46 = vor.u32 %v3238_v62, %v3235_v39  ;;  %v7511_v39 = vld [vmem:[%s6782_s10 + $0x88] sm:$0xff]   ;;  %v3556_v62 = vrot.slane %v7194_v50, 3  ;;  %v3558_v40 = vrot.slane %v7198_v58, 3 }
 0x109   : > { %6146 = vmatprep.subr.bf16.mxu1 %v6689_v0  ;;  %v3229_v16 = vrot.slane %v3227_v17, 3  ;;  %v3541_v19 = vrot.slane %v5216_v42, 3  ;;  %v1486_v17 = vrot.slane %v7471_v23, 1  ;;  %v3545_v25 = vsel %vm3540_vm5, %v3542_v6, %v3544_v61 }
 0x10a   : > { %v1481_v51 = vsel %vm1002_vm3, %v1478_v13, %v1480_v45  ;;  %v1483_v56 = vsel %vm1002_vm3, %v1480_v45, %v1482_v36  ;;  %v1496_v44 = vrot.slane %v7511_v39, 1  ;;  %v1883_v42 = vshrl.u32 %v7451_v53, 16 }
 0x10b   : > { %6154 = vmatpush3.bf16.msra.mxu1 %v6689_v0  ;;  %v3230_v21 = vor.u32 %v3229_v16, %v3226_v5  ;;  %v3543_v33 = vsel %vm3540_vm5, %v3541_v19, %v3542_v6  ;;  %v1484_v0 = vrot.slane %v7466_v60, 1  ;;  %v7488_v5 = vld [vmem:[%s6782_s10 + $0x70] sm:$0xff]   ;;  %v3559_v50 = vsel %vm3540_vm5, %v3556_v62, %v3558_v40 }
 0x10c   : > { %6147 = vmatprep.subr.bf16.mxu1 %v6690_v9  ;;  %v1490_v16 = vrot.slane %v7488_v5, 1  ;;  %v1885_v6 = vrot.slane %v1883_v42, 1  ;;  %v3560_v58 = vrot.slane %v7213_v8, 3 }
 0x10d   : > { %v3231_v43 = vsel %vm3070_vm4, %v3221_v11, %v3230_v21  ;;  %v3240_v52 = vsel %vm3070_vm4, %v3230_v21, %v3239_v46  ;;  %v1487_v4 = vsel %vm1002_vm3, %v1484_v0, %v1486_v17  ;;  %v1494_v21 = vrot.slane %v7502_v20, 1  ;;  %v6665_v46 = vld [vmem:[%s6782_s10 + $0x98] ss:$0 sps:$4 sm:$0x11]  }
 0x10e   : > { %5854 = vmatmul.mubr.bf16.gmra.mrb[4].mxu1 %v1473_v3  ;;  %v3546_v3 = vrot.slane %v7140_v31, 3 }
 0x10f   : > { %6082 = vmatmul.mubr.bf16.gmra.mrb[24].mxu0 %v3204_v15  ;;  %5857 = vmatprep.mubr.bf16.mxu1 %v1475_v59  ;;  %v6701_v15 = vld [vmem:[%s8783_s1 + $0x138] sm:$0xff]   ;;  %v1485_v59 = vsel %vm1002_vm3, %v1482_v36, %v1484_v0  ;;  %v1497_v45 = vsel %vm1002_vm3, %v1494_v21, %v1496_v44  ;;  %v3562_v0 = vrot.slane %v7218_v2, 3 }
 0x110   : > { %6085 = vmatprep.mubr.bf16.mxu0 %v3213_v24  ;;  %6155 = vmatpush3.bf16.msra.mxu1 %v6690_v9  ;;  %v3547_v27 = vsel %vm3540_vm5, %v3544_v61, %v3546_v3  ;;  %v7483_v9 = vld [vmem:[%s6782_s10 + $0x68] sm:$0xff]   ;;  %v3548_v24 = vrot.slane %v7156_v38, 3  ;;  %v1492_v38 = vrot.slane %v7497_v18, 1 }
 0x111   : > { %6148 = vmatprep.subr.bf16.mxu1 %v6693_v26  ;;  %v1488_v31 = vrot.slane %v7483_v9, 1  ;;  %v3563_v8 = vsel %vm3540_vm5, %v3560_v58, %v3562_v0  ;;  %v1913_v2 = vshll.u32 %v7483_v9, 16 }
 0x112   : > { %v3549_v11 = vsel %vm3540_vm5, %v3546_v3, %v3548_v24  ;;  %v3551_v13 = vsel %vm3540_vm5, %v3548_v24, %v3550_v41  ;;  %v1493_v22 = vsel %vm1002_vm3, %v1490_v16, %v1492_v38  ;;  %v1919_v24 = vshrl.u32 %v7488_v5, 16 }
 0x113   : > { %v1489_v55 = vsel %vm1002_vm3, %v1486_v17, %v1488_v31  ;;  %v1491_v12 = vsel %vm1002_vm3, %v1488_v31, %v1490_v16  ;;  %v3566_v16 = vrot.slane %v7240_v57, 3  ;;  %v1931_v57 = vshll.u32 %v7497_v18, 16 }
 0x114   : > { %6156 = vmatpush3.bf16.msra.mxu1 %v6693_v26  ;;  %v3554_v26 = vrot.slane %v7179_v35, 3  ;;  %v7516_v35 = vld [vmem:[%s6782_s10 + $0x90] sm:$0xff]  }
 0x115   : > { %6149 = vmatprep.subr.bf16.mxu1 %v6694_v32 }
 0x116   : > { %5858 = vmatmul.mubr.bf16.gmra.mrb[8].mxu1 %v1477_v30  ;;  %v3553_v30 = vsel %vm3540_vm5, %v3550_v41, %v3552_v1  ;;  %v3557_v36 = vsel %vm3540_vm5, %v3554_v26, %v3556_v62  ;;  %v1933_v62 = vrot.slane %v1931_v57, 2 }
 0x117   : > { %6086 = vmatmul.mubr.bf16.gmra.mrb[28].mxu0 %v3222_v7  ;;  %5861 = vmatprep.mubr.bf16.mxu1 %v1479_v37  ;;  %v1495_v7 = vsel %vm1002_vm3, %v1492_v38, %v1494_v21  ;;  %v3555_v37 = vsel %vm3540_vm5, %v3552_v1, %v3554_v26  ;;  %v1921_v38 = vrot.slane %v1919_v24, 1  ;;  %v3568_v21 = vrot.slane %v7251_v29, 3 }
 0x118   : > { %6089 = vmatprep.mubr.bf16.mxu0 %v3231_v43  ;;  %6157 = vmatpush3.bf16.msra.mxu1 %v6694_v32  ;;  %v1498_v43 = vrot.slane %v7516_v35, 1  ;;  %v1886_v32 = vshll.u32 %v7451_v53, 16  ;;  %v1895_v53 = vshll.u32 %v7466_v60, 16 }
 0x119   : > { %6150 = vmatprep.subr.bf16.mxu1 %v6697_v49 }
 0x11a   : > { %v1499_v19 = vsel %vm1002_vm3, %v1496_v44, %v1498_v43  ;;  %v1897_v3 = vrot.slane %v1895_v53, 2 }
 0x11c   : > { %6158 = vmatpush3.bf16.msra.mxu1 %v6697_v49  ;;  %v1888_v49 = vrot.slane %v1886_v32, 2 }
 0x11d   : > { %6151 = vmatprep.subr.bf16.mxu1 %v6698_v14 }
 0x11e   : > { %5862 = vmatmul.mubr.bf16.gmra.mrb[12].mxu1 %v1481_v51  ;;  %v1500_v51 = vrot.slane %v6665_v46, 1 }
 0x11f   : > { %6090 = vmatmul.mubr.bf16.gmra.mrb[32].mxu0 %v3240_v52  ;;  %5865 = vmatprep.mubr.bf16.mxu1 %v1483_v56  ;;  %v1892_v52 = vshrl.u32 %v7466_v60, 16  ;;  %v1889_v56 = vor.u32 %v1888_v49, %v1885_v6 }
 0x120   : > { %6109 = vmatprep.mubr.bf16.mxu0 %v3543_v33  ;;  %6159 = vmatpush3.bf16.msra.mxu1 %v6698_v14  ;;  %v1901_v33 = vshrl.u32 %v7471_v23, 16  ;;  %v1904_v14 = vshll.u32 %v7471_v23, 16  ;;  %v1501_v61 = vsel %vm1002_vm3, %v1498_v43, %v1500_v51  ;;  %v1910_v23 = vshrl.u32 %v7483_v9, 16 }
 0x121   : > { %6152 = vmatprep.subr.bf16.mxu1 %v6701_v15  ;;  %v1894_v17 = vrot.slane %v1892_v52, 1  ;;  %v3569_v43 = vsel %vm3540_vm5, %v3566_v16, %v3568_v21 }
 0x122   : > { %v1903_v60 = vrot.slane %v1901_v33, 1 }
 0x124   : > { %6160 = vmatpush3.bf16.msra.mxu1 %v6701_v15  ;;  %v3561_v15 = vsel %vm3540_vm5, %v3558_v40, %v3560_v58 }
 0x126   : > { %5866 = vmatmul.mubr.bf16.gmra.mrb[16].mxu1 %v1485_v59  ;;  %v1890_v59 = vsel %vm1801_vm1, %v6943_v34, %v1889_v56  ;;  %v1922_v34 = vshll.u32 %v7488_v5, 16  ;;  %v1928_v5 = vshrl.u32 %v7497_v18, 16 }
 0x127   : > { %6110 = vmatmul.mubr.bf16.vlgmr.msra.gmra.mrb[0].mxu0 %v3545_v25  ;;  %5869 = vmatprep.mubr.bf16.mxu1 %v1487_v4  ;;  %v1906_v25 = vrot.slane %v1904_v14, 2  ;;  %v1898_v4 = vor.u32 %v1897_v3, %v1894_v17 }
 0x128   : > { %6113 = vmatprep.mubr.bf16.mxu0 %v3547_v27  ;;  %v3564_v27 = vrot.slane %v7236_v10, 3  ;;  %v1924_v9 = vrot.slane %v1922_v34, 2  ;;  %v1930_v44 = vrot.slane %v1928_v5, 1 }
 0x129   : > { %v1907_v31 = vor.u32 %v1906_v25, %v1903_v60  ;;  %v1899_v41 = vsel %vm1801_vm1, %v1889_v56, %v1898_v4  ;;  %v6708_v56 = vld [vmem:[%s6782_s10 + $0x98] ss:$0 sps:$4 sm:$0x33]   ;;  %s6450_s10 = smul.u32 144, %s8927_s13 }
 0x12a   : > { %v3567_v1 = vsel %vm3540_vm5, %v3564_v27, %v3566_v16  ;;  %v1925_v26 = vor.u32 %v1924_v9, %v1921_v38  ;;  %v1934_v29 = vor.u32 %v1933_v62, %v1930_v44  ;;  %v1967_v33 = vshll.u32 %v6708_v56, 16 }
 0x12b   : > { %s8374_s8 = scalar_lea.vmem %s8784_s2, %s6450_s10 }
 0x12c   : > { %v1935_v6 = vsel %vm1801_vm1, %v1925_v26, %v1934_v29  ;;  %v1969_v17 = vrot.slane %v1967_v33, 2 }
 0x12e   : > { %5870 = vmatmul.mubr.bf16.gmra.mrb[20].mxu1 %v1489_v55  ;;  %v1912_v55 = vrot.slane %v1910_v23, 1 }
 0x12f   : > { %6114 = vmatmul.mubr.bf16.gmra.mrb[4].mxu0 %v3549_v11  ;;  %5873 = vmatprep.mubr.bf16.mxu1 %v1491_v12  ;;  %v1915_v11 = vrot.slane %v1913_v2, 2  ;;  %v3565_v12 = vsel %vm3540_vm5, %v3562_v0, %v3564_v27 }
 0x130   : > { %6117 = vmatprep.mubr.bf16.mxu0 %v3551_v13  ;;  %v1908_v13 = vsel %vm1801_vm1, %v1898_v4, %v1907_v31 }
 0x131   : > { %v1916_v10 = vor.u32 %v1915_v11, %v1912_v55 }
 0x133   : > { %v1926_v42 = vsel %vm1801_vm1, %v1916_v10, %v1925_v26 }
 0x136   : > { %5874 = vmatmul.mubr.bf16.gmra.mrb[24].mxu1 %v1493_v22  ;;  %v1937_v22 = vshrl.u32 %v7502_v20, 16 }
 0x137   : > { %6118 = vmatmul.mubr.bf16.gmra.mrb[8].mxu0 %v3553_v30  ;;  %5877 = vmatprep.mubr.bf16.mxu1 %v1495_v7  ;;  %v1940_v30 = vshll.u32 %v7502_v20, 16  ;;  %v3570_v7 = vrot.slane %v7259_v54, 3  ;;  %v1946_v20 = vshrl.u32 %v7511_v39, 16  ;;  %v1949_v54 = vshll.u32 %v7511_v39, 16 }
 0x138   : > { %6121 = vmatprep.mubr.bf16.mxu0 %v3555_v37  ;;  %v1917_v37 = vsel %vm1801_vm1, %v1907_v31, %v1916_v10  ;;  %v1939_v32 = vrot.slane %v1937_v22, 1 }
 0x139   : > { %v1942_v18 = vrot.slane %v1940_v30, 2  ;;  %v3571_v40 = vsel %vm3540_vm5, %v3568_v21, %v3570_v7  ;;  %v1948_v49 = vrot.slane %v1946_v20, 1 }
 0x13b   : > { %v1943_v46 = vor.u32 %v1942_v18, %v1939_v32 }
 0x13d   : > { %v1944_v52 = vsel %vm1801_vm1, %v1934_v29, %v1943_v46 }
 0x13e   : > { %5878 = vmatmul.mubr.bf16.gmra.mrb[28].mxu1 %v1497_v45  ;;  %v3572_v45 = vrot.slane %v7273_v48, 3 }
 0x13f   : > { %6122 = vmatmul.mubr.bf16.gmra.mrb[12].mxu0 %v3557_v36  ;;  %5881 = vmatprep.mubr.bf16.mxu1 %v1499_v19  ;;  %v1955_v36 = vshrl.u32 %v7516_v35, 16  ;;  %v1958_v19 = vshll.u32 %v7516_v35, 16  ;;  %v1964_v35 = vshrl.u32 %v6708_v56, 16 }
 0x140   : > { %6125 = vmatprep.mubr.bf16.mxu0 %v3559_v50  ;;  %v1951_v50 = vrot.slane %v1949_v54, 2  ;;  %v3573_v51 = vsel %vm3540_vm5, %v3570_v7, %v3572_v45  ;;  %v3575_v48 = vsel %vm3540_vm5, %v3572_v45, %v3574_v28 }
 0x141   : > { %v1957_v53 = vrot.slane %v1955_v36, 1  ;;  %v1960_v58 = vrot.slane %v1958_v19, 2 }
 0x142   : > { %v1952_v39 = vor.u32 %v1951_v50, %v1948_v49 }
 0x143   : > { %v1961_v14 = vor.u32 %v1960_v58, %v1957_v53 }
 0x144   : > { %v1953_v0 = vsel %vm1801_vm1, %v1943_v46, %v1952_v39 }
 0x145   : > { %v1962_v3 = vsel %vm1801_vm1, %v1952_v39, %v1961_v14 }
 0x146   : > { %5882 = vmatmul.mubr.bf16.gmra.mrb[32].mxu1 %v1501_v61  ;;  %v1966_v61 = vrot.slane %v1964_v35, 1 }
 0x147   : > { %6126 = vmatmul.mubr.bf16.gmra.mrb[16].mxu0 %v3561_v15  ;;  %5917 = vmatprep.mubr.bf16.mxu1 %v1890_v59  ;;  %v3857_v15 = vlaneseq }
 0x148   : > { %6129 = vmatprep.mubr.bf16.mxu0 %v3563_v8  ;;  %v1970_v47 = vor.u32 %v1969_v17, %v1966_v61 }
 0x149   : > { %v7574_v59 = vshrl.u32 %v3857_v15, 7 }
 0x14a   : > { %v1971_v28 = vsel %vm1801_vm1, %v1961_v14, %v1970_v47 }
 0x14b   : > { %v3860_v60 = vadd.s32 16, %v7574_v59  ;;  %v3861_v4 = vadd.s32 24, %v7574_v59  ;;  %v7582_v23 = vmul.u32.u64.low 3817748708, %v7574_v59  ;;  %v7583_v2 = vmul.u32.u64.high 3817748708, %v7574_v59, %v7582_v23 }
 0x14c   : > { %v3864_v24 = vadd.s32 48, %v7574_v59  ;;  %v3862_v55 = vadd.s32 32, %v7574_v59  ;;  %v7604_v5 = vadd.s32 56, %v7574_v59  ;;  %v7607_v21 = vadd.s32 40, %v7574_v59 }
 0x14d   : > { %v7577_v25 = vmul.u32.u64.low 3817748708, %v3860_v60  ;;  %v7578_v8 = vmul.u32.u64.high 3817748708, %v3860_v60, %v7577_v25  ;;  %v7586_v27 = vmul.u32.u64.low 3817748708, %v3861_v4  ;;  %v7587_v31 = vmul.u32.u64.high 3817748708, %v3861_v4, %v7586_v27 }
 0x14e   : > { %5918 = vmatmul.mubr.bf16.vlgmr.msra.gmra.mrb[16].mxu1 %v1899_v41  ;;  %v7623_v32 = vadd.s32 80, %v7574_v59  ;;  %v7627_v29 = vadd.s32 64, %v7574_v59  ;;  %v7630_v20 = vadd.s32 88, %v7574_v59  ;;  %v7680_v47 = vadd.s32 72, %v7574_v59 }
 0x14f   : > { %6130 = vmatmul.mubr.bf16.gmra.mrb[20].mxu0 %v3565_v12  ;;  %5921 = vmatprep.mubr.bf16.mxu1 %v1908_v13  ;;  %v3922_v34 = vshrl.u32 %v7578_v8, 4  ;;  %v7595_v11 = vmul.u32.u64.low 3817748708, %v3864_v24  ;;  %v7596_v12 = vmul.u32.u64.high 3817748708, %v3864_v24, %v7595_v11  ;;  %v3900_v13 = vshrl.u32 %v7583_v2, 4 }
 0x150   : > { %6133 = vmatprep.mubr.bf16.mxu0 %v3567_v1  ;;  %v7599_v9 = vmul.u32.u64.low 3817748708, %v3862_v55  ;;  %v7600_v1 = vmul.u32.u64.high 3817748708, %v3862_v55, %v7599_v9  ;;  %v3933_v10 = vshrl.u32 %v7587_v31, 4 }
 0x151   : > { %v3923_v38 = vmul.u32 18, %v3922_v34  ;;  %v3901_v57 = vmul.u32 18, %v3900_v13  ;;  %v3966_v7 = vshrl.u32 %v7596_v12, 4  ;;  %v8786_v9 = vmov 0.0  }
 0x152   : > { %v3934_v30 = vmul.u32 18, %v3933_v10  ;;  %v7637_v36 = vmul.u32.u64.low 3817748708, %v7623_v32  ;;  %v7638_v19 = vmul.u32.u64.high 3817748708, %v7623_v32, %v7637_v36 }
 0x153   : > { %v3924_v26 = vsub.s32 %v3860_v60, %v3923_v38  ;;  %v7616_v62 = vsub.s32 %v7574_v59, %v3901_v57  ;;  %v3967_v45 = vmul.u32 18, %v3966_v7  ;;  %v7685_v60 = vadd.s32 112, %v7574_v59 }
 0x154   : > { %v7650_v53 = vmul.u32.u64.low 3817748708, %v7630_v20  ;;  %v7651_v58 = vmul.u32.u64.high 3817748708, %v7630_v20, %v7650_v53  ;;  %v4010_v15 = vshrl.u32 %v7638_v19, 4 }
 0x155   : > { %vm4292_vm6 = vcmp.ne.s32.totalorder %v3924_v26, 0  ;;  %vm4328_vm7 = vcmp.lt.s32.totalorder %v3924_v26, 0  ;;  %v4400_v54 = vadd.s32 18, %v3924_v26  ;;  %vm4290_vm9 = vcmp.ne.s32.totalorder %v7616_v62, 0 }
 0x156   : > { %5922 = vmatmul.mubr.bf16.gmra.mrb[20].mxu1 %v1917_v37  ;;  %v7612_v37 = vmul.u32.u64.low 3817748708, %v7604_v5  ;;  %v7613_v44 = vmul.u32.u64.high 3817748708, %v7604_v5, %v7612_v37  ;;  %vm7632_vm8 = vmand %vm4328_vm7, %vm4292_vm6  ;;  %vm4326_vm10 = vcmp.lt.s32.totalorder %v7616_v62, 0  ;;  %v7656_v39 = vsub.s32 %v3864_v24, %v3967_v45 }
 0x157   : > { %6134 = vmatmul.mubr.bf16.gmra.mrb[24].mxu0 %v3569_v43  ;;  %5925 = vmatprep.mubr.bf16.mxu1 %v1926_v42  ;;  %v7619_v43 = vmul.u32.u64.low 3817748708, %v7607_v21  ;;  %v7620_v42 = vmul.u32.u64.high 3817748708, %v7607_v21, %v7619_v43  ;;  %v4398_v33 = vadd.s32 18, %v7616_v62  ;;  %vm7671_vm14 = vmand %vm4326_vm10, %vm4290_vm9  ;;  %v4021_v31 = vshrl.u32 %v7651_v58, 4 }
 0x158   : > { %6137 = vmatprep.mubr.bf16.mxu0 %v3571_v40  ;;  %v3944_v40 = vshrl.u32 %v7600_v1, 4  ;;  %v3977_v56 = vshrl.u32 %v7613_v44, 4  ;;  %vm4296_vm1 = vcmp.ne.s32.totalorder %v7656_v39, 0  ;;  %vm4332_vm2 = vcmp.lt.s32.totalorder %v7656_v39, 0 }
 0x159   : > { %v3955_v35 = vshrl.u32 %v7620_v42, 4  ;;  %v4434_v25 = vsel %vm7671_vm14, %v4398_v33, %v7616_v62  ;;  %v4404_v23 = vadd.s32 18, %v7656_v39  ;;  %vm7713_vm7 = vmand %vm4332_vm2, %vm4296_vm1  ;;  %v4011_v12 = vmul.u32 18, %v4010_v15 }
 0x15a   : > { %v3945_v50 = vmul.u32 18, %v3944_v40  ;;  %v7727_v13 = vmul.u32.u64.low 3817748708, %v7685_v60  ;;  %v7728_v38 = vmul.u32.u64.high 3817748708, %v7685_v60, %v7727_v13 }
 0x15b   : > { %v4022_v7 = vmul.u32 18, %v4021_v31  ;;  %v4012_v43 = vsub.s32 %v7623_v32, %v4011_v12  ;;  %v7874_v31 = vadd.s32 128, %v7574_v59 }
 0x15c   : > { %v7663_v14 = vsub.s32 %v3862_v55, %v3945_v50  ;;  %v7723_v55 = vadd.s32 96, %v7574_v59 }
 0x15d   : > { %v7787_v19 = vsub.s32 %v7630_v20, %v4022_v7  ;;  %v4408_v58 = vadd.s32 18, %v4012_v43  ;;  %v7916_v7 = vadd.s32 176, %v7574_v59  ;;  %v7961_v20 = vadd.s32 168, %v7574_v59 }
 0x15e   : > { %5926 = vmatmul.mubr.bf16.gmra.mrb[24].mxu1 %v1935_v6  ;;  %v7641_v6 = vsub.s32 %v3861_v4, %v3934_v30  ;;  %vm4294_vm4 = vcmp.ne.s32.totalorder %v7663_v14, 0  ;;  %vm4330_vm6 = vcmp.lt.s32.totalorder %v7663_v14, 0 }
 0x15f   : > { %6138 = vmatmul.mubr.bf16.gmra.mrb[28].mxu0 %v3573_v51  ;;  %5929 = vmatprep.mubr.bf16.mxu1 %v1944_v52  ;;  %v7646_v51 = vmul.u32.u64.low 3817748708, %v7627_v29  ;;  %v7647_v52 = vmul.u32.u64.high 3817748708, %v7627_v29, %v7646_v51  ;;  %vm7746_vm9 = vmand %vm4330_vm6, %vm4294_vm4  ;;  %v7760_v37 = vmul.u32.u64.low 3817748708, %v7723_v55  ;;  %v7761_v44 = vmul.u32.u64.high 3817748708, %v7723_v55, %v7760_v37 }
 0x160   : > { %6141 = vmatprep.mubr.bf16.mxu0 %v3575_v48  ;;  %v4436_v48 = vsel %vm7632_vm8, %v4400_v54, %v3924_v26  ;;  %vm4293_vm11 = vcmp.ne.s32.totalorder %v7641_v6, 0  ;;  %vm4329_vm12 = vcmp.lt.s32.totalorder %v7641_v6, 0  ;;  %v4401_v17 = vadd.s32 18, %v7641_v6 }
 0x161   : > { %vm7665_vm13 = vcmp.lt.s32.totalorder %v4436_v48, 16  ;;  %vm7694_vm3 = vmand %vm4329_vm12, %vm4293_vm11  ;;  %v3988_v27 = vshrl.u32 %v7647_v52, 4  ;;  %vm7735_vm8 = vcmp.lt.s32.totalorder %v4434_v25, 16  ;;  %v7772_v54 = vadd.s32 104, %v7574_v59 }
 0x162   : > { %v7733_v1 = vsel %vm7665_vm13, 1.0, %v8786_v9  ;;  %v7777_v45 = vsel %vm7735_vm8, 1.0, %v8786_v9  ;;  %vm4300_vm4 = vcmp.ne.s32.totalorder %v4012_v43, 0  ;;  %v4054_v52 = vshrl.u32 %v7728_v38, 4 }
 0x163   : > { %v3989_v30 = vmul.u32 18, %v3988_v27  ;;  %vm4301_vm8 = vcmp.ne.s32.totalorder %v7787_v19, 0  ;;  %v4409_v8 = vadd.s32 18, %v7787_v19  ;;  %v7895_v38 = vadd.s32 152, %v7574_v59 }
 0x165   : > { %v7784_v32 = vsub.s32 %v7627_v29, %v3989_v30  ;;  %v7913_v30 = vadd.s32 136, %v7574_v59 }
 0x166   : > { %5930 = vmatmul.mubr.bf16.gmra.mrb[28].mxu1 %v1953_v0  ;;  %v7830_v0 = vadd.s32 144, %v7574_v59 }
 0x167   : > { %6142 = vmatmul.mubr.bf16.gmra.mrb[32].mxu0 %v7361_v63  ;;  %5933 = vmatprep.mubr.bf16.mxu1 %v1962_v3  ;;  %v3859_v63 = vadd.s32 8, %v7574_v59  ;;  %v3978_v3 = vmul.u32 18, %v3977_v56  ;;  %vm4298_vm6 = vcmp.ne.s32.totalorder %v7784_v32, 0  ;;  %v4406_v25 = vadd.s32 18, %v7784_v32 }
 0x169   : > { %v7591_v16 = vmul.u32.u64.low 3817748708, %v3859_v63  ;;  %v7592_v41 = vmul.u32.u64.high 3817748708, %v3859_v63, %v7591_v16  ;;  %v3979_v34 = vsub.s32 %v7604_v5, %v3978_v3  ;;  %v4437_v5 = vsel %vm7694_vm3, %v4401_v17, %v7641_v6 }
 0x16b   : > { %v3911_v22 = vshrl.u32 %v7592_v41, 4  ;;  %v7719_v16 = vmul.u32.u64.low 3817748708, %v7680_v47  ;;  %v7720_v41 = vmul.u32.u64.high 3817748708, %v7680_v47, %v7719_v16  ;;  %vm4297_vm10 = vcmp.ne.s32.totalorder %v3979_v34, 0 }
 0x16c   : > { %vm4333_vm11 = vcmp.lt.s32.totalorder %v3979_v34, 0  ;;  %v4405_v42 = vadd.s32 18, %v3979_v34 }
 0x16d   : > { %v3912_v18 = vmul.u32 18, %v3911_v22  ;;  %v4440_v22 = vsel %vm7713_vm7, %v4404_v23, %v7656_v39  ;;  %vm7779_vm14 = vmand %vm4333_vm11, %vm4297_vm10  ;;  %v3999_v29 = vshrl.u32 %v7720_v41, 4  ;;  %vm4334_vm7 = vcmp.lt.s32.totalorder %v7784_v32, 0 }
 0x16e   : > { %5934 = vmatmul.mubr.bf16.gmra.mrb[32].mxu1 %v1971_v28  ;;  %v3956_v28 = vmul.u32 18, %v3955_v35  ;;  %vm7797_vm1 = vcmp.lt.s32.totalorder %v4440_v22, 16  ;;  %v4441_v53 = vsel %vm7779_vm14, %v4405_v42, %v3979_v34  ;;  %vm4337_vm10 = vcmp.lt.s32.totalorder %v7787_v19, 0 }
 0x16f   : > { %v7643_v49 = vsub.s32 %v3859_v63, %v3912_v18  ;;  %v4402_v63 = vadd.s32 18, %v7663_v14  ;;  %v7815_v48 = vmul.u32.u64.low 3817748708, %v7772_v54  ;;  %v7816_v39 = vmul.u32.u64.high 3817748708, %v7772_v54, %v7815_v48  ;;  %vm7869_vm14 = vmand %vm4337_vm10, %vm4301_vm8 }
 0x170   : > { %v3957_v11 = vsub.s32 %v7607_v21, %v3956_v28  ;;  %v7751_v21 = vadd.s32 120, %v7574_v59  ;;  %v4000_v33 = vmul.u32 18, %v3999_v29  ;;  %vm7842_vm11 = vcmp.lt.s32.totalorder %v4441_v53, 16 }
 0x171   : > { %vm4291_vm15 = vcmp.ne.s32.totalorder %v7643_v49, 0  ;;  %vm4327_vm0 = vcmp.lt.s32.totalorder %v7643_v49, 0  ;;  %v4399_v4 = vadd.s32 18, %v7643_v49  ;;  %v4438_v62 = vsel %vm7746_vm9, %v4402_v63, %v7663_v14 }
 0x172   : > { %vm7703_vm5 = vmand %vm4327_vm0, %vm4291_vm15  ;;  %vm4295_vm12 = vcmp.ne.s32.totalorder %v3957_v11, 0  ;;  %vm4331_vm13 = vcmp.lt.s32.totalorder %v3957_v11, 0  ;;  %v7768_v18 = vmul.u32.u64.low 3817748708, %v7751_v21  ;;  %v7769_v40 = vmul.u32.u64.high 3817748708, %v7751_v21, %v7768_v18 }
 0x173   : > { %v4435_v26 = vsel %vm7703_vm5, %v4399_v4, %v7643_v49  ;;  %v4403_v36 = vadd.s32 18, %v3957_v11  ;;  %vm7789_vm15 = vcmp.lt.s32.totalorder %v4437_v5, 16  ;;  %vm7802_vm2 = vmand %vm4331_vm13, %vm4295_vm12  ;;  %vm7807_vm3 = vcmp.lt.s32.totalorder %v4438_v62, 16 }
 0x174   : > { %vm7793_vm0 = vcmp.lt.s32.totalorder %v4435_v26, 16  ;;  %vm4336_vm5 = vcmp.lt.s32.totalorder %v4012_v43, 0  ;;  %v4032_v14 = vshrl.u32 %v7761_v44, 4  ;;  %v7835_v61 = vsel %vm7789_vm15, 1.0, %v8786_v9  ;;  %vm7846_vm13 = vmand %vm4334_vm7, %vm4298_vm6 }
 0x175   : > { %v4439_v56 = vsel %vm7802_vm2, %v4403_v36, %v3957_v11  ;;  %vm7823_vm9 = vmand %vm4336_vm5, %vm4300_vm4  ;;  %v7840_v17 = vsel %vm7793_vm0, 1.0, %v8786_v9  ;;  %v4055_v28 = vmul.u32 18, %v4054_v52  ;;  %v4065_v4 = vshrl.u32 %v7769_v40, 4 }
 0x176   : > { %vm4475_vm12 = vcmp.lt.s32.totalorder %v4439_v56, 16  ;;  %v7856_v23 = vsel %vm7797_vm1, 1.0, %v8786_v9  ;;  %v7861_v2 = vsel %vm7807_vm3, 1.0, %v8786_v9  ;;  %v4444_v63 = vsel %vm7823_vm9, %v4408_v58, %v4012_v43 }
 0x177   : > { %v7877_v24 = vsub.s32 %v7680_v47, %v4000_v33  ;;  %v4033_v34 = vmul.u32 18, %v4032_v14  ;;  %v7880_v16 = vmul.u32.u64.low 3817748708, %v7830_v0  ;;  %v7881_v41 = vmul.u32.u64.high 3817748708, %v7830_v0, %v7880_v16 }
 0x178   : > { %v7886_v11 = vsel %vm7842_vm11, 1.0, %v8786_v9  ;;  %v7889_v12 = vsel %vm4475_vm12, 1.0, %v8786_v9  ;;  %v7892_v13 = vsub.s32 %v7685_v60, %v4055_v28  ;;  %vm7897_vm15 = vcmp.lt.s32.totalorder %v4444_v63, 16 }
 0x179   : > { %v4442_v10 = vsel %vm7846_vm13, %v4406_v25, %v7784_v32  ;;  %v4445_v5 = vsel %vm7869_vm14, %v4409_v8, %v7787_v19  ;;  %v4066_v57 = vmul.u32 18, %v4065_v4  ;;  %v4043_v26 = vshrl.u32 %v7816_v39, 4 }
 0x17a   : > { %v7909_v60 = vmul.u32.u64.low 3817748708, %v7874_v31  ;;  %v7910_v22 = vmul.u32.u64.high 3817748708, %v7874_v31, %v7909_v60  ;;  %vm4299_vm0 = vcmp.ne.s32.totalorder %v7877_v24, 0  ;;  %vm4335_vm1 = vcmp.lt.s32.totalorder %v7877_v24, 0 }
 0x17b   : > { %v7921_v37 = vsub.s32 %v7723_v55, %v4033_v34  ;;  %v7924_v44 = vadd.s32 160, %v7574_v59  ;;  %v4407_v62 = vadd.s32 18, %v7877_v24  ;;  %vm4304_vm2 = vcmp.ne.s32.totalorder %v7892_v13, 0  ;;  %vm7941_vm4 = vmand %vm4335_vm1, %vm4299_vm0 }
 0x17c   : > { %v7929_v43 = vmul.u32.u64.low 3817748708, %v7895_v38  ;;  %v7930_v42 = vmul.u32.u64.high 3817748708, %v7895_v38, %v7929_v43  ;;  %vm4340_vm3 = vcmp.lt.s32.totalorder %v7892_v13, 0  ;;  %v7934_v18 = vsub.s32 %v7751_v21, %v4066_v57 }
 0x17d   : > { %v4044_v40 = vmul.u32 18, %v4043_v26  ;;  %v7937_v55 = vadd.s32 184, %v7574_v59  ;;  %v7946_v32 = vmul.u32.u64.low 3817748708, %v7913_v30  ;;  %v7947_v19 = vmul.u32.u64.high 3817748708, %v7913_v30, %v7946_v32  ;;  %vm7989_vm9 = vmand %vm4340_vm3, %vm4304_vm2 }
 0x17e   : > { %v7950_v6 = vmul.u32.u64.low 3817748708, %v7916_v7  ;;  %v7951_v49 = vmul.u32.u64.high 3817748708, %v7916_v7, %v7950_v6  ;;  %v4098_v50 = vshrl.u32 %v7881_v41, 4  ;;  %vm7965_vm5 = vcmp.lt.s32.totalorder %v4442_v10, 16 }
 0x17f   : > { %v7957_v51 = vmul.u32.u64.low 3817748708, %v7924_v44  ;;  %v7958_v29 = vmul.u32.u64.high 3817748708, %v7924_v44, %v7957_v51  ;;  %vm7969_vm6 = vcmp.lt.s32.totalorder %v4445_v5, 16  ;;  %vm4302_vm7 = vcmp.ne.s32.totalorder %v7921_v37, 0 }
 0x180   : > { %vm4338_vm8 = vcmp.lt.s32.totalorder %v7921_v37, 0  ;;  %v4443_v39 = vsel %vm7941_vm4, %v4407_v62, %v7877_v24  ;;  %v4412_v56 = vadd.s32 18, %v7892_v13  ;;  %v4410_v3 = vadd.s32 18, %v7921_v37 }
 0x181   : > { %v7982_v35 = vmul.u32.u64.low 3817748708, %v7937_v55  ;;  %v7983_v33 = vmul.u32.u64.high 3817748708, %v7937_v55, %v7982_v35  ;;  %vm4305_vm10 = vcmp.ne.s32.totalorder %v7934_v18, 0  ;;  %vm4341_vm11 = vcmp.lt.s32.totalorder %v7934_v18, 0  ;;  %vm7997_vm12 = vmand %vm4338_vm8, %vm4302_vm7 }
 0x182   : > { %v4076_v28 = vshrl.u32 %v7910_v22, 4  ;;  %v8002_v25 = vsub.s32 %v7772_v54, %v4044_v40  ;;  %v4099_v8 = vmul.u32 18, %v4098_v50  ;;  %v8011_v27 = vsel %vm7897_vm15, 1.0, %v8786_v9  ;;  %vm8044_vm14 = vmand %vm4341_vm11, %vm4305_vm10 }
 0x183   : > { %v8005_v4 = vmul.u32.u64.low 3817748708, %v7961_v20  ;;  %v8006_v63 = vmul.u32.u64.high 3817748708, %v7961_v20, %v8005_v4  ;;  %v8016_v24 = vsel %vm7965_vm5, 1.0, %v8786_v9  ;;  %v4109_v34 = vshrl.u32 %v7930_v42, 4 }
 0x184   : > { %v8020_v54 = vadd.s32 208, %v7574_v59  ;;  %v8025_v16 = vsel %vm7969_vm6, 1.0, %v8786_v9  ;;  %vm8027_vm13 = vcmp.lt.s32.totalorder %v4443_v39, 16  ;;  %v4448_v47 = vsel %vm7989_vm9, %v4412_v56, %v7892_v13 }
 0x185   : > { %v4413_v10 = vadd.s32 18, %v7934_v18  ;;  %v4446_v57 = vsel %vm7997_vm12, %v4410_v3, %v7921_v37  ;;  %v4077_v60 = vmul.u32 18, %v4076_v28  ;;  %v4087_v22 = vshrl.u32 %v7947_v19, 4 }
 0x186   : > { %v4142_v13 = vshrl.u32 %v7951_v49, 4  ;;  %vm4303_vm15 = vcmp.ne.s32.totalorder %v8002_v25, 0  ;;  %vm4339_vm0 = vcmp.lt.s32.totalorder %v8002_v25, 0  ;;  %v8055_v37 = vsub.s32 %v7830_v0, %v4099_v8 }
 0x187   : > { %v4120_v43 = vshrl.u32 %v7958_v29, 4  ;;  %v4110_v40 = vmul.u32 18, %v4109_v34  ;;  %v8061_v36 = vmul.u32.u64.low 3817748708, %v8020_v54  ;;  %v8062_v32 = vmul.u32.u64.high 3817748708, %v8020_v54, %v8061_v36  ;;  %vm8089_vm3 = vmand %vm4339_vm0, %vm4303_vm15 }
 0x188   : > { %v8065_v19 = vadd.s32 192, %v7574_v59  ;;  %vm8069_vm1 = vcmp.lt.s32.totalorder %v4448_v47, 16  ;;  %vm8073_vm2 = vcmp.lt.s32.totalorder %v4446_v57, 16  ;;  %v4449_v50 = vsel %vm8044_vm14, %v4413_v10, %v7934_v18 }
 0x189   : > { %v4153_v51 = vshrl.u32 %v7983_v33, 4  ;;  %v4411_v29 = vadd.s32 18, %v8002_v25  ;;  %v8083_v53 = vsub.s32 %v7874_v31, %v4077_v60  ;;  %v4088_v58 = vmul.u32 18, %v4087_v22 }
 0x18a   : > { %v4143_v39 = vmul.u32 18, %v4142_v13  ;;  %vm4308_vm4 = vcmp.ne.s32.totalorder %v8055_v37, 0  ;;  %vm4344_vm5 = vcmp.lt.s32.totalorder %v8055_v37, 0  ;;  %v4121_v18 = vmul.u32 18, %v4120_v43 }
 0x18b   : > { %v4131_v35 = vshrl.u32 %v8006_v63, 4  ;;  %v8099_v31 = vsel %vm8027_vm13, 1.0, %v8786_v9  ;;  %v8102_v33 = vsub.s32 %v7895_v38, %v4110_v40  ;;  %v8111_v28 = vsel %vm8069_vm1, 1.0, %v8786_v9  ;;  %vm8130_vm7 = vmand %vm4344_vm5, %vm4308_vm4 }
 0x18c   : > { %v8105_v14 = vmul.u32.u64.low 3817748708, %v8065_v19  ;;  %v8106_v3 = vmul.u32.u64.high 3817748708, %v8065_v19, %v8105_v14  ;;  %v8116_v15 = vsel %vm8073_vm2, 1.0, %v8786_v9  ;;  %v4416_v8 = vadd.s32 18, %v8055_v37 }
 0x18d   : > { %v4154_v4 = vmul.u32 18, %v4153_v51  ;;  %vm8121_vm6 = vcmp.lt.s32.totalorder %v4449_v50, 16  ;;  %v4447_v34 = vsel %vm8089_vm3, %v4411_v29, %v8002_v25  ;;  %v8135_v47 = vsub.s32 %v7913_v30, %v4088_v58 }
 0x18e   : > { %v8138_v10 = vsub.s32 %v7916_v7, %v4143_v39  ;;  %vm4306_vm8 = vcmp.ne.s32.totalorder %v8083_v53, 0  ;;  %vm4342_vm9 = vcmp.lt.s32.totalorder %v8083_v53, 0  ;;  %v8145_v25 = vsub.s32 %v7924_v44, %v4121_v18 }
 0x18f   : > { %v4132_v26 = vmul.u32 18, %v4131_v35  ;;  %vm4309_vm10 = vcmp.ne.s32.totalorder %v8102_v33, 0  ;;  %vm4345_vm11 = vcmp.lt.s32.totalorder %v8102_v33, 0  ;;  %v4186_v30 = vshrl.u32 %v8062_v32, 4  ;;  %vm8170_vm13 = vmand %vm4342_vm9, %vm4306_vm8 }
 0x190   : > { %v8153_v7 = vadd.s32 216, %v7574_v59  ;;  %vm8157_vm12 = vcmp.lt.s32.totalorder %v4447_v34, 16  ;;  %v4452_v44 = vsel %vm8130_vm7, %v4416_v8, %v8055_v37  ;;  %v4414_v43 = vadd.s32 18, %v8083_v53  ;;  %vm8180_vm1 = vmand %vm4345_vm11, %vm4309_vm10 }
 0x191   : > { %v8166_v40 = vsub.s32 %v7937_v55, %v4154_v4  ;;  %v4417_v32 = vadd.s32 18, %v8102_v33  ;;  %vm4307_vm14 = vcmp.ne.s32.totalorder %v8135_v47, 0  ;;  %vm4343_vm15 = vcmp.lt.s32.totalorder %v8135_v47, 0 }
 0x192   : > { %vm4312_vm0 = vcmp.ne.s32.totalorder %v8138_v10, 0  ;;  %vm4348_vm2 = vcmp.lt.s32.totalorder %v8138_v10, 0  ;;  %vm4310_vm3 = vcmp.ne.s32.totalorder %v8145_v25, 0  ;;  %vm4346_vm4 = vcmp.lt.s32.totalorder %v8145_v25, 0  ;;  %vm8199_vm7 = vmand %vm4343_vm15, %vm4307_vm14 }
 0x193   : > { %v8188_v55 = vsub.s32 %v7961_v20, %v4132_v26  ;;  %v4187_v49 = vmul.u32 18, %v4186_v30  ;;  %v4164_v0 = vshrl.u32 %v8106_v3, 4  ;;  %vm8195_vm5 = vcmp.lt.s32.totalorder %v4452_v44, 16  ;;  %vm8218_vm10 = vmand %vm4348_vm2, %vm4312_vm0 }
 0x194   : > { %v8192_v50 = vmul.u32.u64.low 3817748708, %v8153_v7  ;;  %v8193_v51 = vmul.u32.u64.high 3817748708, %v8153_v7, %v8192_v50  ;;  %v4415_v39 = vadd.s32 18, %v8135_v47  ;;  %vm4313_vm8 = vcmp.ne.s32.totalorder %v8166_v40, 0  ;;  %vm8240_vm11 = vmand %vm4346_vm4, %vm4310_vm3 }
 0x195   : > { %vm4349_vm9 = vcmp.lt.s32.totalorder %v8166_v40, 0  ;;  %v4450_v56 = vsel %vm8170_vm13, %v4414_v43, %v8083_v53  ;;  %v4453_v18 = vsel %vm8180_vm1, %v4417_v32, %v8102_v33  ;;  %v4420_v14 = vadd.s32 18, %v8138_v10 }
 0x196   : > { %v4418_v3 = vadd.s32 18, %v8145_v25  ;;  %v8229_v53 = vsel %vm8121_vm6, 1.0, %v8786_v9  ;;  %v8234_v33 = vsel %vm8157_vm12, 1.0, %v8786_v9  ;;  %v4421_v34 = vadd.s32 18, %v8166_v40  ;;  %vm8252_vm6 = vmand %vm4349_vm9, %vm4313_vm8 }
 0x197   : > { %v8246_v41 = vadd.s32 200, %v7574_v59  ;;  %vm4311_vm12 = vcmp.ne.s32.totalorder %v8188_v55, 0  ;;  %vm4347_vm13 = vcmp.lt.s32.totalorder %v8188_v55, 0  ;;  %v8259_v30 = vsub.s32 %v8020_v54, %v4187_v49 }
 0x198   : > { %v4165_v13 = vmul.u32 18, %v4164_v0  ;;  %v8266_v43 = vsel %vm8195_vm5, 1.0, %v8786_v9  ;;  %vm4486_vm14 = vcmp.lt.s32.totalorder %v4450_v56, 16  ;;  %vm4489_vm15 = vcmp.lt.s32.totalorder %v4453_v18, 16  ;;  %vm8286_vm0 = vmand %vm4347_vm13, %vm4311_vm12 }
 0x199   : > { %v4451_v36 = vsel %vm8199_vm7, %v4415_v39, %v8135_v47  ;;  %v4456_v32 = vsel %vm8218_vm10, %v4420_v14, %v8138_v10  ;;  %v4454_v54 = vsel %vm8240_vm11, %v4418_v3, %v8145_v25  ;;  %v4419_v37 = vadd.s32 18, %v8188_v55 }
 0x19a   : > { %v8279_v49 = vadd.s32 240, %v7574_v59  ;;  %v4457_v0 = vsel %vm8252_vm6, %v4421_v34, %v8166_v40  ;;  %v8291_v10 = vmul.u32.u64.low 3817748708, %v8246_v41  ;;  %v8292_v50 = vmul.u32.u64.high 3817748708, %v8246_v41, %v8291_v10 }
 0x19b   : > { %v8295_v25 = vadd.s32 224, %v7574_v59  ;;  %vm4316_vm1 = vcmp.ne.s32.totalorder %v8259_v30, 0  ;;  %vm4352_vm2 = vcmp.lt.s32.totalorder %v8259_v30, 0  ;;  %v8300_v40 = vsub.s32 %v8065_v19, %v4165_v13 }
 0x19c   : > { %v4197_v29 = vshrl.u32 %v8193_v51, 4  ;;  %v8304_v58 = vsel %vm4486_vm14, 1.0, %v8786_v9  ;;  %v8307_v39 = vsel %vm4489_vm15, 1.0, %v8786_v9  ;;  %vm8309_vm3 = vcmp.lt.s32.totalorder %v4451_v36, 16  ;;  %vm8336_vm8 = vmand %vm4352_vm2, %vm4316_vm1 }
 0x19d   : > { %vm8313_vm4 = vcmp.lt.s32.totalorder %v4456_v32, 16  ;;  %v4455_v19 = vsel %vm8286_vm0, %v4419_v37, %v8188_v55  ;;  %v4424_v51 = vadd.s32 18, %v8259_v30  ;;  %vm8326_vm5 = vcmp.lt.s32.totalorder %v4454_v54, 16 }
 0x19e   : > { %v8322_v35 = vmul.u32.u64.low 3817748708, %v8279_v49  ;;  %v8323_v14 = vmul.u32.u64.high 3817748708, %v8279_v49, %v8322_v35  ;;  %vm8330_vm7 = vcmp.lt.s32.totalorder %v4457_v0, 16  ;;  %vm4314_vm9 = vcmp.ne.s32.totalorder %v8300_v40, 0 }
 0x19f   : > { %v8341_v26 = vmul.u32.u64.low 3817748708, %v8295_v25  ;;  %v8342_v13 = vmul.u32.u64.high 3817748708, %v8295_v25, %v8341_v26  ;;  %vm4350_vm10 = vcmp.lt.s32.totalorder %v8300_v40, 0  ;;  %v4198_v54 = vmul.u32 18, %v4197_v29 }
 0x1a0   : > { %v8351_v47 = vsel %vm8309_vm3, 1.0, %v8786_v9  ;;  %v8356_v10 = vsel %vm8313_vm4, 1.0, %v8786_v9  ;;  %vm4491_vm11 = vcmp.lt.s32.totalorder %v4455_v19, 16  ;;  %v8362_v29 = vsel %vm8326_vm5, 1.0, %v8786_v9  ;;  %vm8386_vm6 = vmand %vm4350_vm10, %vm4314_vm9 }
 0x1a1   : > { %8878 = vst [vmem:[#allocation2_spill] sm:$0xff] %v8356_v10  ;;  %v8368_v56 = vadd.s32 18, %v8300_v40  ;;  %v8380_v19 = vsel %vm8330_vm7, 1.0, %v8786_v9  ;;  %v8398_v4 = vadd.s32 248, %v7574_v59 }
 0x1a2   : > { %8879 = vst [vmem:[#allocation3_spill] sm:$0xff] %v8380_v19 }
 0x1d9   : > { %v7939_v46 = vpop.f32.mrb[0].mxu1 }
 0x1da   : > { %v7953_v21 = vpop.f32.mrb[1].mxu1 }
 0x1db   : > { %v7963_v52 = vpop.f32.mrb[2].mxu1 }
 0x1dc   : > { %v7975_v48 = vpop.f32.mrb[3].mxu1 }
 0x1e1   : > { %v8035_v5 = vpop.f32.mrb[4].mxu1 }
 0x1e2   : > { %v8050_v62 = vpop.f32.mrb[5].mxu1 }
 0x1e3   : > { %v8058_v42 = vpop.f32.mrb[6].mxu1 }
 0x1e4   : > { %v8067_v6 = vpop.f32.mrb[7].mxu1 }
 0x1e9   : > { %v8119_v63 = vpop.f32.mrb[8].mxu1 }
 0x1ea   : > { %v8140_v57 = vpop.f32.mrb[9].mxu1 }
 0x1eb   : > { %v8147_v60 = vpop.f32.mrb[10].mxu1 }
 0x1ec   : > { %v8155_v22 = vpop.f32.mrb[11].mxu1 }
 0x1f1   : > { %v8206_v20 = vpop.f32.mrb[12].mxu1 }
 0x1f2   : > { %v8224_v8 = vpop.f32.mrb[13].mxu1 }
 0x1f3   : > { %v8248_v38 = vpop.f32.mrb[14].mxu1 }
 0x1f4   : > { %v8261_v44 = vpop.f32.mrb[15].mxu1 }
 0x1fa   : > { %v6111_v3 = vpop.f32.mrb[0].mxu0 }
 0x1fb   : > { %v6161_v36 = vadd.f32 %v6111_v3, %v7939_v46  ;;  %v3678_v32 = vpop.f32.mrb[1].mxu0  ;;  %v8392_v3 = vsel %vm4491_vm11, 1.0, %v8786_v9 }
 0x1fc   : > { %v6162_v37 = vadd.f32 %v3678_v32, %v7953_v21  ;;  %v6112_v0 = vpop.f32.mrb[2].mxu0  ;;  %v4460_v21 = vsel %vm8336_vm8, %v4424_v51, %v8259_v30  ;;  %8882 = vst [vmem:[#allocation4_spill] sm:$0xff] %v8392_v3 }
 0x1fd   : > { %v6163_v46 = vadd.f32 %v6112_v0, %v7963_v52  ;;  %v3681_v35 = vpop.f32.mrb[3].mxu0  ;;  %v4652_v34 = vmul.f32 %v6161_v36, %v7733_v1  ;;  %vm4496_vm12 = vcmp.lt.s32.totalorder %v4460_v21, 16 }
 0x1fe   : > { %v4650_v18 = vmul.f32 %v6162_v37, %v7777_v45  ;;  %v6164_v52 = vadd.f32 %v3681_v35, %v7975_v48  ;;  %v4175_v45 = vshrl.u32 %v8292_v50, 4  ;;  %v8395_v48 = vsub.s32 %v8153_v7, %v4198_v54 }
 0x1ff   : > { %v5344_v51 = vpack.c.bf16 %v6163_v46, %v6161_v36  ;;  %v4653_v32 = vmul.f32 %v6163_v46, %v7835_v61  ;;  %v4230_v7 = vshrl.u32 %v8323_v14, 4  ;;  %v8410_v54 = vadd.s32 232, %v7574_v59 }
 0x200   : > { %v4651_v55 = vmul.f32 %v6164_v52, %v7840_v17  ;;  %v5339_v26 = vpack.c.bf16 %v6164_v52, %v6162_v37  ;;  %v4727_v0 = vmul.f32 %v6162_v37, %v4650_v18  ;;  %v4176_v9 = vmul.u32 18, %v4175_v45 }
 0x201   : > { %5426 = vst [vmem:[%s8374_s8 + $0x8] sm:$0xff] %v5344_v51   ;;  %v8883_v51 = vmov 0.0   ;;  %vm4317_vm13 = vcmp.ne.s32.totalorder %v8395_v48, 0  ;;  %v4208_v50 = vshrl.u32 %v8342_v13, 4  ;;  %v4729_v14 = vmul.f32 %v6161_v36, %v4652_v34 }
 0x202   : > { %v4686_v35 = vadd.f32 %v4651_v55, %v4650_v18  ;;  %v4728_v1 = vmul.f32 %v6164_v52, %v4651_v55  ;;  %5340 = vst [vmem:[%s8374_s8] sm:$0xff] %v5339_v26   ;;  %v6115_v17 = vpop.f32.mrb[4].mxu0  ;;  %v8415_v19 = vsel %vm4496_vm12, 1.0, %v8883_v51  ;;  %v4730_v52 = vmul.f32 %v6163_v46, %v4653_v32 }
 0x203   : > { %v6165_v21 = vadd.f32 %v6115_v17, %v8035_v5  ;;  %v3694_v61 = vpop.f32.mrb[5].mxu0  ;;  %vm4353_vm14 = vcmp.lt.s32.totalorder %v8395_v48, 0  ;;  %v8423_v5 = vadd.s32 18, %v8395_v48  ;;  %v8429_v46 = vsub.s32 %v8246_v41, %v4176_v9 }
 0x204   : > { %v4687_v3 = vadd.f32 %v4686_v35, %v4652_v34  ;;  %v4763_v10 = vadd.f32 %v4728_v1, %v4727_v0  ;;  %v6166_v37 = vadd.f32 %v3694_v61, %v8050_v62  ;;  %v6116_v18 = vpop.f32.mrb[6].mxu0  ;;  %vm8434_vm15 = vmand %vm4353_vm14, %vm4317_vm13 }
 0x205   : > { %v6167_v55 = vadd.f32 %v6116_v18, %v8058_v42  ;;  %v3697_v45 = vpop.f32.mrb[7].mxu0  ;;  %v4656_v34 = vmul.f32 %v6165_v21, %v7856_v23  ;;  %v4231_v42 = vmul.u32 18, %v4230_v7  ;;  %vm4315_vm0 = vcmp.ne.s32.totalorder %v8429_v46, 0 }
 0x206   : > { %v4764_v26 = vadd.f32 %v4763_v10, %v4729_v14  ;;  %v4654_v17 = vmul.f32 %v6166_v37, %v7861_v2  ;;  %v4688_v13 = vadd.f32 %v4687_v3, %v4653_v32  ;;  %v6168_v36 = vadd.f32 %v3697_v45, %v8067_v6 }
 0x207   : > { %v5354_v62 = vpack.c.bf16 %v6167_v55, %v6165_v21  ;;  %v4657_v6 = vmul.f32 %v6167_v55, %v7886_v11  ;;  %v8441_v9 = vmul.u32.u64.low 3817748708, %v8398_v4  ;;  %v8442_v41 = vmul.u32.u64.high 3817748708, %v8398_v4, %v8441_v9 }
 0x208   : > { %v4689_v0 = vadd.f32 %v4688_v13, %v4654_v17  ;;  %v4731_v35 = vmul.f32 %v6166_v37, %v4654_v17  ;;  %v4765_v1 = vadd.f32 %v4764_v26, %v4730_v52  ;;  %v4655_v61 = vmul.f32 %v6168_v36, %v7889_v12 }
 0x209   : > { %5428 = vst [vmem:[%s8374_s8 + $0x18] sm:$0xff] %v5354_v62   ;;  %v5349_v23 = vpack.c.bf16 %v6168_v36, %v6166_v37  ;;  %v4209_v14 = vmul.u32 18, %v4208_v50  ;;  %v4461_v11 = vsel %vm8434_vm15, %v8423_v5, %v8395_v48  ;;  %v8451_v37 = vsub.s32 %v8279_v49, %v4231_v42 }
 0x20a   : > { %v4766_v10 = vadd.f32 %v4765_v1, %v4731_v35  ;;  %v4690_v3 = vadd.f32 %v4689_v0, %v4655_v61  ;;  %v4732_v32 = vmul.f32 %v6168_v36, %v4655_v61  ;;  %v6119_v7 = vpop.f32.mrb[8].mxu0  ;;  %v8454_v52 = vadd.s32 272, %v7574_v59 }
 0x20b   : > { %5427 = vst [vmem:[%s8374_s8 + $0x10] sm:$0xff] %v5349_v23   ;;  %v6169_v12 = vadd.f32 %v6119_v7, %v8119_v63  ;;  %v3710_v18 = vpop.f32.mrb[9].mxu0  ;;  %v4733_v45 = vmul.f32 %v6165_v21, %v4656_v34  ;;  %v4734_v63 = vmul.f32 %v6167_v55, %v4657_v6  ;;  %vm4351_vm1 = vcmp.lt.s32.totalorder %v8429_v46, 0 }
 0x20c   : > { %v4691_v26 = vadd.f32 %v4690_v3, %v4656_v34  ;;  %v4767_v17 = vadd.f32 %v4766_v10, %v4732_v32  ;;  %v6170_v50 = vadd.f32 %v3710_v18, %v8140_v57  ;;  %v6120_v13 = vpop.f32.mrb[10].mxu0  ;;  %vm4320_vm2 = vcmp.ne.s32.totalorder %v8451_v37, 0  ;;  %vm8498_vm4 = vmand %vm4351_vm1, %vm4315_vm0 }
 0x20d   : > { %v6171_v36 = vadd.f32 %v6120_v13, %v8147_v60  ;;  %v3713_v62 = vpop.f32.mrb[11].mxu0  ;;  %v8460_v0 = vmul.u32.u64.low 3817748708, %v8410_v54  ;;  %v8461_v49 = vmul.u32.u64.high 3817748708, %v8410_v54, %v8460_v0  ;;  %v4660_v57 = vmul.f32 %v6169_v12, %v8011_v27 }
 0x20e   : > { %v4768_v42 = vadd.f32 %v4767_v17, %v4733_v45  ;;  %v4658_v35 = vmul.f32 %v6170_v50, %v8016_v24  ;;  %v4692_v21 = vadd.f32 %v4691_v26, %v4657_v6  ;;  %v6172_v34 = vadd.f32 %v3713_v62, %v8155_v22 }
 0x20f   : > { %v5364_v1 = vpack.c.bf16 %v6171_v36, %v6169_v12  ;;  %v8468_v60 = vadd.s32 18, %v8429_v46  ;;  %v4661_v10 = vmul.f32 %v6171_v36, %v8025_v16  ;;  %v8474_v22 = vsub.s32 %v8295_v25, %v4209_v14 }
 0x210   : > { %v4693_v55 = vadd.f32 %v4692_v21, %v4658_v35  ;;  %v4735_v61 = vmul.f32 %v6170_v50, %v4658_v35  ;;  %v4769_v23 = vadd.f32 %v4768_v42, %v4734_v63  ;;  %v4659_v9 = vmul.f32 %v6172_v34, %v8099_v31 }
 0x211   : > { %5430 = vst [vmem:[%s8374_s8 + $0x28] sm:$0xff] %v5364_v1   ;;  %v5359_v24 = vpack.c.bf16 %v6172_v34, %v6170_v50  ;;  %v8477_v27 = vadd.s32 256, %v7574_v59  ;;  %v4241_v16 = vshrl.u32 %v8442_v41, 4  ;;  %v4737_v25 = vmul.f32 %v6169_v12, %v4660_v57 }
 0x212   : > { %v4770_v6 = vadd.f32 %v4769_v23, %v4735_v61  ;;  %v4694_v3 = vadd.f32 %v4693_v55, %v4659_v9  ;;  %v4736_v32 = vmul.f32 %v6172_v34, %v4659_v9  ;;  %v6123_v7 = vpop.f32.mrb[12].mxu0  ;;  %v4738_v63 = vmul.f32 %v6171_v36, %v4661_v10 }
 0x213   : > { %5429 = vst [vmem:[%s8374_s8 + $0x20] sm:$0xff] %v5359_v24   ;;  %v6173_v18 = vadd.f32 %v6123_v7, %v8206_v20  ;;  %v3726_v31 = vpop.f32.mrb[13].mxu0  ;;  %v8484_v45 = vmul.u32.u64.low 3817748708, %v8454_v52  ;;  %v8485_v26 = vmul.u32.u64.high 3817748708, %v8454_v52, %v8484_v45  ;;  %vm4356_vm3 = vcmp.lt.s32.totalorder %v8451_v37, 0 }
 0x214   : > { %v4695_v14 = vadd.f32 %v4694_v3, %v4660_v57  ;;  %v4771_v17 = vadd.f32 %v4770_v6, %v4736_v32  ;;  %v6174_v50 = vadd.f32 %v3726_v31, %v8224_v8  ;;  %v6124_v13 = vpop.f32.mrb[14].mxu0  ;;  %v4219_v20 = vshrl.u32 %v8461_v49, 4  ;;  %vm8517_vm7 = vmand %vm4356_vm3, %vm4320_vm2 }
 0x215   : > { %v6175_v62 = vadd.f32 %v6124_v13, %v8248_v38  ;;  %v3729_v0 = vpop.f32.mrb[15].mxu0  ;;  %v4664_v21 = vmul.f32 %v6173_v18, %v8111_v28  ;;  %v4428_v38 = vadd.s32 18, %v8451_v37  ;;  %v4242_v36 = vmul.u32 18, %v4241_v16 }
 0x216   : > { %v4772_v41 = vadd.f32 %v4771_v17, %v4737_v25  ;;  %v4662_v42 = vmul.f32 %v6174_v50, %v8116_v15  ;;  %v4696_v35 = vadd.f32 %v4695_v14, %v4661_v10  ;;  %v6176_v12 = vadd.f32 %v3729_v0, %v8261_v44 }
 0x217   : > { %v5374_v34 = vpack.c.bf16 %v6175_v62, %v6173_v18  ;;  %v8888_v28 = vsel %vm8386_vm6, %v8368_v56, %v8300_v40  ;;  %vm4318_vm8 = vcmp.ne.s32.totalorder %v8474_v22, 0  ;;  %vm4354_vm9 = vcmp.lt.s32.totalorder %v8474_v22, 0 }
 0x218   : > { %v4697_v49 = vadd.f32 %v4696_v35, %v4662_v42  ;;  %v4739_v15 = vmul.f32 %v6174_v50, %v4662_v42  ;;  %v4773_v57 = vadd.f32 %v4772_v41, %v4738_v63  ;;  %v4663_v44 = vmul.f32 %v6176_v12, %v8234_v33  ;;  %vm8544_vm10 = vmand %vm4354_vm9, %vm4318_vm8 }
 0x219   : > { %vm8509_vm5 = vcmp.lt.s32.totalorder %v8888_v28, 16  ;;  %5432 = vst [vmem:[%s8374_s8 + $0x38] sm:$0xff] %v5374_v34   ;;  %v5369_v61 = vpack.c.bf16 %v6176_v12, %v6174_v50  ;;  %v4220_v33 = vmul.u32 18, %v4219_v20  ;;  %v4665_v56 = vmul.f32 %v6175_v62, %v8229_v53 }
 0x21a   : > { %v4774_v40 = vadd.f32 %v4773_v57, %v4739_v15  ;;  %v4698_v30 = vadd.f32 %v4697_v49, %v4663_v44  ;;  %v4740_v23 = vmul.f32 %v6176_v12, %v4663_v44  ;;  %v6127_v9 = vpop.f32.mrb[16].mxu0  ;;  %v4459_v24 = vsel %vm8498_vm4, %v8468_v60, %v8429_v46 }
 0x21b   : > { %5431 = vst [vmem:[%s8374_s8 + $0x30] sm:$0xff] %v5369_v61   ;;  %v3742_v10 = vpop.f32.mrb[17].mxu0  ;;  %v4464_v6 = vsel %vm8517_vm7, %v4428_v38, %v8451_v37  ;;  %v4426_v3 = vadd.s32 18, %v8474_v22  ;;  %v8535_v32 = vsub.s32 %v8398_v4, %v4242_v36  ;;  %v4741_v53 = vmul.f32 %v6173_v18, %v4664_v21 }
 0x21c   : > { %v4699_v7 = vadd.f32 %v4698_v30, %v4664_v21  ;;  %v4775_v31 = vadd.f32 %v4774_v40, %v4740_v23  ;;  %v6128_v16 = vpop.f32.mrb[18].mxu0  ;;  %v8538_v45 = vadd.s32 280, %v7574_v59  ;;  %v4274_v37 = vshrl.u32 %v8485_v26, 4 }
 0x21d   : > { %v3745_v25 = vpop.f32.mrb[19].mxu0  ;;  %v8550_v4 = vmul.u32.u64.low 3817748708, %v8477_v27  ;;  %v8551_v60 = vmul.u32.u64.high 3817748708, %v8477_v27, %v8550_v4  ;;  %v8554_v18 = vadd.s32 264, %v7574_v59  ;;  %v4742_v14 = vmul.f32 %v6175_v62, %v4665_v56 }
 0x21e   : > { %v4776_v17 = vadd.f32 %v4775_v31, %v4741_v53  ;;  %v4700_v50 = vadd.f32 %v4699_v7, %v4665_v56  ;;  %v8557_v13 = vsub.s32 %v8410_v54, %v4220_v33  ;;  %vm8564_vm11 = vcmp.lt.s32.totalorder %v4461_v11, 16 }
 0x21f   : > { %vm8568_vm6 = vcmp.lt.s32.totalorder %v4459_v24, 16  ;;  %vm4321_vm12 = vcmp.ne.s32.totalorder %v8535_v32, 0  ;;  %vm4357_vm13 = vcmp.lt.s32.totalorder %v8535_v32, 0  ;;  %v4462_v54 = vsel %vm8544_vm10, %v4426_v3, %v8474_v22 }
 0x220   : > { %v4777_v62 = vadd.f32 %v4776_v17, %v4742_v14  ;;  %v8578_v2 = vmul.u32.u64.low 3817748708, %v8538_v45  ;;  %v8579_v48 = vmul.u32.u64.high 3817748708, %v8538_v45, %v8578_v2  ;;  %vm8581_vm14 = vcmp.lt.s32.totalorder %v4464_v6, 16  ;;  %vm8590_vm15 = vmand %vm4357_vm13, %vm4321_vm12 }
 0x221   : > { %v5919_v5 = vpop.f32.mrb[16].mxu1  ;;  %v4429_v0 = vadd.s32 18, %v8535_v32  ;;  %v8587_v20 = vmul.u32.u64.low 3817748708, %v8554_v18  ;;  %v8588_v41 = vmul.u32.u64.high 3817748708, %v8554_v18, %v8587_v20  ;;  %vm4319_vm0 = vcmp.ne.s32.totalorder %v8557_v13, 0 }
 0x222   : > { %v6177_v42 = vadd.f32 %v6127_v9, %v5919_v5  ;;  %v6131_v35 = vpop.f32.mrb[20].mxu0  ;;  %v2136_v12 = vpop.f32.mrb[17].mxu1  ;;  %vm4355_vm1 = vcmp.lt.s32.totalorder %v8557_v13, 0  ;;  %v4275_v21 = vmul.u32 18, %v4274_v37  ;;  %v8599_v36 = vsel %vm8509_vm5, 1.0, %v8883_v51 }
 0x223   : > { %v6178_v34 = vadd.f32 %v3742_v10, %v2136_v12  ;;  %v3758_v8 = vpop.f32.mrb[21].mxu0  ;;  %v5920_v38 = vpop.f32.mrb[18].mxu1  ;;  %v8604_v49 = vsel %vm8564_vm11, 1.0, %v8883_v51  ;;  %vm8606_vm2 = vcmp.lt.s32.totalorder %v4462_v54, 16  ;;  %v8613_v55 = vsel %vm8568_vm6, 1.0, %v8883_v51  ;;  %vm8631_vm3 = vmand %vm4355_vm1, %vm4319_vm0 }
 0x224   : > { %v6179_v57 = vadd.f32 %v6128_v16, %v5920_v38  ;;  %v6132_v44 = vpop.f32.mrb[22].mxu0  ;;  %v2139_v28 = vpop.f32.mrb[19].mxu1  ;;  %v8618_v1 = vsel %vm8581_vm14, 1.0, %v8883_v51  ;;  %v8621_v61 = vadd.s32 18, %v8557_v13  ;;  %v4465_v30 = vsel %vm8590_vm15, %v4429_v0, %v8535_v32 }
 0x225   : > { %v4666_v33 = vmul.f32 %v6178_v34, %v8304_v58  ;;  %v6180_v40 = vadd.f32 %v3745_v25, %v2139_v28  ;;  %v3761_v56 = vpop.f32.mrb[23].mxu0  ;;  %v4252_v9 = vshrl.u32 %v8551_v60, 4  ;;  %v4668_v10 = vmul.f32 %v6177_v42, %v8266_v43 }
 0x226   : > { %v5384_v58 = vpack.c.bf16 %v6179_v57, %v6177_v42  ;;  %v8640_v24 = vsel %vm8606_vm2, 1.0, %v8883_v51  ;;  %v8643_v6 = vsub.s32 %v8454_v52, %v4275_v21  ;;  %v4669_v31 = vmul.f32 %v6179_v57, %v8307_v39  ;;  %v8909_v21 = vld [vmem:[#allocation2_spill] sm:$0xff] }
 0x227   : > { %v4701_v3 = vadd.f32 %v4700_v50, %v4666_v33  ;;  %v4743_v32 = vmul.f32 %v6178_v34, %v4666_v33  ;;  %v4667_v53 = vmul.f32 %v6180_v40, %v8351_v47  ;;  %v5379_v7 = vpack.c.bf16 %v6180_v40, %v6178_v34 }
 0x228   : > { %5434 = vst [vmem:[%s8374_s8 + $0x48] sm:$0xff] %v5384_v58   ;;  %vm8648_vm4 = vcmp.lt.s32.totalorder %v4465_v30, 16  ;;  %v4463_v16 = vsel %vm8631_vm3, %v8621_v61, %v8557_v13  ;;  %v4285_v52 = vshrl.u32 %v8579_v48, 4  ;;  %v4253_v4 = vmul.u32 18, %v4252_v9  ;;  %v8912_v61 = vld [vmem:[#allocation4_spill] sm:$0xff] }
 0x229   : > { %v4778_v25 = vadd.f32 %v4777_v62, %v4743_v32  ;;  %v4702_v46 = vadd.f32 %v4701_v3, %v4667_v53  ;;  %v4744_v37 = vmul.f32 %v6180_v40, %v4667_v53  ;;  %5433 = vst [vmem:[%s8374_s8 + $0x40] sm:$0xff] %v5379_v7   ;;  %v5923_v47 = vpop.f32.mrb[20].mxu1  ;;  %vm4324_vm5 = vcmp.ne.s32.totalorder %v8643_v6, 0  ;;  %v8913_v40 = vld [vmem:[#allocation3_spill] sm:$0xff] }
 0x22a   : > { %v6181_v60 = vadd.f32 %v6131_v35, %v5923_v47  ;;  %v6135_v39 = vpop.f32.mrb[24].mxu0  ;;  %v2152_v14 = vpop.f32.mrb[21].mxu1  ;;  %vm4360_vm7 = vcmp.lt.s32.totalorder %v8643_v6, 0  ;;  %v4263_v17 = vshrl.u32 %v8588_v41, 4  ;;  %v4745_v50 = vmul.f32 %v6177_v42, %v4668_v10 }
 0x22b   : > { %v4703_v26 = vadd.f32 %v4702_v46, %v4668_v10  ;;  %v4779_v13 = vadd.f32 %v4778_v25, %v4744_v37  ;;  %v6182_v63 = vadd.f32 %v3758_v8, %v2152_v14  ;;  %v3774_v54 = vpop.f32.mrb[25].mxu0  ;;  %v5924_v62 = vpop.f32.mrb[22].mxu1  ;;  %v4746_v2 = vmul.f32 %v6179_v57, %v4669_v31  ;;  %vm8675_vm8 = vmand %vm4360_vm7, %vm4324_vm5 }
 0x22c   : > { %v6183_v48 = vadd.f32 %v6132_v44, %v5924_v62  ;;  %v6136_v5 = vpop.f32.mrb[26].mxu0  ;;  %v2155_v11 = vpop.f32.mrb[23].mxu1  ;;  %v8664_v0 = vsel %vm8648_vm4, 1.0, %v8883_v51  ;;  %v8667_v20 = vadd.s32 18, %v8643_v6  ;;  %v4672_v34 = vmul.f32 %v6181_v60, %v8909_v21 }
 0x22d   : > { %v4780_v41 = vadd.f32 %v4779_v13, %v4745_v50  ;;  %v4670_v42 = vmul.f32 %v6182_v63, %v8362_v29  ;;  %v4704_v35 = vadd.f32 %v4703_v26, %v4669_v31  ;;  %v6184_v12 = vadd.f32 %v3761_v56, %v2155_v11  ;;  %v3777_v22 = vpop.f32.mrb[27].mxu0 }
 0x22e   : > { %v5394_v8 = vpack.c.bf16 %v6183_v48, %v6181_v60  ;;  %v8680_v15 = vsub.s32 %v8477_v27, %v4253_v4  ;;  %v4286_v57 = vmul.u32 18, %v4285_v52  ;;  %v4673_v56 = vmul.f32 %v6183_v48, %v8913_v40 }
 0x22f   : > { %v4705_v29 = vadd.f32 %v4704_v35, %v4670_v42  ;;  %v4747_v44 = vmul.f32 %v6182_v63, %v4670_v42  ;;  %v4781_v28 = vadd.f32 %v4780_v41, %v4746_v2  ;;  %v4671_v33 = vmul.f32 %v6184_v12, %v8912_v61 }
 0x230   : > { %5436 = vst [vmem:[%s8374_s8 + $0x58] sm:$0xff] %v5394_v8   ;;  %v5389_v30 = vpack.c.bf16 %v6184_v12, %v6182_v63  ;;  %vm8685_vm9 = vcmp.lt.s32.totalorder %v4463_v16, 16  ;;  %v4264_v9 = vmul.u32 18, %v4263_v17  ;;  %v4468_v32 = vsel %vm8675_vm8, %v8667_v20, %v8643_v6 }
 0x231   : > { %v4782_v10 = vadd.f32 %v4781_v28, %v4747_v44  ;;  %v4706_v58 = vadd.f32 %v4705_v29, %v4671_v33  ;;  %v4748_v27 = vmul.f32 %v6184_v12, %v4671_v33  ;;  %v5927_v3 = vpop.f32.mrb[24].mxu1  ;;  %vm4322_vm10 = vcmp.ne.s32.totalorder %v8680_v15, 0 }
 0x232   : > { %5435 = vst [vmem:[%s8374_s8 + $0x50] sm:$0xff] %v5389_v30   ;;  %v6185_v53 = vadd.f32 %v6135_v39, %v5927_v3  ;;  %v6139_v7 = vpop.f32.mrb[28].mxu0  ;;  %v2168_v31 = vpop.f32.mrb[25].mxu1  ;;  %vm4358_vm11 = vcmp.lt.s32.totalorder %v8680_v15, 0  ;;  %v8697_v43 = vsub.s32 %v8538_v45, %v4286_v57  ;;  %v4749_v16 = vmul.f32 %v6181_v60, %v4672_v34 }
 0x233   : > { %v4707_v52 = vadd.f32 %v4706_v58, %v4672_v34  ;;  %v4783_v25 = vadd.f32 %v4782_v10, %v4748_v27  ;;  %v6186_v46 = vadd.f32 %v3774_v54, %v2168_v31  ;;  %v3790_v37 = vpop.f32.mrb[29].mxu0  ;;  %v5928_v47 = vpop.f32.mrb[26].mxu1  ;;  %v4750_v4 = vmul.f32 %v6183_v48, %v4673_v56  ;;  %vm8709_vm6 = vmand %vm4358_vm11, %vm4322_vm10 }
 0x234   : > { %v6187_v14 = vadd.f32 %v6136_v5, %v5928_v47  ;;  %v6140_v6 = vpop.f32.mrb[30].mxu0  ;;  %v2171_v17 = vpop.f32.mrb[27].mxu1  ;;  %v4430_v39 = vadd.s32 18, %v8680_v15  ;;  %v8701_v50 = vsub.s32 %v8554_v18, %v4264_v9  ;;  %v4676_v54 = vmul.f32 %v6185_v53, %v8415_v19 }
 0x235   : > { %v4784_v26 = vadd.f32 %v4783_v25, %v4749_v16  ;;  %v4674_v45 = vmul.f32 %v6186_v46, %v8599_v36  ;;  %v4708_v13 = vadd.f32 %v4707_v52, %v4673_v56  ;;  %v6188_v60 = vadd.f32 %v3777_v22, %v2171_v17  ;;  %v3793_v63 = vpop.f32.mrb[31].mxu0 }
 0x236   : > { %v5404_v62 = vpack.c.bf16 %v6187_v14, %v6185_v53  ;;  %vm4325_vm12 = vcmp.ne.s32.totalorder %v8697_v43, 0  ;;  %vm4361_vm13 = vcmp.lt.s32.totalorder %v8697_v43, 0  ;;  %v4677_v19 = vmul.f32 %v6187_v14, %v8604_v49 }
 0x237   : > { %v4709_v18 = vadd.f32 %v4708_v13, %v4674_v45  ;;  %v4751_v36 = vmul.f32 %v6186_v46, %v4674_v45  ;;  %v4785_v48 = vadd.f32 %v4784_v26, %v4750_v4  ;;  %v4675_v5 = vmul.f32 %v6188_v60, %v8613_v55  ;;  %vm8731_vm0 = vmand %vm4361_vm13, %vm4325_vm12 }
 0x238   : > { %5438 = vst [vmem:[%s8374_s8 + $0x68] sm:$0xff] %v5404_v62   ;;  %v5399_v11 = vpack.c.bf16 %v6188_v60, %v6186_v46  ;;  %vm4323_vm14 = vcmp.ne.s32.totalorder %v8701_v50, 0  ;;  %vm4359_vm15 = vcmp.lt.s32.totalorder %v8701_v50, 0  ;;  %v4466_v12 = vsel %vm8709_vm6, %v4430_v39, %v8680_v15 }
 0x239   : > { %v4786_v20 = vadd.f32 %v4785_v48, %v4751_v36  ;;  %v4710_v41 = vadd.f32 %v4709_v18, %v4675_v5  ;;  %v4752_v42 = vmul.f32 %v6188_v60, %v4675_v5  ;;  %v5931_v35 = vpop.f32.mrb[28].mxu1  ;;  %v5254_v49 = vsel %vm8685_vm9, 1.0, %v8883_v51  ;;  %vm8741_vm1 = vmand %vm4359_vm15, %vm4323_vm14 }
 0x23a   : > { %5437 = vst [vmem:[%s8374_s8 + $0x60] sm:$0xff] %v5399_v11   ;;  %v6189_v22 = vadd.f32 %v6139_v7, %v5931_v35  ;;  %v6143_v21 = vpop.f32.mrb[32].mxu0  ;;  %v2184_v55 = vpop.f32.mrb[29].mxu1  ;;  %v4433_v8 = vadd.s32 18, %v8697_v43  ;;  %v4431_v38 = vadd.s32 18, %v8701_v50  ;;  %v4753_v15 = vmul.f32 %v6185_v53, %v4676_v54 }
 0x23b   : > { %v4711_v57 = vadd.f32 %v4710_v41, %v4676_v54  ;;  %v4787_v29 = vadd.f32 %v4786_v20, %v4752_v42  ;;  %v6190_v44 = vadd.f32 %v3790_v37, %v2184_v55  ;;  %v3806_v28 = vpop.f32.mrb[33].mxu0  ;;  %v5932_v61 = vpop.f32.mrb[30].mxu1  ;;  %v4754_v40 = vmul.f32 %v6187_v14, %v4677_v19 }
 0x23c   : > { %v6191_v56 = vadd.f32 %v6140_v6, %v5932_v61  ;;  %v6144_v30 = vpop.f32.mrb[34].mxu0  ;;  %v2187_v23 = vpop.f32.mrb[31].mxu1  ;;  %vm8745_vm2 = vcmp.lt.s32.totalorder %v4468_v32, 16  ;;  %vm8749_vm3 = vcmp.lt.s32.totalorder %v4466_v12, 16  ;;  %v4680_v31 = vmul.f32 %v6189_v22, %v8618_v1 }
 0x23d   : > { %v4788_v58 = vadd.f32 %v4787_v29, %v4753_v15  ;;  %v4678_v27 = vmul.f32 %v6190_v44, %v8640_v24  ;;  %v4712_v3 = vadd.f32 %v4711_v57, %v4677_v19  ;;  %v6192_v53 = vadd.f32 %v3793_v63, %v2187_v23  ;;  %v3809_v7 = vpop.f32.mrb[35].mxu0 }
 0x23e   : > { %v5414_v16 = vpack.c.bf16 %v6191_v56, %v6189_v22  ;;  %v4469_v32 = vsel %vm8731_vm0, %v4433_v8, %v8697_v43  ;;  %v4467_v52 = vsel %vm8741_vm1, %v4431_v38, %v8701_v50  ;;  %v4681_v24 = vmul.f32 %v6191_v56, %v8664_v0 }
 0x23f   : > { %v4713_v25 = vadd.f32 %v4712_v3, %v4678_v27  ;;  %v4755_v46 = vmul.f32 %v6190_v44, %v4678_v27  ;;  %v4789_v37 = vadd.f32 %v4788_v58, %v4754_v40  ;;  %v4679_v47 = vmul.f32 %v6192_v53, %v5254_v49 }
 0x240   : > { %5440 = vst [vmem:[%s8374_s8 + $0x78] sm:$0xff] %v5414_v16   ;;  %v5409_v4 = vpack.c.bf16 %v6192_v53, %v6190_v44  ;;  %vm4503_vm4 = vcmp.lt.s32.totalorder %v4467_v52, 16  ;;  %v5259_v43 = vsel %vm8745_vm2, 1.0, %v8883_v51  ;;  %v5257_v26 = vsel %vm8749_vm3, 1.0, %v8883_v51 }
 0x241   : > { %v4790_v14 = vadd.f32 %v4789_v37, %v4755_v46  ;;  %v4714_v1 = vadd.f32 %v4713_v25, %v4679_v47  ;;  %v4756_v6 = vmul.f32 %v6192_v53, %v4679_v47  ;;  %v5935_v17 = vpop.f32.mrb[32].mxu1  ;;  %vm4505_vm5 = vcmp.lt.s32.totalorder %v4469_v32, 16 }
 0x242   : > { %5439 = vst [vmem:[%s8374_s8 + $0x70] sm:$0xff] %v5409_v4   ;;  %v6193_v39 = vadd.f32 %v6143_v21, %v5935_v17  ;;  %v2200_v50 = vpop.f32.mrb[33].mxu1  ;;  %v4757_v0 = vmul.f32 %v6189_v22, %v4680_v31  ;;  %v4758_v54 = vmul.f32 %v6191_v56, %v4681_v24  ;;  %v5258_v18 = vsel %vm4503_vm4, 1.0, %v8883_v51 }
 0x243   : > { %v4715_v45 = vadd.f32 %v4714_v1, %v4680_v31  ;;  %v4791_v13 = vadd.f32 %v4790_v14, %v4756_v6  ;;  %v6194_v60 = vadd.f32 %v3806_v28, %v2200_v50  ;;  %v5936_v63 = vpop.f32.mrb[34].mxu1  ;;  %v5260_v20 = vsel %vm4505_vm5, 1.0, %v8883_v51 }
 0x244   : > { %v6195_v62 = vadd.f32 %v6144_v30, %v5936_v63  ;;  %v2203_v2 = vpop.f32.mrb[35].mxu1  ;;  %v4684_v11 = vmul.f32 %v6193_v39, %v5259_v43  ;;  %v4806_v27 = vsub.s32 0, %v7574_v59 }
 0x245   : > { %v4792_v36 = vadd.f32 %v4791_v13, %v4757_v0  ;;  %v4682_v48 = vmul.f32 %v6194_v60, %v5257_v26  ;;  %v4716_v5 = vadd.f32 %v4715_v45, %v4681_v24  ;;  %v6196_v19 = vadd.f32 %v3809_v7, %v2203_v2 }
 0x246   : > { %v5424_v41 = vpack.c.bf16 %v6195_v62, %v6193_v39  ;;  %v4685_v49 = vmul.f32 %v6195_v62, %v5260_v20  ;;  %v4761_v38 = vmul.f32 %v6193_v39, %v4684_v11 }
 0x247   : > { %v4717_v42 = vadd.f32 %v4716_v5, %v4682_v48  ;;  %v4759_v35 = vmul.f32 %v6194_v60, %v4682_v48  ;;  %v4793_v12 = vadd.f32 %v4792_v36, %v4758_v54  ;;  %v4683_v22 = vmul.f32 %v6196_v19, %v5258_v18 }
 0x248   : > { %5442 = vst [vmem:[%s8374_s8 + $0x88] sm:$0xff] %v5424_v41   ;;  %v5419_v21 = vpack.c.bf16 %v6196_v19, %v6194_v60  ;;  %v4762_v29 = vmul.f32 %v6195_v62, %v4685_v49 }
 0x249   : > { %v4794_v55 = vadd.f32 %v4793_v12, %v4759_v35  ;;  %v4718_v34 = vadd.f32 %v4717_v42, %v4683_v22  ;;  %v4760_v8 = vmul.f32 %v6196_v19, %v4683_v22 }
 0x24a   : > { %5441 = vst [vmem:[%s8374_s8 + $0x80] sm:$0xff] %v5419_v21  }
 0x24b   : > { %v4719_v15 = vadd.f32 %v4718_v34, %v4684_v11  ;;  %v4795_v57 = vadd.f32 %v4794_v55, %v4760_v8 }
 0x24d   : > { %v4720_v44 = vadd.f32 %v4719_v15, %v4685_v49  ;;  %v4796_v28 = vadd.f32 %v4795_v57, %v4761_v38 }
 0x24f   : > { %v4721_v51 = vrot.slane %v4720_v44, 4  ;;  %v4797_v61 = vadd.f32 %v4796_v28, %v4762_v29 }
 0x251   : > { %v4722_v33 = vadd.f32 %v4721_v51, %v4720_v44  ;;  %v4798_v40 = vrot.slane %v4797_v61, 4 }
 0x253   : > { %v4723_v56 = vrot.slane %v4722_v33, 2  ;;  %v4799_v30 = vadd.f32 %v4798_v40, %v4797_v61 }
 0x255   : > { %v4724_v23 = vadd.f32 %v4723_v56, %v4722_v33  ;;  %v4800_v9 = vrot.slane %v4799_v30, 2 }
 0x257   : > { %v4725_v10 = vrot.slane %v4724_v23, 1  ;;  %v4801_v58 = vadd.f32 %v4800_v9, %v4799_v30 }
 0x259   : > { %v4726_v3 = vadd.f32 %v4725_v10, %v4724_v23  ;;  %v4802_v53 = vrot.slane %v4801_v58, 1 }
 0x25b   : > { %v4803_v7 = vadd.f32 %v4802_v53, %v4801_v58  ;;  %v4807_v31 = vrot.slane %v4726_v3, %v4806_v27 }
 0x25d   : > { %v4811_v16 = vrot.slane %v4803_v7, %v4806_v27  ;;  %4812 = vst [vmem:[%s183_s15] sm:$0xff] %v4807_v31 }
 0x25f   : > { %4813 = vst [vmem:[%s183_s15 + $0x8] sm:$0xff] %v4811_v16 }
 0x260 PF: > { %s14_s12 = sadd.s32 1, %s6715_s12  }
 0x261   : > { %p11_p4 = scmp.ge.s32.totalorder %s14_s12, 4  }
 0x263   :  { %13 = sbr.rel (!%p11_p4) target bundleno = 1 (0x1), region = 70 }

// kernel: up_forward.6
= control target key start
LH: loop header
LB: loop body
LE: loop exit
PB: predicated region body
PF: predicated region fallthrough
CT: control target
= control target key end

     0   :  { %s7471_s18 = smov 0   ;;  %s9575_s0 = inlined_call_operand.vmem [shape: bf16[2,288,128], index: 0, kind: input, shape index: {}]   ;;  %s9576_s1 = inlined_call_operand.vmem [shape: f32[1,128], index: 1, kind: input, shape index: {}]   ;;  %s9577_s2 = inlined_call_operand.vmem [shape: f32[1,128], index: 2, kind: input, shape index: {}]   ;;  %s9578_s3 = inlined_call_operand.vmem [shape: bf16[1152,128], index: 3, kind: input, shape index: {}]   ;;  %s9579_s4 = inlined_call_operand.vmem [shape: f32[2,288,128], index: 4, kind: output, shape index: {0}]   ;;  %s9580_s5 = inlined_call_operand.vmem [shape: f32[2,8,256], index: 5, kind: output, shape index: {1}]  }
   0x1 LB: > { %s5816_s19 = sadd.s32 4294967295, %s7437_s18   ;;  %p5820_p0 = scmp.ge.s32.totalorder %s7437_s18, 1  ;;  %s7437_s18 = sphi %s7471_s18, %s16_s18  }
   0x2   : > { %p190_p1 = scmp.lt.s32.totalorder %s7437_s18, 3 }
   0x4   : > { %p191_p2 = pnand %p5820_p0, %p190_p1 }
   0x6   : > { %194 = sbr.rel (%p191_p2) target bundleno = 821 (0x335), region = 36 }
   0xd   : > { %v7251_v0 = vld [vmem:[%s9578_s3 + $0x40] sm:$0xff]   ;;  %p7484_p3 = scmp.lt.s32.totalorder %s5816_s19, 1  ;;  %v7252_v1 = vld [vmem:[%s9578_s3 + $0x48] sm:$0xff]   ;;  %v7439_v3 = vmov 0   ;;  %v7254_v4 = vld [vmem:[%s9578_s3 + $0x50] sm:$0xff]   ;;  %v433_v6 = vlaneseq  ;;  %vm1738_vm0 = vcmask 1043457  }
   0xe   : > { %6395 = vmatprep.subr.bf16.mxu1 %v7251_v0  ;;  %v7253_v2 = vld [vmem:[%s9578_s3 + $0x100] sm:$0xff]   ;;  %1190 = vst [vmem:[#allocation2] sm:$0xf] %v7439_v3  ;;  %1191 = vst [vmem:[#allocation2 + $0x4] sm:$0xf] %v7439_v3  ;;  %v7255_v5 = vld [vmem:[%s9578_s3 + $0x108] sm:$0xff]  }
   0xf   : > { %1192 = vst [vmem:[#allocation2 + $0x8] sm:$0xf] %v7439_v3  ;;  %1193 = vst [vmem:[#allocation2 + $0xc] sm:$0xf] %v7439_v3  ;;  %6396 = vmatpush3.bf16.msra.mxu1 %v7251_v0  ;;  %6603 = vmatprep.subr.bf16.mxu0 %v7253_v2  ;;  %s9915_s19 = smov (!%p7484_p3, %s5816_s19), 1  ;;  %v7257_v7 = vld [vmem:[%s9578_s3 + $0x110] sm:$0xff]  }
  0x10   : > { %1194 = vst [vmem:[#allocation2 + $0x10] sm:$0xf] %v7439_v3  ;;  %1195 = vst [vmem:[#allocation2 + $0x14] sm:$0xf] %v7439_v3  ;;  %6397 = vmatprep.subr.bf16.mxu1 %v7252_v1  ;;  %6604 = vmatpush3.bf16.msra.mxu0 %v7253_v2  ;;  %v7256_v8 = vld [vmem:[%s9578_s3 + $0x58] sm:$0xff]   ;;  %s7167_s10 = smul.u32 144, %s9915_s19 }
  0x11   : > { %1196 = vst [vmem:[#allocation2 + $0x18] sm:$0xf] %v7439_v3  ;;  %1197 = vst [vmem:[#allocation2 + $0x1c] sm:$0xf] %v7439_v3  ;;  %6605 = vmatprep.subr.bf16.mxu0 %v7255_v5  ;;  %v7513_v9 = vshrl.u32 %v433_v6, 7  ;;  %v7259_v10 = vld [vmem:[%s9578_s3 + $0x118] sm:$0xff]  }
  0x12   : > { %1198 = vst [vmem:[#allocation2 + $0x20] sm:$0xf] %v7439_v3  ;;  %1199 = vst [vmem:[#allocation2 + $0x24] sm:$0xf] %v7439_v3  ;;  %v7258_v11 = vld [vmem:[%s9578_s3 + $0x60] sm:$0xff]   ;;  %s7524_s17 = scalar_lea.vmem %s9575_s0, %s7167_s10  ;;  %v7260_v17 = vld [vmem:[%s9578_s3 + $0x68] sm:$0xff]  }
  0x13   : > { %1200 = vst [vmem:[#allocation2 + $0x28] sm:$0xf] %v7439_v3  ;;  %1201 = vst [vmem:[#allocation2 + $0x2c] sm:$0xf] %v7439_v3  ;;  %6398 = vmatpush3.bf16.msra.mxu1 %v7252_v1  ;;  %v435_v12 = vadd.s32 8, %v7513_v9  ;;  %v7261_v13 = vld [vmem:[%s9578_s3 + $0x120] sm:$0xff]  }
  0x14   : > { %1202 = vst [vmem:[#allocation2 + $0x30] sm:$0xf] %v7439_v3  ;;  %1203 = vst [vmem:[#allocation2 + $0x34] sm:$0xf] %v7439_v3  ;;  %6399 = vmatprep.subr.bf16.mxu1 %v7254_v4  ;;  %6606 = vmatpush3.bf16.msra.mxu0 %v7255_v5  ;;  %v6073_v14 = vld [vmem:[%s7524_s17] sm:$0xff]   ;;  %v7537_v16 = vadd.s32 16, %v7513_v9 }
  0x15   : > { %1204 = vst [vmem:[#allocation2 + $0x38] sm:$0xf] %v7439_v3  ;;  %1205 = vst [vmem:[#allocation2 + $0x3c] sm:$0xf] %v7439_v3  ;;  %6607 = vmatprep.subr.bf16.mxu0 %v7257_v7  ;;  %v7534_v15 = vld [vmem:[%s9576_s1] ss:$0 sm:$0xff]  ;;  %v6074_v18 = vunpack.c.l.bf16 %v6073_v14  ;;  %v6075_v19 = vunpack.c.h.bf16 %v6073_v14 }
  0x16   : > { %1206 = vst [vmem:[#allocation2 + $0x40] sm:$0xf] %v7439_v3  ;;  %1207 = vst [vmem:[#allocation2 + $0x44] sm:$0xf] %v7439_v3  ;;  %v7543_v20 = vmul.u32.u64.low 3817748708, %v7513_v9  ;;  %v7544_v21 = vmul.u32.u64.high 3817748708, %v7513_v9, %v7543_v20 }
  0x17   : > { %1208 = vst [vmem:[#allocation2 + $0x48] sm:$0xf] %v7439_v3  ;;  %1209 = vst [vmem:[#allocation2 + $0x4c] sm:$0xf] %v7439_v3  ;;  %6400 = vmatpush3.bf16.msra.mxu1 %v7254_v4  ;;  %v1784_v22 = vld [vmem:[#allocation2] sm:$0xf]  ;;  %v318_v30 = vmul.f32 %v6074_v18, %v7534_v15  ;;  %v319_v31 = vmul.f32 %v6075_v19, %v7534_v15 }
  0x18   : > { %1210 = vst [vmem:[#allocation2 + $0x50] sm:$0xf] %v7439_v3  ;;  %1211 = vst [vmem:[#allocation2 + $0x54] sm:$0xf] %v7439_v3  ;;  %6401 = vmatprep.subr.bf16.mxu1 %v7256_v8  ;;  %6608 = vmatpush3.bf16.msra.mxu0 %v7257_v7  ;;  %v7549_v23 = vld [vmem:[%s9577_s2] ss:$0 sm:$0xff] }
  0x19   : > { %1212 = vst [vmem:[#allocation2 + $0x58] sm:$0xf] %v7439_v3  ;;  %1213 = vst [vmem:[#allocation2 + $0x5c] sm:$0xf] %v7439_v3  ;;  %6609 = vmatprep.subr.bf16.mxu0 %v7259_v10  ;;  %v7551_v24 = vmul.u32.u64.low 3817748708, %v435_v12  ;;  %v7552_v25 = vmul.u32.u64.high 3817748708, %v435_v12, %v7551_v24  ;;  %v7581_v38 = vadd.f32 %v7549_v23, %v318_v30  ;;  %v7588_v41 = vadd.f32 %v7549_v23, %v319_v31 }
  0x1a   : > { %1214 = vst [vmem:[#allocation2 + $0x60] sm:$0xf] %v7439_v3  ;;  %1215 = vst [vmem:[#allocation2 + $0x64] sm:$0xf] %v7439_v3  ;;  %v7555_v26 = vadd.s32 24, %v7513_v9  ;;  %v7558_v27 = vadd.s32 32, %v7513_v9 }
  0x1b   : > { %1216 = vst [vmem:[#allocation2 + $0x68] sm:$0xf] %v7439_v3  ;;  %1217 = vst [vmem:[#allocation2 + $0x6c] sm:$0xf] %v7439_v3  ;;  %6402 = vmatpush3.bf16.msra.mxu1 %v7256_v8  ;;  %v7262_v28 = vld [vmem:[%s9578_s3 + $0x70] sm:$0xff]   ;;  %v7263_v29 = vld [vmem:[%s9578_s3 + $0x128] sm:$0xff]  }
  0x1c   : > { %1218 = vst [vmem:[#allocation2 + $0x70] sm:$0xf] %v7439_v3  ;;  %1219 = vst [vmem:[#allocation2 + $0x74] sm:$0xf] %v7439_v3  ;;  %6403 = vmatprep.subr.bf16.mxu1 %v7258_v11  ;;  %6610 = vmatpush3.bf16.msra.mxu0 %v7259_v10  ;;  %v1785_v32 = vld [vmem:[#allocation2 + $0x4] sm:$0xf] }
  0x1d   : > { %1220 = vst [vmem:[#allocation2 + $0x78] sm:$0xf] %v7439_v3  ;;  %1221 = vst [vmem:[#allocation2 + $0x7c] sm:$0xf] %v7439_v3  ;;  %6611 = vmatprep.subr.bf16.mxu0 %v7261_v13  ;;  %v7569_v33 = vadd.s32 40, %v7513_v9  ;;  %v7572_v34 = vadd.s32 48, %v7513_v9  ;;  %v7574_v35 = vcombine.low %v1784_v22, %v1785_v32 }
  0x1e   : > { %1222 = vst [vmem:[#allocation2 + $0x80] sm:$0xf] %v7439_v3  ;;  %1223 = vst [vmem:[#allocation2 + $0x84] sm:$0xf] %v7439_v3  ;;  %v7577_v36 = vmul.u32.u64.low 3817748708, %v7537_v16  ;;  %v7578_v37 = vmul.u32.u64.high 3817748708, %v7537_v16, %v7577_v36 }
  0x1f   : > { %1224 = vst [vmem:[#allocation2 + $0x88] sm:$0xf] %v7439_v3  ;;  %1225 = vst [vmem:[#allocation2 + $0x8c] sm:$0xf] %v7439_v3  ;;  %6404 = vmatpush3.bf16.msra.mxu1 %v7258_v11  ;;  %v476_v39 = vshrl.u32 %v7544_v21, 4  ;;  %v7585_v40 = vadd.s32 56, %v7513_v9 }
  0x20   : > { %1226 = vst [vmem:[#allocation2 + $0x90] sm:$0xf] %v7439_v3  ;;  %1227 = vst [vmem:[#allocation2 + $0x94] sm:$0xf] %v7439_v3  ;;  %6405 = vmatprep.subr.bf16.mxu1 %v7260_v17  ;;  %6612 = vmatpush3.bf16.msra.mxu0 %v7261_v13  ;;  %v487_v42 = vshrl.u32 %v7552_v25, 4  ;;  %v6144_v43 = vld [vmem:[%s7524_s17 + $0x8] sm:$0xff]  }
  0x21   : > { %1228 = vst [vmem:[#allocation2 + $0x98] sm:$0xf] %v7439_v3  ;;  %1229 = vst [vmem:[#allocation2 + $0x9c] sm:$0xf] %v7439_v3  ;;  %v7593_v44 = vadd.s32 64, %v7513_v9  ;;  %v7596_v45 = vadd.s32 72, %v7513_v9  ;;  %6613 = vmatprep.subr.bf16.mxu0 %v7263_v29  ;;  %v6078_v50 = vunpack.c.l.bf16 %v6144_v43  ;;  %v6079_v54 = vunpack.c.h.bf16 %v6144_v43 }
  0x22   : > { %1230 = vst [vmem:[#allocation2 + $0xa0] sm:$0xf] %v7439_v3  ;;  %9643 = vst [vmem:[#allocation3_spill] sm:$0xff] %v7513_v9  ;;  %v7265_v46 = vld [vmem:[%s9578_s3 + $0x130] sm:$0xff]   ;;  %v477_v47 = vmul.u32 18, %v476_v39  ;;  %v1948_v48 = vshrl.u32 %v7574_v35, 16 }
  0x23   : > { %v1950_v49 = vshll.u32 %v7574_v35, 16  ;;  %6406 = vmatpush3.bf16.msra.mxu1 %v7260_v17  ;;  %v7264_v51 = vld [vmem:[%s9578_s3 + $0x78] sm:$0xff]   ;;  %v397_v52 = vmax.f32 %v7581_v38, 0.0  ;;  %v488_v53 = vmul.u32 18, %v487_v42  ;;  %v498_v55 = vshrl.u32 %v7578_v37, 4  ;;  %v7623_v4 = vld [vmem:[%s9578_s3] sm:$0xff]  }
  0x24   : > { %6407 = vmatprep.subr.bf16.mxu1 %v7262_v28  ;;  %v478_v56 = vsub.s32 %v7513_v9, %v477_v47  ;;  %v320_v57 = vmul.f32 %v6078_v50, %v7534_v15  ;;  %v7611_v58 = vmul.u32.u64.low 3817748708, %v7555_v26  ;;  %v7612_v59 = vmul.u32.u64.high 3817748708, %v7555_v26, %v7611_v58  ;;  %6614 = vmatpush3.bf16.msra.mxu0 %v7263_v29  ;;  %v7269_v1 = vld [vmem:[%s9578_s3 + $0x138] sm:$0xff]   ;;  %v6145_v17 = vld [vmem:[%s7524_s17 + $0x10] sm:$0xff]   ;;  %v7647_v20 = vld [vmem:[%s9578_s3 + $0x140] sm:$0xff]   ;;  %s7168_s15 = smul.u32 288, %s9915_s19 }
  0x25   : > { %v398_v60 = vmax.f32 %v7588_v41, 0.0  ;;  %v489_v61 = vsub.s32 %v435_v12, %v488_v53  ;;  %vm1739_vm1 = vsmask.f32 7942  ;;  %v321_v62 = vmul.f32 %v6079_v54, %v7534_v15  ;;  %6615 = vmatprep.subr.bf16.mxu0 %v7265_v46  ;;  %v7650_v21 = vld [vmem:[%s7524_s17 + $0x18] sm:$0xff]   ;;  %v1741_v43 = vld [vmem:[#allocation2 + $0x8] sm:$0xe] }
  0x26   : > { %v499_v63 = vmul.u32 18, %v498_v55  ;;  %vm866_vm2 = vcmp.ne.s32.totalorder %v478_v56, 0  ;;  %vm902_vm3 = vcmp.lt.s32.totalorder %v478_v56, 0  ;;  %v974_v0 = vadd.s32 18, %v478_v56  ;;  %s9382_s21 = scalar_lea.vmem %s9579_s4, %s7168_s15  ;;  %s6035_s22 = sshll.u32 %s9915_s19, 4 }
  0x27   : > { %v363_v2 = vadd.f32 %v7549_v23, %v320_v57  ;;  %6408 = vmatpush3.bf16.msra.mxu1 %v7262_v28  ;;  %vm867_vm4 = vcmp.ne.s32.totalorder %v489_v61, 0  ;;  %vm903_vm5 = vcmp.lt.s32.totalorder %v489_v61, 0  ;;  %vm938_vm6 = vmand %vm902_vm3, %vm866_vm2  ;;  %v975_v3 = vadd.s32 18, %v489_v61  ;;  %s237_s25 = scalar_lea.vmem %s9580_s5, %s6035_s22 }
  0x28   : > { %vm9581_vm7 = vsmask.f32 1280  ;;  %vm1340_vm8 = vsmask.f32 5392  ;;  %v7626_v5 = vadd.f32 %v7549_v23, %v321_v62  ;;  %6409 = vmatprep.subr.bf16.mxu1 %v7264_v51  ;;  %vm939_vm9 = vmand %vm903_vm5, %vm867_vm4  ;;  %v1010_v6 = vsel %vm938_vm6, %v974_v0, %v478_v56  ;;  %6616 = vmatpush3.bf16.msra.mxu0 %v7265_v46 }
  0x29   : > { %v7628_v7 = vrot.slane %v1950_v49, 1  ;;  %v500_v8 = vsub.s32 %v7537_v16, %v499_v63  ;;  %v509_v10 = vshrl.u32 %v7612_v59, 4  ;;  %v1011_v11 = vsel %vm939_vm9, %v975_v3, %v489_v61  ;;  %6617 = vmatprep.subr.bf16.mxu0 %v7269_v1  ;;  %vm7670_vm5 = vmand %vm1738_vm0, %vm1739_vm1  ;;  %v7322_v59 = vld [vmem:[%s9578_s3 + $0x88] sm:$0xff]  }
  0x2a   : > { %vm7632_vm10 = vcmp.lt.s32.totalorder %v1010_v6, 16  ;;  %v399_v13 = vmax.f32 %v363_v2, 0.0  ;;  %v400_v14 = vmax.f32 %v7626_v5, 0.0  ;;  %vm7638_vm11 = vcmp.lt.s32.totalorder %v1011_v11, 16  ;;  %vm7680_vm6 = vmor %vm9581_vm7, %vm1340_vm8  ;;  %v6147_v11 = vld [vmem:[%s7524_s17 + $0x20] sm:$0xff]  }
  0x2b   : > { %v1154_v19 = vsel %vm7632_vm10, %v397_v52, 0.0  ;;  %v510_v16 = vmul.u32 18, %v509_v10  ;;  %vm868_vm12 = vcmp.ne.s32.totalorder %v500_v8, 0  ;;  %6410 = vmatpush3.bf16.msra.mxu1 %v7264_v51  ;;  %v1155_v22 = vsel %vm7638_vm11, %v398_v60, 0.0 }
  0x2c   : > { %v6036_v24 = vpack.c.bf16 %v1154_v19, %v1154_v19  ;;  %vm904_vm13 = vcmp.lt.s32.totalorder %v500_v8, 0  ;;  %v976_v25 = vadd.s32 18, %v500_v8  ;;  %v6037_v28 = vpack.c.bf16 %v1155_v22, %v1155_v22  ;;  %6447 = vmatprep.subr.bf16.mxu1 %v7623_v4  ;;  %6618 = vmatpush3.bf16.msra.mxu0 %v7269_v1 }
  0x2d   : > { %v511_v29 = vsub.s32 %v7555_v26, %v510_v16  ;;  %vm7656_vm14 = vmand %vm904_vm13, %vm868_vm12  ;;  %v6082_v31 = vunpack.c.l.bf16 %v6145_v17  ;;  %v6083_v32 = vunpack.c.h.bf16 %v6145_v17  ;;  %v6086_v39 = vunpack.c.l.bf16 %v7650_v21  ;;  %6655 = vmatprep.subr.bf16.mxu0 %v7647_v20 }
  0x2e   : > { %v1343_v36 = vshrl.u32 %v6036_v24, 16  ;;  %v1346_v37 = vshll.u32 %v6036_v24, 16  ;;  %v1012_v38 = vsel %vm7656_vm14, %v976_v25, %v500_v8  ;;  %v1352_v41 = vshrl.u32 %v6037_v28, 16 }
  0x2f   : > { %v1355_v42 = vshll.u32 %v6037_v28, 16  ;;  %vm869_vm15 = vcmp.ne.s32.totalorder %v511_v29, 0  ;;  %vm905_vm2 = vcmp.lt.s32.totalorder %v511_v29, 0  ;;  %v977_v47 = vadd.s32 18, %v511_v29 }
  0x30   : > { %v1345_v26 = vrot.slane %v1343_v36, 6  ;;  %v1348_v46 = vrot.slane %v1346_v37, 7  ;;  %vm941_vm3 = vmand %vm905_vm2, %vm869_vm15  ;;  %vm7664_vm4 = vcmp.lt.s32.totalorder %v1012_v38, 16  ;;  %v1354_v50 = vrot.slane %v1352_v41, 6 }
  0x31   : > { %v1357_v51 = vrot.slane %v1355_v42, 7  ;;  %v1156_v53 = vsel %vm7664_vm4, %v399_v13, 0.0  ;;  %v322_v54 = vmul.f32 %v6082_v31, %v7534_v15  ;;  %v1013_v56 = vsel %vm941_vm3, %v977_v47, %v511_v29 }
  0x32   : > { %v1349_v55 = vor.u32 %v1348_v46, %v1345_v26  ;;  %v6038_v57 = vpack.c.bf16 %v1156_v53, %v1156_v53  ;;  %v323_v58 = vmul.f32 %v6083_v32, %v7534_v15  ;;  %vm7684_vm0 = vcmp.lt.s32.totalorder %v1013_v56, 16 }
  0x33   : > { %v1358_v60 = vor.u32 %v1357_v51, %v1354_v50  ;;  %v7689_v62 = vadd.f32 %v7549_v23, %v322_v54  ;;  %v6087_v63 = vunpack.c.h.bf16 %v7650_v21  ;;  %v1157_v2 = vsel %vm7684_vm0, %v400_v14, 0.0  ;;  %v7729_v50 = vld [vmem:[%s7524_s17 + $0x28] sm:$0xff]  }
  0x34   : > { %v1350_v0 = vrot.slane %v1349_v55, 4  ;;  %v1742_v1 = vsel %vm7670_vm5, %v1349_v55, %v1741_v43  ;;  %v1362_v3 = vshrl.u32 %v6038_v57, 16  ;;  %v6039_v5 = vpack.c.bf16 %v1157_v2, %v1157_v2 }
  0x35   : > { %1743 = vst [vmem:[#allocation2 + $0x8] sm:$0xe] %v1742_v1  ;;  %v1360_v6 = vrot.slane %v1358_v60, 4  ;;  %v1365_v8 = vshll.u32 %v6038_v57, 16  ;;  %v7697_v10 = vadd.f32 %v7549_v23, %v323_v58  ;;  %v401_v19 = vmax.f32 %v7689_v62, 0.0 }
  0x36   : > { %v1359_v13 = vsel %vm7680_vm6, %v1350_v0, %v1358_v60  ;;  %v1364_v17 = vrot.slane %v1362_v3, 6  ;;  %v324_v16 = vmul.f32 %v6086_v39, %v7534_v15  ;;  %v1372_v14 = vshrl.u32 %v6039_v5, 16 }
  0x37   : > { %1744 = vst [vmem:[#allocation2 + $0xc] sm:$0xf] %v1359_v13  ;;  %v1367_v21 = vrot.slane %v1365_v8, 7  ;;  %v1375_v22 = vshll.u32 %v6039_v5, 16  ;;  %v402_v24 = vmax.f32 %v7697_v10, 0.0  ;;  %v325_v37 = vmul.f32 %v6087_v63, %v7534_v15 }
  0x38   : > { %v7706_v25 = vmul.u32.u64.low 3817748708, %v7558_v27  ;;  %v7707_v28 = vmul.u32.u64.high 3817748708, %v7558_v27, %v7706_v25  ;;  %v7710_v29 = vmul.u32.u64.low 3817748708, %v7569_v33  ;;  %v7711_v30 = vmul.u32.u64.high 3817748708, %v7569_v33, %v7710_v29 }
  0x39   : > { %vm9582_vm1 = vsmask.f32 7424  ;;  %v1368_v31 = vor.u32 %v1367_v21, %v1364_v17  ;;  %v1374_v32 = vrot.slane %v1372_v14, 6  ;;  %v1377_v36 = vrot.slane %v1375_v22, 7 }
  0x3a   : > { %v7715_v38 = vadd.f32 %v7549_v23, %v324_v16  ;;  %v7718_v39 = vmul.u32.u64.low 3817748708, %v7572_v34  ;;  %v7719_v41 = vmul.u32.u64.high 3817748708, %v7572_v34, %v7718_v39  ;;  %v6090_v42 = vunpack.c.l.bf16 %v6147_v11 }
  0x3b   : > { %v1369_v43 = vsel %vm7680_vm6, %v1360_v6, %v1368_v31  ;;  %v1370_v26 = vrot.slane %v1368_v31, 4  ;;  %v7723_v46 = vor.u32 %v1377_v36, %v1374_v32  ;;  %v7726_v47 = vadd.f32 %v7549_v23, %v325_v37 }
  0x3c   : > { %1745 = vst [vmem:[#allocation2 + $0x10] sm:$0xf] %v1369_v43  ;;  %v2918_v51 = vld [vmem:[#allocation2 + $0x8] sm:$0xe]  ;;  %v520_v52 = vshrl.u32 %v7707_v28, 4  ;;  %v531_v53 = vshrl.u32 %v7711_v30, 4  ;;  %v6091_v54 = vunpack.c.h.bf16 %v6147_v11  ;;  %v326_v55 = vmul.f32 %v6090_v42, %v7534_v15 }
  0x3d   : > { %v1379_v56 = vsel %vm7680_vm6, %v1370_v26, %v7723_v46  ;;  %v1380_v57 = vrot.slane %v7723_v46, 4  ;;  %v403_v58 = vmax.f32 %v7715_v38, 0.0  ;;  %v404_v60 = vmax.f32 %v7726_v47, 0.0 }
  0x3e   : > { %v7267_v63 = vld [vmem:[#allocation2 + $0x8] sm:$0xff]   ;;  %v1953_v0 = vor.u32 %v7628_v7, %v1948_v48  ;;  %1746 = vst [vmem:[#allocation2 + $0x14] sm:$0xf] %v1379_v56  ;;  %v521_v2 = vmul.u32 18, %v520_v52  ;;  %v327_v3 = vmul.f32 %v6091_v54, %v7534_v15  ;;  %v7747_v5 = vadd.f32 %v7549_v23, %v326_v55 }
  0x3f   : > { %v7743_v1 = vld [vmem:[#allocation2 + $0xc] sm:$0xf]  ;;  %v532_v8 = vmul.u32 18, %v531_v53  ;;  %v542_v11 = vshrl.u32 %v7719_v41, 4  ;;  %v6094_v13 = vunpack.c.l.bf16 %v7729_v50  ;;  %v1955_v17 = vshll.u32 %v7267_v63, 16 }
  0x40   : > { %v7750_v6 = vcombine.low %v2918_v51, %v7743_v1  ;;  %v1959_v16 = vshrl.u32 %v7267_v63, 16  ;;  %v522_v48 = vsub.s32 %v7558_v27, %v521_v2  ;;  %v6095_v7 = vunpack.c.h.bf16 %v7729_v50 }
  0x41   : > { %v533_v22 = vsub.s32 %v7569_v33, %v532_v8  ;;  %v543_v25 = vmul.u32 18, %v542_v11  ;;  %v1957_v28 = vrot.slane %v1955_v17, 1  ;;  %vm9583_vm12 = vsmask.f32 6400 }
  0x42   : > { %v3402_v21 = vshrl.u32 %v7750_v6, 16  ;;  %v3405_v14 = vshll.u32 %v7750_v6, 16  ;;  %vm870_vm8 = vcmp.ne.s32.totalorder %v522_v48, 0  ;;  %vm906_vm9 = vcmp.lt.s32.totalorder %v522_v48, 0 }
  0x43   : > { %v978_v29 = vadd.s32 18, %v522_v48  ;;  %vm7759_vm13 = vmand %vm906_vm9, %vm870_vm8  ;;  %v544_v27 = vsub.s32 %v7572_v34, %v543_v25  ;;  %v7765_v36 = vadd.f32 %v7549_v23, %v327_v3  ;;  %v1958_v37 = vsel %vm9582_vm1, %v1953_v0, %v1957_v28 }
  0x44   : > { %v3404_v30 = vrot.slane %v3402_v21, 1  ;;  %v3407_v31 = vrot.slane %v3405_v14, 2  ;;  %vm871_vm14 = vcmp.ne.s32.totalorder %v533_v22, 0  ;;  %vm907_vm15 = vcmp.lt.s32.totalorder %v533_v22, 0  ;;  %6411 = vmatprep.mubr.bf16.mxu1 %v1958_v37  ;;  %v7278_v21 = vld [vmem:[%s9578_s3 + $0x8] sm:$0xff]  }
  0x45   : > { %v7769_v33 = vmul.f32 %v6094_v13, %v7534_v15  ;;  %v7771_v39 = vld [vmem:[#allocation2 + $0x10] sm:$0xff]   ;;  %v1961_v41 = vor.u32 %v1959_v16, %v1957_v28  ;;  %v979_v43 = vadd.s32 18, %v533_v22  ;;  %v1014_v26 = vsel %vm7759_vm13, %v978_v29, %v522_v48  ;;  %vm943_vm2 = vmand %vm907_vm15, %vm871_vm14 }
  0x46   : > { %v3408_v42 = vor.u32 %v3407_v31, %v3404_v30  ;;  %v7775_v34 = vld [vmem:[#allocation2 + $0x10] sm:$0xff]   ;;  %vm7777_vm3 = vcmp.lt.s32.totalorder %v1014_v26, 16  ;;  %v7782_v51 = vmul.u32.u64.low 3817748708, %v7585_v40  ;;  %v7783_v52 = vmul.u32.u64.high 3817748708, %v7585_v40, %v7782_v51 }
  0x47   : > { %vm872_vm5 = vcmp.ne.s32.totalorder %v544_v27, 0  ;;  %v1963_v53 = vshll.u32 %v7771_v39, 16  ;;  %v1015_v54 = vsel %vm943_vm2, %v979_v43, %v533_v22  ;;  %v1158_v55 = vsel %vm7777_vm3, %v401_v19, 0.0 }
  0x48   : > { %v1967_v56 = vshrl.u32 %v7771_v39, 16  ;;  %v3410_v63 = vshrl.u32 %v7775_v34, 16  ;;  %v3413_v0 = vshll.u32 %v7775_v34, 16  ;;  %vm7793_vm8 = vcmp.lt.s32.totalorder %v1015_v54, 16 }
  0x49   : > { %v9662_v2 = vmov 0  ;;  %v6040_v3 = vpack.c.bf16 %v1158_v55, %v1158_v55  ;;  %v7797_v8 = vrot.slane %v1963_v53, 1  ;;  %v1159_v62 = vsel %vm7793_vm8, %v402_v24, 0.0 }
  0x4a   : > { %v9663_v2 = vsel %vm7793_vm8, 4294967295, %v9662_v2  ;;  %vm908_vm9 = vcmp.lt.s32.totalorder %v544_v27, 0  ;;  %v980_v19 = vadd.s32 18, %v544_v27  ;;  %v3412_v11 = vrot.slane %v3410_v63, 1 }
  0x4b   : > { %9664 = vst [vmem:[#allocation4_spill] sm:$0xff] %v9663_v2  ;;  %v3415_v13 = vrot.slane %v3413_v0, 2  ;;  %v6041_v17 = vpack.c.bf16 %v1159_v62, %v1159_v62  ;;  %v1382_v16 = vshrl.u32 %v6040_v3, 16  ;;  %vm7804_vm13 = vmand %vm908_vm9, %vm872_vm5  ;;  %v1966_v10 = vsel %vm9582_vm1, %v1961_v41, %v7797_v8 }
  0x4c   : > { %v1385_v14 = vshll.u32 %v6040_v3, 16  ;;  %v553_v24 = vshrl.u32 %v7783_v52, 4  ;;  %v329_v22 = vmul.f32 %v6095_v7, %v7534_v15  ;;  %6412 = vmatmul.mubr.bf16.vlgmr.msra.gmra.mrb[0].mxu1 %v1966_v10  ;;  %v1016_v37 = vsel %vm7804_vm13, %v980_v19, %v544_v27 }
  0x4d   : > { %v7815_v25 = vor.u32 %v3415_v13, %v3412_v11  ;;  %v1384_v28 = vrot.slane %v1382_v16, 6  ;;  %v1392_v29 = vshrl.u32 %v6041_v17, 16  ;;  %v1395_v30 = vshll.u32 %v6041_v17, 16  ;;  %6448 = vmatpush3.bf16.msra.mxu1 %v7623_v4  ;;  %v7285_v4 = vld [vmem:[%s9578_s3 + $0x10] sm:$0xff]  }
  0x4e   : > { %v1387_v31 = vrot.slane %v1385_v14, 7  ;;  %v554_v32 = vmul.u32 18, %v553_v24  ;;  %v405_v41 = vmax.f32 %v7747_v5, 0.0  ;;  %vm7823_vm14 = vcmp.lt.s32.totalorder %v1016_v37, 16  ;;  %6449 = vmatprep.subr.bf16.mxu1 %v7278_v21  ;;  %v6149_v24 = vld [vmem:[%s7524_s17 + $0x30] sm:$0xff]  }
  0x4f   : > { %v3417_v43 = vsel %vm9583_vm12, %v3408_v42, %v7815_v25  ;;  %v1394_v26 = vrot.slane %v1392_v29, 6  ;;  %v1397_v7 = vrot.slane %v1395_v30, 7  ;;  %v1160_v42 = vsel %vm7823_vm14, %v403_v58, 0.0 }
  0x50   : > { %6619 = vmatprep.mubr.bf16.mxu0 %v3417_v43  ;;  %v1388_v52 = vor.u32 %v1387_v31, %v1384_v28  ;;  %v555_v27 = vsub.s32 %v7585_v40, %v554_v32  ;;  %v406_v53 = vmax.f32 %v7765_v36, 0.0  ;;  %v6042_v55 = vpack.c.bf16 %v1160_v42, %v1160_v42  ;;  %v7292_v40 = vld [vmem:[%s9578_s3 + $0x18] sm:$0xff]  }
  0x51   : > { %v1398_v54 = vor.u32 %v1397_v7, %v1394_v26  ;;  %v7837_v63 = vmul.u32.u64.low 3817748708, %v7593_v44  ;;  %v7838_v0 = vmul.u32.u64.high 3817748708, %v7593_v44, %v7837_v63  ;;  %6450 = vmatpush3.bf16.msra.mxu1 %v7278_v21  ;;  %v7859_v16 = vadd.f32 %v7549_v23, %v7769_v33 }
  0x52   : > { %v1389_v3 = vsel %vm7680_vm6, %v1380_v57, %v1388_v52  ;;  %v1390_v62 = vrot.slane %v1388_v52, 4  ;;  %vm873_vm15 = vcmp.ne.s32.totalorder %v555_v27, 0  ;;  %vm909_vm2 = vcmp.lt.s32.totalorder %v555_v27, 0  ;;  %6451 = vmatprep.subr.bf16.mxu1 %v7285_v4 }
  0x53   : > { %1747 = vst [vmem:[#allocation2 + $0x18] sm:$0xf] %v1389_v3  ;;  %vm7847_vm5 = vmand %vm909_vm2, %vm873_vm15  ;;  %v981_v58 = vadd.s32 18, %v555_v27  ;;  %v1400_v19 = vrot.slane %v1398_v54, 4  ;;  %v1402_v46 = vshrl.u32 %v6042_v55, 16  ;;  %v1405_v11 = vshll.u32 %v6042_v55, 16 }
  0x54   : > { %v1399_v57 = vsel %vm7680_vm6, %v1390_v62, %v1398_v54  ;;  %v7854_v13 = vmul.u32.u64.low 3817748708, %v7596_v45  ;;  %v7855_v17 = vmul.u32.u64.high 3817748708, %v7596_v45, %v7854_v13  ;;  %v564_v14 = vshrl.u32 %v7838_v0, 4  ;;  %v7892_v54 = vld [vmem:[%s7524_s17 + $0x38] sm:$0xff]  }
  0x55   : > { %1748 = vst [vmem:[#allocation2 + $0x1c] sm:$0xf] %v1399_v57  ;;  %v1017_v48 = vsel %vm7847_vm5, %v981_v58, %v555_v27  ;;  %v1404_v21 = vrot.slane %v1402_v46, 6  ;;  %v1407_v10 = vrot.slane %v1405_v11, 7  ;;  %v9671_v28 = vmov 0  ;;  %6452 = vmatpush3.bf16.msra.mxu1 %v7285_v4 }
  0x56   : > { %vm7865_vm9 = vcmp.lt.s32.totalorder %v1017_v48, 16  ;;  %v7870_v29 = vadd.f32 %v7549_v23, %v329_v22  ;;  %v407_v30 = vmax.f32 %v7859_v16, 0.0  ;;  %v7874_v33 = vadd.s32 80, %v7513_v9  ;;  %6453 = vmatprep.subr.bf16.mxu1 %v7292_v40  ;;  %v7300_v22 = vld [vmem:[%s9578_s3 + $0x20] sm:$0xff]  }
  0x57   : > { %v9672_v28 = vsel %vm7865_vm9, 4294967295, %v9671_v28  ;;  %v1161_v31 = vsel %vm7865_vm9, %v404_v60, 0.0  ;;  %v1408_v32 = vor.u32 %v1407_v10, %v1404_v21  ;;  %v565_v37 = vmul.u32 18, %v564_v14 }
  0x58   : > { %v7881_v43 = vadd.s32 88, %v7513_v9  ;;  %v6043_v26 = vpack.c.bf16 %v1161_v31, %v1161_v31  ;;  %v575_v7 = vshrl.u32 %v7855_v17, 4  ;;  %v408_v4 = vmax.f32 %v7870_v29, 0.0 }
  0x59   : > { %v6098_v52 = vunpack.c.l.bf16 %v6149_v24  ;;  %v1409_v47 = vsel %vm7680_vm6, %v1400_v19, %v1408_v32  ;;  %v1410_v60 = vrot.slane %v1408_v32, 4  ;;  %v566_v27 = vsub.s32 %v7593_v44, %v565_v37  ;;  %6454 = vmatpush3.bf16.msra.mxu1 %v7292_v40 }
  0x5a   : > { %v6099_v42 = vunpack.c.h.bf16 %v6149_v24  ;;  %v1412_v55 = vshrl.u32 %v6043_v26, 16  ;;  %v1415_v63 = vshll.u32 %v6043_v26, 16  ;;  %1749 = vst [vmem:[#allocation2 + $0x20] sm:$0xf] %v1409_v47  ;;  %v576_v3 = vmul.u32 18, %v575_v7  ;;  %6455 = vmatprep.subr.bf16.mxu1 %v7300_v22  ;;  %v7276_v26 = vld [vmem:[%s9578_s3 + $0x148] sm:$0xff]  }
  0x5b   : > { %v330_v0 = vmul.f32 %v6098_v52, %v7534_v15  ;;  %vm874_vm13 = vcmp.ne.s32.totalorder %v566_v27, 0  ;;  %vm910_vm15 = vcmp.lt.s32.totalorder %v566_v27, 0  ;;  %v982_v62 = vadd.s32 18, %v566_v27 }
  0x5c   : > { %v7895_v38 = vld [vmem:[#allocation2 + $0x18] sm:$0xff]   ;;  %v1969_v44 = vor.u32 %v1967_v56, %v7797_v8  ;;  %v1414_v58 = vrot.slane %v1412_v55, 6  ;;  %v331_v19 = vmul.f32 %v6099_v42, %v7534_v15  ;;  %v6102_v46 = vunpack.c.l.bf16 %v7892_v54  ;;  %vm7905_vm2 = vmand %vm910_vm15, %vm874_vm13 }
  0x5d   : > { %v7902_v11 = vld [vmem:[#allocation2 + $0x18] sm:$0xff]   ;;  %v1417_v57 = vrot.slane %v1415_v63, 7  ;;  %v577_v40 = vsub.s32 %v7596_v45, %v576_v3  ;;  %v7910_v17 = vmul.u32.u64.low 3817748708, %v7874_v33  ;;  %v7911_v48 = vmul.u32.u64.high 3817748708, %v7874_v33, %v7910_v17  ;;  %6456 = vmatpush3.bf16.msra.mxu1 %v7300_v22 }
  0x5e   : > { %v3419_v39 = vshrl.u32 %v7895_v38, 16  ;;  %v3422_v56 = vshll.u32 %v7895_v38, 16  ;;  %v1018_v8 = vsel %vm7905_vm2, %v982_v62, %v566_v27  ;;  %v7918_v21 = vadd.f32 %v7549_v23, %v330_v0 }
  0x5f   : > { %v1971_v45 = vshll.u32 %v7902_v11, 16  ;;  %v7921_v10 = vor.u32 %v1417_v57, %v1414_v58  ;;  %vm875_vm5 = vcmp.ne.s32.totalorder %v577_v40, 0  ;;  %v6103_v14 = vunpack.c.h.bf16 %v7892_v54  ;;  %v7304_v58 = vld [vmem:[%s9578_s3 + $0x28] sm:$0xff]  }
  0x60   : > { %v3421_v24 = vrot.slane %v3419_v39, 1  ;;  %v3424_v31 = vrot.slane %v3422_v56, 2  ;;  %vm911_vm13 = vcmp.lt.s32.totalorder %v577_v40, 0  ;;  %v983_v32 = vadd.s32 18, %v577_v40  ;;  %6457 = vmatprep.subr.bf16.mxu1 %v7304_v58 }
  0x61   : > { %v1973_v37 = vrot.slane %v1971_v45, 1  ;;  %v1419_v22 = vsel %vm7680_vm6, %v1410_v60, %v7921_v10  ;;  %vm947_vm15 = vmand %vm911_vm13, %vm875_vm5  ;;  %vm7930_vm2 = vcmp.lt.s32.totalorder %v1018_v8, 16  ;;  %v9675_v7 = vmov 0  ;;  %6458 = vmatpush3.bf16.msra.mxu1 %v7304_v58 }
  0x62   : > { %v9676_v7 = vsel %vm7930_vm2, 4294967295, %v9675_v7  ;;  %v7935_v52 = vadd.f32 %v7549_v23, %v331_v19  ;;  %v7937_v47 = vor.u32 %v3424_v31, %v3421_v24  ;;  %1750 = vst [vmem:[#allocation2 + $0x24] sm:$0xf] %v1419_v22  ;;  %v1975_v27 = vshrl.u32 %v7902_v11, 16 }
  0x63   : > { %9677 = vst [vmem:[#allocation5_spill] sm:$0xff] %v9676_v7  ;;  %v1019_v42 = vsel %vm947_vm15, %v983_v32, %v577_v40  ;;  %v1162_v55 = vsel %vm7930_vm2, %v405_v41, 0.0  ;;  %v1974_v60 = vsel %vm9582_vm1, %v1969_v44, %v1973_v37  ;;  %v9678_v63 = vmov 0 }
  0x64   : > { %vm7945_vm5 = vcmp.lt.s32.totalorder %v1019_v42, 16  ;;  %v6044_v0 = vpack.c.bf16 %v1162_v55, %v1162_v55  ;;  %v1420_v3 = vrot.slane %v7921_v10, 4  ;;  %v3426_v62 = vsel %vm9583_vm12, %v7815_v25, %v7937_v47  ;;  %6415 = vmatprep.mubr.bf16.mxu1 %v1974_v60  ;;  %v7281_v25 = vld [vmem:[%s9578_s3 + $0x150] sm:$0xff]  }
  0x65   : > { %v9679_v63 = vsel %vm7945_vm5, 4294967295, %v9678_v63  ;;  %v1163_v5 = vsel %vm7945_vm5, %v406_v53, 0.0  ;;  %v586_v41 = vshrl.u32 %v7911_v48, 4  ;;  %v409_v44 = vmax.f32 %v7918_v21, 0.0  ;;  %6620 = vmatmul.mubr.bf16.vlgmr.msra.gmra.mrb[0].mxu0 %v3426_v62 }
  0x66   : > { %9680 = vst [vmem:[#allocation6_spill] sm:$0xff] %v9679_v63  ;;  %v6045_v19 = vpack.c.bf16 %v1163_v5, %v1163_v5  ;;  %v1422_v11 = vshrl.u32 %v6044_v0, 16  ;;  %v1425_v57 = vshll.u32 %v6044_v0, 16  ;;  %v410_v36 = vmax.f32 %v7935_v52, 0.0  ;;  %6656 = vmatpush3.bf16.msra.mxu0 %v7647_v20 }
  0x67   : > { %v587_v53 = vmul.u32 18, %v586_v41  ;;  %v7968_v40 = vmul.u32.u64.low 3817748708, %v7881_v43  ;;  %v7969_v13 = vmul.u32.u64.high 3817748708, %v7881_v43, %v7968_v40  ;;  %v7972_v17 = vadd.s32 96, %v7513_v9  ;;  %6657 = vmatprep.subr.bf16.mxu0 %v7276_v26 }
  0x68   : > { %v1424_v48 = vrot.slane %v1422_v11, 6  ;;  %v1427_v39 = vrot.slane %v1425_v57, 7  ;;  %v1432_v56 = vshrl.u32 %v6045_v19, 16  ;;  %v1435_v8 = vshll.u32 %v6045_v19, 16 }
  0x69   : > { %v588_v45 = vsub.s32 %v7874_v33, %v587_v53  ;;  %v7976_v10 = vadd.s32 104, %v7513_v9  ;;  %v7979_v20 = vmul.u32.u64.low 3817748708, %v7972_v17  ;;  %v7980_v24 = vmul.u32.u64.high 3817748708, %v7972_v17, %v7979_v20  ;;  %v7982_v31 = vld [vmem:[#allocation2 + $0x20] sm:$0xff]  }
  0x6a   : > { %v1977_v32 = vor.u32 %v1975_v27, %v1973_v37  ;;  %v1428_v22 = vor.u32 %v1427_v39, %v1424_v48  ;;  %v1434_v42 = vrot.slane %v1432_v56, 6  ;;  %v332_v55 = vmul.f32 %v6102_v46, %v7534_v15  ;;  %6658 = vmatpush3.bf16.msra.mxu0 %v7276_v26  ;;  %v7987_v60 = vld [vmem:[#allocation2 + $0x20] sm:$0xff]   ;;  %v7283_v27 = vld [vmem:[%s9578_s3 + $0x158] sm:$0xff]  }
  0x6b   : > { %v1437_v33 = vrot.slane %v1435_v8, 7  ;;  %v597_v0 = vshrl.u32 %v7969_v13, 4  ;;  %vm876_vm13 = vcmp.ne.s32.totalorder %v588_v45, 0  ;;  %vm912_vm15 = vcmp.lt.s32.totalorder %v588_v45, 0  ;;  %6659 = vmatprep.subr.bf16.mxu0 %v7281_v25  ;;  %v7288_v56 = vld [vmem:[%s9578_s3 + $0x160] sm:$0xff]  }
  0x6c   : > { %v1979_v62 = vshll.u32 %v7982_v31, 16  ;;  %v1429_v5 = vsel %vm7680_vm6, %v1420_v3, %v1428_v22  ;;  %v1430_v37 = vrot.slane %v1428_v22, 4  ;;  %v333_v46 = vmul.f32 %v6103_v14, %v7534_v15  ;;  %vm8003_vm7 = vmand %vm912_vm15, %vm876_vm13  ;;  %v7290_v22 = vld [vmem:[%s9578_s3 + $0x168] sm:$0xff]  }
  0x6d   : > { %v3428_v26 = vshrl.u32 %v7987_v60, 16  ;;  %v3431_v41 = vshll.u32 %v7987_v60, 16  ;;  %v8001_v58 = vor.u32 %v1437_v33, %v1434_v42  ;;  %1751 = vst [vmem:[#allocation2 + $0x28] sm:$0xf] %v1429_v5  ;;  %v598_v19 = vmul.u32 18, %v597_v0  ;;  %v8044_v42 = vld [vmem:[%s7524_s17 + $0x40] sm:$0xff]  }
  0x6e   : > { %v1981_v11 = vrot.slane %v1979_v62, 1  ;;  %v984_v57 = vadd.s32 18, %v588_v45  ;;  %v608_v53 = vshrl.u32 %v7980_v24, 4  ;;  %v8009_v40 = vadd.f32 %v7549_v23, %v332_v55  ;;  %6660 = vmatpush3.bf16.msra.mxu0 %v7281_v25  ;;  %v8025_v25 = vld [vmem:[%s9577_s2] ss:$0 sm:$0xff] }
  0x6f   : > { %v3430_v15 = vrot.slane %v3428_v26, 1  ;;  %v3433_v54 = vrot.slane %v3431_v41, 2  ;;  %v1439_v14 = vsel %vm7680_vm6, %v1430_v37, %v8001_v58  ;;  %v599_v13 = vsub.s32 %v7881_v43, %v598_v19  ;;  %6661 = vmatprep.subr.bf16.mxu0 %v7283_v27 }
  0x70   : > { %v1982_v48 = vsel %vm9582_vm1, %v1977_v32, %v1981_v11  ;;  %1752 = vst [vmem:[#allocation2 + $0x2c] sm:$0xf] %v1439_v14  ;;  %v1983_v39 = vshrl.u32 %v7982_v31, 16  ;;  %v1020_v23 = vsel %vm8003_vm7, %v984_v57, %v588_v45  ;;  %v8028_v43 = vadd.f32 %v8025_v25, %v333_v46 }
  0x71   : > { %6416 = vmatmul.mubr.bf16.gmra.mrb[4].mxu1 %v1982_v48  ;;  %v8030_v8 = vor.u32 %v3433_v54, %v3430_v15  ;;  %vm877_vm13 = vcmp.ne.s32.totalorder %v599_v13, 0  ;;  %vm913_vm15 = vcmp.lt.s32.totalorder %v599_v13, 0  ;;  %v985_v20 = vadd.s32 18, %v599_v13 }
  0x72   : > { %vm949_vm1 = vmand %vm913_vm15, %vm877_vm13  ;;  %vm8032_vm7 = vcmp.lt.s32.totalorder %v1020_v23, 16  ;;  %v9683_v45 = vmov 0  ;;  %v609_v24 = vmul.u32 18, %v608_v53  ;;  %v1440_v62 = vrot.slane %v8001_v58, 4  ;;  %6662 = vmatpush3.bf16.msra.mxu0 %v7283_v27 }
  0x73   : > { %v9684_v45 = vsel %vm8032_vm7, 4294967295, %v9683_v45  ;;  %v8037_v31 = vmul.u32.u64.low 3817748708, %v7976_v10  ;;  %v8038_v32 = vmul.u32.u64.high 3817748708, %v7976_v10, %v8037_v31  ;;  %v3435_v55 = vsel %vm9583_vm12, %v7937_v47, %v8030_v8  ;;  %6663 = vmatprep.subr.bf16.mxu0 %v7288_v56 }
  0x74   : > { %9685 = vst [vmem:[#allocation7_spill] sm:$0xff] %v9684_v45  ;;  %v1021_v33 = vsel %vm949_vm1, %v985_v20, %v599_v13  ;;  %v1164_v0 = vsel %vm8032_vm7, %v407_v30, 0.0  ;;  %6623 = vmatprep.mubr.bf16.mxu0 %v3435_v55  ;;  %v9686_v5 = vmov 0  ;;  %v8059_v46 = vsub.s32 %v7972_v17, %v609_v24  ;;  %v7295_v13 = vld [vmem:[%s9578_s3 + $0x170] sm:$0xff]  }
  0x75   : > { %vm8054_vm13 = vcmp.lt.s32.totalorder %v1021_v33, 16  ;;  %v6046_v37 = vpack.c.bf16 %v1164_v0, %v1164_v0  ;;  %v411_v47 = vmax.f32 %v8009_v40, 0.0  ;;  %v412_v30 = vmax.f32 %v8028_v43, 0.0  ;;  %v7297_v0 = vld [vmem:[%s9578_s3 + $0x178] sm:$0xff]  }
  0x76   : > { %v9687_v5 = vsel %vm8054_vm13, 4294967295, %v9686_v5  ;;  %v1165_v16 = vsel %vm8054_vm13, %v408_v4, 0.0  ;;  %v8068_v27 = vadd.s32 112, %v7513_v9  ;;  %v8071_v26 = vadd.s32 120, %v7513_v9  ;;  %6664 = vmatpush3.bf16.msra.mxu0 %v7288_v56 }
  0x77   : > { %9688 = vst [vmem:[#allocation8_spill] sm:$0xff] %v9687_v5  ;;  %v6047_v41 = vpack.c.bf16 %v1165_v16, %v1165_v16  ;;  %v1442_v58 = vshrl.u32 %v6046_v37, 16  ;;  %v1445_v17 = vshll.u32 %v6046_v37, 16  ;;  %v619_v19 = vshrl.u32 %v8038_v32, 4  ;;  %v8074_v3 = vld [vmem:[#allocation2 + $0x28] sm:$0xff]   ;;  %6665 = vmatprep.subr.bf16.mxu0 %v7290_v22 }
  0x78   : > { %v1985_v57 = vor.u32 %v1983_v39, %v1981_v11  ;;  %vm878_vm1 = vcmp.ne.s32.totalorder %v8059_v46, 0  ;;  %v6106_v29 = vunpack.c.l.bf16 %v8044_v42  ;;  %v8078_v4 = vld [vmem:[#allocation2 + $0x28] sm:$0xff]   ;;  %v3437_v48 = vshrl.u32 %v8074_v3, 16 }
  0x79   : > { %v1444_v53 = vrot.slane %v1442_v58, 6  ;;  %v1447_v15 = vrot.slane %v1445_v17, 7  ;;  %v1452_v54 = vshrl.u32 %v6047_v41, 16  ;;  %v1455_v14 = vshll.u32 %v6047_v41, 16  ;;  %v8093_v37 = vld [vmem:[%s7524_s17 + $0x48] sm:$0xff]  }
  0x7a   : > { %v3440_v11 = vshll.u32 %v8074_v3, 16  ;;  %v620_v39 = vmul.u32 18, %v619_v19  ;;  %vm914_vm15 = vcmp.lt.s32.totalorder %v8059_v46, 0  ;;  %v1987_v23 = vshll.u32 %v8078_v4, 16  ;;  %6666 = vmatpush3.bf16.msra.mxu0 %v7290_v22 }
  0x7b   : > { %v1448_v56 = vor.u32 %v1447_v15, %v1444_v53  ;;  %v1454_v20 = vrot.slane %v1452_v54, 6  ;;  %v1457_v24 = vrot.slane %v1455_v14, 7  ;;  %v3439_v31 = vrot.slane %v3437_v48, 1  ;;  %vm8103_vm12 = vmand %vm914_vm15, %vm878_vm1  ;;  %6667 = vmatprep.subr.bf16.mxu0 %v7295_v13  ;;  %v8121_v54 = vld [vmem:[%s9576_s1] ss:$0 sm:$0xff] }
  0x7c   : > { %v3442_v32 = vrot.slane %v3440_v11, 2  ;;  %v621_v55 = vsub.s32 %v7976_v10, %v620_v39  ;;  %v6107_v33 = vunpack.c.h.bf16 %v8044_v42  ;;  %v1989_v16 = vrot.slane %v1987_v23, 1 }
  0x7d   : > { %v1449_v41 = vsel %vm7680_vm6, %v1440_v62, %v1448_v56  ;;  %v1450_v58 = vrot.slane %v1448_v56, 4  ;;  %v8097_v17 = vor.u32 %v1457_v24, %v1454_v20  ;;  %v986_v42 = vadd.s32 18, %v8059_v46 }
  0x7e   : > { %v8107_v22 = vor.u32 %v3442_v32, %v3439_v31  ;;  %1753 = vst [vmem:[#allocation2 + $0x30] sm:$0xf] %v1449_v41  ;;  %vm879_vm5 = vcmp.ne.s32.totalorder %v621_v55, 0  ;;  %vm915_vm13 = vcmp.lt.s32.totalorder %v621_v55, 0  ;;  %vm9691_vm2 = vsmask.f32 7424  ;;  %6668 = vmatpush3.bf16.msra.mxu0 %v7295_v13 }
  0x7f   : > { %v1990_v62 = vsel %vm9691_vm2, %v1985_v57, %v1989_v16  ;;  %v1459_v19 = vsel %vm7680_vm6, %v1450_v58, %v8097_v17  ;;  %vm8114_vm7 = vmand %vm915_vm13, %vm879_vm5  ;;  %v987_v15 = vadd.s32 18, %v621_v55  ;;  %v334_v14 = vmul.f32 %v8121_v54, %v6106_v29  ;;  %6669 = vmatprep.subr.bf16.mxu0 %v7297_v0  ;;  %v8159_v31 = vld [vmem:[#allocation2 + $0x8] sm:$0xc]  ;;  %v7308_v32 = vld [vmem:[%s9578_s3 + $0x30] sm:$0xff]  }
  0x80   : > { %vm9694_vm1 = vsmask.f32 6400  ;;  %6419 = vmatprep.mubr.bf16.mxu1 %v1990_v62  ;;  %1754 = vst [vmem:[#allocation2 + $0x34] sm:$0xf] %v1459_v19  ;;  %v1991_v48 = vshrl.u32 %v8078_v4, 16  ;;  %v1022_v11 = vsel %vm8103_vm12, %v986_v42, %v8059_v46  ;;  %v6110_v39 = vunpack.c.l.bf16 %v8093_v37  ;;  %v8145_v46 = vld [vmem:[%s9578_s3 + $0x180] sm:$0xff]   ;;  %6459 = vmatprep.subr.bf16.mxu1 %v7308_v32 }
  0x81   : > { %v3444_v57 = vsel %vm9694_vm1, %v8030_v8, %v8107_v22  ;;  %v1023_v23 = vsel %vm8114_vm7, %v987_v15, %v621_v55  ;;  %vm8134_vm2 = vcmp.lt.s32.totalorder %v1022_v11, 16  ;;  %v9695_v29 = vmov 0  ;;  %6460 = vmatpush3.bf16.msra.mxu1 %v7308_v32 }
  0x82   : > { %6624 = vmatmul.mubr.bf16.gmra.mrb[4].mxu0 %v3444_v57  ;;  %v9696_v29 = vsel %vm8134_vm2, 4294967295, %v9695_v29  ;;  %v8139_v8 = vmul.u32.u64.low 3817748708, %v8068_v27  ;;  %v8140_v56 = vmul.u32.u64.high 3817748708, %v8068_v27, %v8139_v8  ;;  %vm8147_vm12 = vcmp.lt.s32.totalorder %v1023_v23, 16 }
  0x83   : > { %9697 = vst [vmem:[#allocation9_spill] sm:$0xff] %v9696_v29  ;;  %v9698_v4 = vmov 0  ;;  %v1166_v13 = vsel %vm8134_vm2, %v409_v44, 0.0  ;;  %v8156_v20 = vmul.u32.u64.low 3817748708, %v8071_v26  ;;  %v8157_v24 = vmul.u32.u64.high 3817748708, %v8071_v26, %v8156_v20  ;;  %6670 = vmatpush3.bf16.msra.mxu0 %v7297_v0 }
  0x84   : > { %v9699_v4 = vsel %vm8147_vm12, 4294967295, %v9698_v4  ;;  %v1167_v55 = vsel %vm8147_vm12, %v410_v36, 0.0  ;;  %v6048_v41 = vpack.c.bf16 %v1166_v13, %v1166_v13  ;;  %v1460_v21 = vrot.slane %v8097_v17, 4  ;;  %6707 = vmatprep.subr.bf16.mxu0 %v8145_v46 }
  0x85   : > { %9700 = vst [vmem:[#allocation10_spill] sm:$0xff] %v9699_v4  ;;  %v335_v44 = vmul.f32 %v8121_v54, %v6107_v33  ;;  %v1993_v58 = vor.u32 %v1991_v48, %v1989_v16  ;;  %v6049_v10 = vpack.c.bf16 %v1167_v55, %v1167_v55  ;;  %v8171_v42 = vadd.s32 128, %v7513_v9 }
  0x86   : > { %v8174_v62 = vadd.s32 136, %v7513_v9  ;;  %v1462_v19 = vshrl.u32 %v6048_v41, 16  ;;  %v1465_v52 = vshll.u32 %v6048_v41, 16  ;;  %v8177_v53 = vadd.f32 %v8025_v25, %v334_v14 }
  0x87   : > { %v6111_v36 = vunpack.c.h.bf16 %v8093_v37  ;;  %v1472_v33 = vshrl.u32 %v6049_v10, 16  ;;  %v1475_v16 = vshll.u32 %v6049_v10, 16  ;;  %v630_v17 = vshrl.u32 %v8140_v56, 4  ;;  %v8183_v57 = vld [vmem:[#allocation2 + $0x30] sm:$0xff]  }
  0x88   : > { %v641_v15 = vshrl.u32 %v8157_v24, 4  ;;  %v1464_v0 = vrot.slane %v1462_v19, 6  ;;  %v8186_v48 = vadd.f32 %v8025_v25, %v335_v44  ;;  %v336_v14 = vmul.f32 %v8121_v54, %v6110_v39  ;;  %v8191_v11 = vld [vmem:[#allocation2 + $0x30] sm:$0xff]  }
  0x89   : > { %v5943_v37 = vcombine.low %v8159_v31, %v7743_v1  ;;  %v1467_v23 = vrot.slane %v1465_v52, 7  ;;  %v1474_v8 = vrot.slane %v1472_v33, 6  ;;  %v1477_v13 = vrot.slane %v1475_v16, 7 }
  0x8a   : > { %v631_v20 = vmul.u32 18, %v630_v17  ;;  %v1995_v56 = vshll.u32 %v8183_v57, 16  ;;  %v1999_v24 = vshrl.u32 %v8183_v57, 16  ;;  %v642_v32 = vmul.u32 18, %v641_v15 }
  0x8b   : > { %v337_v55 = vmul.f32 %v8121_v54, %v6111_v36  ;;  %v3446_v41 = vshrl.u32 %v8191_v11, 16  ;;  %v3449_v39 = vshll.u32 %v8191_v11, 16  ;;  %v1468_v44 = vor.u32 %v1467_v23, %v1464_v0 }
  0x8c   : > { %v8198_v10 = vor.u32 %v1477_v13, %v1474_v8  ;;  %v1997_v1 = vrot.slane %v1995_v56, 1  ;;  %v632_v31 = vsub.s32 %v8068_v27, %v631_v20  ;;  %v643_v19 = vsub.s32 %v8071_v26, %v642_v32 }
  0x8d   : > { %v3448_v33 = vrot.slane %v3446_v41, 1  ;;  %v3451_v16 = vrot.slane %v3449_v39, 2  ;;  %v1469_v17 = vsel %vm7680_vm6, %v1460_v21, %v1468_v44  ;;  %v1470_v36 = vrot.slane %v1468_v44, 4 }
  0x8e   : > { %vm9701_vm5 = vsmask.f32 7424  ;;  %1755 = vst [vmem:[#allocation2 + $0x38] sm:$0xf] %v1469_v17  ;;  %vm880_vm7 = vcmp.ne.s32.totalorder %v632_v31, 0  ;;  %vm881_vm13 = vcmp.ne.s32.totalorder %v643_v19, 0  ;;  %v8207_v57 = vadd.f32 %v8025_v25, %v336_v14 }
  0x8f   : > { %v1998_v15 = vsel %vm9701_vm5, %v1993_v58, %v1997_v1  ;;  %v8209_v27 = vor.u32 %v3451_v16, %v3448_v33  ;;  %v1479_v26 = vsel %vm7680_vm6, %v1470_v36, %v8198_v10  ;;  %vm916_vm15 = vcmp.lt.s32.totalorder %v632_v31, 0 }
  0x90   : > { %6420 = vmatmul.mubr.bf16.gmra.mrb[8].mxu1 %v1998_v15  ;;  %vm917_vm1 = vcmp.lt.s32.totalorder %v643_v19, 0  ;;  %1756 = vst [vmem:[#allocation2 + $0x3c] sm:$0xf] %v1479_v26  ;;  %vm952_vm12 = vmand %vm916_vm15, %vm880_vm7  ;;  %v988_v21 = vadd.s32 18, %v632_v31  ;;  %v989_v58 = vadd.s32 18, %v643_v19  ;;  %v8216_v23 = vadd.f32 %v8025_v25, %v337_v55  ;;  %v8231_v55 = vld [vmem:[%s7524_s17 + $0x50] sm:$0xff]  }
  0x91   : > { %vm9702_vm5 = vsmask.f32 6400  ;;  %vm953_vm2 = vmand %vm917_vm1, %vm881_vm13  ;;  %v1480_v8 = vrot.slane %v8198_v10, 4  ;;  %v8223_v13 = vmul.u32.u64.low 3817748708, %v8171_v42  ;;  %v8224_v20 = vmul.u32.u64.high 3817748708, %v8171_v42, %v8223_v13 }
  0x92   : > { %v3453_v14 = vsel %vm9702_vm5, %v8107_v22, %v8209_v27  ;;  %v1024_v56 = vsel %vm952_vm12, %v988_v21, %v632_v31  ;;  %v1025_v32 = vsel %vm953_vm2, %v989_v58, %v643_v19  ;;  %v9703_v44 = vmov 0 }
  0x93   : > { %6627 = vmatprep.mubr.bf16.mxu0 %v3453_v14  ;;  %v8227_v41 = vmul.u32.u64.low 3817748708, %v8174_v62  ;;  %v8228_v39 = vmul.u32.u64.high 3817748708, %v8174_v62, %v8227_v41  ;;  %vm8233_vm7 = vcmp.lt.s32.totalorder %v1024_v56, 16  ;;  %vm8237_vm13 = vcmp.lt.s32.totalorder %v1025_v32, 16 }
  0x94   : > { %v9704_v44 = vsel %vm8233_vm7, 4294967295, %v9703_v44  ;;  %v9706_v22 = vmov 0  ;;  %v8243_v33 = vadd.s32 144, %v7513_v9  ;;  %v1168_v31 = vsel %vm8233_vm7, %v411_v47, 0.0 }
  0x95   : > { %9705 = vst [vmem:[#allocation11_spill] sm:$0xff] %v9704_v44  ;;  %v9707_v22 = vsel %vm8237_vm13, 4294967295, %v9706_v22  ;;  %v1169_v19 = vsel %vm8237_vm13, %v412_v30, 0.0  ;;  %v8255_v17 = vadd.s32 152, %v7513_v9  ;;  %v6050_v36 = vpack.c.bf16 %v1168_v31, %v1168_v31 }
  0x96   : > { %9708 = vst [vmem:[#allocation12_spill] sm:$0xff] %v9707_v22  ;;  %v6051_v15 = vpack.c.bf16 %v1169_v19, %v1169_v19  ;;  %v652_v26 = vshrl.u32 %v8224_v20, 4  ;;  %v8258_v21 = vrot.slane %v5943_v37, 2  ;;  %v663_v40 = vshrl.u32 %v8228_v39, 4 }
  0x97   : > { %v8262_v47 = vmul.u32.u64.low 3817748708, %v8243_v33  ;;  %v8263_v58 = vmul.u32.u64.high 3817748708, %v8243_v33, %v8262_v47  ;;  %v8266_v30 = vld [vmem:[#allocation2 + $0x38] sm:$0xff]   ;;  %v2001_v14 = vor.u32 %v1999_v24, %v1997_v1  ;;  %v1482_v13 = vshrl.u32 %v6050_v36, 16 }
  0x98   : > { %v6114_v56 = vunpack.c.l.bf16 %v8231_v55  ;;  %v7289_v41 = vld [vmem:[#allocation2 + $0x38] sm:$0xff]   ;;  %v1485_v20 = vshll.u32 %v6050_v36, 16  ;;  %v1492_v37 = vshrl.u32 %v6051_v15, 16  ;;  %v1495_v31 = vshll.u32 %v6051_v15, 16 }
  0x99   : > { %v653_v19 = vmul.u32 18, %v652_v26  ;;  %v3455_v39 = vshrl.u32 %v8266_v30, 16  ;;  %v3458_v47 = vshll.u32 %v8266_v30, 16  ;;  %v1484_v16 = vrot.slane %v1482_v13, 6  ;;  %v7312_v24 = vld [vmem:[%s9578_s3 + $0x38] sm:$0xff]  }
  0x9a   : > { %v664_v10 = vmul.u32 18, %v663_v40  ;;  %v2003_v1 = vshll.u32 %v7289_v41, 16  ;;  %v1487_v43 = vrot.slane %v1485_v20, 7  ;;  %v1494_v0 = vrot.slane %v1492_v37, 6  ;;  %6461 = vmatprep.subr.bf16.mxu1 %v7312_v24  ;;  %v6154_v37 = vld [vmem:[%s7524_s17 + $0x58] sm:$0xff]  }
  0x9b   : > { %v1497_v32 = vrot.slane %v1495_v31, 7  ;;  %v3457_v36 = vrot.slane %v3455_v39, 1  ;;  %v3460_v52 = vrot.slane %v3458_v47, 2  ;;  %v654_v15 = vsub.s32 %v8171_v42, %v653_v19  ;;  %6462 = vmatpush3.bf16.msra.mxu1 %v7312_v24 }
  0x9c   : > { %v338_v26 = vmul.f32 %v8121_v54, %v6114_v56  ;;  %v2005_v22 = vrot.slane %v2003_v1, 1  ;;  %v1488_v4 = vor.u32 %v1487_v43, %v1484_v16  ;;  %v665_v40 = vsub.s32 %v8174_v62, %v664_v10 }
  0x9d   : > { %v8277_v13 = vor.u32 %v1497_v32, %v1494_v0  ;;  %v8280_v29 = vor.u32 %v3460_v52, %v3457_v36  ;;  %vm882_vm12 = vcmp.ne.s32.totalorder %v654_v15, 0  ;;  %vm918_vm15 = vcmp.lt.s32.totalorder %v654_v15, 0 }
  0x9e   : > { %v990_v20 = vadd.s32 18, %v654_v15  ;;  %vm9709_vm1 = vsmask.f32 7424  ;;  %v1489_v42 = vsel %vm7680_vm6, %v1480_v8, %v1488_v4  ;;  %v1490_v56 = vrot.slane %v1488_v4, 4  ;;  %vm954_vm5 = vmand %vm918_vm15, %vm882_vm12 }
  0x9f   : > { %v2006_v31 = vsel %vm9709_vm1, %v2001_v14, %v2005_v22  ;;  %v2007_v19 = vshrl.u32 %v7289_v41, 16  ;;  %vm9710_vm2 = vsmask.f32 6400  ;;  %1757 = vst [vmem:[#allocation2 + $0x40] sm:$0xf] %v1489_v42  ;;  %vm883_vm13 = vcmp.ne.s32.totalorder %v665_v40, 0 }
  0xa0   : > { %v3462_v0 = vsel %vm9710_vm2, %v8209_v27, %v8280_v29  ;;  %6423 = vmatprep.mubr.bf16.mxu1 %v2006_v31  ;;  %vm919_vm7 = vcmp.lt.s32.totalorder %v665_v40, 0  ;;  %v991_v62 = vadd.s32 18, %v665_v40  ;;  %v1499_v52 = vsel %vm7680_vm6, %v1490_v56, %v8277_v13 }
  0xa1   : > { %6628 = vmatmul.mubr.bf16.gmra.mrb[8].mxu0 %v3462_v0  ;;  %vm955_vm1 = vmand %vm919_vm7, %vm883_vm13  ;;  %v1026_v10 = vsel %vm954_vm5, %v990_v20, %v654_v15  ;;  %v674_v4 = vshrl.u32 %v8263_v58, 4  ;;  %v6118_v8 = vunpack.c.l.bf16 %v6154_v37  ;;  %1758 = vst [vmem:[#allocation2 + $0x44] sm:$0xf] %v1499_v52  ;;  %v9711_v43 = vmov 0 }
  0xa2   : > { %v1027_v16 = vsel %vm955_vm1, %v991_v62, %v665_v40  ;;  %vm8293_vm12 = vcmp.lt.s32.totalorder %v1026_v10, 16  ;;  %v8298_v27 = vmul.u32.u64.low 3817748708, %v8255_v17  ;;  %v8299_v14 = vmul.u32.u64.high 3817748708, %v8255_v17, %v8298_v27  ;;  %v8330_v62 = vld [vmem:[%s7524_s17 + $0x60] sm:$0xff]  }
  0xa3   : > { %v9712_v43 = vsel %vm8293_vm12, 4294967295, %v9711_v43  ;;  %v2009_v32 = vor.u32 %v2007_v19, %v2005_v22  ;;  %vm8301_vm2 = vcmp.lt.s32.totalorder %v1027_v16, 16  ;;  %v9714_v41 = vmov 0 }
  0xa4   : > { %9713 = vst [vmem:[#allocation13_spill] sm:$0xff] %v9712_v43  ;;  %v9715_v41 = vsel %vm8301_vm2, 4294967295, %v9714_v41  ;;  %v9717_v39 = vmax.f32 %v8177_v53, 0.0  ;;  %v675_v47 = vmul.u32 18, %v674_v4  ;;  %v9718_v24 = vmax.f32 %v8186_v48, 0.0 }
  0xa5   : > { %9716 = vst [vmem:[#allocation14_spill] sm:$0xff] %v9715_v41  ;;  %v1500_v15 = vrot.slane %v8277_v13, 4  ;;  %v9719_v22 = vrot.slane %v7775_v34, 2  ;;  %vm9720_vm7 = vcmask 1045504   ;;  %v3874_v31 = vrot.slane %v7895_v38, 2 }
  0xa6   : > { %v1170_v58 = vsel %vm8293_vm12, %v9717_v39, 0.0  ;;  %v1171_v1 = vsel %vm8301_vm2, %v9718_v24, 0.0  ;;  %v676_v53 = vsub.s32 %v8243_v33, %v675_v47  ;;  %v9721_v42 = vunpack.c.h.bf16 %v8231_v55 }
  0xa7   : > { %v6052_v36 = vpack.c.bf16 %v1170_v58, %v1170_v58  ;;  %v8318_v40 = vsel %vm9720_vm7, %v8258_v21, %v9719_v22  ;;  %v6053_v20 = vpack.c.bf16 %v1171_v1, %v1171_v1  ;;  %v685_v0 = vshrl.u32 %v8299_v14, 4 }
  0xa8   : > { %v339_v48 = vmul.f32 %v8121_v54, %v9721_v42  ;;  %v8327_v13 = vadd.s32 160, %v7513_v9  ;;  %v8333_v10 = vadd.f32 %v8025_v25, %v338_v26  ;;  %v6119_v33 = vunpack.c.h.bf16 %v6154_v37  ;;  %v8335_v27 = vld [vmem:[#allocation2 + $0x40] sm:$0xff]  }
  0xa9   : > { %v1502_v56 = vshrl.u32 %v6052_v36, 16  ;;  %v1505_v19 = vshll.u32 %v6052_v36, 16  ;;  %v1512_v21 = vshrl.u32 %v6053_v20, 16  ;;  %v1515_v52 = vshll.u32 %v6053_v20, 16  ;;  %v8342_v24 = vld [vmem:[#allocation2 + $0x40] sm:$0xff]  }
  0xaa   : > { %v686_v55 = vmul.u32 18, %v685_v0  ;;  %vm884_vm13 = vcmp.ne.s32.totalorder %v676_v53, 0  ;;  %v8338_v14 = vadd.f32 %v8025_v25, %v339_v48  ;;  %v340_v58 = vmul.f32 %v8121_v54, %v6118_v8 }
  0xab   : > { %v1504_v4 = vrot.slane %v1502_v56, 6  ;;  %v1507_v16 = vrot.slane %v1505_v19, 7  ;;  %v1514_v39 = vrot.slane %v1512_v21, 6  ;;  %v341_v47 = vmul.f32 %v8121_v54, %v6119_v33 }
  0xac   : > { %v1517_v26 = vrot.slane %v1515_v52, 7  ;;  %v687_v37 = vsub.s32 %v8255_v17, %v686_v55  ;;  %vm920_vm15 = vcmp.lt.s32.totalorder %v676_v53, 0  ;;  %v2011_v36 = vshll.u32 %v8335_v27, 16 }
  0xad   : > { %v1508_v1 = vor.u32 %v1507_v16, %v1504_v4  ;;  %v2015_v22 = vshrl.u32 %v8335_v27, 16  ;;  %vm8347_vm5 = vmand %vm920_vm15, %vm884_vm13  ;;  %v992_v42 = vadd.s32 18, %v676_v53  ;;  %v6122_v8 = vunpack.c.l.bf16 %v8330_v62 }
  0xae   : > { %v3464_v48 = vshrl.u32 %v8342_v24, 16  ;;  %v3467_v56 = vshll.u32 %v8342_v24, 16  ;;  %v2013_v0 = vrot.slane %v2011_v36, 1  ;;  %v1518_v21 = vor.u32 %v1517_v26, %v1514_v39 }
  0xaf   : > { %v1509_v19 = vsel %vm7680_vm6, %v1500_v15, %v1508_v1  ;;  %v1510_v17 = vrot.slane %v1508_v1, 4  ;;  %vm885_vm1 = vcmp.ne.s32.totalorder %v687_v37, 0  ;;  %vm921_vm7 = vcmp.lt.s32.totalorder %v687_v37, 0 }
  0xb0   : > { %1759 = vst [vmem:[#allocation2 + $0x48] sm:$0xf] %v1509_v19  ;;  %v3466_v52 = vrot.slane %v3464_v48, 1  ;;  %v3469_v33 = vrot.slane %v3467_v56, 2  ;;  %vm957_vm13 = vmand %vm921_vm7, %vm885_vm1  ;;  %v993_v4 = vadd.s32 18, %v687_v37  ;;  %v1028_v16 = vsel %vm8347_vm5, %v992_v42, %v676_v53 }
  0xb1   : > { %vm9724_vm15 = vsmask.f32 7424  ;;  %v1519_v27 = vsel %vm7680_vm6, %v1510_v17, %v1518_v21  ;;  %vm8361_vm2 = vcmp.lt.s32.totalorder %v1028_v16, 16  ;;  %v9725_v15 = vmov 0 }
  0xb2   : > { %v2014_v55 = vsel %vm9724_vm15, %v2009_v32, %v2013_v0  ;;  %v9726_v15 = vsel %vm8361_vm2, 4294967295, %v9725_v15  ;;  %v8366_v1 = vor.u32 %v3469_v33, %v3466_v52  ;;  %1760 = vst [vmem:[#allocation2 + $0x4c] sm:$0xf] %v1519_v27  ;;  %v1029_v26 = vsel %vm957_vm13, %v993_v4, %v687_v37 }
  0xb3   : > { %9727 = vst [vmem:[#allocation15_spill] sm:$0xff] %v9726_v15  ;;  %6424 = vmatmul.mubr.bf16.gmra.mrb[12].mxu1 %v2014_v55  ;;  %v9728_v36 = vmax.f32 %v8207_v57, 0.0  ;;  %v1520_v32 = vrot.slane %v1518_v21, 4  ;;  %vm8372_vm5 = vcmp.lt.s32.totalorder %v1029_v26, 16  ;;  %v9729_v20 = vmov 0 }
  0xb4   : > { %v9730_v20 = vsel %vm8372_vm5, 4294967295, %v9729_v20  ;;  %v455_v56 = vadd.s32 168, %v7513_v9  ;;  %vm9732_vm1 = vsmask.f32 6400  ;;  %v9733_v37 = vmax.f32 %v8216_v23, 0.0 }
  0xb5   : > { %v1172_v53 = vsel %vm8361_vm2, %v9728_v36, 0.0  ;;  %9731 = vst [vmem:[#allocation16_spill] sm:$0xff] %v9730_v20  ;;  %v3471_v19 = vsel %vm9732_vm1, %v8280_v29, %v8366_v1  ;;  %v8386_v17 = vmul.u32.u64.low 3817748708, %v8327_v13  ;;  %v8387_v21 = vmul.u32.u64.high 3817748708, %v8327_v13, %v8386_v17 }
  0xb6   : > { %v6054_v42 = vpack.c.bf16 %v1172_v53, %v1172_v53  ;;  %v1173_v57 = vsel %vm8372_vm5, %v9733_v37, 0.0  ;;  %6631 = vmatprep.mubr.bf16.mxu0 %v3471_v19  ;;  %v8390_v16 = vadd.f32 %v8025_v25, %v340_v58  ;;  %v8396_v29 = vadd.f32 %v8025_v25, %v341_v47  ;;  %v7318_v47 = vld [vmem:[%s9578_s3 + $0x80] sm:$0xff]  }
  0xb7   : > { %v6055_v52 = vpack.c.bf16 %v1173_v57, %v1173_v57  ;;  %v8392_v55 = vmul.u32.u64.low 3817748708, %v455_v56  ;;  %v8393_v27 = vmul.u32.u64.high 3817748708, %v455_v56, %v8392_v55  ;;  %v6123_v23 = vunpack.c.h.bf16 %v8330_v62  ;;  %6499 = vmatprep.subr.bf16.mxu1 %v7318_v47 }
  0xb8   : > { %v1522_v33 = vshrl.u32 %v6054_v42, 16  ;;  %v1525_v4 = vshll.u32 %v6054_v42, 16  ;;  %v696_v19 = vshrl.u32 %v8387_v21, 4  ;;  %v8403_v58 = vadd.s32 176, %v7513_v9 }
  0xb9   : > { %v1532_v53 = vshrl.u32 %v6055_v52, 16  ;;  %v1535_v37 = vshll.u32 %v6055_v52, 16  ;;  %v8408_v17 = vld [vmem:[#allocation2 + $0x48] sm:$0xff]   ;;  %v2017_v62 = vor.u32 %v2015_v22, %v2013_v0  ;;  %v9734_v21 = vrot.slane %v7775_v34, 2 }
  0xba   : > { %v1524_v26 = vrot.slane %v1522_v33, 6  ;;  %v1527_v36 = vrot.slane %v1525_v4, 7  ;;  %vm9735_vm7 = vcmask 1045504   ;;  %v7296_v55 = vld [vmem:[#allocation2 + $0x48] sm:$0xff]   ;;  %v697_v57 = vmul.u32 18, %v696_v19 }
  0xbb   : > { %v1534_v4 = vrot.slane %v1532_v53, 6  ;;  %v8415_v52 = vsel %vm9735_vm7, %v9734_v21, %v3874_v31  ;;  %v1537_v42 = vrot.slane %v1535_v37, 7  ;;  %v707_v48 = vshrl.u32 %v8393_v27, 4 }
  0xbc   : > { %v1528_v33 = vor.u32 %v1527_v36, %v1524_v26  ;;  %v342_v39 = vmul.f32 %v8121_v54, %v6122_v8  ;;  %v3473_v20 = vshrl.u32 %v8408_v17, 16  ;;  %v3476_v22 = vshll.u32 %v8408_v17, 16 }
  0xbd   : > { %v2019_v34 = vshll.u32 %v7296_v55, 16  ;;  %v8423_v36 = vor.u32 %v1537_v42, %v1534_v4  ;;  %v698_v53 = vsub.s32 %v8327_v13, %v697_v57  ;;  %v343_v37 = vmul.f32 %v8121_v54, %v6123_v23 }
  0xbe   : > { %v1529_v0 = vsel %vm7680_vm6, %v1520_v32, %v1528_v33  ;;  %v1530_v26 = vrot.slane %v1528_v33, 4  ;;  %v3475_v27 = vrot.slane %v3473_v20, 1  ;;  %v3478_v19 = vrot.slane %v3476_v22, 2 }
  0xbf   : > { %1761 = vst [vmem:[#allocation2 + $0x50] sm:$0xf] %v1529_v0  ;;  %v708_v8 = vmul.u32 18, %v707_v48  ;;  %v8428_v47 = vadd.s32 184, %v7513_v9  ;;  %v2021_v21 = vrot.slane %v2019_v34, 1  ;;  %vm886_vm13 = vcmp.ne.s32.totalorder %v698_v53, 0 }
  0xc0   : > { %v1539_v32 = vsel %vm7680_vm6, %v1530_v26, %v8423_v36  ;;  %vm922_vm15 = vcmp.lt.s32.totalorder %v698_v53, 0  ;;  %v8433_v42 = vor.u32 %v3478_v19, %v3475_v27  ;;  %v2023_v33 = vshrl.u32 %v7296_v55, 16 }
  0xc1   : > { %1762 = vst [vmem:[#allocation2 + $0x54] sm:$0xf] %v1539_v32  ;;  %v709_v13 = vsub.s32 %v455_v56, %v708_v8  ;;  %vm8435_vm1 = vmand %vm922_vm15, %vm886_vm13  ;;  %v994_v20 = vadd.s32 18, %v698_v53  ;;  %vm9738_vm7 = vsmask.f32 7424  ;;  %v3876_v22 = vrot.slane %v7987_v60, 2 }
  0xc2   : > { %v2022_v48 = vsel %vm9738_vm7, %v2017_v62, %v2021_v21  ;;  %v8441_v57 = vmul.u32.u64.low 3817748708, %v8403_v58  ;;  %v8442_v4 = vmul.u32.u64.high 3817748708, %v8403_v58, %v8441_v57  ;;  %vm9739_vm5 = vsmask.f32 6400 }
  0xc3   : > { %v3480_v0 = vsel %vm9739_vm5, %v8366_v1, %v8433_v42  ;;  %6427 = vmatprep.mubr.bf16.mxu1 %v2022_v48  ;;  %vm887_vm2 = vcmp.ne.s32.totalorder %v709_v13, 0  ;;  %vm923_vm12 = vcmp.lt.s32.totalorder %v709_v13, 0  ;;  %v995_v56 = vadd.s32 18, %v709_v13 }
  0xc4   : > { %6632 = vmatmul.mubr.bf16.gmra.mrb[12].mxu0 %v3480_v0  ;;  %vm959_vm13 = vmand %vm923_vm12, %vm887_vm2  ;;  %v1030_v55 = vsel %vm8435_vm1, %v994_v20, %v698_v53  ;;  %v1540_v62 = vrot.slane %v8423_v36, 4  ;;  %v8452_v26 = vmul.u32.u64.low 3817748708, %v8428_v47  ;;  %v8453_v34 = vmul.u32.u64.high 3817748708, %v8428_v47, %v8452_v26 }
  0xc5   : > { %6671 = vmatprep.mubr.bf16.mxu0 %v8318_v40  ;;  %v1031_v60 = vsel %vm959_vm13, %v995_v56, %v709_v13  ;;  %vm8456_vm15 = vcmp.lt.s32.totalorder %v1030_v55, 16  ;;  %v9740_v1 = vmov 0  ;;  %v3878_v27 = vrot.slane %v8074_v3, 2  ;;  %v7307_v26 = vld [vmem:[%s9578_s3 + $0x188] sm:$0xff]  }
  0xc6   : > { %v9741_v1 = vsel %vm8456_vm15, 4294967295, %v9740_v1  ;;  %v8462_v19 = vadd.f32 %v8025_v25, %v342_v39  ;;  %vm8464_vm12 = vcmp.lt.s32.totalorder %v1031_v60, 16  ;;  %v9743_v53 = vmov 0 }
  0xc7   : > { %9742 = vst [vmem:[#allocation17_spill] sm:$0xff] %v9741_v1  ;;  %v9744_v53 = vsel %vm8464_vm12, 4294967295, %v9743_v53  ;;  %v9746_v36 = vmax.f32 %v8333_v10, 0.0  ;;  %v718_v40 = vshrl.u32 %v8442_v4, 4  ;;  %v8474_v32 = vadd.f32 %v8025_v25, %v343_v37 }
  0xc8   : > { %9745 = vst [vmem:[#allocation18_spill] sm:$0xff] %v9744_v53  ;;  %v2025_v13 = vor.u32 %v2023_v33, %v2021_v21  ;;  %v9747_v23 = vmax.f32 %v8338_v14, 0.0  ;;  %vm9748_vm2 = vcmask 1045504   ;;  %v7298_v10 = vld [vmem:[#allocation2 + $0x50] sm:$0xff]   ;;  %v729_v56 = vshrl.u32 %v8453_v34, 4 }
  0xc9   : > { %v1174_v8 = vsel %vm8456_vm15, %v9746_v36, 0.0  ;;  %v3877_v48 = vsel %vm9748_vm2, %v3874_v31, %v3876_v22  ;;  %v719_v0 = vmul.u32 18, %v718_v40  ;;  %vm9749_vm5 = vmmov %vm9748_vm2  ;;  %v421_v14 = vmax.f32 %v8462_v19, 0.0  ;;  %v7333_v19 = vld [vmem:[%s9578_s3 + $0x1b8] sm:$0xff]  }
  0xca   : > { %v1175_v39 = vsel %vm8464_vm12, %v9747_v23, 0.0  ;;  %v6056_v20 = vpack.c.bf16 %v1174_v8, %v1174_v8  ;;  %v3879_v25 = vsel %vm9749_vm5, %v3876_v22, %v3878_v27  ;;  %v422_v33 = vmax.f32 %v8474_v32, 0.0 }
  0xcb   : > { %v6057_v57 = vpack.c.bf16 %v1175_v39, %v1175_v39  ;;  %v2027_v4 = vshll.u32 %v7298_v10, 16  ;;  %v8490_v31 = vadd.s32 192, %v7513_v9  ;;  %v720_v22 = vsub.s32 %v8403_v58, %v719_v0 }
  0xcc   : > { %v1542_v37 = vshrl.u32 %v6056_v20, 16  ;;  %v1545_v21 = vshll.u32 %v6056_v20, 16  ;;  %v730_v36 = vmul.u32 18, %v729_v56  ;;  %6672 = vmatmul.mubr.bf16.vlgmr.msra.gmra.mrb[0].mxu0 %v8415_v52  ;;  %v8498_v39 = vadd.s32 200, %v7513_v9 }
  0xcd   : > { %v1552_v55 = vshrl.u32 %v6057_v57, 16  ;;  %v1555_v38 = vshll.u32 %v6057_v57, 16  ;;  %v2029_v8 = vrot.slane %v2027_v4, 1  ;;  %vm888_vm1 = vcmp.ne.s32.totalorder %v720_v22, 0  ;;  %6708 = vmatpush3.bf16.msra.mxu0 %v8145_v46  ;;  %6675 = vmatprep.mubr.bf16.mxu0 %v3877_v48 }
  0xce   : > { %v1544_v34 = vrot.slane %v1542_v37, 6  ;;  %v1547_v60 = vrot.slane %v1545_v21, 7  ;;  %v731_v57 = vsub.s32 %v8428_v47, %v730_v36  ;;  %vm924_vm7 = vcmp.lt.s32.totalorder %v720_v22, 0  ;;  %v6156_v37 = vld [vmem:[%s7524_s17 + $0x68] sm:$0xff]   ;;  %6709 = vmatprep.subr.bf16.mxu0 %v7307_v26  ;;  %v7311_v47 = vld [vmem:[%s9578_s3 + $0x190] sm:$0xff]  }
  0xcf   : > { %v1554_v40 = vrot.slane %v1552_v55, 6  ;;  %v1557_v23 = vrot.slane %v1555_v38, 7  ;;  %vm9750_vm13 = vsmask.f32 7424  ;;  %v2031_v56 = vshrl.u32 %v7298_v10, 16  ;;  %vm8506_vm2 = vmand %vm924_vm7, %vm888_vm1 }
  0xd0   : > { %v1548_v20 = vor.u32 %v1547_v60, %v1544_v34  ;;  %v2030_v58 = vsel %vm9750_vm13, %v2025_v13, %v2029_v8  ;;  %v996_v21 = vadd.s32 18, %v720_v22  ;;  %vm889_vm5 = vcmp.ne.s32.totalorder %v731_v57, 0 }
  0xd1   : > { %v8504_v0 = vor.u32 %v1557_v23, %v1554_v40  ;;  %6428 = vmatmul.mubr.bf16.gmra.mrb[16].mxu1 %v2030_v58  ;;  %vm925_vm13 = vcmp.lt.s32.totalorder %v731_v57, 0  ;;  %v997_v10 = vadd.s32 18, %v731_v57  ;;  %v6126_v55 = vunpack.c.l.bf16 %v6156_v37  ;;  %6710 = vmatpush3.bf16.msra.mxu0 %v7307_v26  ;;  %v7316_v58 = vld [vmem:[%s9578_s3 + $0x198] sm:$0xff]  }
  0xd2   : > { %v1549_v46 = vsel %vm7680_vm6, %v1540_v62, %v1548_v20  ;;  %v1550_v48 = vrot.slane %v1548_v20, 4  ;;  %vm8515_vm12 = vmand %vm925_vm13, %vm889_vm5  ;;  %v1032_v4 = vsel %vm8506_vm2, %v996_v21, %v720_v22  ;;  %v6127_v38 = vunpack.c.h.bf16 %v6156_v37  ;;  %6711 = vmatprep.subr.bf16.mxu0 %v7311_v47 }
  0xd3   : > { %1763 = vst [vmem:[#allocation2 + $0x58] sm:$0xf] %v1549_v46  ;;  %vm8524_vm1 = vcmp.lt.s32.totalorder %v1032_v4, 16  ;;  %v9755_v62 = vmov 0  ;;  %v8529_v60 = vmul.u32.u64.low 3817748708, %v8490_v31  ;;  %v8530_v36 = vmul.u32.u64.high 3817748708, %v8490_v31, %v8529_v60 }
  0xd4   : > { %v1559_v34 = vsel %vm7680_vm6, %v1550_v48, %v8504_v0  ;;  %v9756_v62 = vsel %vm8524_vm1, 4294967295, %v9755_v62  ;;  %v1033_v40 = vsel %vm8515_vm12, %v997_v10, %v731_v57  ;;  %v9758_v22 = vmax.f32 %v8390_v16, 0.0  ;;  %6676 = vmatmul.mubr.bf16.gmra.mrb[4].mxu0 %v3879_v25 }
  0xd5   : > { %9757 = vst [vmem:[#allocation19_spill] sm:$0xff] %v9756_v62  ;;  %1764 = vst [vmem:[#allocation2 + $0x5c] sm:$0xf] %v1559_v34  ;;  %v8539_v20 = vmul.u32.u64.low 3817748708, %v8498_v39  ;;  %v8540_v37 = vmul.u32.u64.high 3817748708, %v8498_v39, %v8539_v20  ;;  %v8545_v52 = vor.u32 %v2031_v56, %v2029_v8  ;;  %vm8547_vm7 = vcmp.lt.s32.totalorder %v1033_v40, 16  ;;  %6712 = vmatpush3.bf16.msra.mxu0 %v7311_v47 }
  0xd6   : > { %v1176_v23 = vsel %vm8524_vm1, %v9758_v22, 0.0  ;;  %v9759_v26 = vmov 0  ;;  %v1560_v16 = vrot.slane %v8504_v0, 4  ;;  %v9762_v21 = vmax.f32 %v8396_v29, 0.0  ;;  %6713 = vmatprep.subr.bf16.mxu0 %v7316_v58  ;;  %v8576_v22 = vld [vmem:[%s9577_s2] ss:$0 sm:$0xff] }
  0xd7   : > { %v9760_v26 = vsel %vm8547_vm7, 4294967295, %v9759_v26  ;;  %v6058_v57 = vpack.c.bf16 %v1176_v23, %v1176_v23  ;;  %v344_v48 = vmul.f32 %v8121_v54, %v6126_v55  ;;  %v345_v13 = vmul.f32 %v8121_v54, %v6127_v38 }
  0xd8   : > { %9761 = vst [vmem:[#allocation20_spill] sm:$0xff] %v9760_v26  ;;  %v1177_v46 = vsel %vm8547_vm7, %v9762_v21, 0.0  ;;  %v3880_v8 = vrot.slane %v8191_v11, 2  ;;  %v740_v34 = vshrl.u32 %v8530_v36, 4  ;;  %v751_v0 = vshrl.u32 %v8540_v37, 4  ;;  %v7321_v11 = vld [vmem:[%s9578_s3 + $0x1a0] sm:$0xff]  }
  0xd9   : > { %v6059_v56 = vpack.c.bf16 %v1177_v46, %v1177_v46  ;;  %v1562_v10 = vshrl.u32 %v6058_v57, 16  ;;  %v1565_v4 = vshll.u32 %v6058_v57, 16  ;;  %v8562_v29 = vadd.s32 208, %v7513_v9  ;;  %6714 = vmatpush3.bf16.msra.mxu0 %v7316_v58 }
  0xda   : > { %v8565_v60 = vadd.s32 216, %v7513_v9  ;;  %vm9763_vm12 = vcmask 1045504   ;;  %v741_v36 = vmul.u32 18, %v740_v34  ;;  %v752_v40 = vmul.u32 18, %v751_v0  ;;  %6715 = vmatprep.subr.bf16.mxu0 %v7321_v11 }
  0xdb   : > { %v3881_v54 = vsel %vm9763_vm12, %v3878_v27, %v3880_v8  ;;  %v1564_v25 = vrot.slane %v1562_v10, 6  ;;  %v1567_v55 = vrot.slane %v1565_v4, 7  ;;  %v1572_v47 = vshrl.u32 %v6059_v56, 16 }
  0xdc   : > { %v1575_v38 = vshll.u32 %v6059_v56, 16  ;;  %6679 = vmatprep.mubr.bf16.mxu0 %v3881_v54  ;;  %v8579_v3 = vadd.f32 %v8576_v22, %v344_v48  ;;  %v8582_v27 = vadd.f32 %v8576_v22, %v345_v13  ;;  %v8584_v23 = vld [vmem:[#allocation2 + $0x58] sm:$0xff]   ;;  %v9604_v21 = vrot.slane %v8266_v30, 2  ;;  %v7325_v13 = vld [vmem:[%s9578_s3 + $0x1a8] sm:$0xff]  }
  0xdd   : > { %v1568_v20 = vor.u32 %v1567_v55, %v1564_v25  ;;  %v1574_v37 = vrot.slane %v1572_v47, 6  ;;  %v742_v46 = vsub.s32 %v8490_v31, %v741_v36  ;;  %v753_v56 = vsub.s32 %v8498_v39, %v752_v40  ;;  %v6157_v31 = vld [vmem:[%s7524_s17 + $0x70] sm:$0xff]   ;;  %6716 = vmatpush3.bf16.msra.mxu0 %v7321_v11 }
  0xde   : > { %v1577_v57 = vrot.slane %v1575_v38, 7  ;;  %v8590_v10 = vmul.u32.u64.low 3817748708, %v8562_v29  ;;  %v8591_v48 = vmul.u32.u64.high 3817748708, %v8562_v29, %v8590_v10  ;;  %v2035_v4 = vshll.u32 %v8584_v23, 16  ;;  %6717 = vmatprep.subr.bf16.mxu0 %v7325_v13 }
  0xdf   : > { %v1569_v34 = vsel %vm7680_vm6, %v1560_v16, %v1568_v20  ;;  %v1570_v0 = vrot.slane %v1568_v20, 4  ;;  %vm890_vm2 = vcmp.ne.s32.totalorder %v742_v46, 0  ;;  %vm891_vm5 = vcmp.ne.s32.totalorder %v753_v56, 0 }
  0xe0   : > { %v8599_v58 = vor.u32 %v1577_v57, %v1574_v37  ;;  %1765 = vst [vmem:[#allocation2 + $0x60] sm:$0xf] %v1569_v34  ;;  %vm926_vm13 = vcmp.lt.s32.totalorder %v742_v46, 0  ;;  %v2037_v54 = vrot.slane %v2035_v4, 1  ;;  %vm927_vm12 = vcmp.lt.s32.totalorder %v753_v56, 0  ;;  %v7329_v37 = vld [vmem:[%s9578_s3 + $0x1b0] sm:$0xff]  }
  0xe1   : > { %vm8606_vm7 = vmand %vm926_vm13, %vm890_vm2  ;;  %v998_v16 = vadd.s32 18, %v742_v46  ;;  %v999_v38 = vadd.s32 18, %v753_v56  ;;  %v762_v40 = vshrl.u32 %v8591_v48, 4  ;;  %vm9768_vm1 = vcmask 1045504   ;;  %6718 = vmatpush3.bf16.msra.mxu0 %v7325_v13  ;;  %v8657_v13 = vld [vmem:[%s9576_s1] ss:$0 sm:$0xff] }
  0xe2   : > { %v1579_v25 = vsel %vm7680_vm6, %v1570_v0, %v8599_v58  ;;  %vm8610_vm15 = vmand %vm927_vm12, %vm891_vm5  ;;  %v3883_v20 = vsel %vm9768_vm1, %v3880_v8, %v9604_v21  ;;  %vm9769_vm2 = vsmask.f32 7424  ;;  %v2039_v57 = vshrl.u32 %v8584_v23, 16  ;;  %6719 = vmatprep.subr.bf16.mxu0 %v7329_v37 }
  0xe3   : > { %1766 = vst [vmem:[#allocation2 + $0x64] sm:$0xf] %v1579_v25  ;;  %v2038_v11 = vsel %vm9769_vm2, %v8545_v52, %v2037_v54  ;;  %v1034_v10 = vsel %vm8606_vm7, %v998_v16, %v742_v46  ;;  %6680 = vmatmul.mubr.bf16.gmra.mrb[8].mxu0 %v3883_v20  ;;  %v6130_v4 = vunpack.c.l.bf16 %v6157_v31  ;;  %v1035_v48 = vsel %vm8610_vm15, %v999_v38, %v753_v56  ;;  %v8667_v38 = vld [vmem:[%s9578_s3 + $0x1c0] sm:$0xff]  }
  0xe4   : > { %6431 = vmatprep.mubr.bf16.mxu1 %v2038_v11  ;;  %vm8629_vm1 = vcmp.lt.s32.totalorder %v1034_v10, 16  ;;  %v9770_v8 = vmov 0  ;;  %v763_v34 = vmul.u32 18, %v762_v40  ;;  %v6131_v0 = vunpack.c.h.bf16 %v6157_v31 }
  0xe5   : > { %v9771_v8 = vsel %vm8629_vm1, 4294967295, %v9770_v8  ;;  %vm8633_vm5 = vcmp.lt.s32.totalorder %v1035_v48, 16  ;;  %v9773_v25 = vmov 0  ;;  %v1178_v52 = vsel %vm8629_vm1, %v421_v14, 0.0  ;;  %6720 = vmatpush3.bf16.msra.mxu0 %v7329_v37 }
  0xe6   : > { %9772 = vst [vmem:[#allocation21_spill] sm:$0xff] %v9771_v8  ;;  %v9774_v25 = vsel %vm8633_vm5, 4294967295, %v9773_v25  ;;  %v8642_v23 = vmul.u32.u64.low 3817748708, %v8565_v60  ;;  %v8643_v46 = vmul.u32.u64.high 3817748708, %v8565_v60, %v8642_v23  ;;  %v1179_v56 = vsel %vm8633_vm5, %v422_v33, 0.0  ;;  %6721 = vmatprep.subr.bf16.mxu0 %v7333_v19 }
  0xe7   : > { %9775 = vst [vmem:[#allocation22_spill] sm:$0xff] %v9774_v25  ;;  %v6060_v31 = vpack.c.bf16 %v1178_v52, %v1178_v52  ;;  %v1580_v55 = vrot.slane %v8599_v58, 4  ;;  %v764_v16 = vsub.s32 %v8562_v29, %v763_v34  ;;  %v6061_v14 = vpack.c.bf16 %v1179_v56, %v1179_v56 }
  0xe8   : > { %v346_v32 = vmul.f32 %v8657_v13, %v6130_v4  ;;  %v347_v33 = vmul.f32 %v8657_v13, %v6131_v0  ;;  %v8662_v47 = vadd.s32 224, %v7513_v9  ;;  %v2041_v20 = vor.u32 %v2039_v57, %v2037_v54 }
  0xe9   : > { %v1582_v58 = vshrl.u32 %v6060_v31, 16  ;;  %v1585_v29 = vshll.u32 %v6060_v31, 16  ;;  %vm892_vm15 = vcmp.ne.s32.totalorder %v764_v16, 0  ;;  %vm928_vm7 = vcmp.lt.s32.totalorder %v764_v16, 0  ;;  %6722 = vmatpush3.bf16.msra.mxu0 %v7333_v19 }
  0xea   : > { %v8669_v40 = vld [vmem:[#allocation2 + $0x60] sm:$0xff]   ;;  %v1592_v11 = vshrl.u32 %v6061_v14, 16  ;;  %v1595_v10 = vshll.u32 %v6061_v14, 16  ;;  %v773_v4 = vshrl.u32 %v8643_v46, 4  ;;  %vm8672_vm13 = vmand %vm928_vm7, %vm892_vm15  ;;  %v1000_v52 = vadd.s32 18, %v764_v16  ;;  %6759 = vmatprep.subr.bf16.mxu0 %v8667_v38 }
  0xeb   : > { %v1584_v34 = vrot.slane %v1582_v58, 6  ;;  %v1587_v0 = vrot.slane %v1585_v29, 7  ;;  %v8677_v23 = vadd.s32 232, %v7513_v9  ;;  %v2043_v56 = vshll.u32 %v8669_v40, 16 }
  0xec   : > { %v1594_v31 = vrot.slane %v1592_v11, 6  ;;  %v1597_v54 = vrot.slane %v1595_v10, 7  ;;  %v8681_v57 = vadd.f32 %v8576_v22, %v346_v32  ;;  %v774_v14 = vmul.u32 18, %v773_v4 }
  0xed   : > { %v1588_v46 = vor.u32 %v1587_v0, %v1584_v34  ;;  %v1036_v21 = vsel %vm8672_vm13, %v1000_v52, %v764_v16  ;;  %v8686_v37 = vadd.f32 %v8576_v22, %v347_v33  ;;  %v2045_v58 = vrot.slane %v2043_v56, 1  ;;  %v6158_v34 = vld [vmem:[%s7524_s17 + $0x78] sm:$0xff]  }
  0xee   : > { %v1598_v29 = vor.u32 %v1597_v54, %v1594_v31  ;;  %v2047_v36 = vshrl.u32 %v8669_v40, 16  ;;  %vm8689_vm12 = vcmp.lt.s32.totalorder %v1036_v21, 16  ;;  %v9778_v39 = vmov 0 }
  0xef   : > { %v9779_v39 = vsel %vm8689_vm12, 4294967295, %v9778_v39  ;;  %v1589_v32 = vsel %vm7680_vm6, %v1580_v55, %v1588_v46  ;;  %v1590_v11 = vrot.slane %v1588_v46, 4  ;;  %v775_v10 = vsub.s32 %v8565_v60, %v774_v14 }
  0xf0   : > { %9780 = vst [vmem:[#allocation23_spill] sm:$0xff] %v9779_v39  ;;  %v9781_v16 = vmax.f32 %v8579_v3, 0.0  ;;  %v2046_v4 = vsel %vm9769_vm2, %v2041_v20, %v2045_v58  ;;  %1767 = vst [vmem:[#allocation2 + $0x68] sm:$0xf] %v1589_v32  ;;  %v1600_v48 = vrot.slane %v1598_v29, 4  ;;  %v6134_v46 = vunpack.c.l.bf16 %v6158_v34 }
  0xf1   : > { %6432 = vmatmul.mubr.bf16.gmra.mrb[20].mxu1 %v2046_v4  ;;  %v1599_v55 = vsel %vm7680_vm6, %v1590_v11, %v1598_v29  ;;  %vm893_vm15 = vcmp.ne.s32.totalorder %v775_v10, 0  ;;  %vm929_vm7 = vcmp.lt.s32.totalorder %v775_v10, 0  ;;  %v1001_v60 = vadd.s32 18, %v775_v10 }
  0xf2   : > { %v1180_v33 = vsel %vm8689_vm12, %v9781_v16, 0.0  ;;  %1768 = vst [vmem:[#allocation2 + $0x6c] sm:$0xf] %v1599_v55  ;;  %vm965_vm13 = vmand %vm929_vm7, %vm893_vm15  ;;  %v8707_v52 = vmul.u32.u64.low 3817748708, %v8662_v47  ;;  %v8708_v20 = vmul.u32.u64.high 3817748708, %v8662_v47, %v8707_v52  ;;  %v9782_v14 = vmov 0 }
  0xf3   : > { %v6062_v21 = vpack.c.bf16 %v1180_v33, %v1180_v33  ;;  %v1037_v56 = vsel %vm965_vm13, %v1001_v60, %v775_v10  ;;  %v8711_v31 = vmul.u32.u64.low 3817748708, %v8677_v23  ;;  %v8712_v54 = vmul.u32.u64.high 3817748708, %v8677_v23, %v8711_v31 }
  0xf4   : > { %vm8714_vm2 = vcmp.lt.s32.totalorder %v1037_v56, 16  ;;  %v6135_v11 = vunpack.c.h.bf16 %v6158_v34  ;;  %v9785_v16 = vmax.f32 %v8582_v27, 0.0  ;;  %v426_v4 = vmax.f32 %v8686_v37, 0.0 }
  0xf5   : > { %v1602_v3 = vshrl.u32 %v6062_v21, 16  ;;  %v1605_v0 = vshll.u32 %v6062_v21, 16  ;;  %v9783_v14 = vsel %vm8714_vm2, 4294967295, %v9782_v14  ;;  %v348_v10 = vmul.f32 %v8657_v13, %v6134_v46 }
  0xf6   : > { %9784 = vst [vmem:[#allocation24_spill] sm:$0xff] %v9783_v14  ;;  %v1181_v33 = vsel %vm8714_vm2, %v9785_v16, 0.0  ;;  %v464_v21 = vadd.s32 240, %v7513_v9  ;;  %v784_v52 = vshrl.u32 %v8708_v20, 4  ;;  %v465_v56 = vadd.s32 248, %v7513_v9 }
  0xf7   : > { %v1604_v29 = vrot.slane %v1602_v3, 6  ;;  %v1607_v32 = vrot.slane %v1605_v0, 7  ;;  %v6063_v55 = vpack.c.bf16 %v1181_v33, %v1181_v33  ;;  %v795_v3 = vshrl.u32 %v8712_v54, 4 }
  0xf8   : > { %v349_v34 = vmul.f32 %v8657_v13, %v6135_v11  ;;  %v8729_v27 = vmul.u32.u64.low 3817748708, %v464_v21  ;;  %v8730_v0 = vmul.u32.u64.high 3817748708, %v464_v21, %v8729_v27  ;;  %v2049_v31 = vor.u32 %v2047_v36, %v2045_v58 }
  0xf9   : > { %v1608_v60 = vor.u32 %v1607_v32, %v1604_v29  ;;  %v1612_v46 = vshrl.u32 %v6063_v55, 16  ;;  %v1615_v16 = vshll.u32 %v6063_v55, 16  ;;  %v8734_v19 = vld [vmem:[#allocation2 + $0x68] sm:$0xff]   ;;  %v785_v20 = vmul.u32 18, %v784_v52 }
  0xfa   : > { %v796_v32 = vmul.u32 18, %v795_v3  ;;  %v8737_v33 = vadd.f32 %v8576_v22, %v348_v10  ;;  %v8739_v25 = vmul.u32.u64.low 3817748708, %v465_v56  ;;  %v8740_v14 = vmul.u32.u64.high 3817748708, %v465_v56, %v8739_v25 }
  0xfb   : > { %v1609_v37 = vsel %vm7680_vm6, %v1600_v48, %v1608_v60  ;;  %v1610_v29 = vrot.slane %v1608_v60, 4  ;;  %v1614_v54 = vrot.slane %v1612_v46, 6  ;;  %v1617_v11 = vrot.slane %v1615_v16, 7 }
  0xfc   : > { %1769 = vst [vmem:[#allocation2 + $0x70] sm:$0xf] %v1609_v37  ;;  %v2051_v36 = vshll.u32 %v8734_v19, 16  ;;  %v786_v58 = vsub.s32 %v8662_v47, %v785_v20  ;;  %v797_v48 = vsub.s32 %v8677_v23, %v796_v32  ;;  %v8746_v55 = vadd.f32 %v8576_v22, %v349_v34 }
  0xfd   : > { %v8748_v60 = vor.u32 %v1617_v11, %v1614_v54  ;;  %v2055_v52 = vshrl.u32 %v8734_v19, 16  ;;  %v806_v10 = vshrl.u32 %v8730_v0, 4  ;;  %v3884_v3 = vrot.slane %v8342_v24, 2 }
  0xfe   : > { %v2053_v27 = vrot.slane %v2051_v36, 1  ;;  %vm894_vm15 = vcmp.ne.s32.totalorder %v786_v58, 0  ;;  %vm895_vm7 = vcmp.ne.s32.totalorder %v797_v48, 0  ;;  %vm930_vm13 = vcmp.lt.s32.totalorder %v786_v58, 0 }
  0xff   : > { %v1619_v25 = vsel %vm7680_vm6, %v1610_v29, %v8748_v60  ;;  %vm931_vm5 = vcmp.lt.s32.totalorder %v797_v48, 0  ;;  %vm966_vm2 = vmand %vm930_vm13, %vm894_vm15  ;;  %v1002_v47 = vadd.s32 18, %v786_v58  ;;  %v1003_v23 = vadd.s32 18, %v797_v48 }
 0x100   : > { %vm9786_vm1 = vsmask.f32 7424  ;;  %1770 = vst [vmem:[#allocation2 + $0x74] sm:$0xf] %v1619_v25  ;;  %vm967_vm12 = vmand %vm931_vm5, %vm895_vm7  ;;  %v427_v0 = vmax.f32 %v8737_v33, 0.0  ;;  %v428_v24 = vmax.f32 %v8746_v55, 0.0  ;;  %v2057_v36 = vor.u32 %v2055_v52, %v2053_v27 }
 0x101   : > { %v2054_v34 = vsel %vm9786_vm1, %v2049_v31, %v2053_v27  ;;  %v807_v37 = vmul.u32 18, %v806_v10  ;;  %v1038_v46 = vsel %vm966_vm2, %v1002_v47, %v786_v58  ;;  %v1039_v16 = vsel %vm967_vm12, %v1003_v23, %v797_v48 }
 0x102   : > { %6435 = vmatprep.mubr.bf16.mxu1 %v2054_v34  ;;  %v817_v20 = vshrl.u32 %v8740_v14, 4  ;;  %v9787_v29 = vrot.slane %v8266_v30, 2  ;;  %vm9788_vm8 = vcmask 1045504   ;;  %vm8763_vm15 = vcmp.lt.s32.totalorder %v1038_v46, 16 }
 0x103   : > { %v9789_v54 = vmov 0  ;;  %vm8767_vm1 = vcmp.lt.s32.totalorder %v1039_v16, 16  ;;  %v9792_v31 = vmov 0  ;;  %v808_v33 = vsub.s32 %v464_v21, %v807_v37  ;;  %v6159_v37 = vld [vmem:[%s7524_s17 + $0x80] sm:$0xff]  }
 0x104   : > { %v3885_v32 = vsel %vm9788_vm8, %v9787_v29, %v3884_v3  ;;  %v9790_v54 = vsel %vm8763_vm15, 4294967295, %v9789_v54  ;;  %v9793_v31 = vsel %vm8767_vm1, 4294967295, %v9792_v31  ;;  %v9612_v11 = vrot.slane %v8408_v17, 2 }
 0x105   : > { %9791 = vst [vmem:[#allocation25_spill] sm:$0xff] %v9790_v54  ;;  %9794 = vst [vmem:[#allocation26_spill] sm:$0xff] %v9793_v31  ;;  %6683 = vmatprep.mubr.bf16.mxu0 %v3885_v32  ;;  %v9795_v58 = vmax.f32 %v8681_v57, 0.0  ;;  %v1183_v14 = vsel %vm8767_vm1, %v426_v4, 0.0  ;;  %v818_v48 = vmul.u32 18, %v817_v20  ;;  %vm896_vm8 = vcmp.ne.s32.totalorder %v808_v33, 0 }
 0x106   : > { %v6065_v10 = vpack.c.bf16 %v1183_v14, %v1183_v14  ;;  %vm932_vm5 = vcmp.lt.s32.totalorder %v808_v33, 0  ;;  %v1620_v21 = vrot.slane %v8748_v60, 4  ;;  %v1004_v57 = vadd.s32 18, %v808_v33 }
 0x107   : > { %v1182_v30 = vsel %vm8763_vm15, %v9795_v58, 0.0  ;;  %v819_v25 = vsub.s32 %v465_v56, %v818_v48  ;;  %vm8779_vm12 = vmand %vm932_vm5, %vm896_vm8  ;;  %vm9798_vm2 = vcmask 1045504   ;;  %v8787_v46 = vld [vmem:[#allocation2 + $0x70] sm:$0xff]   ;;  %v6138_v14 = vunpack.c.l.bf16 %v6159_v37 }
 0x108   : > { %v6064_v55 = vpack.c.bf16 %v1182_v30, %v1182_v30  ;;  %v3887_v52 = vsel %vm9798_vm2, %v3884_v3, %v9612_v11  ;;  %v1632_v23 = vshrl.u32 %v6065_v10, 16  ;;  %v1635_v34 = vshll.u32 %v6065_v10, 16 }
 0x109   : > { %6684 = vmatmul.mubr.bf16.gmra.mrb[12].mxu0 %v3887_v52  ;;  %vm897_vm7 = vcmp.ne.s32.totalorder %v819_v25, 0  ;;  %vm933_vm13 = vcmp.lt.s32.totalorder %v819_v25, 0  ;;  %v1005_v56 = vadd.s32 18, %v819_v25  ;;  %v1040_v60 = vsel %vm8779_vm12, %v1004_v57, %v808_v33 }
 0x10a   : > { %v1622_v27 = vshrl.u32 %v6064_v55, 16  ;;  %v1625_v4 = vshll.u32 %v6064_v55, 16  ;;  %v1634_v29 = vrot.slane %v1632_v23, 6  ;;  %v1637_v32 = vrot.slane %v1635_v34, 7  ;;  %vm969_vm8 = vmand %vm933_vm13, %vm897_vm7 }
 0x10b   : > { %v2059_v3 = vshll.u32 %v8787_v46, 16  ;;  %v1041_v58 = vsel %vm969_vm8, %v1005_v56, %v819_v25  ;;  %vm8792_vm5 = vcmp.lt.s32.totalorder %v1040_v60, 16  ;;  %v9799_v30 = vmov 0 }
 0x10c   : > { %v1624_v16 = vrot.slane %v1622_v27, 6  ;;  %v1627_v20 = vrot.slane %v1625_v4, 7  ;;  %v9800_v30 = vsel %vm8792_vm5, 4294967295, %v9799_v30  ;;  %v1638_v55 = vor.u32 %v1637_v32, %v1634_v29 }
 0x10d   : > { %9801 = vst [vmem:[#allocation27_spill] sm:$0xff] %v9800_v30  ;;  %vm8796_vm2 = vcmp.lt.s32.totalorder %v1041_v58, 16  ;;  %v9802_v10 = vmov 0  ;;  %v1184_v33 = vsel %vm8792_vm5, %v427_v0, 0.0  ;;  %v2061_v47 = vrot.slane %v2059_v3, 1 }
 0x10e   : > { %v1628_v48 = vor.u32 %v1627_v20, %v1624_v16  ;;  %v9803_v10 = vsel %vm8796_vm2, 4294967295, %v9802_v10  ;;  %v1185_v57 = vsel %vm8796_vm2, %v428_v24, 0.0  ;;  %v6066_v52 = vpack.c.bf16 %v1184_v33, %v1184_v33  ;;  %v7317_v33 = vld [vmem:[#allocation2 + $0x58] sm:$0xff]  }
 0x10f   : > { %9804 = vst [vmem:[#allocation28_spill] sm:$0xff] %v9803_v10  ;;  %v6139_v25 = vunpack.c.h.bf16 %v6159_v37  ;;  %v6067_v23 = vpack.c.bf16 %v1185_v57, %v1185_v57  ;;  %vm9805_vm12 = vsmask.f32 7424  ;;  %v350_v16 = vmul.f32 %v8657_v13, %v6138_v14  ;;  %v7315_v14 = vld [vmem:[#allocation2 + $0x50] sm:$0xff]  }
 0x110   : > { %v1629_v27 = vsel %vm7680_vm6, %v1620_v21, %v1628_v48  ;;  %v1630_v4 = vrot.slane %v1628_v48, 4  ;;  %v2062_v34 = vsel %vm9805_vm12, %v2057_v36, %v2061_v47  ;;  %v1642_v56 = vshrl.u32 %v6066_v52, 16 }
 0x111   : > { %1771 = vst [vmem:[#allocation2 + $0x78] sm:$0xf] %v1629_v27  ;;  %v1645_v60 = vshll.u32 %v6066_v52, 16  ;;  %6436 = vmatmul.mubr.bf16.gmra.mrb[24].mxu1 %v2062_v34  ;;  %v1640_v20 = vrot.slane %v1638_v55, 4  ;;  %v1652_v24 = vshrl.u32 %v6067_v23, 16  ;;  %v1655_v37 = vshll.u32 %v6067_v23, 16 }
 0x112   : > { %v1639_v0 = vsel %vm7680_vm6, %v1630_v4, %v1638_v55  ;;  %v1644_v29 = vrot.slane %v1642_v56, 6  ;;  %v351_v32 = vmul.f32 %v8657_v13, %v6139_v25  ;;  %v466_v36 = vadd.s32 256, %v7513_v9  ;;  %v8818_v4 = vld [vmem:[%s7524_s17 + $0x88] sm:$0xff]  }
 0x113   : > { %1772 = vst [vmem:[#allocation2 + $0x7c] sm:$0xf] %v1639_v0  ;;  %v1647_v21 = vrot.slane %v1645_v60, 7  ;;  %v1654_v3 = vrot.slane %v1652_v24, 6  ;;  %v1657_v58 = vrot.slane %v1655_v37, 7  ;;  %v467_v48 = vadd.s32 264, %v7513_v9 }
 0x114   : > { %v2063_v57 = vshrl.u32 %v8787_v46, 16  ;;  %v8814_v55 = vmul.u32.u64.low 3817748708, %v466_v36  ;;  %v8815_v27 = vmul.u32.u64.high 3817748708, %v466_v36, %v8814_v55  ;;  %v8828_v0 = vadd.f32 %v8576_v22, %v350_v16  ;;  %v7319_v37 = vld [vmem:[#allocation2 + $0x60] sm:$0xff]  }
 0x115   : > { %v1648_v52 = vor.u32 %v1647_v21, %v1644_v29  ;;  %v8820_v23 = vor.u32 %v1657_v58, %v1654_v3  ;;  %v8822_v34 = vmul.u32.u64.low 3817748708, %v467_v48  ;;  %v8823_v25 = vmul.u32.u64.high 3817748708, %v467_v48, %v8822_v34  ;;  %v7320_v55 = vld [vmem:[#allocation2 + $0x68] sm:$0xff]  }
 0x116   : > { %v8831_v24 = vadd.f32 %v8576_v22, %v351_v32  ;;  %v6142_v29 = vunpack.c.l.bf16 %v8818_v4  ;;  %v468_v21 = vadd.s32 272, %v7513_v9  ;;  %v3888_v3 = vrot.slane %v7315_v14, 2 }
 0x117   : > { %v1649_v56 = vsel %vm7680_vm6, %v1640_v20, %v1648_v52  ;;  %v1650_v60 = vrot.slane %v1648_v52, 4  ;;  %v3890_v58 = vrot.slane %v7317_v33, 2  ;;  %v2065_v34 = vor.u32 %v2063_v57, %v2061_v47  ;;  %v8839_v52 = vld [vmem:[#allocation2 + $0x70] sm:$0xff]  }
 0x118   : > { %1773 = vst [vmem:[#allocation2 + $0x80] sm:$0xf] %v1649_v56  ;;  %v828_v16 = vshrl.u32 %v8815_v27, 4  ;;  %v839_v56 = vshrl.u32 %v8823_v25, 4  ;;  %v8844_v11 = vmul.u32.u64.low 3817748708, %v468_v21  ;;  %v8845_v31 = vmul.u32.u64.high 3817748708, %v468_v21, %v8844_v11 }
 0x119   : > { %v1659_v20 = vsel %vm7680_vm6, %v1650_v60, %v8820_v23  ;;  %v9806_v14 = vrot.slane %v8408_v17, 2  ;;  %vm9807_vm7 = vcmask 1045504   ;;  %v429_v33 = vmax.f32 %v8828_v0, 0.0 }
 0x11a   : > { %v8841_v32 = vld [vmem:[#allocation2 + $0x78] sm:$0xff]   ;;  %1774 = vst [vmem:[#allocation2 + $0x84] sm:$0xf] %v1659_v20  ;;  %v829_v57 = vmul.u32 18, %v828_v16  ;;  %vm9808_vm13 = vmmov %vm9807_vm7  ;;  %v3892_v60 = vrot.slane %v7319_v37, 2  ;;  %v430_v20 = vmax.f32 %v8831_v24, 0.0  ;;  %v352_v25 = vmul.f32 %v8657_v13, %v6142_v29 }
 0x11b   : > { %v3889_v47 = vsel %vm9807_vm7, %v9806_v14, %v3888_v3  ;;  %v3891_v27 = vsel %vm9808_vm13, %v3888_v3, %v3890_v58  ;;  %v2067_v10 = vshll.u32 %v8841_v32, 16  ;;  %v840_v54 = vmul.u32 18, %v839_v56  ;;  %vm9809_vm8 = vmmov %vm9807_vm7  ;;  %v7324_v29 = vld [vmem:[#allocation2 + $0x78] sm:$0xff]  }
 0x11c   : > { %6687 = vmatprep.mubr.bf16.mxu0 %v3889_v47  ;;  %v2071_v11 = vshrl.u32 %v8841_v32, 16  ;;  %v830_v17 = vsub.s32 %v466_v36, %v829_v57  ;;  %v3893_v14 = vsel %vm9809_vm8, %v3890_v58, %v3892_v60  ;;  %v3894_v30 = vrot.slane %v7320_v55, 2  ;;  %v9078_v53 = vld [vmem:[#allocation2 + $0x78] sm:$0xff]  }
 0x11d   : > { %6688 = vmatmul.mubr.bf16.gmra.mrb[16].mxu0 %v3891_v27  ;;  %v2069_v0 = vrot.slane %v2067_v10, 1  ;;  %v841_v16 = vsub.s32 %v467_v48, %v840_v54  ;;  %v850_v47 = vshrl.u32 %v8845_v31, 4  ;;  %v3896_v37 = vrot.slane %v8839_v52, 2 }
 0x11e   : > { %6691 = vmatprep.mubr.bf16.mxu0 %v3893_v14  ;;  %vm898_vm12 = vcmp.ne.s32.totalorder %v830_v17, 0  ;;  %vm934_vm7 = vcmp.lt.s32.totalorder %v830_v17, 0  ;;  %v1006_v24 = vadd.s32 18, %v830_v17  ;;  %v6143_v3 = vunpack.c.h.bf16 %v8818_v4 }
 0x11f   : > { %vm9810_vm13 = vsmask.f32 7424  ;;  %vm899_vm1 = vcmp.ne.s32.totalorder %v841_v16, 0  ;;  %vm935_vm2 = vcmp.lt.s32.totalorder %v841_v16, 0  ;;  %vm970_vm15 = vmand %vm934_vm7, %vm898_vm12  ;;  %v395_v36 = vadd.f32 %v8576_v22, %v352_v25 }
 0x120   : > { %v2070_v56 = vsel %vm9810_vm13, %v2065_v34, %v2069_v0  ;;  %vm971_vm8 = vmand %vm935_vm2, %vm899_vm1  ;;  %v1007_v31 = vadd.s32 18, %v841_v16  ;;  %v1042_v10 = vsel %vm970_vm15, %v1006_v24, %v830_v17  ;;  %v851_v48 = vmul.u32 18, %v850_v47 }
 0x121   : > { %6439 = vmatprep.mubr.bf16.mxu1 %v2070_v56  ;;  %v8862_v54 = vld [vmem:[#allocation2 + $0x80] sm:$0xff]   ;;  %vm9811_vm5 = vcmask 1045504   ;;  %v2073_v55 = vor.u32 %v2071_v11, %v2069_v0  ;;  %vm8865_vm9 = vcmp.lt.s32.totalorder %v1042_v10, 16  ;;  %v9812_v4 = vmov 0 }
 0x122   : > { %v3895_v58 = vsel %vm9811_vm5, %v3892_v60, %v3894_v30  ;;  %v9813_v4 = vsel %vm8865_vm9, 4294967295, %v9812_v4  ;;  %v1660_v34 = vrot.slane %v8820_v23, 4  ;;  %vm9815_vm13 = vmmov %vm9811_vm5  ;;  %v8871_v57 = vld [vmem:[#allocation2 + $0x80] sm:$0xff]   ;;  %v2075_v27 = vshll.u32 %v8862_v54, 16 }
 0x123   : > { %9814 = vst [vmem:[#allocation29_spill] sm:$0xff] %v9813_v4  ;;  %v3897_v52 = vsel %vm9815_vm13, %v3894_v30, %v3896_v37  ;;  %v1043_v25 = vsel %vm971_vm8, %v1007_v31, %v841_v16  ;;  %v1186_v17 = vsel %vm8865_vm9, %v429_v33, 0.0  ;;  %v3898_v14 = vrot.slane %v7324_v29, 2  ;;  %vm9820_vm12 = vmmov %vm9815_vm13  ;;  %v9045_v4 = vld [vmem:[#allocation2 + $0x48] sm:$0xff]  }
 0x124   : > { %vm8876_vm15 = vcmp.lt.s32.totalorder %v1043_v25, 16  ;;  %v9816_v60 = vmov 0  ;;  %v6068_v11 = vpack.c.bf16 %v1186_v17, %v1186_v17  ;;  %v431_v0 = vmax.f32 %v395_v36, 0.0  ;;  %vm9821_vm8 = vmmov %vm9820_vm12 }
 0x125   : > { %v9817_v60 = vsel %vm8876_vm15, 4294967295, %v9816_v60  ;;  %v852_v47 = vsub.s32 %v468_v21, %v851_v48  ;;  %6692 = vmatmul.mubr.bf16.gmra.mrb[20].mxu0 %v3895_v58  ;;  %v2077_v23 = vrot.slane %v2075_v27, 1  ;;  %v1187_v30 = vsel %vm8876_vm15, %v430_v20, 0.0 }
 0x126   : > { %9818 = vst [vmem:[#allocation30_spill] sm:$0xff] %v9817_v60  ;;  %6695 = vmatprep.mubr.bf16.mxu0 %v3897_v52  ;;  %v3900_v24 = vrot.slane %v8871_v57, 2  ;;  %v469_v16 = vadd.s32 280, %v7513_v9  ;;  %v6069_v56 = vpack.c.bf16 %v1187_v30, %v1187_v30  ;;  %v1662_v33 = vshrl.u32 %v6068_v11, 16  ;;  %v1781_v57 = vld [vmem:[#allocation2 + $0x98] sm:$0x3] }
 0x127   : > { %v1665_v29 = vshll.u32 %v6068_v11, 16  ;;  %vm900_vm1 = vcmp.ne.s32.totalorder %v852_v47, 0  ;;  %vm9819_vm5 = vsmask.f32 7424  ;;  %vm936_vm2 = vcmp.lt.s32.totalorder %v852_v47, 0 }
 0x128   : > { %v2078_v31 = vsel %vm9819_vm5, %v2073_v55, %v2077_v23  ;;  %v1008_v10 = vadd.s32 18, %v852_v47  ;;  %v3899_v21 = vsel %vm9820_vm12, %v3896_v37, %v3898_v14  ;;  %v1664_v36 = vrot.slane %v1662_v33, 6  ;;  %vm972_vm7 = vmand %vm936_vm2, %vm900_vm1 }
 0x129   : > { %6440 = vmatmul.mubr.bf16.gmra.mrb[28].mxu1 %v2078_v31  ;;  %v1667_v48 = vrot.slane %v1665_v29, 7  ;;  %v1672_v58 = vshrl.u32 %v6069_v56, 16  ;;  %v1675_v20 = vshll.u32 %v6069_v56, 16  ;;  %v3901_v27 = vsel %vm9821_vm8, %v3898_v14, %v3900_v24 }
 0x12a   : > { %v1044_v52 = vsel %vm972_vm7, %v1008_v10, %v852_v47  ;;  %v8889_v25 = vmul.u32.u64.low 3817748708, %v469_v16  ;;  %v8890_v17 = vmul.u32.u64.high 3817748708, %v469_v16, %v8889_v25  ;;  %v9822_v9 = vmov 0  ;;  %vm9828_vm7 = vmmov %vm9821_vm8 }
 0x12b   : > { %v1668_v11 = vor.u32 %v1667_v48, %v1664_v36  ;;  %v1674_v55 = vrot.slane %v1672_v58, 6  ;;  %v1677_v30 = vrot.slane %v1675_v20, 7  ;;  %vm8892_vm13 = vcmp.lt.s32.totalorder %v1044_v52, 16 }
 0x12c   : > { %v9823_v9 = vsel %vm8892_vm13, 4294967295, %v9822_v9  ;;  %v353_v37 = vmul.f32 %v8657_v13, %v6143_v3  ;;  %v1188_v56 = vsel %vm8892_vm13, %v431_v0, 0.0  ;;  %v861_v31 = vshrl.u32 %v8890_v17, 4 }
 0x12d   : > { %9824 = vst [vmem:[#allocation31_spill] sm:$0xff] %v9823_v9  ;;  %v1669_v47 = vsel %vm7680_vm6, %v1660_v34, %v1668_v11  ;;  %v1670_v33 = vrot.slane %v1668_v11, 4  ;;  %v1678_v14 = vor.u32 %v1677_v30, %v1674_v55  ;;  %v6070_v29 = vpack.c.bf16 %v1188_v56, %v1188_v56  ;;  %6696 = vmatmul.mubr.bf16.gmra.mrb[24].mxu0 %v3899_v21  ;;  %v7369_v9 = vld [vmem:[%s9578_s3 + $0x1f8] sm:$0xff]  }
 0x12e   : > { %1775 = vst [vmem:[#allocation2 + $0x88] sm:$0xf] %v1669_v47  ;;  %6699 = vmatprep.mubr.bf16.mxu0 %v3901_v27  ;;  %v396_v13 = vadd.f32 %v8576_v22, %v353_v37  ;;  %v862_v3 = vmul.u32 18, %v861_v31  ;;  %v2079_v27 = vshrl.u32 %v8862_v54, 16  ;;  %v9825_v22 = vmov 0 }
 0x12f   : > { %v1679_v10 = vsel %vm7680_vm6, %v1670_v33, %v1678_v14  ;;  %v1682_v36 = vshrl.u32 %v6070_v29, 16  ;;  %v1685_v48 = vshll.u32 %v6070_v29, 16  ;;  %v1680_v0 = vrot.slane %v1678_v14, 4 }
 0x130   : > { %1776 = vst [vmem:[#allocation2 + $0x8c] sm:$0xf] %v1679_v10  ;;  %v863_v20 = vsub.s32 %v469_v16, %v862_v3  ;;  %v432_v25 = vmax.f32 %v396_v13, 0.0  ;;  %v2081_v37 = vor.u32 %v2079_v27, %v2077_v23  ;;  %vm9829_vm8 = vsmask.f32 7424 }
 0x131   : > { %v1684_v58 = vrot.slane %v1682_v36, 6  ;;  %v1687_v34 = vrot.slane %v1685_v48, 7  ;;  %v4358_v26 = vrot.slane %v9078_v53, 2 }
 0x132   : > { %vm901_vm1 = vcmp.ne.s32.totalorder %v863_v20, 0  ;;  %vm937_vm5 = vcmp.lt.s32.totalorder %v863_v20, 0  ;;  %v1009_v21 = vadd.s32 18, %v863_v20 }
 0x133   : > { %v1688_v52 = vor.u32 %v1687_v34, %v1684_v58  ;;  %vm973_vm2 = vmand %vm937_vm5, %vm901_vm1  ;;  %vm1779_vm1 = vcmask 1041408   ;;  %vm9830_vm5 = vsmask.f32 1280 }
 0x134   : > { %v1045_v11 = vsel %vm973_vm2, %v1009_v21, %v863_v20  ;;  %vm1780_vm2 = vmand %vm1779_vm1, %vm9830_vm5 }
 0x135   : > { %v1689_v17 = vsel %vm7680_vm6, %v1680_v0, %v1688_v52  ;;  %vm8910_vm12 = vcmp.lt.s32.totalorder %v1045_v11, 16  ;;  %v1690_v23 = vrot.slane %v1688_v52, 4  ;;  %v4187_v52 = vld [vmem:[#allocation2 + $0x10] sm:$0xc]  ;;  %v8929_v11 = vld [vmem:[#allocation2 + $0x14] sm:$0xf] }
 0x136   : > { %1777 = vst [vmem:[#allocation2 + $0x90] sm:$0xf] %v1689_v17  ;;  %v9826_v22 = vsel %vm8910_vm12, 4294967295, %v9825_v22  ;;  %v1189_v30 = vsel %vm8910_vm12, %v432_v25, 0.0 }
 0x137   : > { %v8908_v55 = vld [vmem:[#allocation2 + $0x88] sm:$0xff]   ;;  %9827 = vst [vmem:[#allocation32_spill] sm:$0xff] %v9826_v22  ;;  %v6071_v47 = vpack.c.bf16 %v1189_v30, %v1189_v30  ;;  %v8935_v30 = vld [vmem:[#allocation2 + $0x18] sm:$0xff]  }
 0x138   : > { %v7328_v16 = vld [vmem:[#allocation2 + $0x88] sm:$0xff]   ;;  %v2083_v56 = vshll.u32 %v8908_v55, 16  ;;  %v2087_v29 = vshrl.u32 %v8908_v55, 16  ;;  %v9037_v22 = vld [vmem:[#allocation2 + $0x58] sm:$0xff]   ;;  %v4682_v43 = vshll.u32 %v8935_v30, 16 }
 0x139   : > { %v3902_v33 = vrot.slane %v7328_v16, 2  ;;  %v1692_v31 = vshrl.u32 %v6071_v47, 16  ;;  %v1695_v10 = vshll.u32 %v6071_v47, 16  ;;  %v8933_v16 = vcombine.low %v4187_v52, %v8929_v11  ;;  %v7342_v52 = vld [vmem:[%s9578_s3 + $0x1c8] sm:$0xff]  }
 0x13a   : > { %v2085_v14 = vrot.slane %v2083_v56, 1  ;;  %v4334_v47 = vrot.slane %v8935_v30, 2  ;;  %v4350_v60 = vrot.slane %v9037_v22, 2 }
 0x13b   : > { %v3903_v36 = vsel %vm9828_vm7, %v3900_v24, %v3902_v33  ;;  %v1694_v3 = vrot.slane %v1692_v31, 6  ;;  %v1697_v0 = vrot.slane %v1695_v10, 7  ;;  %vm9831_vm7 = vmmov %vm9829_vm8  ;;  %v4333_v56 = vrot.slane %v8933_v16, 2  ;;  %v7390_v31 = vld [vmem:[%s9578_s3 + $0x80] sm:$0xff]   ;;  %v8951_v10 = vld [vmem:[#allocation2 + $0x10] sm:$0xff]  }
 0x13c   : > { %v2086_v48 = vsel %vm9829_vm8, %v2081_v37, %v2085_v14  ;;  %6700 = vmatmul.mubr.bf16.gmra.mrb[28].mxu0 %v3903_v36  ;;  %v2089_v58 = vor.u32 %v2087_v29, %v2085_v14  ;;  %v8944_v14 = vld [vmem:[#allocation2 + $0x8] sm:$0xff]   ;;  %v7326_v36 = vld [vmem:[%s9578_s3 + $0x90] sm:$0xff]   ;;  %v4671_v15 = vshrl.u32 %v8933_v16, 16 }
 0x13d   : > { %v8922_v13 = vld [vmem:[#allocation2 + $0x90] ss:$0 sps:$4 sm:$0x11]   ;;  %6443 = vmatprep.mubr.bf16.mxu1 %v2086_v48  ;;  %v1698_v20 = vor.u32 %v1697_v0, %v1694_v3 }
 0x13e   : > { %v2091_v34 = vshll.u32 %v8922_v13, 16  ;;  %v4673_v44 = vrot.slane %v4671_v15, 2 }
 0x13f   : > { %v1699_v24 = vsel %vm7680_vm6, %v1690_v23, %v1698_v20  ;;  %v1700_v21 = vrot.slane %v1698_v20, 4  ;;  %vm9832_vm6 = vcmask 1045504   ;;  %v8958_v23 = vld [vmem:[#allocation2 + $0x20] sm:$0xff]   ;;  %v7330_v20 = vld [vmem:[%s9578_s3 + $0x98] sm:$0xff]  }
 0x140   : > { %v2093_v25 = vrot.slane %v2091_v34, 1  ;;  %1778 = vst [vmem:[#allocation2 + $0x94] sm:$0xf] %v1699_v24  ;;  %vm9833_vm8 = vmmov %vm9832_vm6  ;;  %v8962_v34 = vld [vmem:[#allocation2 + $0x28] sm:$0xff]   ;;  %v8972_v24 = vld [vmem:[#allocation2 + $0x20] sm:$0xff]   ;;  %v4691_v15 = vshll.u32 %v8958_v23, 16 }
 0x141   : > { %v1782_v17 = vsel %vm1780_vm2, %v1700_v21, %v1781_v57  ;;  %v4335_v0 = vsel %vm9833_vm8, %v4333_v56, %v4334_v47  ;;  %vm9834_vm1 = vmmov %vm9832_vm6  ;;  %v4338_v57 = vrot.slane %v8962_v34, 2  ;;  %v7336_v21 = vld [vmem:[%s9578_s3 + $0xa0] sm:$0xff]  }
 0x142   : > { %v2094_v27 = vsel %vm9831_vm7, %v2089_v58, %v2093_v25  ;;  %1783 = vst [vmem:[#allocation2 + $0x98] sm:$0x3] %v1782_v17  ;;  %v8968_v25 = vld [vmem:[#allocation2 + $0x18] sm:$0xff]   ;;  %vm9835_vm5 = vmmov %vm9834_vm1  ;;  %v8979_v17 = vld [vmem:[#allocation2 + $0x30] sm:$0xff]  }
 0x143   : > { %6444 = vmatmul.mubr.bf16.gmra.mrb[32].mxu1 %v2094_v27  ;;  %vm9836_vm2 = vmmov %vm9834_vm1 }
 0x144   : > { %6463 = vmatprep.mubr.bf16.mxu1 %v7574_v35  ;;  %vm9837_vm7 = vmmov %vm9834_vm1 }
 0x145   : > { %vm9839_vm8 = vmmov %vm9834_vm1 }
 0x147   : > { %v8940_v37 = vld [vmem:[#allocation2 + $0x90] sm:$0xff]  }
 0x148   : > { %v3904_v35 = vrot.slane %v8940_v37, 2 }
 0x149   : > { %v7332_v29 = vld [vmem:[#allocation2 + $0x98] ss:$0 sps:$4 sm:$0x33]  }
 0x14a   : > { %v3905_v48 = vsel %vm9832_vm6, %v3902_v33, %v3904_v35  ;;  %v3906_v3 = vrot.slane %v7332_v29, 2  ;;  %v4336_v33 = vrot.slane %v8958_v23, 2  ;;  %vm9838_vm6 = vmmov %vm9834_vm1 }
 0x14b   : > { %6464 = vmatmul.mubr.bf16.vlgmr.msra.gmra.mrb[0].mxu1 %v8944_v14  ;;  %6703 = vmatprep.mubr.bf16.mxu0 %v3905_v48  ;;  %v8999_v48 = vld [vmem:[#allocation2 + $0x30] sm:$0xff]  }
 0x14c   : > { %6500 = vmatpush3.bf16.msra.mxu1 %v7390_v31  ;;  %6467 = vmatprep.mubr.bf16.mxu1 %v8951_v10  ;;  %v3907_v58 = vsel %vm9834_vm1, %v3904_v35, %v3906_v3  ;;  %v4337_v27 = vsel %vm9835_vm5, %v4334_v47, %v4336_v33  ;;  %v4339_v56 = vsel %vm9836_vm2, %v4336_v33, %v4338_v57  ;;  %v4340_v35 = vrot.slane %v8979_v17, 2  ;;  %v7341_v47 = vld [vmem:[%s9578_s3 + $0xa8] sm:$0xff]   ;;  %v7346_v31 = vld [vmem:[%s9578_s3 + $0x1d0] sm:$0xff]   ;;  %v9003_v3 = vld [vmem:[#allocation2 + $0x40] sm:$0xff]  }
 0x14d   : > { %6501 = vmatprep.subr.bf16.mxu1 %v7322_v59  ;;  %6704 = vmatmul.mubr.bf16.gmra.mrb[32].mxu0 %v3907_v58  ;;  %v7351_v33 = vld [vmem:[%s9578_s3 + $0x1d8] sm:$0xff]   ;;  %vm9840_vm5 = vmmov %vm9834_vm1 }
 0x14e   : > { %6723 = vmatprep.mubr.bf16.mxu0 %v4335_v0  ;;  %v7345_v0 = vld [vmem:[%s9578_s3 + $0xb0] sm:$0xff]   ;;  %vm9841_vm2 = vmmov %vm9834_vm1 }
 0x150   : > { %6502 = vmatpush3.bf16.msra.mxu1 %v7322_v59  ;;  %v8984_v59 = vld [vmem:[#allocation2 + $0x38] sm:$0xff]  }
 0x151   : > { %6503 = vmatprep.subr.bf16.mxu1 %v7326_v36  ;;  %v4342_v29 = vrot.slane %v8984_v59, 2 }
 0x153   : > { %6468 = vmatmul.mubr.bf16.gmra.mrb[4].mxu1 %v8968_v25  ;;  %v4343_v58 = vsel %vm9838_vm6, %v4340_v35, %v4342_v29  ;;  %vm9843_vm6 = vmmov %vm9834_vm1 }
 0x154   : > { %6471 = vmatprep.mubr.bf16.mxu1 %v8972_v24  ;;  %6504 = vmatpush3.bf16.msra.mxu1 %v7326_v36  ;;  %v8996_v36 = vld [vmem:[#allocation2 + $0x28] sm:$0xff]  }
 0x155   : > { %6505 = vmatprep.subr.bf16.mxu1 %v7330_v20  ;;  %6724 = vmatmul.mubr.bf16.vlgmr.msra.gmra.mrb[0].mxu0 %v4337_v27 }
 0x156   : > { %6760 = vmatpush3.bf16.msra.mxu0 %v8667_v38  ;;  %6727 = vmatprep.mubr.bf16.mxu0 %v4339_v56  ;;  %v4341_v38 = vsel %vm9837_vm7, %v4338_v57, %v4340_v35  ;;  %v4344_v57 = vrot.slane %v9003_v3, 2  ;;  %v7357_v56 = vld [vmem:[%s9578_s3 + $0x1e0] sm:$0xff]   ;;  %vm9842_vm7 = vmmov %vm9834_vm1 }
 0x157   : > { %6761 = vmatprep.subr.bf16.mxu0 %v7342_v52  ;;  %v9025_v35 = vld [vmem:[#allocation2 + $0x40] sm:$0xff]  }
 0x158   : > { %6506 = vmatpush3.bf16.msra.mxu1 %v7330_v20  ;;  %v9009_v20 = vld [vmem:[#allocation2 + $0x48] sm:$0xff]  }
 0x159   : > { %6507 = vmatprep.subr.bf16.mxu1 %v7336_v21  ;;  %v4346_v27 = vrot.slane %v9009_v20, 2 }
 0x15a   : > { %6762 = vmatpush3.bf16.msra.mxu0 %v7342_v52  ;;  %v9019_v52 = vld [vmem:[#allocation2 + $0x38] sm:$0xff]  }
 0x15b   : > { %6472 = vmatmul.mubr.bf16.gmra.mrb[8].mxu1 %v8996_v36  ;;  %6763 = vmatprep.subr.bf16.mxu0 %v7346_v31 }
 0x15c   : > { %6475 = vmatprep.mubr.bf16.mxu1 %v8999_v48  ;;  %6508 = vmatpush3.bf16.msra.mxu1 %v7336_v21  ;;  %v7349_v21 = vld [vmem:[%s9578_s3 + $0xb8] sm:$0xff]  }
 0x15d   : > { %6509 = vmatprep.subr.bf16.mxu1 %v7341_v47  ;;  %6728 = vmatmul.mubr.bf16.gmra.mrb[4].mxu0 %v4341_v38  ;;  %v9029_v38 = vld [vmem:[#allocation2 + $0x50] sm:$0xff]  }
 0x15e   : > { %6731 = vmatprep.mubr.bf16.mxu0 %v4343_v58  ;;  %6764 = vmatpush3.bf16.msra.mxu0 %v7346_v31  ;;  %v9034_v31 = vld [vmem:[%s9578_s3 + $0xc0] sm:$0xff]   ;;  %v4347_v58 = vsel %vm9834_vm1, %v4344_v57, %v4346_v27 }
 0x15f   : > { %6765 = vmatprep.subr.bf16.mxu0 %v7351_v33 }
 0x160   : > { %6510 = vmatpush3.bf16.msra.mxu1 %v7341_v47  ;;  %v4345_v47 = vsel %vm9839_vm8, %v4342_v29, %v4344_v57  ;;  %v4348_v29 = vrot.slane %v9029_v38, 2  ;;  %v9051_v57 = vld [vmem:[#allocation2 + $0x50] sm:$0xff]   ;;  %vm9844_vm8 = vmmov %vm9834_vm1 }
 0x161   : > { %6511 = vmatprep.subr.bf16.mxu1 %v7345_v0 }
 0x162   : > { %6766 = vmatpush3.bf16.msra.mxu0 %v7351_v33  ;;  %v7365_v33 = vld [vmem:[%s9578_s3 + $0x1f0] sm:$0xff]  }
 0x163   : > { %6476 = vmatmul.mubr.bf16.gmra.mrb[12].mxu1 %v9019_v52  ;;  %6767 = vmatprep.subr.bf16.mxu0 %v7357_v56 }
 0x164   : > { %6479 = vmatprep.mubr.bf16.mxu1 %v9025_v35  ;;  %6512 = vmatpush3.bf16.msra.mxu1 %v7345_v0  ;;  %v7361_v0 = vld [vmem:[%s9578_s3 + $0x1e8] sm:$0xff]  }
 0x165   : > { %6513 = vmatprep.subr.bf16.mxu1 %v7349_v21  ;;  %6732 = vmatmul.mubr.bf16.gmra.mrb[8].mxu0 %v4345_v47  ;;  %v9055_v47 = vld [vmem:[#allocation2 + $0x60] sm:$0xff]  }
 0x166   : > { %6735 = vmatprep.mubr.bf16.mxu0 %v4347_v58  ;;  %6768 = vmatpush3.bf16.msra.mxu0 %v7357_v56  ;;  %v4351_v58 = vsel %vm9841_vm2, %v4348_v29, %v4350_v60  ;;  %v9058_v56 = vld [vmem:[#allocation2 + $0x68] sm:$0xff]   ;;  %v4352_v8 = vrot.slane %v9055_v47, 2  ;;  %vm2601_vm2 = vcmask 1046528  }
 0x167   : > { %6769 = vmatprep.subr.bf16.mxu0 %v7361_v0  ;;  %v4354_v39 = vrot.slane %v9058_v56, 2 }
 0x168   : > { %6514 = vmatpush3.bf16.msra.mxu1 %v7349_v21  ;;  %v4349_v21 = vsel %vm9840_vm5, %v4346_v27, %v4348_v29  ;;  %v9065_v27 = vld [vmem:[#allocation2 + $0x58] sm:$0xff]   ;;  %v4353_v29 = vsel %vm9842_vm7, %v4350_v60, %v4352_v8  ;;  %v9086_v60 = vld [vmem:[#allocation2 + $0x80] sm:$0xff]   ;;  %vm9845_vm5 = vmmov %vm9834_vm1 }
 0x169   : > { %6551 = vmatprep.subr.bf16.mxu1 %v9034_v31  ;;  %v4360_v62 = vrot.slane %v9086_v60, 2  ;;  %vm9846_vm7 = vmmov %vm9834_vm1 }
 0x16a   : > { %6770 = vmatpush3.bf16.msra.mxu0 %v7361_v0  ;;  %v9071_v0 = vld [vmem:[%s9578_s3 + $0x200] sm:$0xff]  }
 0x16b   : > { %6480 = vmatmul.mubr.bf16.gmra.mrb[16].mxu1 %v9045_v4  ;;  %6771 = vmatprep.subr.bf16.mxu0 %v7365_v33 }
 0x16c   : > { %6483 = vmatprep.mubr.bf16.mxu1 %v9051_v57 }
 0x16d   : > { %6736 = vmatmul.mubr.bf16.gmra.mrb[12].mxu0 %v4349_v21  ;;  %v9075_v21 = vld [vmem:[#allocation2 + $0x70] sm:$0xff]  }
 0x16e   : > { %6739 = vmatprep.mubr.bf16.mxu0 %v4351_v58  ;;  %6772 = vmatpush3.bf16.msra.mxu0 %v7365_v33  ;;  %v4355_v58 = vsel %vm9843_vm6, %v4352_v8, %v4354_v39  ;;  %v4356_v33 = vrot.slane %v9075_v21, 2  ;;  %v2581_v8 = vld [vmem:[#allocation2] sm:$0xe]  ;;  %vm9847_vm6 = vmmov %vm9834_vm1 }
 0x16f   : > { %6773 = vmatprep.subr.bf16.mxu0 %v7369_v9 }
 0x170   : > { %v4359_v1 = vsel %vm9834_vm1, %v4356_v33, %v4358_v26 }
 0x172   : > { %6774 = vmatpush3.bf16.msra.mxu0 %v7369_v9  ;;  %v9089_v9 = vld [vmem:[#allocation2 + $0x88] sm:$0xff]  }
 0x173   : > { %6484 = vmatmul.mubr.bf16.gmra.mrb[20].mxu1 %v9065_v27  ;;  %6811 = vmatprep.subr.bf16.mxu0 %v9071_v0  ;;  %v4362_v41 = vrot.slane %v9089_v9, 2 }
 0x174   : > { %6487 = vmatprep.mubr.bf16.mxu1 %v8669_v40  ;;  %v4357_v40 = vsel %vm9844_vm8, %v4354_v39, %v4356_v33  ;;  %v9097_v33 = vld [vmem:[#allocation2 + $0x90] sm:$0xff]   ;;  %vm9848_vm8 = vmmov %vm9834_vm1  ;;  %vm4669_vm1 = vsmask.f32 5376 }
 0x175   : > { %6740 = vmatmul.mubr.bf16.gmra.mrb[16].mxu0 %v4353_v29  ;;  %v7401_v29 = vld [vmem:[#allocation2 + $0x4] sm:$0xf] }
 0x176   : > { %6743 = vmatprep.mubr.bf16.mxu0 %v4355_v58  ;;  %v5898_v58 = vcombine.low %v2581_v8, %v7401_v29  ;;  %v9100_v8 = vld [vmem:[#allocation2 + $0x98] sm:$0xff]   ;;  %v4364_v29 = vrot.slane %v9097_v33, 2 }
 0x178   : > { %v2602_v39 = vrot.slane %v5898_v58, 1  ;;  %v4366_v58 = vrot.slane %v9100_v8, 2 }
 0x17a   : > { %v4367_v63 = vsel %vm9848_vm8, %v4364_v29, %v4366_v58 }
 0x17b   : > { %6488 = vmatmul.mubr.bf16.gmra.mrb[24].mxu1 %v8734_v19  ;;  %v2603_v19 = vrot.slane %v8944_v14, 1  ;;  %v4674_v14 = vshll.u32 %v8933_v16, 16  ;;  %v4684_v16 = vrot.slane %v4682_v43, 3  ;;  %v4697_v43 = vshrl.u32 %v8962_v34, 16 }
 0x17c   : > { %6491 = vmatprep.mubr.bf16.mxu1 %v8787_v46  ;;  %v4361_v46 = vsel %vm9845_vm5, %v4358_v26, %v4360_v62  ;;  %v4679_v26 = vshrl.u32 %v8935_v30, 16 }
 0x17d   : > { %6744 = vmatmul.mubr.bf16.gmra.mrb[20].mxu0 %v4357_v40  ;;  %v4363_v40 = vsel %vm9846_vm7, %v4360_v62, %v4362_v41  ;;  %v2605_v62 = vrot.slane %v8951_v10, 1  ;;  %v4676_v5 = vrot.slane %v4674_v14, 3  ;;  %v7358_v10 = vld [vmem:[%s9578_s3 + $0xc8] sm:$0xff]   ;;  %v2609_v14 = vrot.slane %v8972_v24, 1  ;;  %v7366_v24 = vld [vmem:[%s9578_s3 + $0xd8] sm:$0xff]  }
 0x17e   : > { %6747 = vmatprep.mubr.bf16.mxu0 %v4359_v1  ;;  %v2604_v1 = vsel %vm2601_vm2, %v2602_v39, %v2603_v19  ;;  %v2607_v39 = vrot.slane %v8968_v25, 1  ;;  %v4681_v7 = vrot.slane %v4679_v26, 2  ;;  %v7362_v26 = vld [vmem:[%s9578_s3 + $0xd0] sm:$0xff]   ;;  %vm5139_vm7 = vcmask 1044480  }
 0x17f   : > { %v2606_v45 = vsel %vm2601_vm2, %v2603_v19, %v2605_v62  ;;  %v4700_v19 = vshll.u32 %v8962_v34, 16 }
 0x180   : > { %v2608_v2 = vsel %vm2601_vm2, %v2605_v62, %v2607_v39  ;;  %v4699_v62 = vrot.slane %v4697_v43, 2 }
 0x183   : > { %6492 = vmatmul.mubr.bf16.gmra.mrb[28].mxu1 %v8841_v32 }
 0x184   : > { %6495 = vmatprep.mubr.bf16.mxu1 %v8862_v54 }
 0x185   : > { %6748 = vmatmul.mubr.bf16.gmra.mrb[24].mxu0 %v4361_v46  ;;  %v4365_v46 = vsel %vm9847_vm6, %v4362_v41, %v4364_v29  ;;  %v4688_v41 = vshrl.u32 %v8958_v23, 16  ;;  %v4685_v29 = vor.u32 %v4684_v16, %v4681_v7  ;;  %v4715_v16 = vshrl.u32 %v8984_v59, 16 }
 0x186   : > { %6751 = vmatprep.mubr.bf16.mxu0 %v4363_v40  ;;  %v7368_v40 = vld [vmem:[#allocation2 + $0xa0] ss:$0 sps:$4 sm:$0x33]   ;;  %vm9849_vm6 = vsmask.f32 6400 }
 0x187   : > { %v4368_v25 = vrot.slane %v7368_v40, 2  ;;  %v4709_v40 = vshll.u32 %v8979_v17, 16 }
 0x189   : > { %v4369_v7 = vsel %vm9845_vm5, %v4366_v58, %v4368_v25  ;;  %v4706_v58 = vshrl.u32 %v8979_v17, 16  ;;  %v4718_v25 = vshll.u32 %v8984_v59, 16 }
 0x18b   : > { %6496 = vmatmul.mubr.bf16.gmra.mrb[32].mxu1 %v8908_v55  ;;  %v4708_v43 = vrot.slane %v4706_v58, 2 }
 0x18c   : > { %6515 = vmatprep.mubr.bf16.mxu1 %v2604_v1  ;;  %v4677_v1 = vor.u32 %v4676_v5, %v4673_v44  ;;  %v4693_v5 = vrot.slane %v4691_v15, 3  ;;  %v7370_v15 = vld [vmem:[%s9578_s3 + $0xe0] sm:$0xff]  }
 0x18d   : > { %6752 = vmatmul.mubr.bf16.gmra.mrb[28].mxu0 %v4365_v46  ;;  %v4702_v46 = vrot.slane %v4700_v19, 3  ;;  %v4711_v19 = vrot.slane %v4709_v40, 3 }
 0x18e   : > { %6755 = vmatprep.mubr.bf16.mxu0 %v4367_v63  ;;  %v2611_v63 = vrot.slane %v8996_v36, 1  ;;  %v4686_v44 = vsel %vm4669_vm1, %v4677_v1, %v4685_v29 }
 0x193   : > { %6516 = vmatmul.mubr.bf16.vlgmr.msra.gmra.mrb[0].mxu1 %v2606_v45  ;;  %v4690_v45 = vrot.slane %v4688_v41, 2  ;;  %v2615_v41 = vrot.slane %v9019_v52, 1 }
 0x194   : > { %6552 = vmatpush3.bf16.msra.mxu1 %v9034_v31  ;;  %6519 = vmatprep.mubr.bf16.mxu1 %v2608_v2  ;;  %v2610_v31 = vsel %vm2601_vm2, %v2607_v39, %v2609_v14  ;;  %v2612_v2 = vsel %vm2601_vm2, %v2609_v14, %v2611_v63  ;;  %v4703_v39 = vor.u32 %v4702_v46, %v4699_v62  ;;  %v7373_v14 = vld [vmem:[%s9578_s3 + $0x208] sm:$0xff]   ;;  %v4727_v62 = vshll.u32 %v9003_v3, 16 }
 0x195   : > { %6553 = vmatprep.subr.bf16.mxu1 %v7358_v10  ;;  %6756 = vmatmul.mubr.bf16.gmra.mrb[32].mxu0 %v4369_v7  ;;  %v4694_v36 = vor.u32 %v4693_v5, %v4690_v45  ;;  %v4717_v7 = vrot.slane %v4715_v16, 2  ;;  %v4720_v45 = vrot.slane %v4718_v25, 3  ;;  %v7372_v5 = vld [vmem:[%s9578_s3 + $0xe8] sm:$0xff]   ;;  %v7374_v16 = vld [vmem:[%s9578_s3 + $0xf0] sm:$0xff]  }
 0x196   : > { %6775 = vmatprep.mubr.bf16.mxu0 %v4686_v44  ;;  %v4724_v44 = vshrl.u32 %v9003_v3, 16  ;;  %v4729_v40 = vrot.slane %v4727_v62, 3 }
 0x197   : > { %v4695_v1 = vsel %vm4669_vm1, %v4685_v29, %v4694_v36  ;;  %v4712_v29 = vor.u32 %v4711_v19, %v4708_v43  ;;  %v4721_v46 = vor.u32 %v4720_v45, %v4717_v7  ;;  %v4742_v43 = vshrl.u32 %v9029_v38, 16 }
 0x198   : > { %6554 = vmatpush3.bf16.msra.mxu1 %v7358_v10  ;;  %v2613_v10 = vrot.slane %v8999_v48, 1  ;;  %v4704_v48 = vsel %vm4669_vm1, %v4694_v36, %v4703_v39  ;;  %v4726_v58 = vrot.slane %v4724_v44, 2  ;;  %v4745_v19 = vshll.u32 %v9029_v38, 16 }
 0x199   : > { %6555 = vmatprep.subr.bf16.mxu1 %v7362_v26  ;;  %v4713_v36 = vsel %vm4669_vm1, %v4703_v39, %v4712_v29  ;;  %v4722_v25 = vsel %vm4669_vm1, %v4712_v29, %v4721_v46  ;;  %v4751_v45 = vshrl.u32 %v9037_v22, 16 }
 0x19a   : > { %v2616_v52 = vsel %vm2601_vm2, %v2613_v10, %v2615_v41  ;;  %v4747_v44 = vrot.slane %v4745_v19, 3 }
 0x19b   : > { %6520 = vmatmul.mubr.bf16.gmra.mrb[4].mxu1 %v2610_v31  ;;  %v4733_v31 = vshrl.u32 %v9009_v20, 16 }
 0x19c   : > { %6523 = vmatprep.mubr.bf16.mxu1 %v2612_v2  ;;  %6556 = vmatpush3.bf16.msra.mxu1 %v7362_v26  ;;  %v2614_v26 = vsel %vm2601_vm2, %v2611_v63, %v2613_v10  ;;  %v7375_v63 = vld [vmem:[%s9578_s3 + $0x210] sm:$0xff]   ;;  %v2617_v2 = vrot.slane %v9025_v35, 1  ;;  %v7377_v35 = vld [vmem:[%s9578_s3 + $0x218] sm:$0xff]  }
 0x19d   : > { %6557 = vmatprep.subr.bf16.mxu1 %v7366_v24  ;;  %6776 = vmatmul.mubr.bf16.vlgmr.msra.gmra.mrb[0].mxu0 %v4695_v1  ;;  %v4735_v10 = vrot.slane %v4733_v31, 2 }
 0x19e   : > { %6812 = vmatpush3.bf16.msra.mxu0 %v9071_v0  ;;  %6779 = vmatprep.mubr.bf16.mxu0 %v4704_v48  ;;  %v4736_v0 = vshll.u32 %v9009_v20, 16  ;;  %v7378_v48 = vld [vmem:[%s9578_s3 + $0x220] sm:$0xff]  }
 0x19f   : > { %6813 = vmatprep.subr.bf16.mxu0 %v7373_v14 }
 0x1a0   : > { %6558 = vmatpush3.bf16.msra.mxu1 %v7366_v24  ;;  %v2619_v24 = vrot.slane %v9045_v4, 1  ;;  %v4738_v1 = vrot.slane %v4736_v0, 3  ;;  %v2618_v4 = vsel %vm2601_vm2, %v2615_v41, %v2617_v2  ;;  %v4754_v41 = vshll.u32 %v9037_v22, 16  ;;  %v7379_v0 = vld [vmem:[%s9578_s3 + $0x228] sm:$0xff]  }
 0x1a1   : > { %6559 = vmatprep.subr.bf16.mxu1 %v7370_v15 }
 0x1a2   : > { %6814 = vmatpush3.bf16.msra.mxu0 %v7373_v14  ;;  %v2620_v39 = vsel %vm2601_vm2, %v2617_v2, %v2619_v24  ;;  %v7376_v14 = vld [vmem:[%s9578_s3 + $0xf8] sm:$0xff]   ;;  %v4739_v7 = vor.u32 %v4738_v1, %v4735_v10  ;;  %v4756_v31 = vrot.slane %v4754_v41, 3  ;;  %v4760_v2 = vshrl.u32 %v9055_v47, 16  ;;  %v7403_v10 = vld [vmem:[#allocation2 + $0x60] sm:$0xff]  }
 0x1a3   : > { %6524 = vmatmul.mubr.bf16.gmra.mrb[8].mxu1 %v2614_v26  ;;  %6815 = vmatprep.subr.bf16.mxu0 %v7375_v63  ;;  %v2621_v26 = vrot.slane %v9051_v57, 1  ;;  %v2625_v1 = vrot.slane %v7403_v10, 1  ;;  %v7382_v41 = vld [vmem:[%s9578_s3 + $0x238] sm:$0xff]  }
 0x1a4   : > { %6527 = vmatprep.mubr.bf16.mxu1 %v2616_v52  ;;  %6560 = vmatpush3.bf16.msra.mxu1 %v7370_v15  ;;  %v4730_v15 = vor.u32 %v4729_v40, %v4726_v58  ;;  %v2623_v52 = vrot.slane %v9065_v27, 1  ;;  %v9199_v58 = vld [vmem:[%s9578_s3 + $0x100] sm:$0xff]  }
 0x1a5   : > { %6561 = vmatprep.subr.bf16.mxu1 %v7372_v5  ;;  %6780 = vmatmul.mubr.bf16.gmra.mrb[4].mxu0 %v4713_v36  ;;  %v2622_v57 = vsel %vm2601_vm2, %v2619_v24, %v2621_v26  ;;  %v4763_v36 = vshll.u32 %v9055_v47, 16  ;;  %v4769_v24 = vshrl.u32 %v9058_v56, 16 }
 0x1a6   : > { %6783 = vmatprep.mubr.bf16.mxu0 %v4722_v25  ;;  %6816 = vmatpush3.bf16.msra.mxu0 %v7375_v63  ;;  %v4731_v29 = vsel %vm4669_vm1, %v4721_v46, %v4730_v15  ;;  %v4740_v62 = vsel %vm4669_vm1, %v4730_v15, %v4739_v7  ;;  %v4753_v63 = vrot.slane %v4751_v45, 2  ;;  %v2624_v27 = vsel %vm2601_vm2, %v2621_v26, %v2623_v52  ;;  %v7380_v25 = vld [vmem:[%s9578_s3 + $0x230] sm:$0xff]  }
 0x1a7   : > { %6817 = vmatprep.subr.bf16.mxu0 %v7377_v35  ;;  %v4762_v15 = vrot.slane %v4760_v2, 2 }
 0x1a8   : > { %6562 = vmatpush3.bf16.msra.mxu1 %v7372_v5  ;;  %v4744_v5 = vrot.slane %v4742_v43, 2  ;;  %v4757_v40 = vor.u32 %v4756_v31, %v4753_v63  ;;  %v4765_v43 = vrot.slane %v4763_v36, 3  ;;  %v4790_v63 = vshll.u32 %v9078_v53, 16  ;;  %v7405_v31 = vld [vmem:[#allocation2 + $0x70] sm:$0xff]  }
 0x1a9   : > { %6563 = vmatprep.subr.bf16.mxu1 %v7374_v16 }
 0x1aa   : > { %6818 = vmatpush3.bf16.msra.mxu0 %v7377_v35  ;;  %v4748_v46 = vor.u32 %v4747_v44, %v4744_v5  ;;  %v7404_v35 = vld [vmem:[#allocation2 + $0x68] sm:$0xff]   ;;  %v4781_v5 = vshll.u32 %v9075_v21, 16 }
 0x1ab   : > { %6528 = vmatmul.mubr.bf16.gmra.mrb[12].mxu1 %v2618_v4  ;;  %6819 = vmatprep.subr.bf16.mxu0 %v7378_v48  ;;  %v2627_v4 = vrot.slane %v7404_v35, 1 }
 0x1ac   : > { %6531 = vmatprep.mubr.bf16.mxu1 %v2620_v39  ;;  %6564 = vmatpush3.bf16.msra.mxu1 %v7374_v16  ;;  %v4772_v16 = vshll.u32 %v9058_v56, 16  ;;  %v4749_v39 = vsel %vm4669_vm1, %v4739_v7, %v4748_v46  ;;  %v4758_v19 = vsel %vm4669_vm1, %v4748_v46, %v4757_v40  ;;  %v4778_v7 = vshrl.u32 %v9075_v21, 16 }
 0x1ad   : > { %6565 = vmatprep.subr.bf16.mxu1 %v7376_v14  ;;  %6784 = vmatmul.mubr.bf16.gmra.mrb[8].mxu0 %v4731_v29  ;;  %v2628_v26 = vsel %vm2601_vm2, %v2625_v1, %v2627_v4  ;;  %v4766_v29 = vor.u32 %v4765_v43, %v4762_v15  ;;  %v4783_v46 = vrot.slane %v4781_v5, 3  ;;  %v2633_v15 = vrot.slane %v8862_v54, 1 }
 0x1ae   : > { %6787 = vmatprep.mubr.bf16.mxu0 %v4740_v62  ;;  %6820 = vmatpush3.bf16.msra.mxu0 %v7378_v48  ;;  %v4774_v45 = vrot.slane %v4772_v16, 3  ;;  %v2626_v48 = vsel %vm2601_vm2, %v2623_v52, %v2625_v1  ;;  %v4787_v62 = vshrl.u32 %v9078_v53, 16  ;;  %v2629_v52 = vrot.slane %v7405_v31, 1 }
 0x1af   : > { %6821 = vmatprep.subr.bf16.mxu0 %v7379_v0  ;;  %v4796_v1 = vshrl.u32 %v9086_v60, 16  ;;  %v4814_v5 = vshrl.u32 %v9097_v33, 16  ;;  %v4817_v54 = vshll.u32 %v9097_v33, 16  ;;  %v3064_v31 = vrot.slane %v7750_v6, 1 }
 0x1b0   : > { %6566 = vmatpush3.bf16.msra.mxu1 %v7376_v14  ;;  %v4771_v14 = vrot.slane %v4769_v24, 2  ;;  %v4789_v36 = vrot.slane %v4787_v62, 2  ;;  %v4792_v24 = vrot.slane %v4790_v63, 3  ;;  %v2630_v16 = vsel %vm2601_vm2, %v2627_v4, %v2629_v52 }
 0x1b1   : > { %6863 = vmatprep.subr.bf16.mxu1 %v9199_v58  ;;  %v2635_v4 = vrot.slane %v8908_v55, 1  ;;  %v4826_v62 = vshll.u32 %v9100_v8, 16  ;;  %v2637_v63 = vrot.slane %v8922_v13, 1 }
 0x1b2   : > { %6822 = vmatpush3.bf16.msra.mxu0 %v7379_v0  ;;  %v4775_v44 = vor.u32 %v4774_v45, %v4771_v14  ;;  %v2631_v0 = vrot.slane %v8841_v32, 1  ;;  %v4799_v32 = vshll.u32 %v9086_v60, 16  ;;  %v4793_v35 = vor.u32 %v4792_v24, %v4789_v36 }
 0x1b3   : > { %6532 = vmatmul.mubr.bf16.gmra.mrb[16].mxu1 %v2622_v57  ;;  %6823 = vmatprep.subr.bf16.mxu0 %v7380_v25  ;;  %v4767_v57 = vsel %vm4669_vm1, %v4757_v40, %v4766_v29  ;;  %v4805_v40 = vshrl.u32 %v9089_v9, 16 }
 0x1b4   : > { %6535 = vmatprep.mubr.bf16.mxu1 %v2624_v27  ;;  %v4780_v27 = vrot.slane %v4778_v7, 2  ;;  %v4776_v2 = vsel %vm4669_vm1, %v4766_v29, %v4775_v44  ;;  %v4801_v14 = vrot.slane %v4799_v32, 3  ;;  %v2636_v29 = vsel %vm2601_vm2, %v2633_v15, %v2635_v4 }
 0x1b5   : > { %6788 = vmatmul.mubr.bf16.gmra.mrb[12].mxu0 %v4749_v39  ;;  %v4808_v39 = vshll.u32 %v9089_v9, 16 }
 0x1b6   : > { %6791 = vmatprep.mubr.bf16.mxu0 %v4758_v19  ;;  %6824 = vmatpush3.bf16.msra.mxu0 %v7380_v25  ;;  %v2632_v25 = vsel %vm2601_vm2, %v2629_v52, %v2631_v0  ;;  %v4784_v10 = vor.u32 %v4783_v46, %v4780_v27  ;;  %v4798_v19 = vrot.slane %v4796_v1, 2  ;;  %v7406_v52 = vld [vmem:[#allocation2 + $0x10] sm:$0xff]   ;;  %v4816_v27 = vrot.slane %v4814_v5, 2 }
 0x1b7   : > { %6825 = vmatprep.subr.bf16.mxu0 %v7382_v41  ;;  %v4819_v46 = vrot.slane %v4817_v54, 3  ;;  %v5141_v5 = vrot.slane %v8935_v30, 3  ;;  %v7409_v54 = vld [vmem:[#allocation2 + $0x28] sm:$0xff]  }
 0x1b8   : > { %v4785_v43 = vsel %vm4669_vm1, %v4775_v44, %v4784_v10  ;;  %v4794_v45 = vsel %vm4669_vm1, %v4784_v10, %v4793_v35  ;;  %v4802_v7 = vor.u32 %v4801_v14, %v4798_v19  ;;  %v4823_v44 = vshrl.u32 %v9100_v8, 16 }
 0x1b9   : > { %v4820_v13 = vor.u32 %v4819_v46, %v4816_v27  ;;  %v7413_v27 = vld [vmem:[#allocation2 + $0x38] sm:$0xff]  }
 0x1ba   : > { %6826 = vmatpush3.bf16.msra.mxu0 %v7382_v41  ;;  %v4807_v41 = vrot.slane %v4805_v40, 2  ;;  %v4825_v24 = vrot.slane %v4823_v44, 2  ;;  %v7407_v40 = vld [vmem:[#allocation2 + $0x18] sm:$0xff]   ;;  %v7411_v44 = vld [vmem:[#allocation2 + $0x30] sm:$0xff]   ;;  %v3075_v46 = vrot.slane %v7413_v27, 1 }
 0x1bb   : > { %6536 = vmatmul.mubr.bf16.gmra.mrb[20].mxu1 %v2626_v48  ;;  %v4810_v48 = vrot.slane %v4808_v39, 3  ;;  %v3067_v39 = vrot.slane %v7407_v40, 1  ;;  %v9278_v40 = vld [vmem:[#allocation2 + $0x50] sm:$0xff]  }
 0x1bc   : > { %6539 = vmatprep.mubr.bf16.mxu1 %v2628_v26  ;;  %v2634_v26 = vsel %vm2601_vm2, %v2631_v0, %v2633_v15  ;;  %v3065_v0 = vrot.slane %v7406_v52, 1  ;;  %v7408_v15 = vld [vmem:[#allocation2 + $0x20] sm:$0xff]   ;;  %v7412_v52 = vld [vmem:[%s9578_s3 + $0x110] sm:$0xff]  }
 0x1bd   : > { %6792 = vmatmul.mubr.bf16.gmra.mrb[16].mxu0 %v4767_v57  ;;  %v4811_v55 = vor.u32 %v4810_v48, %v4807_v41  ;;  %v4803_v57 = vsel %vm4669_vm1, %v4793_v35, %v4802_v7  ;;  %v5119_v35 = vld [vmem:[#allocation2 + $0x10] sm:$0x8] }
 0x1be   : > { %6795 = vmatprep.mubr.bf16.mxu0 %v4776_v2  ;;  %v9240_v2 = vld [vmem:[#allocation2 + $0xa0] ss:$0 sps:$4 sm:$0x77]   ;;  %v3066_v10 = vsel %vm2601_vm2, %v3064_v31, %v3065_v0  ;;  %v5988_v41 = vcombine.low %v5119_v35, %v8929_v11  ;;  %v3068_v48 = vsel %vm2601_vm2, %v3065_v0, %v3067_v39  ;;  %v7410_v11 = vld [vmem:[%s9578_s3 + $0x108] sm:$0xff]   ;;  %v5143_v0 = vrot.slane %v8958_v23, 3 }
 0x1bf   : > { %v4812_v36 = vsel %vm4669_vm1, %v4802_v7, %v4811_v55  ;;  %v4832_v6 = vshrl.u32 %v9240_v2, 16  ;;  %v4835_v1 = vshll.u32 %v9240_v2, 16  ;;  %v4821_v19 = vsel %vm4669_vm1, %v4811_v55, %v4820_v13 }
 0x1c0   : > { %v5140_v7 = vrot.slane %v5988_v41, 3  ;;  %v3071_v55 = vrot.slane %v7409_v54, 1  ;;  %v9293_v41 = vld [vmem:[#allocation2 + $0x58] sm:$0xff]  }
 0x1c1   : > { %v4837_v14 = vrot.slane %v4835_v1, 3  ;;  %v5149_v1 = vrot.slane %v8984_v59, 3 }
 0x1c2   : > { %v5142_v31 = vsel %vm5139_vm7, %v5140_v7, %v5141_v5  ;;  %v7423_v7 = vld [vmem:[%s9578_s3 + $0x138] sm:$0xff]  }
 0x1c3   : > { %6540 = vmatmul.mubr.bf16.gmra.mrb[24].mxu1 %v2630_v16  ;;  %v4828_v16 = vrot.slane %v4826_v62, 3  ;;  %v3073_v62 = vrot.slane %v7411_v44, 1  ;;  %v9308_v44 = vld [vmem:[#allocation2 + $0x68] sm:$0xff]  }
 0x1c4   : > { %6543 = vmatprep.mubr.bf16.mxu1 %v2632_v25  ;;  %v2638_v25 = vsel %vm2601_vm2, %v2635_v4, %v2637_v63  ;;  %v4834_v4 = vrot.slane %v4832_v6, 2  ;;  %v5147_v6 = vrot.slane %v8979_v17, 3 }
 0x1c5   : > { %6796 = vmatmul.mubr.bf16.gmra.mrb[20].mxu0 %v4785_v43  ;;  %v4829_v32 = vor.u32 %v4828_v16, %v4825_v24  ;;  %v3069_v43 = vrot.slane %v7408_v15, 1  ;;  %v7415_v16 = vld [vmem:[%s9578_s3 + $0x118] sm:$0xff]   ;;  %v3076_v23 = vsel %vm2601_vm2, %v3073_v62, %v3075_v46 }
 0x1c6   : > { %6799 = vmatprep.mubr.bf16.mxu0 %v4794_v45  ;;  %v5150_v17 = vsel %vm5139_vm7, %v5147_v6, %v5149_v1 }
 0x1c7   : > { %v4830_v45 = vsel %vm4669_vm1, %v4820_v13, %v4829_v32  ;;  %v3072_v30 = vsel %vm2601_vm2, %v3069_v43, %v3071_v55  ;;  %v7416_v13 = vld [vmem:[%s9578_s3 + $0x120] sm:$0xff]  }
 0x1cb   : > { %6544 = vmatmul.mubr.bf16.gmra.mrb[28].mxu1 %v2634_v26  ;;  %v3070_v26 = vsel %vm2601_vm2, %v3067_v39, %v3069_v43  ;;  %v3081_v39 = vrot.slane %v9278_v40, 1  ;;  %v7419_v43 = vld [vmem:[%s9578_s3 + $0x128] sm:$0xff]  }
 0x1cc   : > { %6547 = vmatprep.mubr.bf16.mxu1 %v2636_v29  ;;  %v4838_v29 = vor.u32 %v4837_v14, %v4834_v4  ;;  %v5151_v4 = vrot.slane %v9003_v3, 3  ;;  %v7420_v14 = vld [vmem:[%s9578_s3 + $0x130] sm:$0xff]  }
 0x1cd   : > { %6800 = vmatmul.mubr.bf16.gmra.mrb[24].mxu0 %v4803_v57  ;;  %v5145_v57 = vrot.slane %v8962_v34, 3 }
 0x1ce   : > { %6803 = vmatprep.mubr.bf16.mxu0 %v4812_v36  ;;  %v4839_v63 = vsel %vm4669_vm1, %v4829_v32, %v4838_v29  ;;  %v7414_v36 = vld [vmem:[#allocation2 + $0x40] sm:$0xff]   ;;  %v7417_v32 = vld [vmem:[#allocation2 + $0x48] sm:$0xff]   ;;  %v5152_v3 = vsel %vm5139_vm7, %v5149_v1, %v5151_v4  ;;  %v3485_v1 = vshll.u32 %v9278_v40, 16 }
 0x1cf   : > { %v3077_v24 = vrot.slane %v7414_v36, 1  ;;  %v3079_v35 = vrot.slane %v7417_v32, 1  ;;  %v5148_v15 = vsel %vm5139_vm7, %v5145_v57, %v5147_v6  ;;  %v3482_v6 = vshrl.u32 %v9278_v40, 16 }
 0x1d1   : > { %v3078_v34 = vsel %vm2601_vm2, %v3075_v46, %v3077_v24  ;;  %v3080_v59 = vsel %vm2601_vm2, %v3077_v24, %v3079_v35  ;;  %v9323_v46 = vld [vmem:[#allocation2 + $0x80] sm:$0xff]  }
 0x1d2   : > { %v3093_v36 = vrot.slane %v9323_v46, 1 }
 0x1d3   : > { %6548 = vmatmul.mubr.bf16.gmra.mrb[32].mxu1 %v2638_v25  ;;  %v5144_v25 = vsel %vm5139_vm7, %v5141_v5, %v5143_v0 }
 0x1d4   : > { %6567 = vmatprep.mubr.bf16.mxu1 %v3066_v10  ;;  %v5146_v10 = vsel %vm5139_vm7, %v5143_v0, %v5145_v57  ;;  %v5161_v0 = vrot.slane %v9058_v56, 3  ;;  %v9320_v57 = vld [vmem:[#allocation2 + $0x78] sm:$0xff]   ;;  %v5163_v56 = vrot.slane %v9075_v21, 3 }
 0x1d5   : > { %6804 = vmatmul.mubr.bf16.gmra.mrb[28].mxu0 %v4821_v19  ;;  %v3082_v19 = vsel %vm2601_vm2, %v3079_v35, %v3081_v39  ;;  %v3091_v27 = vrot.slane %v9320_v57, 1 }
 0x1d6   : > { %6807 = vmatprep.mubr.bf16.mxu0 %v4830_v45  ;;  %v5153_v45 = vrot.slane %v9009_v20, 3  ;;  %v5164_v32 = vsel %vm5139_vm7, %v5161_v0, %v5163_v56 }
 0x1d8   : > { %v5154_v20 = vsel %vm5139_vm7, %v5151_v4, %v5153_v45 }
 0x1db   : > { %6568 = vmatmul.mubr.bf16.vlgmr.msra.gmra.mrb[0].mxu1 %v3068_v48  ;;  %v3083_v48 = vrot.slane %v9293_v41, 1 }
 0x1dc   : > { %6871 = vmatpush3.bf16.msra.mxu1 %v9199_v58  ;;  %6571 = vmatprep.mubr.bf16.mxu1 %v3070_v26  ;;  %v3074_v58 = vsel %vm2601_vm2, %v3071_v55, %v3073_v62  ;;  %v9296_v26 = vld [vmem:[#allocation2 + $0x60] sm:$0xff]   ;;  %v5155_v55 = vrot.slane %v9029_v38, 3  ;;  %v3087_v62 = vrot.slane %v9308_v44, 1 }
 0x1dd   : > { %6864 = vmatprep.subr.bf16.mxu1 %v7410_v11  ;;  %6808 = vmatmul.mubr.bf16.gmra.mrb[32].mxu0 %v4839_v63  ;;  %v3085_v29 = vrot.slane %v9296_v26, 1  ;;  %v3084_v5 = vsel %vm2601_vm2, %v3081_v39, %v3083_v48  ;;  %v9311_v63 = vld [vmem:[#allocation2 + $0x70] sm:$0xff]   ;;  %v7384_v39 = vld [vmem:[#allocation2 + $0x98] ss:$0 sps:$4 sm:$0x11]  }
 0x1de   : > { %6827 = vmatprep.mubr.bf16.mxu0 %v5142_v31  ;;  %v3089_v31 = vrot.slane %v9311_v63, 1  ;;  %v3099_v40 = vrot.slane %v7384_v39, 1 }
 0x1df   : > { %v3086_v54 = vsel %vm2601_vm2, %v3083_v48, %v3085_v29 }
 0x1e0   : > { %6872 = vmatpush3.bf16.msra.mxu1 %v7410_v11  ;;  %v5157_v11 = vrot.slane %v9037_v22, 3  ;;  %v3090_v38 = vsel %vm2601_vm2, %v3087_v62, %v3089_v31  ;;  %v5159_v22 = vrot.slane %v9055_v47, 3  ;;  %v3094_v47 = vsel %vm2601_vm2, %v3091_v27, %v3093_v36 }
 0x1e1   : > { %6865 = vmatprep.subr.bf16.mxu1 %v7412_v52 }
 0x1e2   : > { %v5160_v24 = vsel %vm5139_vm7, %v5157_v11, %v5159_v22 }
 0x1e3   : > { %6572 = vmatmul.mubr.bf16.gmra.mrb[4].mxu1 %v3072_v30  ;;  %v5156_v30 = vsel %vm5139_vm7, %v5153_v45, %v5155_v55  ;;  %v3503_v45 = vshll.u32 %v9296_v26, 16 }
 0x1e4   : > { %6575 = vmatprep.mubr.bf16.mxu1 %v3074_v58  ;;  %6873 = vmatpush3.bf16.msra.mxu1 %v7412_v52  ;;  %v5158_v58 = vsel %vm5139_vm7, %v5155_v55, %v5157_v11  ;;  %v3088_v52 = vsel %vm2601_vm2, %v3085_v29, %v3087_v62  ;;  %v3509_v55 = vshrl.u32 %v9308_v44, 16  ;;  %v3512_v11 = vshll.u32 %v9308_v44, 16 }
 0x1e5   : > { %6866 = vmatprep.subr.bf16.mxu1 %v7415_v16  ;;  %6828 = vmatmul.mubr.bf16.vlgmr.msra.gmra.mrb[0].mxu0 %v5144_v25  ;;  %v3092_v25 = vsel %vm2601_vm2, %v3089_v31, %v3091_v27  ;;  %v3518_v31 = vshrl.u32 %v9311_v63, 16  ;;  %v5175_v44 = vrot.slane %v9240_v2, 3 }
 0x1e6   : > { %6831 = vmatprep.mubr.bf16.mxu0 %v5146_v10  ;;  %v5165_v10 = vrot.slane %v9078_v53, 3 }
 0x1e8   : > { %6874 = vmatpush3.bf16.msra.mxu1 %v7415_v16  ;;  %v5162_v16 = vsel %vm5139_vm7, %v5159_v22, %v5161_v0  ;;  %v5166_v35 = vsel %vm5139_vm7, %v5163_v56, %v5165_v10  ;;  %v3520_v22 = vrot.slane %v3518_v31, 1 }
 0x1e9   : > { %6867 = vmatprep.subr.bf16.mxu1 %v7416_v13 }
 0x1eb   : > { %6576 = vmatmul.mubr.bf16.gmra.mrb[8].mxu1 %v3076_v23  ;;  %v9332_v23 = vld [vmem:[#allocation2 + $0x88] sm:$0xff]  }
 0x1ec   : > { %6579 = vmatprep.mubr.bf16.mxu1 %v3078_v34  ;;  %6875 = vmatpush3.bf16.msra.mxu1 %v7416_v13  ;;  %v3095_v34 = vrot.slane %v9332_v23, 1  ;;  %v3097_v13 = vrot.slane %v8940_v37, 1  ;;  %v5169_v37 = vrot.slane %v9089_v9, 3 }
 0x1ed   : > { %6868 = vmatprep.subr.bf16.mxu1 %v7419_v43  ;;  %6832 = vmatmul.mubr.bf16.gmra.mrb[4].mxu0 %v5148_v15  ;;  %v3484_v15 = vrot.slane %v3482_v6, 1 }
 0x1ee   : > { %6835 = vmatprep.mubr.bf16.mxu0 %v5150_v17  ;;  %v3096_v21 = vsel %vm2601_vm2, %v3093_v36, %v3095_v34  ;;  %v3098_v53 = vsel %vm2601_vm2, %v3095_v34, %v3097_v13  ;;  %v5167_v17 = vrot.slane %v9086_v60, 3  ;;  %v3100_v60 = vsel %vm2601_vm2, %v3097_v13, %v3099_v40  ;;  %vm9850_vm2 = vmmov %vm9849_vm6 }
 0x1ef   : > { %vm9851_vm8 = vmmov %vm9850_vm2  ;;  %v3530_v36 = vshll.u32 %v9320_v57, 16 }
 0x1f0   : > { %6876 = vmatpush3.bf16.msra.mxu1 %v7419_v43  ;;  %v3487_v43 = vrot.slane %v3485_v1, 2  ;;  %v5168_v48 = vsel %vm5139_vm7, %v5165_v10, %v5167_v17  ;;  %v5170_v29 = vsel %vm5139_vm7, %v5167_v17, %v5169_v37  ;;  %vm9852_vm1 = vmmov %vm9850_vm2 }
 0x1f1   : > { %6869 = vmatprep.subr.bf16.mxu1 %v7420_v14  ;;  %v3532_v34 = vrot.slane %v3530_v36, 2  ;;  %vm9853_vm5 = vmmov %vm9852_vm1 }
 0x1f2   : > { %v3488_v4 = vor.u32 %v3487_v43, %v3484_v15 }
 0x1f3   : > { %6580 = vmatmul.mubr.bf16.gmra.mrb[12].mxu1 %v3080_v59  ;;  %v3491_v59 = vshrl.u32 %v9293_v41, 16 }
 0x1f4   : > { %6583 = vmatprep.mubr.bf16.mxu1 %v3082_v19  ;;  %6877 = vmatpush3.bf16.msra.mxu1 %v7420_v14  ;;  %v3494_v19 = vshll.u32 %v9293_v41, 16  ;;  %v3500_v14 = vshrl.u32 %v9296_v26, 16  ;;  %v5171_v41 = vrot.slane %v9097_v33, 3 }
 0x1f5   : > { %6870 = vmatprep.subr.bf16.mxu1 %v7423_v7  ;;  %6836 = vmatmul.mubr.bf16.gmra.mrb[8].mxu0 %v5152_v3  ;;  %v3493_v3 = vrot.slane %v3491_v59, 1 }
 0x1f6   : > { %6839 = vmatprep.mubr.bf16.mxu0 %v5154_v20  ;;  %v3496_v9 = vrot.slane %v3494_v19, 2  ;;  %v3502_v20 = vrot.slane %v3500_v14, 1  ;;  %v7430_v19 = vld [vmem:[#allocation2 + $0x98] ss:$0 sps:$4 sm:$0x33]  }
 0x1f7   : > { %v3566_v14 = vshll.u32 %v7430_v19, 16 }
 0x1f8   : > { %6878 = vmatpush3.bf16.msra.mxu1 %v7423_v7  ;;  %v3489_v7 = vsel %vm9849_vm6, %v8433_v42, %v3488_v4  ;;  %v3497_v26 = vor.u32 %v3496_v9, %v3493_v3  ;;  %v5172_v42 = vsel %vm5139_vm7, %v5169_v37, %v5171_v41  ;;  %vm9855_vm6 = vmmov %vm9852_vm1 }
 0x1fa   : > { %v3498_v33 = vsel %vm9850_vm2, %v3488_v4, %v3497_v26  ;;  %v3563_v4 = vshrl.u32 %v7430_v19, 16  ;;  %vm9856_vm2 = vmmov %vm9852_vm1 }
 0x1fb   : > { %6584 = vmatmul.mubr.bf16.gmra.mrb[16].mxu1 %v3084_v5  ;;  %v3505_v5 = vrot.slane %v3503_v45, 2 }
 0x1fc   : > { %6587 = vmatprep.mubr.bf16.mxu1 %v3086_v54  ;;  %v5173_v54 = vrot.slane %v9100_v8, 3  ;;  %v3514_v8 = vrot.slane %v3512_v11, 2 }
 0x1fd   : > { %6840 = vmatmul.mubr.bf16.gmra.mrb[12].mxu0 %v5156_v30  ;;  %v3506_v62 = vor.u32 %v3505_v5, %v3502_v20  ;;  %v3521_v30 = vshll.u32 %v9311_v63, 16  ;;  %v3527_v63 = vshrl.u32 %v9320_v57, 16  ;;  %v3545_v57 = vshrl.u32 %v9332_v23, 16 }
 0x1fe   : > { %6843 = vmatprep.mubr.bf16.mxu0 %v5158_v58  ;;  %v5174_v58 = vsel %vm5139_vm7, %v5171_v41, %v5173_v54 }
 0x1ff   : > { %v3523_v0 = vrot.slane %v3521_v30, 2  ;;  %v3529_v10 = vrot.slane %v3527_v63, 1  ;;  %v3547_v15 = vrot.slane %v3545_v57, 1 }
 0x201   : > { %v3533_v1 = vor.u32 %v3532_v34, %v3529_v10 }
 0x203   : > { %6588 = vmatmul.mubr.bf16.gmra.mrb[20].mxu1 %v3088_v52  ;;  %v3511_v52 = vrot.slane %v3509_v55, 1 }
 0x204   : > { %6591 = vmatprep.mubr.bf16.mxu1 %v3090_v38  ;;  %v3507_v38 = vsel %vm9851_vm8, %v3497_v26, %v3506_v62  ;;  %vm9857_vm8 = vmmov %vm9852_vm1 }
 0x205   : > { %6844 = vmatmul.mubr.bf16.gmra.mrb[16].mxu0 %v5160_v24  ;;  %v3515_v27 = vor.u32 %v3514_v8, %v3511_v52  ;;  %v3524_v24 = vor.u32 %v3523_v0, %v3520_v22 }
 0x206   : > { %6847 = vmatprep.mubr.bf16.mxu0 %v5162_v16  ;;  %v3536_v16 = vshrl.u32 %v9323_v46, 16 }
 0x207   : > { %v3516_v56 = vsel %vm9852_vm1, %v3506_v62, %v3515_v27  ;;  %v3525_v2 = vsel %vm9853_vm5, %v3515_v27, %v3524_v24 }
 0x208   : > { %v3538_v13 = vrot.slane %v3536_v16, 1 }
 0x20b   : > { %6592 = vmatmul.mubr.bf16.gmra.mrb[24].mxu1 %v3092_v25  ;;  %v3539_v25 = vshll.u32 %v9323_v46, 16  ;;  %v7429_v46 = vld [vmem:[#allocation2 + $0x90] sm:$0xff]  }
 0x20c   : > { %6595 = vmatprep.mubr.bf16.mxu1 %v3094_v47  ;;  %v5176_v47 = vsel %vm5139_vm7, %v5173_v54, %v5175_v44  ;;  %v3557_v39 = vshll.u32 %v7429_v46, 16  ;;  %vm9854_vm7 = vmmov %vm9852_vm1 }
 0x20d   : > { %6848 = vmatmul.mubr.bf16.gmra.mrb[20].mxu0 %v5164_v32  ;;  %v3541_v6 = vrot.slane %v3539_v25, 2  ;;  %v3548_v32 = vshll.u32 %v9332_v23, 16 }
 0x20e   : > { %6851 = vmatprep.mubr.bf16.mxu0 %v5166_v35  ;;  %v3559_v40 = vrot.slane %v3557_v39, 2 }
 0x20f   : > { %v3542_v35 = vor.u32 %v3541_v6, %v3538_v13  ;;  %v3550_v43 = vrot.slane %v3548_v32, 2 }
 0x211   : > { %v3543_v17 = vsel %vm9855_vm6, %v3533_v1, %v3542_v35  ;;  %v3551_v59 = vor.u32 %v3550_v43, %v3547_v15  ;;  %v9859_v43 = vld [vmem:[#allocation4_spill] sm:$0xff] }
 0x213   : > { %6596 = vmatmul.mubr.bf16.gmra.mrb[28].mxu1 %v3096_v21  ;;  %v3554_v21 = vshrl.u32 %v7429_v46, 16  ;;  %v3552_v45 = vsel %vm9856_vm2, %v3542_v35, %v3551_v59 }
 0x214   : > { %6599 = vmatprep.mubr.bf16.mxu1 %v3098_v53  ;;  %v3534_v53 = vsel %vm9854_vm7, %v3524_v24, %v3533_v1 }
 0x215   : > { %6852 = vmatmul.mubr.bf16.gmra.mrb[24].mxu0 %v5168_v48  ;;  %v3556_v37 = vrot.slane %v3554_v21, 1  ;;  %v3565_v48 = vrot.slane %v3563_v4, 1 }
 0x216   : > { %6855 = vmatprep.mubr.bf16.mxu0 %v5170_v29  ;;  %v3568_v29 = vrot.slane %v3566_v14, 2 }
 0x217   : > { %v3560_v23 = vor.u32 %v3559_v40, %v3556_v37 }
 0x218   : > { %v3569_v3 = vor.u32 %v3568_v29, %v3565_v48 }
 0x21a   : > { %v3570_v9 = vsel %vm9852_vm1, %v3560_v23, %v3569_v3 }
 0x21b   : > { %6600 = vmatmul.mubr.bf16.gmra.mrb[32].mxu1 %v3100_v60  ;;  %v3561_v60 = vsel %vm9857_vm8, %v3551_v59, %v3560_v23 }
 0x21c   : > { %6635 = vmatprep.mubr.bf16.mxu1 %v3489_v7 }
 0x21d   : > { %6856 = vmatmul.mubr.bf16.gmra.mrb[28].mxu0 %v5172_v42  ;;  %v7440_v42 = vmov 0.0  }
 0x21e   : > { %6859 = vmatprep.mubr.bf16.mxu0 %v5174_v58  ;;  %v5997_v58 = vsel %vm7632_vm10, 1.0, %v7440_v42  ;;  %v5998_v44 = vsel %vm7638_vm11, 1.0, %v7440_v42  ;;  %v6000_v12 = vsel %vm7684_vm0, 1.0, %v7440_v42  ;;  %v6003_v61 = vsel %vm7823_vm14, 1.0, %v7440_v42 }
 0x21f   : > { %v6001_v6 = vsel %vm7777_vm3, 1.0, %v7440_v42  ;;  %vm9858_vm10 = vnez %v9672_v28  ;;  %vm9860_vm11 = vnez %v9859_v43 }
 0x220   : > { %v6004_v51 = vsel %vm9858_vm10, 1.0, %v7440_v42  ;;  %v6002_v50 = vsel %vm9860_vm11, 1.0, %v7440_v42 }
 0x223   : > { %6636 = vmatmul.mubr.bf16.vlgmr.msra.gmra.mrb[16].mxu1 %v3498_v33 }
 0x224   : > { %6639 = vmatprep.mubr.bf16.mxu1 %v3507_v38  ;;  %v5999_v38 = vsel %vm7664_vm4, 1.0, %v7440_v42 }
 0x225   : > { %6860 = vmatmul.mubr.bf16.gmra.mrb[32].mxu0 %v5176_v47 }
 0x22b   : > { %6640 = vmatmul.mubr.bf16.gmra.mrb[20].mxu1 %v3516_v56 }
 0x22c   : > { %6643 = vmatprep.mubr.bf16.mxu1 %v3525_v2 }
 0x233   : > { %6644 = vmatmul.mubr.bf16.gmra.mrb[24].mxu1 %v3534_v53 }
 0x234   : > { %6647 = vmatprep.mubr.bf16.mxu1 %v3543_v17 }
 0x23b   : > { %6648 = vmatmul.mubr.bf16.gmra.mrb[28].mxu1 %v3552_v45 }
 0x23c   : > { %6651 = vmatprep.mubr.bf16.mxu1 %v3561_v60 }
 0x243   : > { %6652 = vmatmul.mubr.bf16.gmra.mrb[32].mxu1 %v3570_v9 }
 0x2ae   : > { %v6569_v7 = vpop.f32.mrb[0].mxu1 }
 0x2af   : > { %v3201_v20 = vpop.f32.mrb[1].mxu1 }
 0x2b0   : > { %v6570_v5 = vpop.f32.mrb[2].mxu1 }
 0x2b1   : > { %v3204_v41 = vpop.f32.mrb[3].mxu1 }
 0x2b6   : > { %v6573_v54 = vpop.f32.mrb[4].mxu1 }
 0x2b7   : > { %v3217_v26 = vpop.f32.mrb[5].mxu1 }
 0x2b8   : > { %v6574_v55 = vpop.f32.mrb[6].mxu1  ;;  %v6829_v62 = vpop.f32.mrb[0].mxu0 }
 0x2b9   : > { %v3220_v11 = vpop.f32.mrb[7].mxu1  ;;  %v6879_v31 = vadd.f32 %v6829_v62, %v6569_v7  ;;  %v5277_v30 = vpop.f32.mrb[1].mxu0 }
 0x2ba   : > { %v6880_v33 = vadd.f32 %v5277_v30, %v3201_v20  ;;  %v6830_v52 = vpop.f32.mrb[2].mxu0 }
 0x2bb   : > { %5694 = vst [vmem:[%s9382_s21 + $0x10] sm:$0xff] %v6879_v31  ;;  %v6881_v22 = vadd.f32 %v6830_v52, %v6570_v5  ;;  %v5280_v0 = vpop.f32.mrb[3].mxu0  ;;  %v5530_v16 = vmul.f32 %v6879_v31, %v5999_v38  ;;  %v9865_v38 = vld [vmem:[#allocation8_spill] sm:$0xff] }
 0x2bc   : > { %v5528_v63 = vmul.f32 %v6880_v33, %v5997_v58  ;;  %5692 = vst [vmem:[%s9382_s21] sm:$0xff] %v6880_v33  ;;  %v6882_v36 = vadd.f32 %v5280_v0, %v3204_v41  ;;  %v9861_v41 = vld [vmem:[#allocation7_spill] sm:$0xff]  ;;  %vm9866_vm3 = vnez %v9865_v38 }
 0x2bd   : > { %5695 = vst [vmem:[%s9382_s21 + $0x18] sm:$0xff] %v6881_v22  ;;  %v5531_v47 = vmul.f32 %v6881_v22, %v6000_v12  ;;  %v5607_v1 = vmul.f32 %v6879_v31, %v5530_v16  ;;  %vm9862_vm4 = vnez %v9861_v41 }
 0x2be   : > { %v6577_v8 = vpop.f32.mrb[8].mxu1  ;;  %v5529_v25 = vmul.f32 %v6882_v36, %v5998_v44  ;;  %5693 = vst [vmem:[%s9382_s21 + $0x8] sm:$0xff] %v6882_v36  ;;  %v5605_v56 = vmul.f32 %v6880_v33, %v5528_v63  ;;  %v9867_v44 = vld [vmem:[#allocation6_spill] sm:$0xff] }
 0x2bf   : > { %v3233_v27 = vpop.f32.mrb[9].mxu1  ;;  %v5608_v39 = vmul.f32 %v6881_v22, %v5531_v47  ;;  %v6008_v22 = vsel %vm9866_vm3, 1.0, %v7440_v42  ;;  %vm9868_vm14 = vnez %v9867_v44 }
 0x2c0   : > { %v6578_v24 = vpop.f32.mrb[10].mxu1  ;;  %v5564_v18 = vadd.f32 %v5529_v25, %v5528_v63  ;;  %v5606_v10 = vmul.f32 %v6882_v36, %v5529_v25  ;;  %v6833_v34 = vpop.f32.mrb[4].mxu0  ;;  %v6006_v63 = vsel %vm9868_vm14, 1.0, %v7440_v42 }
 0x2c1   : > { %v9399_v49 = vpop.f32.mrb[11].mxu1  ;;  %v6883_v2 = vadd.f32 %v6833_v34, %v6573_v54  ;;  %v5293_v13 = vpop.f32.mrb[5].mxu0  ;;  %v6007_v54 = vsel %vm9862_vm4, 1.0, %v7440_v42 }
 0x2c2   : > { %v5565_v57 = vadd.f32 %v5564_v18, %v5530_v16  ;;  %v5641_v32 = vadd.f32 %v5606_v10, %v5605_v56  ;;  %v6884_v35 = vadd.f32 %v5293_v13, %v3217_v26  ;;  %v6834_v46 = vpop.f32.mrb[6].mxu0 }
 0x2c3   : > { %5698 = vst [vmem:[%s9382_s21 + $0x30] sm:$0xff] %v6883_v2  ;;  %v6885_v53 = vadd.f32 %v6834_v46, %v6574_v55  ;;  %v5296_v15 = vpop.f32.mrb[7].mxu0  ;;  %v5534_v14 = vmul.f32 %v6883_v2, %v6003_v61  ;;  %v9863_v55 = vld [vmem:[#allocation5_spill] sm:$0xff] }
 0x2c4   : > { %v5642_v37 = vadd.f32 %v5641_v32, %v5607_v1  ;;  %v5532_v40 = vmul.f32 %v6884_v35, %v6001_v6  ;;  %v5566_v59 = vadd.f32 %v5565_v57, %v5531_v47  ;;  %5696 = vst [vmem:[%s9382_s21 + $0x20] sm:$0xff] %v6884_v35  ;;  %v6886_v19 = vadd.f32 %v5296_v15, %v3220_v11  ;;  %v9869_v1 = vld [vmem:[#allocation11_spill] sm:$0xff]  ;;  %v9871_v32 = vld [vmem:[#allocation9_spill] sm:$0xff] }
 0x2c5   : > { %5699 = vst [vmem:[%s9382_s21 + $0x38] sm:$0xff] %v6885_v53  ;;  %v5535_v60 = vmul.f32 %v6885_v53, %v6004_v51  ;;  %vm9864_vm0 = vnez %v9863_v55  ;;  %v5611_v62 = vmul.f32 %v6883_v2, %v5534_v14  ;;  %vm9870_vm5 = vnez %v9869_v1 }
 0x2c6   : > { %v6581_v21 = vpop.f32.mrb[12].mxu1  ;;  %v5567_v45 = vadd.f32 %v5566_v59, %v5532_v40  ;;  %v5609_v48 = vmul.f32 %v6884_v35, %v5532_v40  ;;  %v5643_v28 = vadd.f32 %v5642_v37, %v5608_v39  ;;  %v5533_v29 = vmul.f32 %v6886_v19, %v6002_v50  ;;  %5697 = vst [vmem:[%s9382_s21 + $0x28] sm:$0xff] %v6886_v19  ;;  %v9873_v37 = vld [vmem:[#allocation10_spill] sm:$0xff] }
 0x2c7   : > { %v3249_v17 = vpop.f32.mrb[13].mxu1  ;;  %v6005_v11 = vsel %vm9864_vm0, 1.0, %v7440_v42  ;;  %v5612_v52 = vmul.f32 %v6885_v53, %v5535_v60  ;;  %v6011_v57 = vsel %vm9870_vm5, 1.0, %v7440_v42  ;;  %vm9872_vm7 = vnez %v9871_v32 }
 0x2c8   : > { %v6582_v4 = vpop.f32.mrb[14].mxu1  ;;  %v5644_v3 = vadd.f32 %v5643_v28, %v5609_v48  ;;  %v5568_v9 = vadd.f32 %v5567_v45, %v5533_v29  ;;  %v5610_v7 = vmul.f32 %v6886_v19, %v5533_v29  ;;  %v6837_v20 = vpop.f32.mrb[8].mxu0  ;;  %v6009_v35 = vsel %vm9872_vm7, 1.0, %v7440_v42  ;;  %v9875_v28 = vld [vmem:[#allocation12_spill] sm:$0xff] }
 0x2c9   : > { %v3252_v23 = vpop.f32.mrb[15].mxu1  ;;  %v6887_v5 = vadd.f32 %v6837_v20, %v6577_v8  ;;  %v5309_v26 = vpop.f32.mrb[9].mxu0  ;;  %vm9874_vm6 = vnez %v9873_v37  ;;  %vm9876_vm2 = vnez %v9875_v28 }
 0x2ca   : > { %v5569_v31 = vadd.f32 %v5568_v9, %v5534_v14  ;;  %v5645_v30 = vadd.f32 %v5644_v3, %v5610_v7  ;;  %v6888_v58 = vadd.f32 %v5309_v26, %v3233_v27  ;;  %v6838_v33 = vpop.f32.mrb[10].mxu0  ;;  %v6010_v40 = vsel %vm9874_vm6, 1.0, %v7440_v42 }
 0x2cb   : > { %5702 = vst [vmem:[%s9382_s21 + $0x50] sm:$0xff] %v6887_v5  ;;  %v6889_v8 = vadd.f32 %v6838_v33, %v6578_v24  ;;  %v5312_v0 = vpop.f32.mrb[11].mxu0  ;;  %v5538_v25 = vmul.f32 %v6887_v5, %v6007_v54 }
 0x2cc   : > { %v5646_v12 = vadd.f32 %v5645_v30, %v5611_v62  ;;  %v5536_v36 = vmul.f32 %v6888_v58, %v6005_v11  ;;  %v5570_v16 = vadd.f32 %v5569_v31, %v5535_v60  ;;  %5700 = vst [vmem:[%s9382_s21 + $0x40] sm:$0xff] %v6888_v58  ;;  %v6890_v27 = vadd.f32 %v5312_v0, %v9399_v49 }
 0x2cd   : > { %5703 = vst [vmem:[%s9382_s21 + $0x58] sm:$0xff] %v6889_v8  ;;  %v5539_v10 = vmul.f32 %v6889_v8, %v6008_v22  ;;  %v5615_v46 = vmul.f32 %v6887_v5, %v5538_v25 }
 0x2ce   : > { %v5571_v47 = vadd.f32 %v5570_v16, %v5536_v36  ;;  %v5613_v56 = vmul.f32 %v6888_v58, %v5536_v36  ;;  %v5647_v24 = vadd.f32 %v5646_v12, %v5612_v52  ;;  %v5537_v18 = vmul.f32 %v6890_v27, %v6006_v63  ;;  %5701 = vst [vmem:[%s9382_s21 + $0x48] sm:$0xff] %v6890_v27 }
 0x2cf   : > { %v5616_v43 = vmul.f32 %v6889_v8, %v5539_v10 }
 0x2d0   : > { %v5648_v34 = vadd.f32 %v5647_v24, %v5613_v56  ;;  %v5572_v2 = vadd.f32 %v5571_v47, %v5537_v18  ;;  %v5614_v61 = vmul.f32 %v6890_v27, %v5537_v18  ;;  %v6841_v13 = vpop.f32.mrb[12].mxu0  ;;  %v9877_v18 = vld [vmem:[#allocation13_spill] sm:$0xff] }
 0x2d1   : > { %v6891_v6 = vadd.f32 %v6841_v13, %v6581_v21  ;;  %v5325_v49 = vpop.f32.mrb[13].mxu0  ;;  %vm9878_vm8 = vnez %v9877_v18 }
 0x2d2   : > { %v5573_v39 = vadd.f32 %v5572_v2, %v5538_v25  ;;  %v5649_v53 = vadd.f32 %v5648_v34, %v5614_v61  ;;  %v6892_v51 = vadd.f32 %v5325_v49, %v3249_v17  ;;  %v6842_v15 = vpop.f32.mrb[14].mxu0  ;;  %v6012_v17 = vsel %vm9876_vm2, 1.0, %v7440_v42  ;;  %v9879_v61 = vld [vmem:[#allocation15_spill] sm:$0xff] }
 0x2d3   : > { %5706 = vst [vmem:[%s9382_s21 + $0x70] sm:$0xff] %v6891_v6  ;;  %v6893_v21 = vadd.f32 %v6842_v15, %v6582_v4  ;;  %v5328_v50 = vpop.f32.mrb[15].mxu0  ;;  %v5542_v48 = vmul.f32 %v6891_v6, %v6011_v57  ;;  %vm9880_vm1 = vnez %v9879_v61  ;;  %v9881_v57 = vld [vmem:[#allocation14_spill] sm:$0xff] }
 0x2d4   : > { %v5650_v59 = vadd.f32 %v5649_v53, %v5615_v46  ;;  %v5540_v19 = vmul.f32 %v6892_v51, %v6009_v35  ;;  %v5574_v14 = vadd.f32 %v5573_v39, %v5539_v10  ;;  %5704 = vst [vmem:[%s9382_s21 + $0x60] sm:$0xff] %v6892_v51  ;;  %v6894_v45 = vadd.f32 %v5328_v50, %v3252_v23  ;;  %v9883_v35 = vld [vmem:[#allocation16_spill] sm:$0xff] }
 0x2d5   : > { %5707 = vst [vmem:[%s9382_s21 + $0x78] sm:$0xff] %v6893_v21  ;;  %v5543_v7 = vmul.f32 %v6893_v21, %v6012_v17  ;;  %v5619_v26 = vmul.f32 %v6891_v6, %v5542_v48  ;;  %v6013_v10 = vsel %vm9878_vm8, 1.0, %v7440_v42  ;;  %v6015_v13 = vsel %vm9880_vm1, 1.0, %v7440_v42  ;;  %v9885_v17 = vld [vmem:[#allocation19_spill] sm:$0xff] }
 0x2d6   : > { %v5575_v29 = vadd.f32 %v5574_v14, %v5540_v19  ;;  %v5617_v60 = vmul.f32 %v6892_v51, %v5540_v19  ;;  %v5651_v3 = vadd.f32 %v5650_v59, %v5616_v43  ;;  %v5541_v4 = vmul.f32 %v6894_v45, %v6010_v40  ;;  %5705 = vst [vmem:[%s9382_s21 + $0x68] sm:$0xff] %v6894_v45 }
 0x2d7   : > { %v5620_v31 = vmul.f32 %v6893_v21, %v5543_v7  ;;  %vm9882_vm10 = vnez %v9881_v57  ;;  %vm9884_vm11 = vnez %v9883_v35  ;;  %vm9886_vm4 = vnez %v9885_v17  ;;  %v9895_v57 = vld [vmem:[#allocation21_spill] sm:$0xff] }
 0x2d8   : > { %v5652_v9 = vadd.f32 %v5651_v3, %v5617_v60  ;;  %v5576_v20 = vadd.f32 %v5575_v29, %v5541_v4  ;;  %v5618_v5 = vmul.f32 %v6894_v45, %v5541_v4  ;;  %v6845_v41 = vpop.f32.mrb[16].mxu0  ;;  %v6014_v49 = vsel %vm9882_vm10, 1.0, %v7440_v42  ;;  %v9887_v3 = vld [vmem:[#allocation17_spill] sm:$0xff] }
 0x2d9   : > { %v5341_v54 = vpop.f32.mrb[17].mxu0  ;;  %v6016_v46 = vsel %vm9884_vm11, 1.0, %v7440_v42  ;;  %v6019_v29 = vsel %vm9886_vm4, 1.0, %v7440_v42  ;;  %vm9888_vm0 = vnez %v9887_v3  ;;  %vm9896_vm7 = vnez %v9895_v57 }
 0x2da   : > { %v5577_v55 = vadd.f32 %v5576_v20, %v5542_v48  ;;  %v5653_v23 = vadd.f32 %v5652_v9, %v5618_v5  ;;  %v6846_v11 = vpop.f32.mrb[18].mxu0  ;;  %v6017_v4 = vsel %vm9888_vm0, 1.0, %v7440_v42 }
 0x2db   : > { %v5344_v62 = vpop.f32.mrb[19].mxu0 }
 0x2dc   : > { %v5654_v30 = vadd.f32 %v5653_v23, %v5619_v26  ;;  %v5578_v58 = vadd.f32 %v5577_v55, %v5543_v7  ;;  %v9889_v55 = vld [vmem:[#allocation20_spill] sm:$0xff] }
 0x2dd   : > { %vm9890_vm3 = vnez %v9889_v55  ;;  %v9903_v55 = vld [vmem:[#allocation25_spill] sm:$0xff] }
 0x2de   : > { %v5655_v33 = vadd.f32 %v5654_v30, %v5620_v31  ;;  %v6020_v23 = vsel %vm9890_vm3, 1.0, %v7440_v42  ;;  %vm9904_vm1 = vnez %v9903_v55 }
 0x2e0   : > { %v6849_v52 = vpop.f32.mrb[20].mxu0 }
 0x2e1   : > { %v5357_v8 = vpop.f32.mrb[21].mxu0 }
 0x2e2   : > { %v6850_v38 = vpop.f32.mrb[22].mxu0 }
 0x2e3   : > { %v5360_v22 = vpop.f32.mrb[23].mxu0 }
 0x2e8   : > { %v9451_v0 = vpop.f32.mrb[24].mxu0 }
 0x2e9   : > { %v9453_v44 = vpop.f32.mrb[25].mxu0 }
 0x2ea   : > { %v9455_v63 = vpop.f32.mrb[26].mxu0 }
 0x2eb   : > { %v9457_v12 = vpop.f32.mrb[27].mxu0 }
 0x2f0   : > { %v9459_v36 = vpop.f32.mrb[28].mxu0 }
 0x2f1   : > { %v9461_v16 = vpop.f32.mrb[29].mxu0 }
 0x2f2   : > { %v9463_v27 = vpop.f32.mrb[30].mxu0 }
 0x2f3   : > { %v9465_v47 = vpop.f32.mrb[31].mxu0 }
 0x2f6   : > { %v6637_v25 = vpop.f32.mrb[16].mxu1 }
 0x2f7   : > { %v6895_v56 = vadd.f32 %v6845_v41, %v6637_v25  ;;  %v3735_v24 = vpop.f32.mrb[17].mxu1 }
 0x2f8   : > { %v6896_v34 = vadd.f32 %v5341_v54, %v3735_v24  ;;  %v6638_v2 = vpop.f32.mrb[18].mxu1  ;;  %v9482_v53 = vpop.f32.mrb[32].mxu0 }
 0x2f9   : > { %5710 = vst [vmem:[%s9382_s21 + $0x90] sm:$0xff] %v6895_v56  ;;  %v6897_v6 = vadd.f32 %v6846_v11, %v6638_v2  ;;  %v3738_v1 = vpop.f32.mrb[19].mxu1  ;;  %v5546_v51 = vmul.f32 %v6895_v56, %v6015_v13  ;;  %v9485_v50 = vpop.f32.mrb[33].mxu0 }
 0x2fa   : > { %v5544_v32 = vmul.f32 %v6896_v34, %v6013_v10  ;;  %5708 = vst [vmem:[%s9382_s21 + $0x80] sm:$0xff] %v6896_v34  ;;  %v6898_v39 = vadd.f32 %v5344_v62, %v3738_v1  ;;  %v9487_v40 = vpop.f32.mrb[34].mxu0  ;;  %v9891_v62 = vld [vmem:[#allocation18_spill] sm:$0xff] }
 0x2fb   : > { %5711 = vst [vmem:[%s9382_s21 + $0x98] sm:$0xff] %v6897_v6  ;;  %v5547_v37 = vmul.f32 %v6897_v6, %v6016_v46  ;;  %v9489_v48 = vpop.f32.mrb[35].mxu0  ;;  %v5623_v9 = vmul.f32 %v6895_v56, %v5546_v51  ;;  %vm9892_vm14 = vnez %v9891_v62 }
 0x2fc   : > { %v5579_v15 = vadd.f32 %v5578_v58, %v5544_v32  ;;  %v5621_v43 = vmul.f32 %v6896_v34, %v5544_v32  ;;  %v5545_v21 = vmul.f32 %v6898_v39, %v6014_v49  ;;  %5709 = vst [vmem:[%s9382_s21 + $0x88] sm:$0xff] %v6898_v39  ;;  %v6018_v31 = vsel %vm9892_vm14, 1.0, %v7440_v42 }
 0x2fd   : > { %v5624_v54 = vmul.f32 %v6897_v6, %v5547_v37  ;;  %v9893_v6 = vld [vmem:[#allocation23_spill] sm:$0xff]  ;;  %v6021_v49 = vsel %vm9896_vm7, 1.0, %v7440_v42 }
 0x2fe   : > { %v5656_v59 = vadd.f32 %v5655_v33, %v5621_v43  ;;  %v5580_v19 = vadd.f32 %v5579_v15, %v5545_v21  ;;  %v5622_v14 = vmul.f32 %v6898_v39, %v5545_v21  ;;  %v6641_v45 = vpop.f32.mrb[20].mxu1  ;;  %vm9894_vm5 = vnez %v9893_v6  ;;  %v9897_v43 = vld [vmem:[#allocation24_spill] sm:$0xff] }
 0x2ff   : > { %v6899_v28 = vadd.f32 %v6849_v52, %v6641_v45  ;;  %v3751_v60 = vpop.f32.mrb[21].mxu1  ;;  %v6023_v1 = vsel %vm9894_vm5, 1.0, %v7440_v42  ;;  %vm9898_vm6 = vnez %v9897_v43 }
 0x300   : > { %v5581_v7 = vadd.f32 %v5580_v19, %v5546_v51  ;;  %v5657_v20 = vadd.f32 %v5656_v59, %v5622_v14  ;;  %v6900_v5 = vadd.f32 %v5357_v8, %v3751_v60  ;;  %v6642_v41 = vpop.f32.mrb[22].mxu1  ;;  %v6024_v21 = vsel %vm9898_vm6, 1.0, %v7440_v42  ;;  %v9899_v59 = vld [vmem:[#allocation22_spill] sm:$0xff] }
 0x301   : > { %5714 = vst [vmem:[%s9382_s21 + $0xb0] sm:$0xff] %v6899_v28  ;;  %v6901_v26 = vadd.f32 %v6850_v38, %v6642_v41  ;;  %v3754_v11 = vpop.f32.mrb[23].mxu1  ;;  %v5550_v8 = vmul.f32 %v6899_v28, %v6019_v29  ;;  %vm9900_vm2 = vnez %v9899_v59 }
 0x302   : > { %v5658_v30 = vadd.f32 %v5657_v20, %v5623_v9  ;;  %v5548_v58 = vmul.f32 %v6900_v5, %v6017_v4  ;;  %v5582_v33 = vadd.f32 %v5581_v7, %v5547_v37  ;;  %5712 = vst [vmem:[%s9382_s21 + $0xa0] sm:$0xff] %v6900_v5  ;;  %v6902_v52 = vadd.f32 %v5360_v22, %v3754_v11 }
 0x303   : > { %5715 = vst [vmem:[%s9382_s21 + $0xb8] sm:$0xff] %v6901_v26  ;;  %v5551_v18 = vmul.f32 %v6901_v26, %v6020_v23  ;;  %v5627_v32 = vmul.f32 %v6899_v28, %v5550_v8  ;;  %v6022_v19 = vsel %vm9900_vm2, 1.0, %v7440_v42  ;;  %v6025_v23 = vsel %vm9904_vm1, 1.0, %v7440_v42 }
 0x304   : > { %v5583_v25 = vadd.f32 %v5582_v33, %v5548_v58  ;;  %v5625_v56 = vmul.f32 %v6900_v5, %v5548_v58  ;;  %v5659_v24 = vadd.f32 %v5658_v30, %v5624_v54  ;;  %v5549_v38 = vmul.f32 %v6902_v52, %v6018_v31  ;;  %5713 = vst [vmem:[%s9382_s21 + $0xa8] sm:$0xff] %v6902_v52  ;;  %v9901_v54 = vld [vmem:[#allocation27_spill] sm:$0xff] }
 0x305   : > { %v5628_v15 = vmul.f32 %v6901_v26, %v5551_v18  ;;  %vm9902_vm8 = vnez %v9901_v54 }
 0x306   : > { %v5660_v10 = vadd.f32 %v5659_v24, %v5625_v56  ;;  %v5584_v34 = vadd.f32 %v5583_v25, %v5549_v38  ;;  %v5626_v2 = vmul.f32 %v6902_v52, %v5549_v38  ;;  %v6645_v61 = vpop.f32.mrb[24].mxu1  ;;  %v6027_v26 = vsel %vm9902_vm8, 1.0, %v7440_v42  ;;  %v9905_v52 = vld [vmem:[#allocation28_spill] sm:$0xff]  ;;  %v9907_v56 = vld [vmem:[#allocation26_spill] sm:$0xff] }
 0x307   : > { %v6903_v13 = vadd.f32 %v9451_v0, %v6645_v61  ;;  %v3767_v22 = vpop.f32.mrb[25].mxu1  ;;  %vm9906_vm10 = vnez %v9905_v52  ;;  %vm9908_vm11 = vnez %v9907_v56 }
 0x308   : > { %v5585_v35 = vadd.f32 %v5584_v34, %v5550_v8  ;;  %v5661_v46 = vadd.f32 %v5660_v10, %v5626_v2  ;;  %v6904_v39 = vadd.f32 %v9453_v44, %v3767_v22  ;;  %v6646_v51 = vpop.f32.mrb[26].mxu1  ;;  %v6028_v8 = vsel %vm9906_vm10, 1.0, %v7440_v42 }
 0x309   : > { %5718 = vst [vmem:[%s9382_s21 + $0xd0] sm:$0xff] %v6903_v13  ;;  %v6905_v0 = vadd.f32 %v9455_v63, %v6646_v51  ;;  %v3770_v37 = vpop.f32.mrb[27].mxu1  ;;  %v5554_v17 = vmul.f32 %v6903_v13, %v6023_v1  ;;  %v6026_v24 = vsel %vm9908_vm11, 1.0, %v7440_v42  ;;  %v6029_v51 = vsel %vm8865_vm9, 1.0, %v7440_v42 }
 0x30a   : > { %v5662_v14 = vadd.f32 %v5661_v46, %v5627_v32  ;;  %v5552_v45 = vmul.f32 %v6904_v39, %v6021_v49  ;;  %v5586_v28 = vadd.f32 %v5585_v35, %v5551_v18  ;;  %5716 = vst [vmem:[%s9382_s21 + $0xc0] sm:$0xff] %v6904_v39  ;;  %v6906_v44 = vadd.f32 %v9457_v12, %v3770_v37 }
 0x30b   : > { %5719 = vst [vmem:[%s9382_s21 + $0xd8] sm:$0xff] %v6905_v0  ;;  %v5555_v4 = vmul.f32 %v6905_v0, %v6024_v21  ;;  %v5631_v11 = vmul.f32 %v6903_v13, %v5554_v17  ;;  %v6031_v46 = vsel %vm8892_vm13, 1.0, %v7440_v42 }
 0x30c   : > { %v5587_v29 = vadd.f32 %v5586_v28, %v5552_v45  ;;  %v5629_v60 = vmul.f32 %v6904_v39, %v5552_v45  ;;  %v5663_v63 = vadd.f32 %v5662_v14, %v5628_v15  ;;  %v5553_v3 = vmul.f32 %v6906_v44, %v6022_v19  ;;  %5717 = vst [vmem:[%s9382_s21 + $0xc8] sm:$0xff] %v6906_v44 }
 0x30d   : > { %v5632_v33 = vmul.f32 %v6905_v0, %v5555_v4  ;;  %v6030_v45 = vsel %vm8876_vm15, 1.0, %v7440_v42 }
 0x30e   : > { %v5664_v9 = vadd.f32 %v5663_v63, %v5629_v60  ;;  %v5588_v7 = vadd.f32 %v5587_v29, %v5553_v3  ;;  %v5630_v20 = vmul.f32 %v6906_v44, %v5553_v3  ;;  %v6649_v5 = vpop.f32.mrb[28].mxu1  ;;  %v6032_v63 = vsel %vm8910_vm12, 1.0, %v7440_v42 }
 0x30f   : > { %v6907_v41 = vadd.f32 %v9459_v36, %v6649_v5  ;;  %v3783_v12 = vpop.f32.mrb[29].mxu1 }
 0x310   : > { %v5589_v62 = vadd.f32 %v5588_v7, %v5554_v17  ;;  %v5665_v31 = vadd.f32 %v5664_v9, %v5630_v20  ;;  %v6908_v30 = vadd.f32 %v9461_v16, %v3783_v12  ;;  %v6650_v58 = vpop.f32.mrb[30].mxu1 }
 0x311   : > { %5722 = vst [vmem:[%s9382_s21 + $0xf0] sm:$0xff] %v6907_v41  ;;  %v6909_v36 = vadd.f32 %v9463_v27, %v6650_v58  ;;  %v3786_v25 = vpop.f32.mrb[31].mxu1  ;;  %v5558_v34 = vmul.f32 %v6907_v41, %v6027_v26 }
 0x312   : > { %v5666_v38 = vadd.f32 %v5665_v31, %v5631_v11  ;;  %v5556_v18 = vmul.f32 %v6908_v30, %v6025_v23  ;;  %v5590_v10 = vadd.f32 %v5589_v62, %v5555_v4  ;;  %5720 = vst [vmem:[%s9382_s21 + $0xe0] sm:$0xff] %v6908_v30  ;;  %v6910_v16 = vadd.f32 %v9465_v47, %v3786_v25  ;;  %v9913_v25 = vld [vmem:[#allocation3_spill] sm:$0xff] }
 0x313   : > { %5723 = vst [vmem:[%s9382_s21 + $0xf8] sm:$0xff] %v6909_v36  ;;  %v5559_v6 = vmul.f32 %v6909_v36, %v6028_v8  ;;  %v5635_v15 = vmul.f32 %v6907_v41, %v5558_v34  ;;  %v5684_v56 = vsub.s32 0, %v9913_v25 }
 0x314   : > { %v5591_v2 = vadd.f32 %v5590_v10, %v5556_v18  ;;  %v5633_v61 = vmul.f32 %v6908_v30, %v5556_v18  ;;  %v5667_v27 = vadd.f32 %v5666_v38, %v5632_v33  ;;  %v5557_v13 = vmul.f32 %v6910_v16, %v6026_v24  ;;  %5721 = vst [vmem:[%s9382_s21 + $0xe8] sm:$0xff] %v6910_v16 }
 0x315   : > { %v5636_v59 = vmul.f32 %v6909_v36, %v5559_v6 }
 0x316   : > { %v5668_v1 = vadd.f32 %v5667_v27, %v5633_v61  ;;  %v5592_v22 = vadd.f32 %v5591_v2, %v5557_v13  ;;  %v5634_v57 = vmul.f32 %v6910_v16, %v5557_v13  ;;  %v6653_v49 = vpop.f32.mrb[32].mxu1 }
 0x317   : > { %v6911_v32 = vadd.f32 %v9482_v53, %v6653_v49  ;;  %v3799_v47 = vpop.f32.mrb[33].mxu1 }
 0x318   : > { %v5593_v0 = vadd.f32 %v5592_v22, %v5558_v34  ;;  %v5669_v43 = vadd.f32 %v5668_v1, %v5634_v57  ;;  %v6912_v21 = vadd.f32 %v9485_v50, %v3799_v47  ;;  %v6654_v37 = vpop.f32.mrb[34].mxu1 }
 0x319   : > { %5726 = vst [vmem:[%s9382_s21 + $0x110] sm:$0xff] %v6911_v32  ;;  %v6913_v53 = vadd.f32 %v9487_v40, %v6654_v37  ;;  %v3802_v19 = vpop.f32.mrb[35].mxu1  ;;  %v5562_v60 = vmul.f32 %v6911_v32, %v6031_v46 }
 0x31a   : > { %v5670_v28 = vadd.f32 %v5669_v43, %v5635_v15  ;;  %v5560_v44 = vmul.f32 %v6912_v21, %v6029_v51  ;;  %v5594_v17 = vadd.f32 %v5593_v0, %v5559_v6  ;;  %5724 = vst [vmem:[%s9382_s21 + $0x100] sm:$0xff] %v6912_v21  ;;  %v6914_v29 = vadd.f32 %v9489_v48, %v3802_v19 }
 0x31b   : > { %5727 = vst [vmem:[%s9382_s21 + $0x118] sm:$0xff] %v6913_v53  ;;  %v5563_v20 = vmul.f32 %v6913_v53, %v6032_v63  ;;  %v5639_v54 = vmul.f32 %v6911_v32, %v5562_v60 }
 0x31c   : > { %v5595_v3 = vadd.f32 %v5594_v17, %v5560_v44  ;;  %v5637_v4 = vmul.f32 %v6912_v21, %v5560_v44  ;;  %v5671_v40 = vadd.f32 %v5670_v28, %v5636_v59  ;;  %v5561_v9 = vmul.f32 %v6914_v29, %v6030_v45  ;;  %5725 = vst [vmem:[%s9382_s21 + $0x108] sm:$0xff] %v6914_v29 }
 0x31d   : > { %v5640_v48 = vmul.f32 %v6913_v53, %v5563_v20 }
 0x31e   : > { %v5672_v7 = vadd.f32 %v5671_v40, %v5637_v4  ;;  %v5596_v5 = vadd.f32 %v5595_v3, %v5561_v9  ;;  %v5638_v41 = vmul.f32 %v6914_v29, %v5561_v9 }
 0x320   : > { %v5597_v26 = vadd.f32 %v5596_v5, %v5562_v60  ;;  %v5673_v12 = vadd.f32 %v5672_v7, %v5638_v41 }
 0x322   : > { %v5598_v55 = vadd.f32 %v5597_v26, %v5563_v20  ;;  %v5674_v23 = vadd.f32 %v5673_v12, %v5639_v54 }
 0x324   : > { %v5599_v11 = vrot.slane %v5598_v55, 4  ;;  %v5675_v62 = vadd.f32 %v5674_v23, %v5640_v48 }
 0x326   : > { %v5600_v42 = vadd.f32 %v5599_v11, %v5598_v55  ;;  %v5676_v31 = vrot.slane %v5675_v62, 4 }
 0x328   : > { %v5601_v30 = vrot.slane %v5600_v42, 2  ;;  %v5677_v58 = vadd.f32 %v5676_v31, %v5675_v62 }
 0x32a   : > { %v5602_v33 = vadd.f32 %v5601_v30, %v5600_v42  ;;  %v5678_v36 = vrot.slane %v5677_v58, 2 }
 0x32c   : > { %v5603_v52 = vrot.slane %v5602_v33, 1  ;;  %v5679_v8 = vadd.f32 %v5678_v36, %v5677_v58 }
 0x32e   : > { %v5604_v24 = vadd.f32 %v5603_v52, %v5602_v33  ;;  %v5680_v38 = vrot.slane %v5679_v8, 1 }
 0x330   : > { %v5681_v18 = vadd.f32 %v5680_v38, %v5679_v8  ;;  %v5685_v10 = vrot.slane %v5604_v24, %v5684_v56 }
 0x332   : > { %v5689_v16 = vrot.slane %v5681_v18, %v5684_v56  ;;  %5690 = vst [vmem:[%s237_s25] sm:$0xff] %v5685_v10 }
 0x334   : > { %5691 = vst [vmem:[%s237_s25 + $0x8] sm:$0xff] %v5689_v16 }
 0x335 PF: > { %s16_s18 = sadd.s32 1, %s7437_s18  }
 0x336   : > { %p13_p4 = scmp.ge.s32.totalorder %s16_s18, 4  }
 0x338   :  { %15 = sbr.rel (!%p13_p4) target bundleno = 1 (0x1), region = 78 }

</bundles_post_ra>
